<compile_context>
chip_gen: v7x
topology: tpu7x:2x2x1
jax: 0.10.0
libtpu: 0.0.40
codegen_flags: <defaults>
</compile_context>

<pallas_src>
import math
from functools import lru_cache, partial

import numpy as np
import jax
import jax.numpy as jnp
from jax import lax
from jax.experimental import pallas as pl
from jax.experimental.pallas import tpu as pltpu

ACT_DTYPE = jnp.bfloat16       # dtype of the kernel's HBM outputs
COMPUTE_DTYPE = jnp.bfloat16   # MXU operand dtype (f32 accumulation/epilogue)
_LANE = 128


def _round_up(n, m):
    return -(-n // m) * m


# ------------------------------------------------------------------
# Static host-side lookup tables (cached per (N, H, W))
# ------------------------------------------------------------------
@lru_cache(maxsize=None)
def _tap_masks(N, H, W):
    """[9, 1, Mp] f32 validity mask per 3x3 tap over the flattened (n,h,w) axis."""
    M = N * H * W
    Mp = _round_up(M, _LANE)
    idx = np.arange(M)
    w = idx % W
    h = (idx // W) % H
    masks = np.zeros((9, 1, Mp), np.float32)
    t = 0
    for dh in (-1, 0, 1):
        for dw in (-1, 0, 1):
            valid = ((h + dh) >= 0) & ((h + dh) < H) & ((w + dw) >= 0) & ((w + dw) < W)
            masks[t, 0, :M] = valid
            t += 1
    return jnp.asarray(masks)


@lru_cache(maxsize=None)
def _downsample_matrix(N, H, W):
    """[Mp_in, Mp_out] f32 selection matrix implementing stride-2 subsampling."""
    Ho, Wo = H // 2, W // 2
    Mi, Mo = N * H * W, N * Ho * Wo
    S = np.zeros((_round_up(Mi, _LANE), _round_up(Mo, _LANE)), np.float32)
    for n in range(N):
        for ho in range(Ho):
            for wo in range(Wo):
                S[(n * H + 2 * ho) * W + 2 * wo, (n * Ho + ho) * Wo + wo] = 1.0
    return jnp.asarray(S)


def _vmem_spec():
    return pl.BlockSpec(memory_space=pltpu.MemorySpace.VMEM)


# ------------------------------------------------------------------
# In-kernel 3x3 conv in channels-major [C, M] layout
# ------------------------------------------------------------------
def _conv3x3_cm(x_f32, w_ref, mask_ref, W):
    """x_f32: [Cin, Mp] f32.  w_ref: [9, Cout, Cin] (BN scale folded, bf16).
    mask_ref: [9, 1, Mp] f32 per-tap validity.  Returns [Cout, Mp] f32."""
    Mp = x_f32.shape[1]
    acc = None
    t = 0
    for dh in (-1, 0, 1):
        for dw in (-1, 0, 1):
            shift = dh * W + dw           # source flat offset for this tap
            if shift == 0:
                xs = x_f32
            else:
                # xs[m] = x[(m + shift) mod Mp]; out-of-image taps are masked.
                xs = pltpu.roll(x_f32, shift=(-shift) % Mp, axis=1)
            xs = (xs * mask_ref[t]).astype(COMPUTE_DTYPE)
            part = jnp.dot(w_ref[t], xs, preferred_element_type=jnp.float32)
            acc = part if acc is None else acc + part
            t += 1
    return acc


# ------------------------------------------------------------------
# Single fused encoder kernel (stem + all BasicBlocks, VMEM-resident)
# ------------------------------------------------------------------
def _encoder_kernel(*refs, plan):
    n_masks = plan["n_masks"]
    n_ds = plan["n_ds"]
    blocks = plan["blocks"]

    idx = 0
    x_ref = refs[idx]; idx += 1
    mask_refs = refs[idx:idx + n_masks]; idx += n_masks
    ds_refs = refs[idx:idx + n_ds]; idx += n_ds
    stem_w_ref, stem_b_ref = refs[idx], refs[idx + 1]; idx += 2
    blk_refs = []
    for b in blocks:
        n = 6 if b["has_sc"] else 4
        blk_refs.append(refs[idx:idx + n]); idx += n
    o_l4_ref, o_l3_ref, o_l2_ref = refs[idx], refs[idx + 1], refs[idx + 2]

    # ---- stem: conv3x3 (+ folded bn1 scale) -> bias -> relu ----
    h = _conv3x3_cm(x_ref[...].astype(jnp.float32), stem_w_ref,
                    mask_refs[plan["stem_mask"]], plan["stem_W"])
    h = jnp.maximum(h + stem_b_ref[...], 0.0)

    # ---- BasicBlocks, everything resident in VMEM/vregs ----
    for bi, (b, br) in enumerate(zip(blocks, blk_refs)):
        w1_ref, b1_ref, w2_ref, b2_ref = br[:4]
        x_in = h                                                   # [Cin, Mp_in]

        # conv1 (+folded bn1) -> optional stride-2 subsample -> bias -> relu
        y = _conv3x3_cm(x_in, w1_ref, mask_refs[b["mask_in"]], b["W_in"])
        if b["stride"] == 2:
            y = jnp.dot(y, ds_refs[b["ds_idx"]][...],
                        preferred_element_type=jnp.float32)
        y = jnp.maximum(y + b1_ref[...], 0.0)                      # [Cout, Mp_out]

        # conv2 (+folded bn2)
        z = _conv3x3_cm(y, w2_ref, mask_refs[b["mask_out"]], b["W_out"])

        # shortcut branch
        if b["has_sc"]:
            wsc_ref, bsc_ref = br[4], br[5]
            x_sc = x_in
            if b["stride"] == 2:
                x_sc = jnp.dot(x_sc, ds_refs[b["ds_idx"]][...],
                               preferred_element_type=jnp.float32)
            sc = jnp.dot(wsc_ref[...], x_sc.astype(COMPUTE_DTYPE),
                         preferred_element_type=jnp.float32) + bsc_ref[...]
        else:
            sc = x_in                                              # identity

        h = jnp.maximum(z + b2_ref[...] + sc, 0.0)                 # f32 epilogue

        if bi == plan["tap_l2"]:
            o_l2_ref[...] = h.astype(o_l2_ref.dtype)
        if bi == plan["tap_l3"]:
            o_l3_ref[...] = h.astype(o_l3_ref.dtype)
    o_l4_ref[...] = h.astype(o_l4_ref.dtype)


# ------------------------------------------------------------------
# Wrapper: builds the static plan + flat ref list, one pallas_call total
# ------------------------------------------------------------------
def _to_cm(x_nchw):
    N, C, H, W = x_nchw.shape
    M = N * H * W
    Mp = _round_up(M, _LANE)
    x = jnp.transpose(x_nchw, (1, 0, 2, 3)).reshape(C, M)
    if Mp != M:
        x = jnp.pad(x, ((0, 0), (0, Mp - M)))
    return x.astype(ACT_DTYPE)


def _from_cm(x_cm, N, H, W):
    C = x_cm.shape[0]
    M = N * H * W
    return jnp.transpose(x_cm[:, :M].reshape(C, N, H, W), (1, 0, 2, 3)).astype(jnp.float32)


def resnet_encoder_forward(params, x_nchw):
    N, _, H, W = x_nchw.shape
    x_cm = _to_cm(x_nchw)

    mask_keys, mask_arrays = [], []
    ds_keys, ds_arrays = [], []

    def mask_idx(h, w):
        key = (h, w)
        if key not in mask_keys:
            mask_keys.append(key)
            mask_arrays.append(_tap_masks(N, h, w))
        return mask_keys.index(key)

    def ds_idx(h, w):
        key = (h, w)
        if key not in ds_keys:
            ds_keys.append(key)
            ds_arrays.append(_downsample_matrix(N, h, w))
        return ds_keys.index(key)

    stem_mask = mask_idx(H, W)
    blocks_plan, blk_args = [], []
    taps = {}
    h_cur, w_cur = H, W
    bi = 0
    for name in ("layer1", "layer2", "layer3", "layer4"):
        layer = params[name]
        assert layer, "each layer must contain at least one BasicBlock"
        for blk in layer:
            stride = blk["stride"]
            has_sc = blk["wsc"] is not None
            assert stride == 1 or has_sc
            h_out, w_out = h_cur // stride, w_cur // stride
            blocks_plan.append(dict(
                stride=stride, has_sc=has_sc, W_in=w_cur, W_out=w_out,
                mask_in=mask_idx(h_cur, w_cur), mask_out=mask_idx(h_out, w_out),
                ds_idx=ds_idx(h_cur, w_cur) if stride == 2 else -1))
            blk_args += [blk["w1"], blk["b1"], blk["w2"], blk["b2"]]
            if has_sc:
                blk_args += [blk["wsc"], blk["bsc"]]
            h_cur, w_cur = h_out, w_out
            bi += 1
        taps[name] = (bi - 1, layer[-1]["w1"].shape[1], h_cur, w_cur)

    plan = dict(n_masks=len(mask_arrays), n_ds=len(ds_arrays),
                stem_W=W, stem_mask=stem_mask, blocks=blocks_plan,
                tap_l2=taps["layer2"][0], tap_l3=taps["layer3"][0])

    def out_struct(tap):
        _, c, h, w = tap
        return jax.ShapeDtypeStruct((c, _round_up(N * h * w, _LANE)), ACT_DTYPE)

    flat_inputs = ([x_cm] + mask_arrays + ds_arrays
                   + [params["stem_w"], params["stem_b"]] + blk_args)

    out_l4, out_l3, out_l2 = pl.pallas_call(
        partial(_encoder_kernel, plan=plan),
        out_shape=(out_struct(taps["layer4"]),
                   out_struct(taps["layer3"]),
                   out_struct(taps["layer2"])),
        in_specs=[_vmem_spec()] * len(flat_inputs),
        out_specs=(_vmem_spec(), _vmem_spec(), _vmem_spec()),
    )(*flat_inputs)

    _, _, h4, w4 = taps["layer4"]
    _, _, h3, w3 = taps["layer3"]
    _, _, h2, w2 = taps["layer2"]
    return (_from_cm(out_l4, N, h4, w4),
            _from_cm(out_l3, N, h3, w3),
            _from_cm(out_l2, N, h2, w2))


# ------------------------------------------------------------------
# Deterministic parameter init (torch layout) + one-time kernel-layout prep
# ------------------------------------------------------------------
def _init_conv(key, cout, cin, kh, kw):
    std = 1.0 / math.sqrt(cin * kh * kw)
    return (std * jax.random.normal(key, (cout, cin, kh, kw))).astype(jnp.float32)


def _init_bn(key, c, eps=1e-5):
    k1, k2, k3, k4 = jax.random.split(key, 4)
    gamma = 1.0 + 0.1 * jax.random.normal(k1, (c,))
    beta = 0.1 * jax.random.normal(k2, (c,))
    mean = 0.1 * jax.random.normal(k3, (c,))
    var = 1.0 + 0.1 * jax.random.uniform(k4, (c,))
    scale = gamma / jnp.sqrt(var + eps)
    bias = beta - mean * scale
    return scale.astype(jnp.float32), bias.astype(jnp.float32)


def init_resnet_encoder_raw(key, num_blocks, k):
    params = {}
    key, kc, kb = jax.random.split(key, 3)
    params["conv1_w"] = _init_conv(kc, k, 3, 3, 3)
    params["bn1"] = _init_bn(kb, k)
    in_ch = k

    def make_layer(key, out_ch, nb, stride, in_ch):
        layers = []
        for s in [stride] + [1] * (nb - 1):
            key, kc1, kb1, kc2, kb2, ksc, kbs = jax.random.split(key, 7)
            blk = {"stride": s,
                   "conv1_w": _init_conv(kc1, out_ch, in_ch, 3, 3),
                   "bn1": _init_bn(kb1, out_ch),
                   "conv2_w": _init_conv(kc2, out_ch, out_ch, 3, 3),
                   "bn2": _init_bn(kb2, out_ch)}
            if s != 1 or in_ch != out_ch:
                blk["shortcut"] = {"w": _init_conv(ksc, out_ch, in_ch, 1, 1),
                                   "bn": _init_bn(kbs, out_ch)}
            else:
                blk["shortcut"] = None
            layers.append(blk)
            in_ch = out_ch
        return layers, in_ch, key

    params["layer1"], in_ch, key = make_layer(key, k, num_blocks[0], 1, in_ch)
    params["layer2"], in_ch, key = make_layer(key, k * 2, num_blocks[1], 2, in_ch)
    params["layer3"], in_ch, key = make_layer(key, k * 4, num_blocks[2], 2, in_ch)
    params["layer4"], in_ch, key = make_layer(key, k * 8, num_blocks[3], 2, in_ch)
    return params


def _fold3x3(w, scale):
    # torch [Cout,Cin,3,3] -> [9, Cout, Cin] (tap-major), BN scale folded in.
    w = w * scale[:, None, None, None]
    cout, cin = w.shape[0], w.shape[1]
    return jnp.transpose(w, (2, 3, 0, 1)).reshape(9, cout, cin).astype(COMPUTE_DTYPE)


def _fold1x1(w, scale):
    return (w[:, :, 0, 0] * scale[:, None]).astype(COMPUTE_DTYPE)


def _bias_col(b):
    return b.reshape(-1, 1).astype(jnp.float32)


def prepare_params(raw):
    """One-time conversion to the kernel layout (BN scale folded into weights)."""
    prep = {"stem_w": _fold3x3(raw["conv1_w"], raw["bn1"][0]),
            "stem_b": _bias_col(raw["bn1"][1])}
    for name in ("layer1", "layer2", "layer3", "layer4"):
        layer = []
        for blk in raw[name]:
            p = {"stride": blk["stride"],
                 "w1": _fold3x3(blk["conv1_w"], blk["bn1"][0]),
                 "b1": _bias_col(blk["bn1"][1]),
                 "w2": _fold3x3(blk["conv2_w"], blk["bn2"][0]),
                 "b2": _bias_col(blk["bn2"][1])}
            if blk["shortcut"] is not None:
                p["wsc"] = _fold1x1(blk["shortcut"]["w"], blk["shortcut"]["bn"][0])
                p["bsc"] = _bias_col(blk["shortcut"]["bn"][1])
            else:
                p["wsc"] = None
                p["bsc"] = None
            layer.append(p)
        prep[name] = layer
    return prep


# ------------------------------------------------------------------
# Plain-JAX reference (same inference-form BN) for a sanity check
# ------------------------------------------------------------------
def _ref_conv(x, w, stride, pad):
    return lax.conv_general_dilated(
        x, w, (stride, stride), [(pad, pad), (pad, pad)],
        dimension_numbers=("NCHW", "OIHW", "NCHW"),
        precision=lax.Precision.HIGHEST)


def _ref_bn(x, sb):
    s, b = sb
    return x * s[None, :, None, None] + b[None, :, None, None]


def _ref_block(x, blk):
    out = jax.nn.relu(_ref_bn(_ref_conv(x, blk["conv1_w"], blk["stride"], 1), blk["bn1"]))
    out = _ref_bn(_ref_conv(out, blk["conv2_w"], 1, 1), blk["bn2"])
    if blk["shortcut"] is None:
        sc = x
    else:
        sc = _ref_bn(_ref_conv(x, blk["shortcut"]["w"], blk["stride"], 0),
                     blk["shortcut"]["bn"])
    return jax.nn.relu(out + sc)


def ref_forward(raw, x):
    out = jax.nn.relu(_ref_bn(_ref_conv(x, raw["conv1_w"], 1, 1), raw["bn1"]))
    for blk in raw["layer1"]:
        out = _ref_block(out, blk)
    for blk in raw["layer2"]:
        out = _ref_block(out, blk)
    third = out
    for blk in raw["layer3"]:
        out = _ref_block(out, blk)
    second = out
    for blk in raw["layer4"]:
        out = _ref_block(out, blk)
    return out, second, third


# ------------------------------------------------------------------
if __name__ == "__main__":
    key = jax.random.PRNGKey(0)
    key, kp, kx = jax.random.split(key, 3)

    num_blocks = [1, 1, 1, 1]
    k = 8
    raw = init_resnet_encoder_raw(kp, num_blocks, k)
    params = prepare_params(raw)            # one-time layout / BN-fold prep

    # Input (NCHW, matching the PyTorch module): batch=2, channels=3, 16x16
    x = jax.random.normal(kx, (2, 3, 16, 16), dtype=jnp.float32)

    fwd = jax.jit(partial(resnet_encoder_forward, params))
    out, second_last, third_last = fwd(x)
    jax.block_until_ready((out, second_last, third_last))

    assert out.shape == (2, 8 * k, 2, 2), out.shape
    assert second_last.shape == (2, 4 * k, 4, 4), second_last.shape
    assert third_last.shape == (2, 2 * k, 8, 8), third_last.shape
    assert bool(jnp.all(jnp.isfinite(out)))

    # Loose-tolerance check vs the XLA reference (Pallas path uses bf16 MXU
    # operands and bf16 HBM outputs by design).
    ref_out, ref_second, ref_third = ref_forward(raw, x)
    for got, want in ((out, ref_out), (second_last, ref_second),
                      (third_last, ref_third)):
        err = float(jnp.max(jnp.abs(got - want)))
        ref_scale = max(1.0, float(jnp.max(jnp.abs(want))))
        assert err <= 0.15 * ref_scale, (err, ref_scale)

    print("KERNEL_OK")
</pallas_src>

<mosaic_0001>
module attributes {stable_mosaic.version = 11 : i64} {
  func.func @_encoder_kernel(%arg0: memref<3x512xbf16, #tpu.memory_space<vmem>>, %arg1: memref<9x1x512xf32, #tpu.memory_space<vmem>>, %arg2: memref<9x1x128xf32, #tpu.memory_space<vmem>>, %arg3: memref<9x1x128xf32, #tpu.memory_space<vmem>>, %arg4: memref<9x1x128xf32, #tpu.memory_space<vmem>>, %arg5: memref<512x128xf32, #tpu.memory_space<vmem>>, %arg6: memref<128x128xf32, #tpu.memory_space<vmem>>, %arg7: memref<128x128xf32, #tpu.memory_space<vmem>>, %arg8: memref<9x8x3xbf16, #tpu.memory_space<vmem>>, %arg9: memref<8x1xf32, #tpu.memory_space<vmem>>, %arg10: memref<9x8x8xbf16, #tpu.memory_space<vmem>>, %arg11: memref<8x1xf32, #tpu.memory_space<vmem>>, %arg12: memref<9x8x8xbf16, #tpu.memory_space<vmem>>, %arg13: memref<8x1xf32, #tpu.memory_space<vmem>>, %arg14: memref<9x16x8xbf16, #tpu.memory_space<vmem>>, %arg15: memref<16x1xf32, #tpu.memory_space<vmem>>, %arg16: memref<9x16x16xbf16, #tpu.memory_space<vmem>>, %arg17: memref<16x1xf32, #tpu.memory_space<vmem>>, %arg18: memref<16x8xbf16, #tpu.memory_space<vmem>>, %arg19: memref<16x1xf32, #tpu.memory_space<vmem>>, %arg20: memref<9x32x16xbf16, #tpu.memory_space<vmem>>, %arg21: memref<32x1xf32, #tpu.memory_space<vmem>>, %arg22: memref<9x32x32xbf16, #tpu.memory_space<vmem>>, %arg23: memref<32x1xf32, #tpu.memory_space<vmem>>, %arg24: memref<32x16xbf16, #tpu.memory_space<vmem>>, %arg25: memref<32x1xf32, #tpu.memory_space<vmem>>, %arg26: memref<9x64x32xbf16, #tpu.memory_space<vmem>>, %arg27: memref<64x1xf32, #tpu.memory_space<vmem>>, %arg28: memref<9x64x64xbf16, #tpu.memory_space<vmem>>, %arg29: memref<64x1xf32, #tpu.memory_space<vmem>>, %arg30: memref<64x32xbf16, #tpu.memory_space<vmem>>, %arg31: memref<64x1xf32, #tpu.memory_space<vmem>>, %arg32: memref<64x128xbf16, #tpu.memory_space<vmem>>, %arg33: memref<32x128xbf16, #tpu.memory_space<vmem>>, %arg34: memref<16x128xbf16, #tpu.memory_space<vmem>>) attributes {dimension_semantics = [], scalar_prefetch = 0 : i64, scratch_operands = 0 : i64, tpu.core_type = #tpu.core_type<tc>} {
    %c0 = arith.constant 0 : index
    %c0_0 = arith.constant 0 : index
    %0 = vector.load %arg0[%c0, %c0_0] : memref<3x512xbf16, #tpu.memory_space<vmem>>, vector<3x512xbf16>
    %1 = arith.extf %0 : vector<3x512xbf16> to vector<3x512xf32>
    %c17_i32 = arith.constant 17 : i32
    %2 = tpu.dynamic_rotate %1 by %c17_i32 dim 1 : vector<3x512xf32>, i32 -> vector<3x512xf32>
    %c0_1 = arith.constant 0 : index
    %c0_2 = arith.constant 0 : index
    %c0_3 = arith.constant 0 : index
    %3 = vector.load %arg1[%c0_1, %c0_2, %c0_3] : memref<9x1x512xf32, #tpu.memory_space<vmem>>, vector<1x1x512xf32>
    %4 = vector.shape_cast %3 : vector<1x1x512xf32> to vector<1x512xf32>
    %5 = vector.broadcast %4 : vector<1x512xf32> to vector<3x512xf32>
    %6 = arith.mulf %2, %5 : vector<3x512xf32>
    %7 = arith.truncf %6 : vector<3x512xf32> to vector<3x512xbf16>
    %c0_4 = arith.constant 0 : index
    %c0_5 = arith.constant 0 : index
    %c0_6 = arith.constant 0 : index
    %8 = vector.load %arg8[%c0_4, %c0_5, %c0_6] : memref<9x8x3xbf16, #tpu.memory_space<vmem>>, vector<1x8x3xbf16>
    %9 = vector.shape_cast %8 : vector<1x8x3xbf16> to vector<8x3xbf16>
    %cst = arith.constant dense<0.000000e+00> : vector<8x512xf32>
    %10 = tpu.matmul %9, %7, %cst {dimension_numbers = #tpu.dot_dimension_numbers<[1], [0], [0], [1], [0, 0, 1, 1], [], []>} : vector<8x3xbf16>, vector<3x512xbf16>, vector<8x512xf32> -> vector<8x512xf32>
    %c16_i32 = arith.constant 16 : i32
    %11 = tpu.dynamic_rotate %1 by %c16_i32 dim 1 : vector<3x512xf32>, i32 -> vector<3x512xf32>
    %c1 = arith.constant 1 : index
    %c0_7 = arith.constant 0 : index
    %c0_8 = arith.constant 0 : index
    %12 = vector.load %arg1[%c1, %c0_7, %c0_8] : memref<9x1x512xf32, #tpu.memory_space<vmem>>, vector<1x1x512xf32>
    %13 = vector.shape_cast %12 : vector<1x1x512xf32> to vector<1x512xf32>
    %14 = vector.broadcast %13 : vector<1x512xf32> to vector<3x512xf32>
    %15 = arith.mulf %11, %14 : vector<3x512xf32>
    %16 = arith.truncf %15 : vector<3x512xf32> to vector<3x512xbf16>
    %c1_9 = arith.constant 1 : index
    %c0_10 = arith.constant 0 : index
    %c0_11 = arith.constant 0 : index
    %17 = vector.load %arg8[%c1_9, %c0_10, %c0_11] : memref<9x8x3xbf16, #tpu.memory_space<vmem>>, vector<1x8x3xbf16>
    %18 = vector.shape_cast %17 : vector<1x8x3xbf16> to vector<8x3xbf16>
    %cst_12 = arith.constant dense<0.000000e+00> : vector<8x512xf32>
    %19 = tpu.matmul %18, %16, %cst_12 {dimension_numbers = #tpu.dot_dimension_numbers<[1], [0], [0], [1], [0, 0, 1, 1], [], []>} : vector<8x3xbf16>, vector<3x512xbf16>, vector<8x512xf32> -> vector<8x512xf32>
    %20 = arith.addf %10, %19 : vector<8x512xf32>
    %c15_i32 = arith.constant 15 : i32
    %21 = tpu.dynamic_rotate %1 by %c15_i32 dim 1 : vector<3x512xf32>, i32 -> vector<3x512xf32>
    %c2 = arith.constant 2 : index
    %c0_13 = arith.constant 0 : index
    %c0_14 = arith.constant 0 : index
    %22 = vector.load %arg1[%c2, %c0_13, %c0_14] : memref<9x1x512xf32, #tpu.memory_space<vmem>>, vector<1x1x512xf32>
    %23 = vector.shape_cast %22 : vector<1x1x512xf32> to vector<1x512xf32>
    %24 = vector.broadcast %23 : vector<1x512xf32> to vector<3x512xf32>
    %25 = arith.mulf %21, %24 : vector<3x512xf32>
    %26 = arith.truncf %25 : vector<3x512xf32> to vector<3x512xbf16>
    %c2_15 = arith.constant 2 : index
    %c0_16 = arith.constant 0 : index
    %c0_17 = arith.constant 0 : index
    %27 = vector.load %arg8[%c2_15, %c0_16, %c0_17] : memref<9x8x3xbf16, #tpu.memory_space<vmem>>, vector<1x8x3xbf16>
    %28 = vector.shape_cast %27 : vector<1x8x3xbf16> to vector<8x3xbf16>
    %cst_18 = arith.constant dense<0.000000e+00> : vector<8x512xf32>
    %29 = tpu.matmul %28, %26, %cst_18 {dimension_numbers = #tpu.dot_dimension_numbers<[1], [0], [0], [1], [0, 0, 1, 1], [], []>} : vector<8x3xbf16>, vector<3x512xbf16>, vector<8x512xf32> -> vector<8x512xf32>
    %30 = arith.addf %20, %29 : vector<8x512xf32>
    %c1_i32 = arith.constant 1 : i32
    %31 = tpu.dynamic_rotate %1 by %c1_i32 dim 1 : vector<3x512xf32>, i32 -> vector<3x512xf32>
    %c3 = arith.constant 3 : index
    %c0_19 = arith.constant 0 : index
    %c0_20 = arith.constant 0 : index
    %32 = vector.load %arg1[%c3, %c0_19, %c0_20] : memref<9x1x512xf32, #tpu.memory_space<vmem>>, vector<1x1x512xf32>
    %33 = vector.shape_cast %32 : vector<1x1x512xf32> to vector<1x512xf32>
    %34 = vector.broadcast %33 : vector<1x512xf32> to vector<3x512xf32>
    %35 = arith.mulf %31, %34 : vector<3x512xf32>
    %36 = arith.truncf %35 : vector<3x512xf32> to vector<3x512xbf16>
    %c3_21 = arith.constant 3 : index
    %c0_22 = arith.constant 0 : index
    %c0_23 = arith.constant 0 : index
    %37 = vector.load %arg8[%c3_21, %c0_22, %c0_23] : memref<9x8x3xbf16, #tpu.memory_space<vmem>>, vector<1x8x3xbf16>
    %38 = vector.shape_cast %37 : vector<1x8x3xbf16> to vector<8x3xbf16>
    %cst_24 = arith.constant dense<0.000000e+00> : vector<8x512xf32>
    %39 = tpu.matmul %38, %36, %cst_24 {dimension_numbers = #tpu.dot_dimension_numbers<[1], [0], [0], [1], [0, 0, 1, 1], [], []>} : vector<8x3xbf16>, vector<3x512xbf16>, vector<8x512xf32> -> vector<8x512xf32>
    %40 = arith.addf %30, %39 : vector<8x512xf32>
    %c4 = arith.constant 4 : index
    %c0_25 = arith.constant 0 : index
    %c0_26 = arith.constant 0 : index
    %41 = vector.load %arg1[%c4, %c0_25, %c0_26] : memref<9x1x512xf32, #tpu.memory_space<vmem>>, vector<1x1x512xf32>
    %42 = vector.shape_cast %41 : vector<1x1x512xf32> to vector<1x512xf32>
    %43 = vector.broadcast %42 : vector<1x512xf32> to vector<3x512xf32>
    %44 = arith.mulf %1, %43 : vector<3x512xf32>
    %45 = arith.truncf %44 : vector<3x512xf32> to vector<3x512xbf16>
    %c4_27 = arith.constant 4 : index
    %c0_28 = arith.constant 0 : index
    %c0_29 = arith.constant 0 : index
    %46 = vector.load %arg8[%c4_27, %c0_28, %c0_29] : memref<9x8x3xbf16, #tpu.memory_space<vmem>>, vector<1x8x3xbf16>
    %47 = vector.shape_cast %46 : vector<1x8x3xbf16> to vector<8x3xbf16>
    %cst_30 = arith.constant dense<0.000000e+00> : vector<8x512xf32>
    %48 = tpu.matmul %47, %45, %cst_30 {dimension_numbers = #tpu.dot_dimension_numbers<[1], [0], [0], [1], [0, 0, 1, 1], [], []>} : vector<8x3xbf16>, vector<3x512xbf16>, vector<8x512xf32> -> vector<8x512xf32>
    %49 = arith.addf %40, %48 : vector<8x512xf32>
    %c511_i32 = arith.constant 511 : i32
    %50 = tpu.dynamic_rotate %1 by %c511_i32 dim 1 : vector<3x512xf32>, i32 -> vector<3x512xf32>
    %c5 = arith.constant 5 : index
    %c0_31 = arith.constant 0 : index
    %c0_32 = arith.constant 0 : index
    %51 = vector.load %arg1[%c5, %c0_31, %c0_32] : memref<9x1x512xf32, #tpu.memory_space<vmem>>, vector<1x1x512xf32>
    %52 = vector.shape_cast %51 : vector<1x1x512xf32> to vector<1x512xf32>
    %53 = vector.broadcast %52 : vector<1x512xf32> to vector<3x512xf32>
    %54 = arith.mulf %50, %53 : vector<3x512xf32>
    %55 = arith.truncf %54 : vector<3x512xf32> to vector<3x512xbf16>
    %c5_33 = arith.constant 5 : index
    %c0_34 = arith.constant 0 : index
    %c0_35 = arith.constant 0 : index
    %56 = vector.load %arg8[%c5_33, %c0_34, %c0_35] : memref<9x8x3xbf16, #tpu.memory_space<vmem>>, vector<1x8x3xbf16>
    %57 = vector.shape_cast %56 : vector<1x8x3xbf16> to vector<8x3xbf16>
    %cst_36 = arith.constant dense<0.000000e+00> : vector<8x512xf32>
    %58 = tpu.matmul %57, %55, %cst_36 {dimension_numbers = #tpu.dot_dimension_numbers<[1], [0], [0], [1], [0, 0, 1, 1], [], []>} : vector<8x3xbf16>, vector<3x512xbf16>, vector<8x512xf32> -> vector<8x512xf32>
    %59 = arith.addf %49, %58 : vector<8x512xf32>
    %c497_i32 = arith.constant 497 : i32
    %60 = tpu.dynamic_rotate %1 by %c497_i32 dim 1 : vector<3x512xf32>, i32 -> vector<3x512xf32>
    %c6 = arith.constant 6 : index
    %c0_37 = arith.constant 0 : index
    %c0_38 = arith.constant 0 : index
    %61 = vector.load %arg1[%c6, %c0_37, %c0_38] : memref<9x1x512xf32, #tpu.memory_space<vmem>>, vector<1x1x512xf32>
    %62 = vector.shape_cast %61 : vector<1x1x512xf32> to vector<1x512xf32>
    %63 = vector.broadcast %62 : vector<1x512xf32> to vector<3x512xf32>
    %64 = arith.mulf %60, %63 : vector<3x512xf32>
    %65 = arith.truncf %64 : vector<3x512xf32> to vector<3x512xbf16>
    %c6_39 = arith.constant 6 : index
    %c0_40 = arith.constant 0 : index
    %c0_41 = arith.constant 0 : index
    %66 = vector.load %arg8[%c6_39, %c0_40, %c0_41] : memref<9x8x3xbf16, #tpu.memory_space<vmem>>, vector<1x8x3xbf16>
    %67 = vector.shape_cast %66 : vector<1x8x3xbf16> to vector<8x3xbf16>
    %cst_42 = arith.constant dense<0.000000e+00> : vector<8x512xf32>
    %68 = tpu.matmul %67, %65, %cst_42 {dimension_numbers = #tpu.dot_dimension_numbers<[1], [0], [0], [1], [0, 0, 1, 1], [], []>} : vector<8x3xbf16>, vector<3x512xbf16>, vector<8x512xf32> -> vector<8x512xf32>
    %69 = arith.addf %59, %68 : vector<8x512xf32>
    %c496_i32 = arith.constant 496 : i32
    %70 = tpu.dynamic_rotate %1 by %c496_i32 dim 1 : vector<3x512xf32>, i32 -> vector<3x512xf32>
    %c7 = arith.constant 7 : index
    %c0_43 = arith.constant 0 : index
    %c0_44 = arith.constant 0 : index
    %71 = vector.load %arg1[%c7, %c0_43, %c0_44] : memref<9x1x512xf32, #tpu.memory_space<vmem>>, vector<1x1x512xf32>
    %72 = vector.shape_cast %71 : vector<1x1x512xf32> to vector<1x512xf32>
    %73 = vector.broadcast %72 : vector<1x512xf32> to vector<3x512xf32>
    %74 = arith.mulf %70, %73 : vector<3x512xf32>
    %75 = arith.truncf %74 : vector<3x512xf32> to vector<3x512xbf16>
    %c7_45 = arith.constant 7 : index
    %c0_46 = arith.constant 0 : index
    %c0_47 = arith.constant 0 : index
    %76 = vector.load %arg8[%c7_45, %c0_46, %c0_47] : memref<9x8x3xbf16, #tpu.memory_space<vmem>>, vector<1x8x3xbf16>
    %77 = vector.shape_cast %76 : vector<1x8x3xbf16> to vector<8x3xbf16>
    %cst_48 = arith.constant dense<0.000000e+00> : vector<8x512xf32>
    %78 = tpu.matmul %77, %75, %cst_48 {dimension_numbers = #tpu.dot_dimension_numbers<[1], [0], [0], [1], [0, 0, 1, 1], [], []>} : vector<8x3xbf16>, vector<3x512xbf16>, vector<8x512xf32> -> vector<8x512xf32>
    %79 = arith.addf %69, %78 : vector<8x512xf32>
    %c495_i32 = arith.constant 495 : i32
    %80 = tpu.dynamic_rotate %1 by %c495_i32 dim 1 : vector<3x512xf32>, i32 -> vector<3x512xf32>
    %c8 = arith.constant 8 : index
    %c0_49 = arith.constant 0 : index
    %c0_50 = arith.constant 0 : index
    %81 = vector.load %arg1[%c8, %c0_49, %c0_50] : memref<9x1x512xf32, #tpu.memory_space<vmem>>, vector<1x1x512xf32>
    %82 = vector.shape_cast %81 : vector<1x1x512xf32> to vector<1x512xf32>
    %83 = vector.broadcast %82 : vector<1x512xf32> to vector<3x512xf32>
    %84 = arith.mulf %80, %83 : vector<3x512xf32>
    %85 = arith.truncf %84 : vector<3x512xf32> to vector<3x512xbf16>
    %c8_51 = arith.constant 8 : index
    %c0_52 = arith.constant 0 : index
    %c0_53 = arith.constant 0 : index
    %86 = vector.load %arg8[%c8_51, %c0_52, %c0_53] : memref<9x8x3xbf16, #tpu.memory_space<vmem>>, vector<1x8x3xbf16>
    %87 = vector.shape_cast %86 : vector<1x8x3xbf16> to vector<8x3xbf16>
    %cst_54 = arith.constant dense<0.000000e+00> : vector<8x512xf32>
    %88 = tpu.matmul %87, %85, %cst_54 {dimension_numbers = #tpu.dot_dimension_numbers<[1], [0], [0], [1], [0, 0, 1, 1], [], []>} : vector<8x3xbf16>, vector<3x512xbf16>, vector<8x512xf32> -> vector<8x512xf32>
    %89 = arith.addf %79, %88 : vector<8x512xf32>
    %c0_55 = arith.constant 0 : index
    %c0_56 = arith.constant 0 : index
    %90 = vector.load %arg9[%c0_55, %c0_56] : memref<8x1xf32, #tpu.memory_space<vmem>>, vector<8x1xf32>
    %91 = vector.broadcast %90 : vector<8x1xf32> to vector<8x512xf32>
    %92 = arith.addf %89, %91 : vector<8x512xf32>
    %cst_57 = arith.constant 0.000000e+00 : f32
    %93 = vector.broadcast %cst_57 : f32 to vector<8x512xf32>
    %94 = arith.maximumf %92, %93 : vector<8x512xf32>
    %c17_i32_58 = arith.constant 17 : i32
    %95 = tpu.dynamic_rotate %94 by %c17_i32_58 dim 1 : vector<8x512xf32>, i32 -> vector<8x512xf32>
    %c0_59 = arith.constant 0 : index
    %c0_60 = arith.constant 0 : index
    %c0_61 = arith.constant 0 : index
    %96 = vector.load %arg1[%c0_59, %c0_60, %c0_61] : memref<9x1x512xf32, #tpu.memory_space<vmem>>, vector<1x1x512xf32>
    %97 = vector.shape_cast %96 : vector<1x1x512xf32> to vector<1x512xf32>
    %98 = vector.broadcast %97 : vector<1x512xf32> to vector<8x512xf32>
    %99 = arith.mulf %95, %98 : vector<8x512xf32>
    %100 = arith.truncf %99 : vector<8x512xf32> to vector<8x512xbf16>
    %c0_62 = arith.constant 0 : index
    %c0_63 = arith.constant 0 : index
    %c0_64 = arith.constant 0 : index
    %101 = vector.load %arg10[%c0_62, %c0_63, %c0_64] : memref<9x8x8xbf16, #tpu.memory_space<vmem>>, vector<1x8x8xbf16>
    %102 = vector.shape_cast %101 : vector<1x8x8xbf16> to vector<8x8xbf16>
    %cst_65 = arith.constant dense<0.000000e+00> : vector<8x512xf32>
    %103 = tpu.matmul %102, %100, %cst_65 {dimension_numbers = #tpu.dot_dimension_numbers<[1], [0], [0], [1], [0, 0, 1, 1], [], []>} : vector<8x8xbf16>, vector<8x512xbf16>, vector<8x512xf32> -> vector<8x512xf32>
    %c16_i32_66 = arith.constant 16 : i32
    %104 = tpu.dynamic_rotate %94 by %c16_i32_66 dim 1 : vector<8x512xf32>, i32 -> vector<8x512xf32>
    %c1_67 = arith.constant 1 : index
    %c0_68 = arith.constant 0 : index
    %c0_69 = arith.constant 0 : index
    %105 = vector.load %arg1[%c1_67, %c0_68, %c0_69] : memref<9x1x512xf32, #tpu.memory_space<vmem>>, vector<1x1x512xf32>
    %106 = vector.shape_cast %105 : vector<1x1x512xf32> to vector<1x512xf32>
    %107 = vector.broadcast %106 : vector<1x512xf32> to vector<8x512xf32>
    %108 = arith.mulf %104, %107 : vector<8x512xf32>
    %109 = arith.truncf %108 : vector<8x512xf32> to vector<8x512xbf16>
    %c1_70 = arith.constant 1 : index
    %c0_71 = arith.constant 0 : index
    %c0_72 = arith.constant 0 : index
    %110 = vector.load %arg10[%c1_70, %c0_71, %c0_72] : memref<9x8x8xbf16, #tpu.memory_space<vmem>>, vector<1x8x8xbf16>
    %111 = vector.shape_cast %110 : vector<1x8x8xbf16> to vector<8x8xbf16>
    %cst_73 = arith.constant dense<0.000000e+00> : vector<8x512xf32>
    %112 = tpu.matmul %111, %109, %cst_73 {dimension_numbers = #tpu.dot_dimension_numbers<[1], [0], [0], [1], [0, 0, 1, 1], [], []>} : vector<8x8xbf16>, vector<8x512xbf16>, vector<8x512xf32> -> vector<8x512xf32>
    %113 = arith.addf %103, %112 : vector<8x512xf32>
    %c15_i32_74 = arith.constant 15 : i32
    %114 = tpu.dynamic_rotate %94 by %c15_i32_74 dim 1 : vector<8x512xf32>, i32 -> vector<8x512xf32>
    %c2_75 = arith.constant 2 : index
    %c0_76 = arith.constant 0 : index
    %c0_77 = arith.constant 0 : index
    %115 = vector.load %arg1[%c2_75, %c0_76, %c0_77] : memref<9x1x512xf32, #tpu.memory_space<vmem>>, vector<1x1x512xf32>
    %116 = vector.shape_cast %115 : vector<1x1x512xf32> to vector<1x512xf32>
    %117 = vector.broadcast %116 : vector<1x512xf32> to vector<8x512xf32>
    %118 = arith.mulf %114, %117 : vector<8x512xf32>
    %119 = arith.truncf %118 : vector<8x512xf32> to vector<8x512xbf16>
    %c2_78 = arith.constant 2 : index
    %c0_79 = arith.constant 0 : index
    %c0_80 = arith.constant 0 : index
    %120 = vector.load %arg10[%c2_78, %c0_79, %c0_80] : memref<9x8x8xbf16, #tpu.memory_space<vmem>>, vector<1x8x8xbf16>
    %121 = vector.shape_cast %120 : vector<1x8x8xbf16> to vector<8x8xbf16>
    %cst_81 = arith.constant dense<0.000000e+00> : vector<8x512xf32>
    %122 = tpu.matmul %121, %119, %cst_81 {dimension_numbers = #tpu.dot_dimension_numbers<[1], [0], [0], [1], [0, 0, 1, 1], [], []>} : vector<8x8xbf16>, vector<8x512xbf16>, vector<8x512xf32> -> vector<8x512xf32>
    %123 = arith.addf %113, %122 : vector<8x512xf32>
    %c1_i32_82 = arith.constant 1 : i32
    %124 = tpu.dynamic_rotate %94 by %c1_i32_82 dim 1 : vector<8x512xf32>, i32 -> vector<8x512xf32>
    %c3_83 = arith.constant 3 : index
    %c0_84 = arith.constant 0 : index
    %c0_85 = arith.constant 0 : index
    %125 = vector.load %arg1[%c3_83, %c0_84, %c0_85] : memref<9x1x512xf32, #tpu.memory_space<vmem>>, vector<1x1x512xf32>
    %126 = vector.shape_cast %125 : vector<1x1x512xf32> to vector<1x512xf32>
    %127 = vector.broadcast %126 : vector<1x512xf32> to vector<8x512xf32>
    %128 = arith.mulf %124, %127 : vector<8x512xf32>
    %129 = arith.truncf %128 : vector<8x512xf32> to vector<8x512xbf16>
    %c3_86 = arith.constant 3 : index
    %c0_87 = arith.constant 0 : index
    %c0_88 = arith.constant 0 : index
    %130 = vector.load %arg10[%c3_86, %c0_87, %c0_88] : memref<9x8x8xbf16, #tpu.memory_space<vmem>>, vector<1x8x8xbf16>
    %131 = vector.shape_cast %130 : vector<1x8x8xbf16> to vector<8x8xbf16>
    %cst_89 = arith.constant dense<0.000000e+00> : vector<8x512xf32>
    %132 = tpu.matmul %131, %129, %cst_89 {dimension_numbers = #tpu.dot_dimension_numbers<[1], [0], [0], [1], [0, 0, 1, 1], [], []>} : vector<8x8xbf16>, vector<8x512xbf16>, vector<8x512xf32> -> vector<8x512xf32>
    %133 = arith.addf %123, %132 : vector<8x512xf32>
    %c4_90 = arith.constant 4 : index
    %c0_91 = arith.constant 0 : index
    %c0_92 = arith.constant 0 : index
    %134 = vector.load %arg1[%c4_90, %c0_91, %c0_92] : memref<9x1x512xf32, #tpu.memory_space<vmem>>, vector<1x1x512xf32>
    %135 = vector.shape_cast %134 : vector<1x1x512xf32> to vector<1x512xf32>
    %136 = vector.broadcast %135 : vector<1x512xf32> to vector<8x512xf32>
    %137 = arith.mulf %94, %136 : vector<8x512xf32>
    %138 = arith.truncf %137 : vector<8x512xf32> to vector<8x512xbf16>
    %c4_93 = arith.constant 4 : index
    %c0_94 = arith.constant 0 : index
    %c0_95 = arith.constant 0 : index
    %139 = vector.load %arg10[%c4_93, %c0_94, %c0_95] : memref<9x8x8xbf16, #tpu.memory_space<vmem>>, vector<1x8x8xbf16>
    %140 = vector.shape_cast %139 : vector<1x8x8xbf16> to vector<8x8xbf16>
    %cst_96 = arith.constant dense<0.000000e+00> : vector<8x512xf32>
    %141 = tpu.matmul %140, %138, %cst_96 {dimension_numbers = #tpu.dot_dimension_numbers<[1], [0], [0], [1], [0, 0, 1, 1], [], []>} : vector<8x8xbf16>, vector<8x512xbf16>, vector<8x512xf32> -> vector<8x512xf32>
    %142 = arith.addf %133, %141 : vector<8x512xf32>
    %c511_i32_97 = arith.constant 511 : i32
    %143 = tpu.dynamic_rotate %94 by %c511_i32_97 dim 1 : vector<8x512xf32>, i32 -> vector<8x512xf32>
    %c5_98 = arith.constant 5 : index
    %c0_99 = arith.constant 0 : index
    %c0_100 = arith.constant 0 : index
    %144 = vector.load %arg1[%c5_98, %c0_99, %c0_100] : memref<9x1x512xf32, #tpu.memory_space<vmem>>, vector<1x1x512xf32>
    %145 = vector.shape_cast %144 : vector<1x1x512xf32> to vector<1x512xf32>
    %146 = vector.broadcast %145 : vector<1x512xf32> to vector<8x512xf32>
    %147 = arith.mulf %143, %146 : vector<8x512xf32>
    %148 = arith.truncf %147 : vector<8x512xf32> to vector<8x512xbf16>
    %c5_101 = arith.constant 5 : index
    %c0_102 = arith.constant 0 : index
    %c0_103 = arith.constant 0 : index
    %149 = vector.load %arg10[%c5_101, %c0_102, %c0_103] : memref<9x8x8xbf16, #tpu.memory_space<vmem>>, vector<1x8x8xbf16>
    %150 = vector.shape_cast %149 : vector<1x8x8xbf16> to vector<8x8xbf16>
    %cst_104 = arith.constant dense<0.000000e+00> : vector<8x512xf32>
    %151 = tpu.matmul %150, %148, %cst_104 {dimension_numbers = #tpu.dot_dimension_numbers<[1], [0], [0], [1], [0, 0, 1, 1], [], []>} : vector<8x8xbf16>, vector<8x512xbf16>, vector<8x512xf32> -> vector<8x512xf32>
    %152 = arith.addf %142, %151 : vector<8x512xf32>
    %c497_i32_105 = arith.constant 497 : i32
    %153 = tpu.dynamic_rotate %94 by %c497_i32_105 dim 1 : vector<8x512xf32>, i32 -> vector<8x512xf32>
    %c6_106 = arith.constant 6 : index
    %c0_107 = arith.constant 0 : index
    %c0_108 = arith.constant 0 : index
    %154 = vector.load %arg1[%c6_106, %c0_107, %c0_108] : memref<9x1x512xf32, #tpu.memory_space<vmem>>, vector<1x1x512xf32>
    %155 = vector.shape_cast %154 : vector<1x1x512xf32> to vector<1x512xf32>
    %156 = vector.broadcast %155 : vector<1x512xf32> to vector<8x512xf32>
    %157 = arith.mulf %153, %156 : vector<8x512xf32>
    %158 = arith.truncf %157 : vector<8x512xf32> to vector<8x512xbf16>
    %c6_109 = arith.constant 6 : index
    %c0_110 = arith.constant 0 : index
    %c0_111 = arith.constant 0 : index
    %159 = vector.load %arg10[%c6_109, %c0_110, %c0_111] : memref<9x8x8xbf16, #tpu.memory_space<vmem>>, vector<1x8x8xbf16>
    %160 = vector.shape_cast %159 : vector<1x8x8xbf16> to vector<8x8xbf16>
    %cst_112 = arith.constant dense<0.000000e+00> : vector<8x512xf32>
    %161 = tpu.matmul %160, %158, %cst_112 {dimension_numbers = #tpu.dot_dimension_numbers<[1], [0], [0], [1], [0, 0, 1, 1], [], []>} : vector<8x8xbf16>, vector<8x512xbf16>, vector<8x512xf32> -> vector<8x512xf32>
    %162 = arith.addf %152, %161 : vector<8x512xf32>
    %c496_i32_113 = arith.constant 496 : i32
    %163 = tpu.dynamic_rotate %94 by %c496_i32_113 dim 1 : vector<8x512xf32>, i32 -> vector<8x512xf32>
    %c7_114 = arith.constant 7 : index
    %c0_115 = arith.constant 0 : index
    %c0_116 = arith.constant 0 : index
    %164 = vector.load %arg1[%c7_114, %c0_115, %c0_116] : memref<9x1x512xf32, #tpu.memory_space<vmem>>, vector<1x1x512xf32>
    %165 = vector.shape_cast %164 : vector<1x1x512xf32> to vector<1x512xf32>
    %166 = vector.broadcast %165 : vector<1x512xf32> to vector<8x512xf32>
    %167 = arith.mulf %163, %166 : vector<8x512xf32>
    %168 = arith.truncf %167 : vector<8x512xf32> to vector<8x512xbf16>
    %c7_117 = arith.constant 7 : index
    %c0_118 = arith.constant 0 : index
    %c0_119 = arith.constant 0 : index
    %169 = vector.load %arg10[%c7_117, %c0_118, %c0_119] : memref<9x8x8xbf16, #tpu.memory_space<vmem>>, vector<1x8x8xbf16>
    %170 = vector.shape_cast %169 : vector<1x8x8xbf16> to vector<8x8xbf16>
    %cst_120 = arith.constant dense<0.000000e+00> : vector<8x512xf32>
    %171 = tpu.matmul %170, %168, %cst_120 {dimension_numbers = #tpu.dot_dimension_numbers<[1], [0], [0], [1], [0, 0, 1, 1], [], []>} : vector<8x8xbf16>, vector<8x512xbf16>, vector<8x512xf32> -> vector<8x512xf32>
    %172 = arith.addf %162, %171 : vector<8x512xf32>
    %c495_i32_121 = arith.constant 495 : i32
    %173 = tpu.dynamic_rotate %94 by %c495_i32_121 dim 1 : vector<8x512xf32>, i32 -> vector<8x512xf32>
    %c8_122 = arith.constant 8 : index
    %c0_123 = arith.constant 0 : index
    %c0_124 = arith.constant 0 : index
    %174 = vector.load %arg1[%c8_122, %c0_123, %c0_124] : memref<9x1x512xf32, #tpu.memory_space<vmem>>, vector<1x1x512xf32>
    %175 = vector.shape_cast %174 : vector<1x1x512xf32> to vector<1x512xf32>
    %176 = vector.broadcast %175 : vector<1x512xf32> to vector<8x512xf32>
    %177 = arith.mulf %173, %176 : vector<8x512xf32>
    %178 = arith.truncf %177 : vector<8x512xf32> to vector<8x512xbf16>
    %c8_125 = arith.constant 8 : index
    %c0_126 = arith.constant 0 : index
    %c0_127 = arith.constant 0 : index
    %179 = vector.load %arg10[%c8_125, %c0_126, %c0_127] : memref<9x8x8xbf16, #tpu.memory_space<vmem>>, vector<1x8x8xbf16>
    %180 = vector.shape_cast %179 : vector<1x8x8xbf16> to vector<8x8xbf16>
    %cst_128 = arith.constant dense<0.000000e+00> : vector<8x512xf32>
    %181 = tpu.matmul %180, %178, %cst_128 {dimension_numbers = #tpu.dot_dimension_numbers<[1], [0], [0], [1], [0, 0, 1, 1], [], []>} : vector<8x8xbf16>, vector<8x512xbf16>, vector<8x512xf32> -> vector<8x512xf32>
    %182 = arith.addf %172, %181 : vector<8x512xf32>
    %c0_129 = arith.constant 0 : index
    %c0_130 = arith.constant 0 : index
    %183 = vector.load %arg11[%c0_129, %c0_130] : memref<8x1xf32, #tpu.memory_space<vmem>>, vector<8x1xf32>
    %184 = vector.broadcast %183 : vector<8x1xf32> to vector<8x512xf32>
    %185 = arith.addf %182, %184 : vector<8x512xf32>
    %cst_131 = arith.constant 0.000000e+00 : f32
    %186 = vector.broadcast %cst_131 : f32 to vector<8x512xf32>
    %187 = arith.maximumf %185, %186 : vector<8x512xf32>
    %c17_i32_132 = arith.constant 17 : i32
    %188 = tpu.dynamic_rotate %187 by %c17_i32_132 dim 1 : vector<8x512xf32>, i32 -> vector<8x512xf32>
    %c0_133 = arith.constant 0 : index
    %c0_134 = arith.constant 0 : index
    %c0_135 = arith.constant 0 : index
    %189 = vector.load %arg1[%c0_133, %c0_134, %c0_135] : memref<9x1x512xf32, #tpu.memory_space<vmem>>, vector<1x1x512xf32>
    %190 = vector.shape_cast %189 : vector<1x1x512xf32> to vector<1x512xf32>
    %191 = vector.broadcast %190 : vector<1x512xf32> to vector<8x512xf32>
    %192 = arith.mulf %188, %191 : vector<8x512xf32>
    %193 = arith.truncf %192 : vector<8x512xf32> to vector<8x512xbf16>
    %c0_136 = arith.constant 0 : index
    %c0_137 = arith.constant 0 : index
    %c0_138 = arith.constant 0 : index
    %194 = vector.load %arg12[%c0_136, %c0_137, %c0_138] : memref<9x8x8xbf16, #tpu.memory_space<vmem>>, vector<1x8x8xbf16>
    %195 = vector.shape_cast %194 : vector<1x8x8xbf16> to vector<8x8xbf16>
    %cst_139 = arith.constant dense<0.000000e+00> : vector<8x512xf32>
    %196 = tpu.matmul %195, %193, %cst_139 {dimension_numbers = #tpu.dot_dimension_numbers<[1], [0], [0], [1], [0, 0, 1, 1], [], []>} : vector<8x8xbf16>, vector<8x512xbf16>, vector<8x512xf32> -> vector<8x512xf32>
    %c16_i32_140 = arith.constant 16 : i32
    %197 = tpu.dynamic_rotate %187 by %c16_i32_140 dim 1 : vector<8x512xf32>, i32 -> vector<8x512xf32>
    %c1_141 = arith.constant 1 : index
    %c0_142 = arith.constant 0 : index
    %c0_143 = arith.constant 0 : index
    %198 = vector.load %arg1[%c1_141, %c0_142, %c0_143] : memref<9x1x512xf32, #tpu.memory_space<vmem>>, vector<1x1x512xf32>
    %199 = vector.shape_cast %198 : vector<1x1x512xf32> to vector<1x512xf32>
    %200 = vector.broadcast %199 : vector<1x512xf32> to vector<8x512xf32>
    %201 = arith.mulf %197, %200 : vector<8x512xf32>
    %202 = arith.truncf %201 : vector<8x512xf32> to vector<8x512xbf16>
    %c1_144 = arith.constant 1 : index
    %c0_145 = arith.constant 0 : index
    %c0_146 = arith.constant 0 : index
    %203 = vector.load %arg12[%c1_144, %c0_145, %c0_146] : memref<9x8x8xbf16, #tpu.memory_space<vmem>>, vector<1x8x8xbf16>
    %204 = vector.shape_cast %203 : vector<1x8x8xbf16> to vector<8x8xbf16>
    %cst_147 = arith.constant dense<0.000000e+00> : vector<8x512xf32>
    %205 = tpu.matmul %204, %202, %cst_147 {dimension_numbers = #tpu.dot_dimension_numbers<[1], [0], [0], [1], [0, 0, 1, 1], [], []>} : vector<8x8xbf16>, vector<8x512xbf16>, vector<8x512xf32> -> vector<8x512xf32>
    %206 = arith.addf %196, %205 : vector<8x512xf32>
    %c15_i32_148 = arith.constant 15 : i32
    %207 = tpu.dynamic_rotate %187 by %c15_i32_148 dim 1 : vector<8x512xf32>, i32 -> vector<8x512xf32>
    %c2_149 = arith.constant 2 : index
    %c0_150 = arith.constant 0 : index
    %c0_151 = arith.constant 0 : index
    %208 = vector.load %arg1[%c2_149, %c0_150, %c0_151] : memref<9x1x512xf32, #tpu.memory_space<vmem>>, vector<1x1x512xf32>
    %209 = vector.shape_cast %208 : vector<1x1x512xf32> to vector<1x512xf32>
    %210 = vector.broadcast %209 : vector<1x512xf32> to vector<8x512xf32>
    %211 = arith.mulf %207, %210 : vector<8x512xf32>
    %212 = arith.truncf %211 : vector<8x512xf32> to vector<8x512xbf16>
    %c2_152 = arith.constant 2 : index
    %c0_153 = arith.constant 0 : index
    %c0_154 = arith.constant 0 : index
    %213 = vector.load %arg12[%c2_152, %c0_153, %c0_154] : memref<9x8x8xbf16, #tpu.memory_space<vmem>>, vector<1x8x8xbf16>
    %214 = vector.shape_cast %213 : vector<1x8x8xbf16> to vector<8x8xbf16>
    %cst_155 = arith.constant dense<0.000000e+00> : vector<8x512xf32>
    %215 = tpu.matmul %214, %212, %cst_155 {dimension_numbers = #tpu.dot_dimension_numbers<[1], [0], [0], [1], [0, 0, 1, 1], [], []>} : vector<8x8xbf16>, vector<8x512xbf16>, vector<8x512xf32> -> vector<8x512xf32>
    %216 = arith.addf %206, %215 : vector<8x512xf32>
    %c1_i32_156 = arith.constant 1 : i32
    %217 = tpu.dynamic_rotate %187 by %c1_i32_156 dim 1 : vector<8x512xf32>, i32 -> vector<8x512xf32>
    %c3_157 = arith.constant 3 : index
    %c0_158 = arith.constant 0 : index
    %c0_159 = arith.constant 0 : index
    %218 = vector.load %arg1[%c3_157, %c0_158, %c0_159] : memref<9x1x512xf32, #tpu.memory_space<vmem>>, vector<1x1x512xf32>
    %219 = vector.shape_cast %218 : vector<1x1x512xf32> to vector<1x512xf32>
    %220 = vector.broadcast %219 : vector<1x512xf32> to vector<8x512xf32>
    %221 = arith.mulf %217, %220 : vector<8x512xf32>
    %222 = arith.truncf %221 : vector<8x512xf32> to vector<8x512xbf16>
    %c3_160 = arith.constant 3 : index
    %c0_161 = arith.constant 0 : index
    %c0_162 = arith.constant 0 : index
    %223 = vector.load %arg12[%c3_160, %c0_161, %c0_162] : memref<9x8x8xbf16, #tpu.memory_space<vmem>>, vector<1x8x8xbf16>
    %224 = vector.shape_cast %223 : vector<1x8x8xbf16> to vector<8x8xbf16>
    %cst_163 = arith.constant dense<0.000000e+00> : vector<8x512xf32>
    %225 = tpu.matmul %224, %222, %cst_163 {dimension_numbers = #tpu.dot_dimension_numbers<[1], [0], [0], [1], [0, 0, 1, 1], [], []>} : vector<8x8xbf16>, vector<8x512xbf16>, vector<8x512xf32> -> vector<8x512xf32>
    %226 = arith.addf %216, %225 : vector<8x512xf32>
    %c4_164 = arith.constant 4 : index
    %c0_165 = arith.constant 0 : index
    %c0_166 = arith.constant 0 : index
    %227 = vector.load %arg1[%c4_164, %c0_165, %c0_166] : memref<9x1x512xf32, #tpu.memory_space<vmem>>, vector<1x1x512xf32>
    %228 = vector.shape_cast %227 : vector<1x1x512xf32> to vector<1x512xf32>
    %229 = vector.broadcast %228 : vector<1x512xf32> to vector<8x512xf32>
    %230 = arith.mulf %187, %229 : vector<8x512xf32>
    %231 = arith.truncf %230 : vector<8x512xf32> to vector<8x512xbf16>
    %c4_167 = arith.constant 4 : index
    %c0_168 = arith.constant 0 : index
    %c0_169 = arith.constant 0 : index
    %232 = vector.load %arg12[%c4_167, %c0_168, %c0_169] : memref<9x8x8xbf16, #tpu.memory_space<vmem>>, vector<1x8x8xbf16>
    %233 = vector.shape_cast %232 : vector<1x8x8xbf16> to vector<8x8xbf16>
    %cst_170 = arith.constant dense<0.000000e+00> : vector<8x512xf32>
    %234 = tpu.matmul %233, %231, %cst_170 {dimension_numbers = #tpu.dot_dimension_numbers<[1], [0], [0], [1], [0, 0, 1, 1], [], []>} : vector<8x8xbf16>, vector<8x512xbf16>, vector<8x512xf32> -> vector<8x512xf32>
    %235 = arith.addf %226, %234 : vector<8x512xf32>
    %c511_i32_171 = arith.constant 511 : i32
    %236 = tpu.dynamic_rotate %187 by %c511_i32_171 dim 1 : vector<8x512xf32>, i32 -> vector<8x512xf32>
    %c5_172 = arith.constant 5 : index
    %c0_173 = arith.constant 0 : index
    %c0_174 = arith.constant 0 : index
    %237 = vector.load %arg1[%c5_172, %c0_173, %c0_174] : memref<9x1x512xf32, #tpu.memory_space<vmem>>, vector<1x1x512xf32>
    %238 = vector.shape_cast %237 : vector<1x1x512xf32> to vector<1x512xf32>
    %239 = vector.broadcast %238 : vector<1x512xf32> to vector<8x512xf32>
    %240 = arith.mulf %236, %239 : vector<8x512xf32>
    %241 = arith.truncf %240 : vector<8x512xf32> to vector<8x512xbf16>
    %c5_175 = arith.constant 5 : index
    %c0_176 = arith.constant 0 : index
    %c0_177 = arith.constant 0 : index
    %242 = vector.load %arg12[%c5_175, %c0_176, %c0_177] : memref<9x8x8xbf16, #tpu.memory_space<vmem>>, vector<1x8x8xbf16>
    %243 = vector.shape_cast %242 : vector<1x8x8xbf16> to vector<8x8xbf16>
    %cst_178 = arith.constant dense<0.000000e+00> : vector<8x512xf32>
    %244 = tpu.matmul %243, %241, %cst_178 {dimension_numbers = #tpu.dot_dimension_numbers<[1], [0], [0], [1], [0, 0, 1, 1], [], []>} : vector<8x8xbf16>, vector<8x512xbf16>, vector<8x512xf32> -> vector<8x512xf32>
    %245 = arith.addf %235, %244 : vector<8x512xf32>
    %c497_i32_179 = arith.constant 497 : i32
    %246 = tpu.dynamic_rotate %187 by %c497_i32_179 dim 1 : vector<8x512xf32>, i32 -> vector<8x512xf32>
    %c6_180 = arith.constant 6 : index
    %c0_181 = arith.constant 0 : index
    %c0_182 = arith.constant 0 : index
    %247 = vector.load %arg1[%c6_180, %c0_181, %c0_182] : memref<9x1x512xf32, #tpu.memory_space<vmem>>, vector<1x1x512xf32>
    %248 = vector.shape_cast %247 : vector<1x1x512xf32> to vector<1x512xf32>
    %249 = vector.broadcast %248 : vector<1x512xf32> to vector<8x512xf32>
    %250 = arith.mulf %246, %249 : vector<8x512xf32>
    %251 = arith.truncf %250 : vector<8x512xf32> to vector<8x512xbf16>
    %c6_183 = arith.constant 6 : index
    %c0_184 = arith.constant 0 : index
    %c0_185 = arith.constant 0 : index
    %252 = vector.load %arg12[%c6_183, %c0_184, %c0_185] : memref<9x8x8xbf16, #tpu.memory_space<vmem>>, vector<1x8x8xbf16>
    %253 = vector.shape_cast %252 : vector<1x8x8xbf16> to vector<8x8xbf16>
    %cst_186 = arith.constant dense<0.000000e+00> : vector<8x512xf32>
    %254 = tpu.matmul %253, %251, %cst_186 {dimension_numbers = #tpu.dot_dimension_numbers<[1], [0], [0], [1], [0, 0, 1, 1], [], []>} : vector<8x8xbf16>, vector<8x512xbf16>, vector<8x512xf32> -> vector<8x512xf32>
    %255 = arith.addf %245, %254 : vector<8x512xf32>
    %c496_i32_187 = arith.constant 496 : i32
    %256 = tpu.dynamic_rotate %187 by %c496_i32_187 dim 1 : vector<8x512xf32>, i32 -> vector<8x512xf32>
    %c7_188 = arith.constant 7 : index
    %c0_189 = arith.constant 0 : index
    %c0_190 = arith.constant 0 : index
    %257 = vector.load %arg1[%c7_188, %c0_189, %c0_190] : memref<9x1x512xf32, #tpu.memory_space<vmem>>, vector<1x1x512xf32>
    %258 = vector.shape_cast %257 : vector<1x1x512xf32> to vector<1x512xf32>
    %259 = vector.broadcast %258 : vector<1x512xf32> to vector<8x512xf32>
    %260 = arith.mulf %256, %259 : vector<8x512xf32>
    %261 = arith.truncf %260 : vector<8x512xf32> to vector<8x512xbf16>
    %c7_191 = arith.constant 7 : index
    %c0_192 = arith.constant 0 : index
    %c0_193 = arith.constant 0 : index
    %262 = vector.load %arg12[%c7_191, %c0_192, %c0_193] : memref<9x8x8xbf16, #tpu.memory_space<vmem>>, vector<1x8x8xbf16>
    %263 = vector.shape_cast %262 : vector<1x8x8xbf16> to vector<8x8xbf16>
    %cst_194 = arith.constant dense<0.000000e+00> : vector<8x512xf32>
    %264 = tpu.matmul %263, %261, %cst_194 {dimension_numbers = #tpu.dot_dimension_numbers<[1], [0], [0], [1], [0, 0, 1, 1], [], []>} : vector<8x8xbf16>, vector<8x512xbf16>, vector<8x512xf32> -> vector<8x512xf32>
    %265 = arith.addf %255, %264 : vector<8x512xf32>
    %c495_i32_195 = arith.constant 495 : i32
    %266 = tpu.dynamic_rotate %187 by %c495_i32_195 dim 1 : vector<8x512xf32>, i32 -> vector<8x512xf32>
    %c8_196 = arith.constant 8 : index
    %c0_197 = arith.constant 0 : index
    %c0_198 = arith.constant 0 : index
    %267 = vector.load %arg1[%c8_196, %c0_197, %c0_198] : memref<9x1x512xf32, #tpu.memory_space<vmem>>, vector<1x1x512xf32>
    %268 = vector.shape_cast %267 : vector<1x1x512xf32> to vector<1x512xf32>
    %269 = vector.broadcast %268 : vector<1x512xf32> to vector<8x512xf32>
    %270 = arith.mulf %266, %269 : vector<8x512xf32>
    %271 = arith.truncf %270 : vector<8x512xf32> to vector<8x512xbf16>
    %c8_199 = arith.constant 8 : index
    %c0_200 = arith.constant 0 : index
    %c0_201 = arith.constant 0 : index
    %272 = vector.load %arg12[%c8_199, %c0_200, %c0_201] : memref<9x8x8xbf16, #tpu.memory_space<vmem>>, vector<1x8x8xbf16>
    %273 = vector.shape_cast %272 : vector<1x8x8xbf16> to vector<8x8xbf16>
    %cst_202 = arith.constant dense<0.000000e+00> : vector<8x512xf32>
    %274 = tpu.matmul %273, %271, %cst_202 {dimension_numbers = #tpu.dot_dimension_numbers<[1], [0], [0], [1], [0, 0, 1, 1], [], []>} : vector<8x8xbf16>, vector<8x512xbf16>, vector<8x512xf32> -> vector<8x512xf32>
    %275 = arith.addf %265, %274 : vector<8x512xf32>
    %c0_203 = arith.constant 0 : index
    %c0_204 = arith.constant 0 : index
    %276 = vector.load %arg13[%c0_203, %c0_204] : memref<8x1xf32, #tpu.memory_space<vmem>>, vector<8x1xf32>
    %277 = vector.broadcast %276 : vector<8x1xf32> to vector<8x512xf32>
    %278 = arith.addf %275, %277 : vector<8x512xf32>
    %279 = arith.addf %278, %94 : vector<8x512xf32>
    %cst_205 = arith.constant 0.000000e+00 : f32
    %280 = vector.broadcast %cst_205 : f32 to vector<8x512xf32>
    %281 = arith.maximumf %279, %280 : vector<8x512xf32>
    %c17_i32_206 = arith.constant 17 : i32
    %282 = tpu.dynamic_rotate %281 by %c17_i32_206 dim 1 : vector<8x512xf32>, i32 -> vector<8x512xf32>
    %c0_207 = arith.constant 0 : index
    %c0_208 = arith.constant 0 : index
    %c0_209 = arith.constant 0 : index
    %283 = vector.load %arg1[%c0_207, %c0_208, %c0_209] : memref<9x1x512xf32, #tpu.memory_space<vmem>>, vector<1x1x512xf32>
    %284 = vector.shape_cast %283 : vector<1x1x512xf32> to vector<1x512xf32>
    %285 = vector.broadcast %284 : vector<1x512xf32> to vector<8x512xf32>
    %286 = arith.mulf %282, %285 : vector<8x512xf32>
    %287 = arith.truncf %286 : vector<8x512xf32> to vector<8x512xbf16>
    %c0_210 = arith.constant 0 : index
    %c0_211 = arith.constant 0 : index
    %c0_212 = arith.constant 0 : index
    %288 = vector.load %arg14[%c0_210, %c0_211, %c0_212] : memref<9x16x8xbf16, #tpu.memory_space<vmem>>, vector<1x16x8xbf16>
    %289 = vector.shape_cast %288 : vector<1x16x8xbf16> to vector<16x8xbf16>
    %cst_213 = arith.constant dense<0.000000e+00> : vector<16x512xf32>
    %290 = tpu.matmul %289, %287, %cst_213 {dimension_numbers = #tpu.dot_dimension_numbers<[1], [0], [0], [1], [0, 0, 1, 1], [], []>} : vector<16x8xbf16>, vector<8x512xbf16>, vector<16x512xf32> -> vector<16x512xf32>
    %c16_i32_214 = arith.constant 16 : i32
    %291 = tpu.dynamic_rotate %281 by %c16_i32_214 dim 1 : vector<8x512xf32>, i32 -> vector<8x512xf32>
    %c1_215 = arith.constant 1 : index
    %c0_216 = arith.constant 0 : index
    %c0_217 = arith.constant 0 : index
    %292 = vector.load %arg1[%c1_215, %c0_216, %c0_217] : memref<9x1x512xf32, #tpu.memory_space<vmem>>, vector<1x1x512xf32>
    %293 = vector.shape_cast %292 : vector<1x1x512xf32> to vector<1x512xf32>
    %294 = vector.broadcast %293 : vector<1x512xf32> to vector<8x512xf32>
    %295 = arith.mulf %291, %294 : vector<8x512xf32>
    %296 = arith.truncf %295 : vector<8x512xf32> to vector<8x512xbf16>
    %c1_218 = arith.constant 1 : index
    %c0_219 = arith.constant 0 : index
    %c0_220 = arith.constant 0 : index
    %297 = vector.load %arg14[%c1_218, %c0_219, %c0_220] : memref<9x16x8xbf16, #tpu.memory_space<vmem>>, vector<1x16x8xbf16>
    %298 = vector.shape_cast %297 : vector<1x16x8xbf16> to vector<16x8xbf16>
    %cst_221 = arith.constant dense<0.000000e+00> : vector<16x512xf32>
    %299 = tpu.matmul %298, %296, %cst_221 {dimension_numbers = #tpu.dot_dimension_numbers<[1], [0], [0], [1], [0, 0, 1, 1], [], []>} : vector<16x8xbf16>, vector<8x512xbf16>, vector<16x512xf32> -> vector<16x512xf32>
    %300 = arith.addf %290, %299 : vector<16x512xf32>
    %c15_i32_222 = arith.constant 15 : i32
    %301 = tpu.dynamic_rotate %281 by %c15_i32_222 dim 1 : vector<8x512xf32>, i32 -> vector<8x512xf32>
    %c2_223 = arith.constant 2 : index
    %c0_224 = arith.constant 0 : index
    %c0_225 = arith.constant 0 : index
    %302 = vector.load %arg1[%c2_223, %c0_224, %c0_225] : memref<9x1x512xf32, #tpu.memory_space<vmem>>, vector<1x1x512xf32>
    %303 = vector.shape_cast %302 : vector<1x1x512xf32> to vector<1x512xf32>
    %304 = vector.broadcast %303 : vector<1x512xf32> to vector<8x512xf32>
    %305 = arith.mulf %301, %304 : vector<8x512xf32>
    %306 = arith.truncf %305 : vector<8x512xf32> to vector<8x512xbf16>
    %c2_226 = arith.constant 2 : index
    %c0_227 = arith.constant 0 : index
    %c0_228 = arith.constant 0 : index
    %307 = vector.load %arg14[%c2_226, %c0_227, %c0_228] : memref<9x16x8xbf16, #tpu.memory_space<vmem>>, vector<1x16x8xbf16>
    %308 = vector.shape_cast %307 : vector<1x16x8xbf16> to vector<16x8xbf16>
    %cst_229 = arith.constant dense<0.000000e+00> : vector<16x512xf32>
    %309 = tpu.matmul %308, %306, %cst_229 {dimension_numbers = #tpu.dot_dimension_numbers<[1], [0], [0], [1], [0, 0, 1, 1], [], []>} : vector<16x8xbf16>, vector<8x512xbf16>, vector<16x512xf32> -> vector<16x512xf32>
    %310 = arith.addf %300, %309 : vector<16x512xf32>
    %c1_i32_230 = arith.constant 1 : i32
    %311 = tpu.dynamic_rotate %281 by %c1_i32_230 dim 1 : vector<8x512xf32>, i32 -> vector<8x512xf32>
    %c3_231 = arith.constant 3 : index
    %c0_232 = arith.constant 0 : index
    %c0_233 = arith.constant 0 : index
    %312 = vector.load %arg1[%c3_231, %c0_232, %c0_233] : memref<9x1x512xf32, #tpu.memory_space<vmem>>, vector<1x1x512xf32>
    %313 = vector.shape_cast %312 : vector<1x1x512xf32> to vector<1x512xf32>
    %314 = vector.broadcast %313 : vector<1x512xf32> to vector<8x512xf32>
    %315 = arith.mulf %311, %314 : vector<8x512xf32>
    %316 = arith.truncf %315 : vector<8x512xf32> to vector<8x512xbf16>
    %c3_234 = arith.constant 3 : index
    %c0_235 = arith.constant 0 : index
    %c0_236 = arith.constant 0 : index
    %317 = vector.load %arg14[%c3_234, %c0_235, %c0_236] : memref<9x16x8xbf16, #tpu.memory_space<vmem>>, vector<1x16x8xbf16>
    %318 = vector.shape_cast %317 : vector<1x16x8xbf16> to vector<16x8xbf16>
    %cst_237 = arith.constant dense<0.000000e+00> : vector<16x512xf32>
    %319 = tpu.matmul %318, %316, %cst_237 {dimension_numbers = #tpu.dot_dimension_numbers<[1], [0], [0], [1], [0, 0, 1, 1], [], []>} : vector<16x8xbf16>, vector<8x512xbf16>, vector<16x512xf32> -> vector<16x512xf32>
    %320 = arith.addf %310, %319 : vector<16x512xf32>
    %c4_238 = arith.constant 4 : index
    %c0_239 = arith.constant 0 : index
    %c0_240 = arith.constant 0 : index
    %321 = vector.load %arg1[%c4_238, %c0_239, %c0_240] : memref<9x1x512xf32, #tpu.memory_space<vmem>>, vector<1x1x512xf32>
    %322 = vector.shape_cast %321 : vector<1x1x512xf32> to vector<1x512xf32>
    %323 = vector.broadcast %322 : vector<1x512xf32> to vector<8x512xf32>
    %324 = arith.mulf %281, %323 : vector<8x512xf32>
    %325 = arith.truncf %324 : vector<8x512xf32> to vector<8x512xbf16>
    %c4_241 = arith.constant 4 : index
    %c0_242 = arith.constant 0 : index
    %c0_243 = arith.constant 0 : index
    %326 = vector.load %arg14[%c4_241, %c0_242, %c0_243] : memref<9x16x8xbf16, #tpu.memory_space<vmem>>, vector<1x16x8xbf16>
    %327 = vector.shape_cast %326 : vector<1x16x8xbf16> to vector<16x8xbf16>
    %cst_244 = arith.constant dense<0.000000e+00> : vector<16x512xf32>
    %328 = tpu.matmul %327, %325, %cst_244 {dimension_numbers = #tpu.dot_dimension_numbers<[1], [0], [0], [1], [0, 0, 1, 1], [], []>} : vector<16x8xbf16>, vector<8x512xbf16>, vector<16x512xf32> -> vector<16x512xf32>
    %329 = arith.addf %320, %328 : vector<16x512xf32>
    %c511_i32_245 = arith.constant 511 : i32
    %330 = tpu.dynamic_rotate %281 by %c511_i32_245 dim 1 : vector<8x512xf32>, i32 -> vector<8x512xf32>
    %c5_246 = arith.constant 5 : index
    %c0_247 = arith.constant 0 : index
    %c0_248 = arith.constant 0 : index
    %331 = vector.load %arg1[%c5_246, %c0_247, %c0_248] : memref<9x1x512xf32, #tpu.memory_space<vmem>>, vector<1x1x512xf32>
    %332 = vector.shape_cast %331 : vector<1x1x512xf32> to vector<1x512xf32>
    %333 = vector.broadcast %332 : vector<1x512xf32> to vector<8x512xf32>
    %334 = arith.mulf %330, %333 : vector<8x512xf32>
    %335 = arith.truncf %334 : vector<8x512xf32> to vector<8x512xbf16>
    %c5_249 = arith.constant 5 : index
    %c0_250 = arith.constant 0 : index
    %c0_251 = arith.constant 0 : index
    %336 = vector.load %arg14[%c5_249, %c0_250, %c0_251] : memref<9x16x8xbf16, #tpu.memory_space<vmem>>, vector<1x16x8xbf16>
    %337 = vector.shape_cast %336 : vector<1x16x8xbf16> to vector<16x8xbf16>
    %cst_252 = arith.constant dense<0.000000e+00> : vector<16x512xf32>
    %338 = tpu.matmul %337, %335, %cst_252 {dimension_numbers = #tpu.dot_dimension_numbers<[1], [0], [0], [1], [0, 0, 1, 1], [], []>} : vector<16x8xbf16>, vector<8x512xbf16>, vector<16x512xf32> -> vector<16x512xf32>
    %339 = arith.addf %329, %338 : vector<16x512xf32>
    %c497_i32_253 = arith.constant 497 : i32
    %340 = tpu.dynamic_rotate %281 by %c497_i32_253 dim 1 : vector<8x512xf32>, i32 -> vector<8x512xf32>
    %c6_254 = arith.constant 6 : index
    %c0_255 = arith.constant 0 : index
    %c0_256 = arith.constant 0 : index
    %341 = vector.load %arg1[%c6_254, %c0_255, %c0_256] : memref<9x1x512xf32, #tpu.memory_space<vmem>>, vector<1x1x512xf32>
    %342 = vector.shape_cast %341 : vector<1x1x512xf32> to vector<1x512xf32>
    %343 = vector.broadcast %342 : vector<1x512xf32> to vector<8x512xf32>
    %344 = arith.mulf %340, %343 : vector<8x512xf32>
    %345 = arith.truncf %344 : vector<8x512xf32> to vector<8x512xbf16>
    %c6_257 = arith.constant 6 : index
    %c0_258 = arith.constant 0 : index
    %c0_259 = arith.constant 0 : index
    %346 = vector.load %arg14[%c6_257, %c0_258, %c0_259] : memref<9x16x8xbf16, #tpu.memory_space<vmem>>, vector<1x16x8xbf16>
    %347 = vector.shape_cast %346 : vector<1x16x8xbf16> to vector<16x8xbf16>
    %cst_260 = arith.constant dense<0.000000e+00> : vector<16x512xf32>
    %348 = tpu.matmul %347, %345, %cst_260 {dimension_numbers = #tpu.dot_dimension_numbers<[1], [0], [0], [1], [0, 0, 1, 1], [], []>} : vector<16x8xbf16>, vector<8x512xbf16>, vector<16x512xf32> -> vector<16x512xf32>
    %349 = arith.addf %339, %348 : vector<16x512xf32>
    %c496_i32_261 = arith.constant 496 : i32
    %350 = tpu.dynamic_rotate %281 by %c496_i32_261 dim 1 : vector<8x512xf32>, i32 -> vector<8x512xf32>
    %c7_262 = arith.constant 7 : index
    %c0_263 = arith.constant 0 : index
    %c0_264 = arith.constant 0 : index
    %351 = vector.load %arg1[%c7_262, %c0_263, %c0_264] : memref<9x1x512xf32, #tpu.memory_space<vmem>>, vector<1x1x512xf32>
    %352 = vector.shape_cast %351 : vector<1x1x512xf32> to vector<1x512xf32>
    %353 = vector.broadcast %352 : vector<1x512xf32> to vector<8x512xf32>
    %354 = arith.mulf %350, %353 : vector<8x512xf32>
    %355 = arith.truncf %354 : vector<8x512xf32> to vector<8x512xbf16>
    %c7_265 = arith.constant 7 : index
    %c0_266 = arith.constant 0 : index
    %c0_267 = arith.constant 0 : index
    %356 = vector.load %arg14[%c7_265, %c0_266, %c0_267] : memref<9x16x8xbf16, #tpu.memory_space<vmem>>, vector<1x16x8xbf16>
    %357 = vector.shape_cast %356 : vector<1x16x8xbf16> to vector<16x8xbf16>
    %cst_268 = arith.constant dense<0.000000e+00> : vector<16x512xf32>
    %358 = tpu.matmul %357, %355, %cst_268 {dimension_numbers = #tpu.dot_dimension_numbers<[1], [0], [0], [1], [0, 0, 1, 1], [], []>} : vector<16x8xbf16>, vector<8x512xbf16>, vector<16x512xf32> -> vector<16x512xf32>
    %359 = arith.addf %349, %358 : vector<16x512xf32>
    %c495_i32_269 = arith.constant 495 : i32
    %360 = tpu.dynamic_rotate %281 by %c495_i32_269 dim 1 : vector<8x512xf32>, i32 -> vector<8x512xf32>
    %c8_270 = arith.constant 8 : index
    %c0_271 = arith.constant 0 : index
    %c0_272 = arith.constant 0 : index
    %361 = vector.load %arg1[%c8_270, %c0_271, %c0_272] : memref<9x1x512xf32, #tpu.memory_space<vmem>>, vector<1x1x512xf32>
    %362 = vector.shape_cast %361 : vector<1x1x512xf32> to vector<1x512xf32>
    %363 = vector.broadcast %362 : vector<1x512xf32> to vector<8x512xf32>
    %364 = arith.mulf %360, %363 : vector<8x512xf32>
    %365 = arith.truncf %364 : vector<8x512xf32> to vector<8x512xbf16>
    %c8_273 = arith.constant 8 : index
    %c0_274 = arith.constant 0 : index
    %c0_275 = arith.constant 0 : index
    %366 = vector.load %arg14[%c8_273, %c0_274, %c0_275] : memref<9x16x8xbf16, #tpu.memory_space<vmem>>, vector<1x16x8xbf16>
    %367 = vector.shape_cast %366 : vector<1x16x8xbf16> to vector<16x8xbf16>
    %cst_276 = arith.constant dense<0.000000e+00> : vector<16x512xf32>
    %368 = tpu.matmul %367, %365, %cst_276 {dimension_numbers = #tpu.dot_dimension_numbers<[1], [0], [0], [1], [0, 0, 1, 1], [], []>} : vector<16x8xbf16>, vector<8x512xbf16>, vector<16x512xf32> -> vector<16x512xf32>
    %369 = arith.addf %359, %368 : vector<16x512xf32>
    %c0_277 = arith.constant 0 : index
    %c0_278 = arith.constant 0 : index
    %370 = vector.load %arg5[%c0_277, %c0_278] : memref<512x128xf32, #tpu.memory_space<vmem>>, vector<512x128xf32>
    %cst_279 = arith.constant dense<0.000000e+00> : vector<16x128xf32>
    %371 = tpu.matmul %369, %370, %cst_279 {dimension_numbers = #tpu.dot_dimension_numbers<[1], [0], [0], [1], [0, 0, 1, 1], [], []>} : vector<16x512xf32>, vector<512x128xf32>, vector<16x128xf32> -> vector<16x128xf32>
    %c0_280 = arith.constant 0 : index
    %c0_281 = arith.constant 0 : index
    %372 = vector.load %arg15[%c0_280, %c0_281] : memref<16x1xf32, #tpu.memory_space<vmem>>, vector<16x1xf32>
    %373 = vector.broadcast %372 : vector<16x1xf32> to vector<16x128xf32>
    %374 = arith.addf %371, %373 : vector<16x128xf32>
    %cst_282 = arith.constant 0.000000e+00 : f32
    %375 = vector.broadcast %cst_282 : f32 to vector<16x128xf32>
    %376 = arith.maximumf %374, %375 : vector<16x128xf32>
    %c9_i32 = arith.constant 9 : i32
    %377 = tpu.dynamic_rotate %376 by %c9_i32 dim 1 : vector<16x128xf32>, i32 -> vector<16x128xf32>
    %c0_283 = arith.constant 0 : index
    %c0_284 = arith.constant 0 : index
    %c0_285 = arith.constant 0 : index
    %378 = vector.load %arg2[%c0_283, %c0_284, %c0_285] : memref<9x1x128xf32, #tpu.memory_space<vmem>>, vector<1x1x128xf32>
    %379 = vector.shape_cast %378 : vector<1x1x128xf32> to vector<1x128xf32>
    %380 = vector.broadcast %379 : vector<1x128xf32> to vector<16x128xf32>
    %381 = arith.mulf %377, %380 : vector<16x128xf32>
    %382 = arith.truncf %381 : vector<16x128xf32> to vector<16x128xbf16>
    %c0_286 = arith.constant 0 : index
    %c0_287 = arith.constant 0 : index
    %c0_288 = arith.constant 0 : index
    %383 = vector.load %arg16[%c0_286, %c0_287, %c0_288] : memref<9x16x16xbf16, #tpu.memory_space<vmem>>, vector<1x16x16xbf16>
    %384 = vector.shape_cast %383 : vector<1x16x16xbf16> to vector<16x16xbf16>
    %cst_289 = arith.constant dense<0.000000e+00> : vector<16x128xf32>
    %385 = tpu.matmul %384, %382, %cst_289 {dimension_numbers = #tpu.dot_dimension_numbers<[1], [0], [0], [1], [0, 0, 1, 1], [], []>} : vector<16x16xbf16>, vector<16x128xbf16>, vector<16x128xf32> -> vector<16x128xf32>
    %c8_i32 = arith.constant 8 : i32
    %386 = tpu.dynamic_rotate %376 by %c8_i32 dim 1 : vector<16x128xf32>, i32 -> vector<16x128xf32>
    %c1_290 = arith.constant 1 : index
    %c0_291 = arith.constant 0 : index
    %c0_292 = arith.constant 0 : index
    %387 = vector.load %arg2[%c1_290, %c0_291, %c0_292] : memref<9x1x128xf32, #tpu.memory_space<vmem>>, vector<1x1x128xf32>
    %388 = vector.shape_cast %387 : vector<1x1x128xf32> to vector<1x128xf32>
    %389 = vector.broadcast %388 : vector<1x128xf32> to vector<16x128xf32>
    %390 = arith.mulf %386, %389 : vector<16x128xf32>
    %391 = arith.truncf %390 : vector<16x128xf32> to vector<16x128xbf16>
    %c1_293 = arith.constant 1 : index
    %c0_294 = arith.constant 0 : index
    %c0_295 = arith.constant 0 : index
    %392 = vector.load %arg16[%c1_293, %c0_294, %c0_295] : memref<9x16x16xbf16, #tpu.memory_space<vmem>>, vector<1x16x16xbf16>
    %393 = vector.shape_cast %392 : vector<1x16x16xbf16> to vector<16x16xbf16>
    %cst_296 = arith.constant dense<0.000000e+00> : vector<16x128xf32>
    %394 = tpu.matmul %393, %391, %cst_296 {dimension_numbers = #tpu.dot_dimension_numbers<[1], [0], [0], [1], [0, 0, 1, 1], [], []>} : vector<16x16xbf16>, vector<16x128xbf16>, vector<16x128xf32> -> vector<16x128xf32>
    %395 = arith.addf %385, %394 : vector<16x128xf32>
    %c7_i32 = arith.constant 7 : i32
    %396 = tpu.dynamic_rotate %376 by %c7_i32 dim 1 : vector<16x128xf32>, i32 -> vector<16x128xf32>
    %c2_297 = arith.constant 2 : index
    %c0_298 = arith.constant 0 : index
    %c0_299 = arith.constant 0 : index
    %397 = vector.load %arg2[%c2_297, %c0_298, %c0_299] : memref<9x1x128xf32, #tpu.memory_space<vmem>>, vector<1x1x128xf32>
    %398 = vector.shape_cast %397 : vector<1x1x128xf32> to vector<1x128xf32>
    %399 = vector.broadcast %398 : vector<1x128xf32> to vector<16x128xf32>
    %400 = arith.mulf %396, %399 : vector<16x128xf32>
    %401 = arith.truncf %400 : vector<16x128xf32> to vector<16x128xbf16>
    %c2_300 = arith.constant 2 : index
    %c0_301 = arith.constant 0 : index
    %c0_302 = arith.constant 0 : index
    %402 = vector.load %arg16[%c2_300, %c0_301, %c0_302] : memref<9x16x16xbf16, #tpu.memory_space<vmem>>, vector<1x16x16xbf16>
    %403 = vector.shape_cast %402 : vector<1x16x16xbf16> to vector<16x16xbf16>
    %cst_303 = arith.constant dense<0.000000e+00> : vector<16x128xf32>
    %404 = tpu.matmul %403, %401, %cst_303 {dimension_numbers = #tpu.dot_dimension_numbers<[1], [0], [0], [1], [0, 0, 1, 1], [], []>} : vector<16x16xbf16>, vector<16x128xbf16>, vector<16x128xf32> -> vector<16x128xf32>
    %405 = arith.addf %395, %404 : vector<16x128xf32>
    %c1_i32_304 = arith.constant 1 : i32
    %406 = tpu.dynamic_rotate %376 by %c1_i32_304 dim 1 : vector<16x128xf32>, i32 -> vector<16x128xf32>
    %c3_305 = arith.constant 3 : index
    %c0_306 = arith.constant 0 : index
    %c0_307 = arith.constant 0 : index
    %407 = vector.load %arg2[%c3_305, %c0_306, %c0_307] : memref<9x1x128xf32, #tpu.memory_space<vmem>>, vector<1x1x128xf32>
    %408 = vector.shape_cast %407 : vector<1x1x128xf32> to vector<1x128xf32>
    %409 = vector.broadcast %408 : vector<1x128xf32> to vector<16x128xf32>
    %410 = arith.mulf %406, %409 : vector<16x128xf32>
    %411 = arith.truncf %410 : vector<16x128xf32> to vector<16x128xbf16>
    %c3_308 = arith.constant 3 : index
    %c0_309 = arith.constant 0 : index
    %c0_310 = arith.constant 0 : index
    %412 = vector.load %arg16[%c3_308, %c0_309, %c0_310] : memref<9x16x16xbf16, #tpu.memory_space<vmem>>, vector<1x16x16xbf16>
    %413 = vector.shape_cast %412 : vector<1x16x16xbf16> to vector<16x16xbf16>
    %cst_311 = arith.constant dense<0.000000e+00> : vector<16x128xf32>
    %414 = tpu.matmul %413, %411, %cst_311 {dimension_numbers = #tpu.dot_dimension_numbers<[1], [0], [0], [1], [0, 0, 1, 1], [], []>} : vector<16x16xbf16>, vector<16x128xbf16>, vector<16x128xf32> -> vector<16x128xf32>
    %415 = arith.addf %405, %414 : vector<16x128xf32>
    %c4_312 = arith.constant 4 : index
    %c0_313 = arith.constant 0 : index
    %c0_314 = arith.constant 0 : index
    %416 = vector.load %arg2[%c4_312, %c0_313, %c0_314] : memref<9x1x128xf32, #tpu.memory_space<vmem>>, vector<1x1x128xf32>
    %417 = vector.shape_cast %416 : vector<1x1x128xf32> to vector<1x128xf32>
    %418 = vector.broadcast %417 : vector<1x128xf32> to vector<16x128xf32>
    %419 = arith.mulf %376, %418 : vector<16x128xf32>
    %420 = arith.truncf %419 : vector<16x128xf32> to vector<16x128xbf16>
    %c4_315 = arith.constant 4 : index
    %c0_316 = arith.constant 0 : index
    %c0_317 = arith.constant 0 : index
    %421 = vector.load %arg16[%c4_315, %c0_316, %c0_317] : memref<9x16x16xbf16, #tpu.memory_space<vmem>>, vector<1x16x16xbf16>
    %422 = vector.shape_cast %421 : vector<1x16x16xbf16> to vector<16x16xbf16>
    %cst_318 = arith.constant dense<0.000000e+00> : vector<16x128xf32>
    %423 = tpu.matmul %422, %420, %cst_318 {dimension_numbers = #tpu.dot_dimension_numbers<[1], [0], [0], [1], [0, 0, 1, 1], [], []>} : vector<16x16xbf16>, vector<16x128xbf16>, vector<16x128xf32> -> vector<16x128xf32>
    %424 = arith.addf %415, %423 : vector<16x128xf32>
    %c127_i32 = arith.constant 127 : i32
    %425 = tpu.dynamic_rotate %376 by %c127_i32 dim 1 : vector<16x128xf32>, i32 -> vector<16x128xf32>
    %c5_319 = arith.constant 5 : index
    %c0_320 = arith.constant 0 : index
    %c0_321 = arith.constant 0 : index
    %426 = vector.load %arg2[%c5_319, %c0_320, %c0_321] : memref<9x1x128xf32, #tpu.memory_space<vmem>>, vector<1x1x128xf32>
    %427 = vector.shape_cast %426 : vector<1x1x128xf32> to vector<1x128xf32>
    %428 = vector.broadcast %427 : vector<1x128xf32> to vector<16x128xf32>
    %429 = arith.mulf %425, %428 : vector<16x128xf32>
    %430 = arith.truncf %429 : vector<16x128xf32> to vector<16x128xbf16>
    %c5_322 = arith.constant 5 : index
    %c0_323 = arith.constant 0 : index
    %c0_324 = arith.constant 0 : index
    %431 = vector.load %arg16[%c5_322, %c0_323, %c0_324] : memref<9x16x16xbf16, #tpu.memory_space<vmem>>, vector<1x16x16xbf16>
    %432 = vector.shape_cast %431 : vector<1x16x16xbf16> to vector<16x16xbf16>
    %cst_325 = arith.constant dense<0.000000e+00> : vector<16x128xf32>
    %433 = tpu.matmul %432, %430, %cst_325 {dimension_numbers = #tpu.dot_dimension_numbers<[1], [0], [0], [1], [0, 0, 1, 1], [], []>} : vector<16x16xbf16>, vector<16x128xbf16>, vector<16x128xf32> -> vector<16x128xf32>
    %434 = arith.addf %424, %433 : vector<16x128xf32>
    %c121_i32 = arith.constant 121 : i32
    %435 = tpu.dynamic_rotate %376 by %c121_i32 dim 1 : vector<16x128xf32>, i32 -> vector<16x128xf32>
    %c6_326 = arith.constant 6 : index
    %c0_327 = arith.constant 0 : index
    %c0_328 = arith.constant 0 : index
    %436 = vector.load %arg2[%c6_326, %c0_327, %c0_328] : memref<9x1x128xf32, #tpu.memory_space<vmem>>, vector<1x1x128xf32>
    %437 = vector.shape_cast %436 : vector<1x1x128xf32> to vector<1x128xf32>
    %438 = vector.broadcast %437 : vector<1x128xf32> to vector<16x128xf32>
    %439 = arith.mulf %435, %438 : vector<16x128xf32>
    %440 = arith.truncf %439 : vector<16x128xf32> to vector<16x128xbf16>
    %c6_329 = arith.constant 6 : index
    %c0_330 = arith.constant 0 : index
    %c0_331 = arith.constant 0 : index
    %441 = vector.load %arg16[%c6_329, %c0_330, %c0_331] : memref<9x16x16xbf16, #tpu.memory_space<vmem>>, vector<1x16x16xbf16>
    %442 = vector.shape_cast %441 : vector<1x16x16xbf16> to vector<16x16xbf16>
    %cst_332 = arith.constant dense<0.000000e+00> : vector<16x128xf32>
    %443 = tpu.matmul %442, %440, %cst_332 {dimension_numbers = #tpu.dot_dimension_numbers<[1], [0], [0], [1], [0, 0, 1, 1], [], []>} : vector<16x16xbf16>, vector<16x128xbf16>, vector<16x128xf32> -> vector<16x128xf32>
    %444 = arith.addf %434, %443 : vector<16x128xf32>
    %c120_i32 = arith.constant 120 : i32
    %445 = tpu.dynamic_rotate %376 by %c120_i32 dim 1 : vector<16x128xf32>, i32 -> vector<16x128xf32>
    %c7_333 = arith.constant 7 : index
    %c0_334 = arith.constant 0 : index
    %c0_335 = arith.constant 0 : index
    %446 = vector.load %arg2[%c7_333, %c0_334, %c0_335] : memref<9x1x128xf32, #tpu.memory_space<vmem>>, vector<1x1x128xf32>
    %447 = vector.shape_cast %446 : vector<1x1x128xf32> to vector<1x128xf32>
    %448 = vector.broadcast %447 : vector<1x128xf32> to vector<16x128xf32>
    %449 = arith.mulf %445, %448 : vector<16x128xf32>
    %450 = arith.truncf %449 : vector<16x128xf32> to vector<16x128xbf16>
    %c7_336 = arith.constant 7 : index
    %c0_337 = arith.constant 0 : index
    %c0_338 = arith.constant 0 : index
    %451 = vector.load %arg16[%c7_336, %c0_337, %c0_338] : memref<9x16x16xbf16, #tpu.memory_space<vmem>>, vector<1x16x16xbf16>
    %452 = vector.shape_cast %451 : vector<1x16x16xbf16> to vector<16x16xbf16>
    %cst_339 = arith.constant dense<0.000000e+00> : vector<16x128xf32>
    %453 = tpu.matmul %452, %450, %cst_339 {dimension_numbers = #tpu.dot_dimension_numbers<[1], [0], [0], [1], [0, 0, 1, 1], [], []>} : vector<16x16xbf16>, vector<16x128xbf16>, vector<16x128xf32> -> vector<16x128xf32>
    %454 = arith.addf %444, %453 : vector<16x128xf32>
    %c119_i32 = arith.constant 119 : i32
    %455 = tpu.dynamic_rotate %376 by %c119_i32 dim 1 : vector<16x128xf32>, i32 -> vector<16x128xf32>
    %c8_340 = arith.constant 8 : index
    %c0_341 = arith.constant 0 : index
    %c0_342 = arith.constant 0 : index
    %456 = vector.load %arg2[%c8_340, %c0_341, %c0_342] : memref<9x1x128xf32, #tpu.memory_space<vmem>>, vector<1x1x128xf32>
    %457 = vector.shape_cast %456 : vector<1x1x128xf32> to vector<1x128xf32>
    %458 = vector.broadcast %457 : vector<1x128xf32> to vector<16x128xf32>
    %459 = arith.mulf %455, %458 : vector<16x128xf32>
    %460 = arith.truncf %459 : vector<16x128xf32> to vector<16x128xbf16>
    %c8_343 = arith.constant 8 : index
    %c0_344 = arith.constant 0 : index
    %c0_345 = arith.constant 0 : index
    %461 = vector.load %arg16[%c8_343, %c0_344, %c0_345] : memref<9x16x16xbf16, #tpu.memory_space<vmem>>, vector<1x16x16xbf16>
    %462 = vector.shape_cast %461 : vector<1x16x16xbf16> to vector<16x16xbf16>
    %cst_346 = arith.constant dense<0.000000e+00> : vector<16x128xf32>
    %463 = tpu.matmul %462, %460, %cst_346 {dimension_numbers = #tpu.dot_dimension_numbers<[1], [0], [0], [1], [0, 0, 1, 1], [], []>} : vector<16x16xbf16>, vector<16x128xbf16>, vector<16x128xf32> -> vector<16x128xf32>
    %464 = arith.addf %454, %463 : vector<16x128xf32>
    %c0_347 = arith.constant 0 : index
    %c0_348 = arith.constant 0 : index
    %465 = vector.load %arg5[%c0_347, %c0_348] : memref<512x128xf32, #tpu.memory_space<vmem>>, vector<512x128xf32>
    %cst_349 = arith.constant dense<0.000000e+00> : vector<8x128xf32>
    %466 = tpu.matmul %281, %465, %cst_349 {dimension_numbers = #tpu.dot_dimension_numbers<[1], [0], [0], [1], [0, 0, 1, 1], [], []>} : vector<8x512xf32>, vector<512x128xf32>, vector<8x128xf32> -> vector<8x128xf32>
    %c0_350 = arith.constant 0 : index
    %c0_351 = arith.constant 0 : index
    %467 = vector.load %arg18[%c0_350, %c0_351] : memref<16x8xbf16, #tpu.memory_space<vmem>>, vector<16x8xbf16>
    %468 = arith.truncf %466 : vector<8x128xf32> to vector<8x128xbf16>
    %cst_352 = arith.constant dense<0.000000e+00> : vector<16x128xf32>
    %469 = tpu.matmul %467, %468, %cst_352 {dimension_numbers = #tpu.dot_dimension_numbers<[1], [0], [0], [1], [0, 0, 1, 1], [], []>} : vector<16x8xbf16>, vector<8x128xbf16>, vector<16x128xf32> -> vector<16x128xf32>
    %c0_353 = arith.constant 0 : index
    %c0_354 = arith.constant 0 : index
    %470 = vector.load %arg19[%c0_353, %c0_354] : memref<16x1xf32, #tpu.memory_space<vmem>>, vector<16x1xf32>
    %471 = vector.broadcast %470 : vector<16x1xf32> to vector<16x128xf32>
    %472 = arith.addf %469, %471 : vector<16x128xf32>
    %c0_355 = arith.constant 0 : index
    %c0_356 = arith.constant 0 : index
    %473 = vector.load %arg17[%c0_355, %c0_356] : memref<16x1xf32, #tpu.memory_space<vmem>>, vector<16x1xf32>
    %474 = vector.broadcast %473 : vector<16x1xf32> to vector<16x128xf32>
    %475 = arith.addf %464, %474 : vector<16x128xf32>
    %476 = arith.addf %475, %472 : vector<16x128xf32>
    %cst_357 = arith.constant 0.000000e+00 : f32
    %477 = vector.broadcast %cst_357 : f32 to vector<16x128xf32>
    %478 = arith.maximumf %476, %477 : vector<16x128xf32>
    %479 = arith.truncf %478 : vector<16x128xf32> to vector<16x128xbf16>
    %c0_358 = arith.constant 0 : index
    %c0_359 = arith.constant 0 : index
    %480 = vector.load %arg34[%c0_358, %c0_359] : memref<16x128xbf16, #tpu.memory_space<vmem>>, vector<16x128xbf16>
    tpu.vector_store %arg34[%c0_358, %c0_359], %479 {strides = array<i32>} : memref<16x128xbf16, #tpu.memory_space<vmem>>, vector<16x128xbf16>,
    %c9_i32_360 = arith.constant 9 : i32
    %481 = tpu.dynamic_rotate %478 by %c9_i32_360 dim 1 : vector<16x128xf32>, i32 -> vector<16x128xf32>
    %c0_361 = arith.constant 0 : index
    %c0_362 = arith.constant 0 : index
    %c0_363 = arith.constant 0 : index
    %482 = vector.load %arg2[%c0_361, %c0_362, %c0_363] : memref<9x1x128xf32, #tpu.memory_space<vmem>>, vector<1x1x128xf32>
    %483 = vector.shape_cast %482 : vector<1x1x128xf32> to vector<1x128xf32>
    %484 = vector.broadcast %483 : vector<1x128xf32> to vector<16x128xf32>
    %485 = arith.mulf %481, %484 : vector<16x128xf32>
    %486 = arith.truncf %485 : vector<16x128xf32> to vector<16x128xbf16>
    %c0_364 = arith.constant 0 : index
    %c0_365 = arith.constant 0 : index
    %c0_366 = arith.constant 0 : index
    %487 = vector.load %arg20[%c0_364, %c0_365, %c0_366] : memref<9x32x16xbf16, #tpu.memory_space<vmem>>, vector<1x32x16xbf16>
    %488 = vector.shape_cast %487 : vector<1x32x16xbf16> to vector<32x16xbf16>
    %cst_367 = arith.constant dense<0.000000e+00> : vector<32x128xf32>
    %489 = tpu.matmul %488, %486, %cst_367 {dimension_numbers = #tpu.dot_dimension_numbers<[1], [0], [0], [1], [0, 0, 1, 1], [], []>} : vector<32x16xbf16>, vector<16x128xbf16>, vector<32x128xf32> -> vector<32x128xf32>
    %c8_i32_368 = arith.constant 8 : i32
    %490 = tpu.dynamic_rotate %478 by %c8_i32_368 dim 1 : vector<16x128xf32>, i32 -> vector<16x128xf32>
    %c1_369 = arith.constant 1 : index
    %c0_370 = arith.constant 0 : index
    %c0_371 = arith.constant 0 : index
    %491 = vector.load %arg2[%c1_369, %c0_370, %c0_371] : memref<9x1x128xf32, #tpu.memory_space<vmem>>, vector<1x1x128xf32>
    %492 = vector.shape_cast %491 : vector<1x1x128xf32> to vector<1x128xf32>
    %493 = vector.broadcast %492 : vector<1x128xf32> to vector<16x128xf32>
    %494 = arith.mulf %490, %493 : vector<16x128xf32>
    %495 = arith.truncf %494 : vector<16x128xf32> to vector<16x128xbf16>
    %c1_372 = arith.constant 1 : index
    %c0_373 = arith.constant 0 : index
    %c0_374 = arith.constant 0 : index
    %496 = vector.load %arg20[%c1_372, %c0_373, %c0_374] : memref<9x32x16xbf16, #tpu.memory_space<vmem>>, vector<1x32x16xbf16>
    %497 = vector.shape_cast %496 : vector<1x32x16xbf16> to vector<32x16xbf16>
    %cst_375 = arith.constant dense<0.000000e+00> : vector<32x128xf32>
    %498 = tpu.matmul %497, %495, %cst_375 {dimension_numbers = #tpu.dot_dimension_numbers<[1], [0], [0], [1], [0, 0, 1, 1], [], []>} : vector<32x16xbf16>, vector<16x128xbf16>, vector<32x128xf32> -> vector<32x128xf32>
    %499 = arith.addf %489, %498 : vector<32x128xf32>
    %c7_i32_376 = arith.constant 7 : i32
    %500 = tpu.dynamic_rotate %478 by %c7_i32_376 dim 1 : vector<16x128xf32>, i32 -> vector<16x128xf32>
    %c2_377 = arith.constant 2 : index
    %c0_378 = arith.constant 0 : index
    %c0_379 = arith.constant 0 : index
    %501 = vector.load %arg2[%c2_377, %c0_378, %c0_379] : memref<9x1x128xf32, #tpu.memory_space<vmem>>, vector<1x1x128xf32>
    %502 = vector.shape_cast %501 : vector<1x1x128xf32> to vector<1x128xf32>
    %503 = vector.broadcast %502 : vector<1x128xf32> to vector<16x128xf32>
    %504 = arith.mulf %500, %503 : vector<16x128xf32>
    %505 = arith.truncf %504 : vector<16x128xf32> to vector<16x128xbf16>
    %c2_380 = arith.constant 2 : index
    %c0_381 = arith.constant 0 : index
    %c0_382 = arith.constant 0 : index
    %506 = vector.load %arg20[%c2_380, %c0_381, %c0_382] : memref<9x32x16xbf16, #tpu.memory_space<vmem>>, vector<1x32x16xbf16>
    %507 = vector.shape_cast %506 : vector<1x32x16xbf16> to vector<32x16xbf16>
    %cst_383 = arith.constant dense<0.000000e+00> : vector<32x128xf32>
    %508 = tpu.matmul %507, %505, %cst_383 {dimension_numbers = #tpu.dot_dimension_numbers<[1], [0], [0], [1], [0, 0, 1, 1], [], []>} : vector<32x16xbf16>, vector<16x128xbf16>, vector<32x128xf32> -> vector<32x128xf32>
    %509 = arith.addf %499, %508 : vector<32x128xf32>
    %c1_i32_384 = arith.constant 1 : i32
    %510 = tpu.dynamic_rotate %478 by %c1_i32_384 dim 1 : vector<16x128xf32>, i32 -> vector<16x128xf32>
    %c3_385 = arith.constant 3 : index
    %c0_386 = arith.constant 0 : index
    %c0_387 = arith.constant 0 : index
    %511 = vector.load %arg2[%c3_385, %c0_386, %c0_387] : memref<9x1x128xf32, #tpu.memory_space<vmem>>, vector<1x1x128xf32>
    %512 = vector.shape_cast %511 : vector<1x1x128xf32> to vector<1x128xf32>
    %513 = vector.broadcast %512 : vector<1x128xf32> to vector<16x128xf32>
    %514 = arith.mulf %510, %513 : vector<16x128xf32>
    %515 = arith.truncf %514 : vector<16x128xf32> to vector<16x128xbf16>
    %c3_388 = arith.constant 3 : index
    %c0_389 = arith.constant 0 : index
    %c0_390 = arith.constant 0 : index
    %516 = vector.load %arg20[%c3_388, %c0_389, %c0_390] : memref<9x32x16xbf16, #tpu.memory_space<vmem>>, vector<1x32x16xbf16>
    %517 = vector.shape_cast %516 : vector<1x32x16xbf16> to vector<32x16xbf16>
    %cst_391 = arith.constant dense<0.000000e+00> : vector<32x128xf32>
    %518 = tpu.matmul %517, %515, %cst_391 {dimension_numbers = #tpu.dot_dimension_numbers<[1], [0], [0], [1], [0, 0, 1, 1], [], []>} : vector<32x16xbf16>, vector<16x128xbf16>, vector<32x128xf32> -> vector<32x128xf32>
    %519 = arith.addf %509, %518 : vector<32x128xf32>
    %c4_392 = arith.constant 4 : index
    %c0_393 = arith.constant 0 : index
    %c0_394 = arith.constant 0 : index
    %520 = vector.load %arg2[%c4_392, %c0_393, %c0_394] : memref<9x1x128xf32, #tpu.memory_space<vmem>>, vector<1x1x128xf32>
    %521 = vector.shape_cast %520 : vector<1x1x128xf32> to vector<1x128xf32>
    %522 = vector.broadcast %521 : vector<1x128xf32> to vector<16x128xf32>
    %523 = arith.mulf %478, %522 : vector<16x128xf32>
    %524 = arith.truncf %523 : vector<16x128xf32> to vector<16x128xbf16>
    %c4_395 = arith.constant 4 : index
    %c0_396 = arith.constant 0 : index
    %c0_397 = arith.constant 0 : index
    %525 = vector.load %arg20[%c4_395, %c0_396, %c0_397] : memref<9x32x16xbf16, #tpu.memory_space<vmem>>, vector<1x32x16xbf16>
    %526 = vector.shape_cast %525 : vector<1x32x16xbf16> to vector<32x16xbf16>
    %cst_398 = arith.constant dense<0.000000e+00> : vector<32x128xf32>
    %527 = tpu.matmul %526, %524, %cst_398 {dimension_numbers = #tpu.dot_dimension_numbers<[1], [0], [0], [1], [0, 0, 1, 1], [], []>} : vector<32x16xbf16>, vector<16x128xbf16>, vector<32x128xf32> -> vector<32x128xf32>
    %528 = arith.addf %519, %527 : vector<32x128xf32>
    %c127_i32_399 = arith.constant 127 : i32
    %529 = tpu.dynamic_rotate %478 by %c127_i32_399 dim 1 : vector<16x128xf32>, i32 -> vector<16x128xf32>
    %c5_400 = arith.constant 5 : index
    %c0_401 = arith.constant 0 : index
    %c0_402 = arith.constant 0 : index
    %530 = vector.load %arg2[%c5_400, %c0_401, %c0_402] : memref<9x1x128xf32, #tpu.memory_space<vmem>>, vector<1x1x128xf32>
    %531 = vector.shape_cast %530 : vector<1x1x128xf32> to vector<1x128xf32>
    %532 = vector.broadcast %531 : vector<1x128xf32> to vector<16x128xf32>
    %533 = arith.mulf %529, %532 : vector<16x128xf32>
    %534 = arith.truncf %533 : vector<16x128xf32> to vector<16x128xbf16>
    %c5_403 = arith.constant 5 : index
    %c0_404 = arith.constant 0 : index
    %c0_405 = arith.constant 0 : index
    %535 = vector.load %arg20[%c5_403, %c0_404, %c0_405] : memref<9x32x16xbf16, #tpu.memory_space<vmem>>, vector<1x32x16xbf16>
    %536 = vector.shape_cast %535 : vector<1x32x16xbf16> to vector<32x16xbf16>
    %cst_406 = arith.constant dense<0.000000e+00> : vector<32x128xf32>
    %537 = tpu.matmul %536, %534, %cst_406 {dimension_numbers = #tpu.dot_dimension_numbers<[1], [0], [0], [1], [0, 0, 1, 1], [], []>} : vector<32x16xbf16>, vector<16x128xbf16>, vector<32x128xf32> -> vector<32x128xf32>
    %538 = arith.addf %528, %537 : vector<32x128xf32>
    %c121_i32_407 = arith.constant 121 : i32
    %539 = tpu.dynamic_rotate %478 by %c121_i32_407 dim 1 : vector<16x128xf32>, i32 -> vector<16x128xf32>
    %c6_408 = arith.constant 6 : index
    %c0_409 = arith.constant 0 : index
    %c0_410 = arith.constant 0 : index
    %540 = vector.load %arg2[%c6_408, %c0_409, %c0_410] : memref<9x1x128xf32, #tpu.memory_space<vmem>>, vector<1x1x128xf32>
    %541 = vector.shape_cast %540 : vector<1x1x128xf32> to vector<1x128xf32>
    %542 = vector.broadcast %541 : vector<1x128xf32> to vector<16x128xf32>
    %543 = arith.mulf %539, %542 : vector<16x128xf32>
    %544 = arith.truncf %543 : vector<16x128xf32> to vector<16x128xbf16>
    %c6_411 = arith.constant 6 : index
    %c0_412 = arith.constant 0 : index
    %c0_413 = arith.constant 0 : index
    %545 = vector.load %arg20[%c6_411, %c0_412, %c0_413] : memref<9x32x16xbf16, #tpu.memory_space<vmem>>, vector<1x32x16xbf16>
    %546 = vector.shape_cast %545 : vector<1x32x16xbf16> to vector<32x16xbf16>
    %cst_414 = arith.constant dense<0.000000e+00> : vector<32x128xf32>
    %547 = tpu.matmul %546, %544, %cst_414 {dimension_numbers = #tpu.dot_dimension_numbers<[1], [0], [0], [1], [0, 0, 1, 1], [], []>} : vector<32x16xbf16>, vector<16x128xbf16>, vector<32x128xf32> -> vector<32x128xf32>
    %548 = arith.addf %538, %547 : vector<32x128xf32>
    %c120_i32_415 = arith.constant 120 : i32
    %549 = tpu.dynamic_rotate %478 by %c120_i32_415 dim 1 : vector<16x128xf32>, i32 -> vector<16x128xf32>
    %c7_416 = arith.constant 7 : index
    %c0_417 = arith.constant 0 : index
    %c0_418 = arith.constant 0 : index
    %550 = vector.load %arg2[%c7_416, %c0_417, %c0_418] : memref<9x1x128xf32, #tpu.memory_space<vmem>>, vector<1x1x128xf32>
    %551 = vector.shape_cast %550 : vector<1x1x128xf32> to vector<1x128xf32>
    %552 = vector.broadcast %551 : vector<1x128xf32> to vector<16x128xf32>
    %553 = arith.mulf %549, %552 : vector<16x128xf32>
    %554 = arith.truncf %553 : vector<16x128xf32> to vector<16x128xbf16>
    %c7_419 = arith.constant 7 : index
    %c0_420 = arith.constant 0 : index
    %c0_421 = arith.constant 0 : index
    %555 = vector.load %arg20[%c7_419, %c0_420, %c0_421] : memref<9x32x16xbf16, #tpu.memory_space<vmem>>, vector<1x32x16xbf16>
    %556 = vector.shape_cast %555 : vector<1x32x16xbf16> to vector<32x16xbf16>
    %cst_422 = arith.constant dense<0.000000e+00> : vector<32x128xf32>
    %557 = tpu.matmul %556, %554, %cst_422 {dimension_numbers = #tpu.dot_dimension_numbers<[1], [0], [0], [1], [0, 0, 1, 1], [], []>} : vector<32x16xbf16>, vector<16x128xbf16>, vector<32x128xf32> -> vector<32x128xf32>
    %558 = arith.addf %548, %557 : vector<32x128xf32>
    %c119_i32_423 = arith.constant 119 : i32
    %559 = tpu.dynamic_rotate %478 by %c119_i32_423 dim 1 : vector<16x128xf32>, i32 -> vector<16x128xf32>
    %c8_424 = arith.constant 8 : index
    %c0_425 = arith.constant 0 : index
    %c0_426 = arith.constant 0 : index
    %560 = vector.load %arg2[%c8_424, %c0_425, %c0_426] : memref<9x1x128xf32, #tpu.memory_space<vmem>>, vector<1x1x128xf32>
    %561 = vector.shape_cast %560 : vector<1x1x128xf32> to vector<1x128xf32>
    %562 = vector.broadcast %561 : vector<1x128xf32> to vector<16x128xf32>
    %563 = arith.mulf %559, %562 : vector<16x128xf32>
    %564 = arith.truncf %563 : vector<16x128xf32> to vector<16x128xbf16>
    %c8_427 = arith.constant 8 : index
    %c0_428 = arith.constant 0 : index
    %c0_429 = arith.constant 0 : index
    %565 = vector.load %arg20[%c8_427, %c0_428, %c0_429] : memref<9x32x16xbf16, #tpu.memory_space<vmem>>, vector<1x32x16xbf16>
    %566 = vector.shape_cast %565 : vector<1x32x16xbf16> to vector<32x16xbf16>
    %cst_430 = arith.constant dense<0.000000e+00> : vector<32x128xf32>
    %567 = tpu.matmul %566, %564, %cst_430 {dimension_numbers = #tpu.dot_dimension_numbers<[1], [0], [0], [1], [0, 0, 1, 1], [], []>} : vector<32x16xbf16>, vector<16x128xbf16>, vector<32x128xf32> -> vector<32x128xf32>
    %568 = arith.addf %558, %567 : vector<32x128xf32>
    %c0_431 = arith.constant 0 : index
    %c0_432 = arith.constant 0 : index
    %569 = vector.load %arg6[%c0_431, %c0_432] : memref<128x128xf32, #tpu.memory_space<vmem>>, vector<128x128xf32>
    %cst_433 = arith.constant dense<0.000000e+00> : vector<32x128xf32>
    %570 = tpu.matmul %568, %569, %cst_433 {dimension_numbers = #tpu.dot_dimension_numbers<[1], [0], [0], [1], [0, 0, 1, 1], [], []>} : vector<32x128xf32>, vector<128x128xf32>, vector<32x128xf32> -> vector<32x128xf32>
    %c0_434 = arith.constant 0 : index
    %c0_435 = arith.constant 0 : index
    %571 = vector.load %arg21[%c0_434, %c0_435] : memref<32x1xf32, #tpu.memory_space<vmem>>, vector<32x1xf32>
    %572 = vector.broadcast %571 : vector<32x1xf32> to vector<32x128xf32>
    %573 = arith.addf %570, %572 : vector<32x128xf32>
    %cst_436 = arith.constant 0.000000e+00 : f32
    %574 = vector.broadcast %cst_436 : f32 to vector<32x128xf32>
    %575 = arith.maximumf %573, %574 : vector<32x128xf32>
    %c5_i32 = arith.constant 5 : i32
    %576 = tpu.dynamic_rotate %575 by %c5_i32 dim 1 : vector<32x128xf32>, i32 -> vector<32x128xf32>
    %c0_437 = arith.constant 0 : index
    %c0_438 = arith.constant 0 : index
    %c0_439 = arith.constant 0 : index
    %577 = vector.load %arg3[%c0_437, %c0_438, %c0_439] : memref<9x1x128xf32, #tpu.memory_space<vmem>>, vector<1x1x128xf32>
    %578 = vector.shape_cast %577 : vector<1x1x128xf32> to vector<1x128xf32>
    %579 = vector.broadcast %578 : vector<1x128xf32> to vector<32x128xf32>
    %580 = arith.mulf %576, %579 : vector<32x128xf32>
    %581 = arith.truncf %580 : vector<32x128xf32> to vector<32x128xbf16>
    %c0_440 = arith.constant 0 : index
    %c0_441 = arith.constant 0 : index
    %c0_442 = arith.constant 0 : index
    %582 = vector.load %arg22[%c0_440, %c0_441, %c0_442] : memref<9x32x32xbf16, #tpu.memory_space<vmem>>, vector<1x32x32xbf16>
    %583 = vector.shape_cast %582 : vector<1x32x32xbf16> to vector<32x32xbf16>
    %cst_443 = arith.constant dense<0.000000e+00> : vector<32x128xf32>
    %584 = tpu.matmul %583, %581, %cst_443 {dimension_numbers = #tpu.dot_dimension_numbers<[1], [0], [0], [1], [0, 0, 1, 1], [], []>} : vector<32x32xbf16>, vector<32x128xbf16>, vector<32x128xf32> -> vector<32x128xf32>
    %c4_i32 = arith.constant 4 : i32
    %585 = tpu.dynamic_rotate %575 by %c4_i32 dim 1 : vector<32x128xf32>, i32 -> vector<32x128xf32>
    %c1_444 = arith.constant 1 : index
    %c0_445 = arith.constant 0 : index
    %c0_446 = arith.constant 0 : index
    %586 = vector.load %arg3[%c1_444, %c0_445, %c0_446] : memref<9x1x128xf32, #tpu.memory_space<vmem>>, vector<1x1x128xf32>
    %587 = vector.shape_cast %586 : vector<1x1x128xf32> to vector<1x128xf32>
    %588 = vector.broadcast %587 : vector<1x128xf32> to vector<32x128xf32>
    %589 = arith.mulf %585, %588 : vector<32x128xf32>
    %590 = arith.truncf %589 : vector<32x128xf32> to vector<32x128xbf16>
    %c1_447 = arith.constant 1 : index
    %c0_448 = arith.constant 0 : index
    %c0_449 = arith.constant 0 : index
    %591 = vector.load %arg22[%c1_447, %c0_448, %c0_449] : memref<9x32x32xbf16, #tpu.memory_space<vmem>>, vector<1x32x32xbf16>
    %592 = vector.shape_cast %591 : vector<1x32x32xbf16> to vector<32x32xbf16>
    %cst_450 = arith.constant dense<0.000000e+00> : vector<32x128xf32>
    %593 = tpu.matmul %592, %590, %cst_450 {dimension_numbers = #tpu.dot_dimension_numbers<[1], [0], [0], [1], [0, 0, 1, 1], [], []>} : vector<32x32xbf16>, vector<32x128xbf16>, vector<32x128xf32> -> vector<32x128xf32>
    %594 = arith.addf %584, %593 : vector<32x128xf32>
    %c3_i32 = arith.constant 3 : i32
    %595 = tpu.dynamic_rotate %575 by %c3_i32 dim 1 : vector<32x128xf32>, i32 -> vector<32x128xf32>
    %c2_451 = arith.constant 2 : index
    %c0_452 = arith.constant 0 : index
    %c0_453 = arith.constant 0 : index
    %596 = vector.load %arg3[%c2_451, %c0_452, %c0_453] : memref<9x1x128xf32, #tpu.memory_space<vmem>>, vector<1x1x128xf32>
    %597 = vector.shape_cast %596 : vector<1x1x128xf32> to vector<1x128xf32>
    %598 = vector.broadcast %597 : vector<1x128xf32> to vector<32x128xf32>
    %599 = arith.mulf %595, %598 : vector<32x128xf32>
    %600 = arith.truncf %599 : vector<32x128xf32> to vector<32x128xbf16>
    %c2_454 = arith.constant 2 : index
    %c0_455 = arith.constant 0 : index
    %c0_456 = arith.constant 0 : index
    %601 = vector.load %arg22[%c2_454, %c0_455, %c0_456] : memref<9x32x32xbf16, #tpu.memory_space<vmem>>, vector<1x32x32xbf16>
    %602 = vector.shape_cast %601 : vector<1x32x32xbf16> to vector<32x32xbf16>
    %cst_457 = arith.constant dense<0.000000e+00> : vector<32x128xf32>
    %603 = tpu.matmul %602, %600, %cst_457 {dimension_numbers = #tpu.dot_dimension_numbers<[1], [0], [0], [1], [0, 0, 1, 1], [], []>} : vector<32x32xbf16>, vector<32x128xbf16>, vector<32x128xf32> -> vector<32x128xf32>
    %604 = arith.addf %594, %603 : vector<32x128xf32>
    %c1_i32_458 = arith.constant 1 : i32
    %605 = tpu.dynamic_rotate %575 by %c1_i32_458 dim 1 : vector<32x128xf32>, i32 -> vector<32x128xf32>
    %c3_459 = arith.constant 3 : index
    %c0_460 = arith.constant 0 : index
    %c0_461 = arith.constant 0 : index
    %606 = vector.load %arg3[%c3_459, %c0_460, %c0_461] : memref<9x1x128xf32, #tpu.memory_space<vmem>>, vector<1x1x128xf32>
    %607 = vector.shape_cast %606 : vector<1x1x128xf32> to vector<1x128xf32>
    %608 = vector.broadcast %607 : vector<1x128xf32> to vector<32x128xf32>
    %609 = arith.mulf %605, %608 : vector<32x128xf32>
    %610 = arith.truncf %609 : vector<32x128xf32> to vector<32x128xbf16>
    %c3_462 = arith.constant 3 : index
    %c0_463 = arith.constant 0 : index
    %c0_464 = arith.constant 0 : index
    %611 = vector.load %arg22[%c3_462, %c0_463, %c0_464] : memref<9x32x32xbf16, #tpu.memory_space<vmem>>, vector<1x32x32xbf16>
    %612 = vector.shape_cast %611 : vector<1x32x32xbf16> to vector<32x32xbf16>
    %cst_465 = arith.constant dense<0.000000e+00> : vector<32x128xf32>
    %613 = tpu.matmul %612, %610, %cst_465 {dimension_numbers = #tpu.dot_dimension_numbers<[1], [0], [0], [1], [0, 0, 1, 1], [], []>} : vector<32x32xbf16>, vector<32x128xbf16>, vector<32x128xf32> -> vector<32x128xf32>
    %614 = arith.addf %604, %613 : vector<32x128xf32>
    %c4_466 = arith.constant 4 : index
    %c0_467 = arith.constant 0 : index
    %c0_468 = arith.constant 0 : index
    %615 = vector.load %arg3[%c4_466, %c0_467, %c0_468] : memref<9x1x128xf32, #tpu.memory_space<vmem>>, vector<1x1x128xf32>
    %616 = vector.shape_cast %615 : vector<1x1x128xf32> to vector<1x128xf32>
    %617 = vector.broadcast %616 : vector<1x128xf32> to vector<32x128xf32>
    %618 = arith.mulf %575, %617 : vector<32x128xf32>
    %619 = arith.truncf %618 : vector<32x128xf32> to vector<32x128xbf16>
    %c4_469 = arith.constant 4 : index
    %c0_470 = arith.constant 0 : index
    %c0_471 = arith.constant 0 : index
    %620 = vector.load %arg22[%c4_469, %c0_470, %c0_471] : memref<9x32x32xbf16, #tpu.memory_space<vmem>>, vector<1x32x32xbf16>
    %621 = vector.shape_cast %620 : vector<1x32x32xbf16> to vector<32x32xbf16>
    %cst_472 = arith.constant dense<0.000000e+00> : vector<32x128xf32>
    %622 = tpu.matmul %621, %619, %cst_472 {dimension_numbers = #tpu.dot_dimension_numbers<[1], [0], [0], [1], [0, 0, 1, 1], [], []>} : vector<32x32xbf16>, vector<32x128xbf16>, vector<32x128xf32> -> vector<32x128xf32>
    %623 = arith.addf %614, %622 : vector<32x128xf32>
    %c127_i32_473 = arith.constant 127 : i32
    %624 = tpu.dynamic_rotate %575 by %c127_i32_473 dim 1 : vector<32x128xf32>, i32 -> vector<32x128xf32>
    %c5_474 = arith.constant 5 : index
    %c0_475 = arith.constant 0 : index
    %c0_476 = arith.constant 0 : index
    %625 = vector.load %arg3[%c5_474, %c0_475, %c0_476] : memref<9x1x128xf32, #tpu.memory_space<vmem>>, vector<1x1x128xf32>
    %626 = vector.shape_cast %625 : vector<1x1x128xf32> to vector<1x128xf32>
    %627 = vector.broadcast %626 : vector<1x128xf32> to vector<32x128xf32>
    %628 = arith.mulf %624, %627 : vector<32x128xf32>
    %629 = arith.truncf %628 : vector<32x128xf32> to vector<32x128xbf16>
    %c5_477 = arith.constant 5 : index
    %c0_478 = arith.constant 0 : index
    %c0_479 = arith.constant 0 : index
    %630 = vector.load %arg22[%c5_477, %c0_478, %c0_479] : memref<9x32x32xbf16, #tpu.memory_space<vmem>>, vector<1x32x32xbf16>
    %631 = vector.shape_cast %630 : vector<1x32x32xbf16> to vector<32x32xbf16>
    %cst_480 = arith.constant dense<0.000000e+00> : vector<32x128xf32>
    %632 = tpu.matmul %631, %629, %cst_480 {dimension_numbers = #tpu.dot_dimension_numbers<[1], [0], [0], [1], [0, 0, 1, 1], [], []>} : vector<32x32xbf16>, vector<32x128xbf16>, vector<32x128xf32> -> vector<32x128xf32>
    %633 = arith.addf %623, %632 : vector<32x128xf32>
    %c125_i32 = arith.constant 125 : i32
    %634 = tpu.dynamic_rotate %575 by %c125_i32 dim 1 : vector<32x128xf32>, i32 -> vector<32x128xf32>
    %c6_481 = arith.constant 6 : index
    %c0_482 = arith.constant 0 : index
    %c0_483 = arith.constant 0 : index
    %635 = vector.load %arg3[%c6_481, %c0_482, %c0_483] : memref<9x1x128xf32, #tpu.memory_space<vmem>>, vector<1x1x128xf32>
    %636 = vector.shape_cast %635 : vector<1x1x128xf32> to vector<1x128xf32>
    %637 = vector.broadcast %636 : vector<1x128xf32> to vector<32x128xf32>
    %638 = arith.mulf %634, %637 : vector<32x128xf32>
    %639 = arith.truncf %638 : vector<32x128xf32> to vector<32x128xbf16>
    %c6_484 = arith.constant 6 : index
    %c0_485 = arith.constant 0 : index
    %c0_486 = arith.constant 0 : index
    %640 = vector.load %arg22[%c6_484, %c0_485, %c0_486] : memref<9x32x32xbf16, #tpu.memory_space<vmem>>, vector<1x32x32xbf16>
    %641 = vector.shape_cast %640 : vector<1x32x32xbf16> to vector<32x32xbf16>
    %cst_487 = arith.constant dense<0.000000e+00> : vector<32x128xf32>
    %642 = tpu.matmul %641, %639, %cst_487 {dimension_numbers = #tpu.dot_dimension_numbers<[1], [0], [0], [1], [0, 0, 1, 1], [], []>} : vector<32x32xbf16>, vector<32x128xbf16>, vector<32x128xf32> -> vector<32x128xf32>
    %643 = arith.addf %633, %642 : vector<32x128xf32>
    %c124_i32 = arith.constant 124 : i32
    %644 = tpu.dynamic_rotate %575 by %c124_i32 dim 1 : vector<32x128xf32>, i32 -> vector<32x128xf32>
    %c7_488 = arith.constant 7 : index
    %c0_489 = arith.constant 0 : index
    %c0_490 = arith.constant 0 : index
    %645 = vector.load %arg3[%c7_488, %c0_489, %c0_490] : memref<9x1x128xf32, #tpu.memory_space<vmem>>, vector<1x1x128xf32>
    %646 = vector.shape_cast %645 : vector<1x1x128xf32> to vector<1x128xf32>
    %647 = vector.broadcast %646 : vector<1x128xf32> to vector<32x128xf32>
    %648 = arith.mulf %644, %647 : vector<32x128xf32>
    %649 = arith.truncf %648 : vector<32x128xf32> to vector<32x128xbf16>
    %c7_491 = arith.constant 7 : index
    %c0_492 = arith.constant 0 : index
    %c0_493 = arith.constant 0 : index
    %650 = vector.load %arg22[%c7_491, %c0_492, %c0_493] : memref<9x32x32xbf16, #tpu.memory_space<vmem>>, vector<1x32x32xbf16>
    %651 = vector.shape_cast %650 : vector<1x32x32xbf16> to vector<32x32xbf16>
    %cst_494 = arith.constant dense<0.000000e+00> : vector<32x128xf32>
    %652 = tpu.matmul %651, %649, %cst_494 {dimension_numbers = #tpu.dot_dimension_numbers<[1], [0], [0], [1], [0, 0, 1, 1], [], []>} : vector<32x32xbf16>, vector<32x128xbf16>, vector<32x128xf32> -> vector<32x128xf32>
    %653 = arith.addf %643, %652 : vector<32x128xf32>
    %c123_i32 = arith.constant 123 : i32
    %654 = tpu.dynamic_rotate %575 by %c123_i32 dim 1 : vector<32x128xf32>, i32 -> vector<32x128xf32>
    %c8_495 = arith.constant 8 : index
    %c0_496 = arith.constant 0 : index
    %c0_497 = arith.constant 0 : index
    %655 = vector.load %arg3[%c8_495, %c0_496, %c0_497] : memref<9x1x128xf32, #tpu.memory_space<vmem>>, vector<1x1x128xf32>
    %656 = vector.shape_cast %655 : vector<1x1x128xf32> to vector<1x128xf32>
    %657 = vector.broadcast %656 : vector<1x128xf32> to vector<32x128xf32>
    %658 = arith.mulf %654, %657 : vector<32x128xf32>
    %659 = arith.truncf %658 : vector<32x128xf32> to vector<32x128xbf16>
    %c8_498 = arith.constant 8 : index
    %c0_499 = arith.constant 0 : index
    %c0_500 = arith.constant 0 : index
    %660 = vector.load %arg22[%c8_498, %c0_499, %c0_500] : memref<9x32x32xbf16, #tpu.memory_space<vmem>>, vector<1x32x32xbf16>
    %661 = vector.shape_cast %660 : vector<1x32x32xbf16> to vector<32x32xbf16>
    %cst_501 = arith.constant dense<0.000000e+00> : vector<32x128xf32>
    %662 = tpu.matmul %661, %659, %cst_501 {dimension_numbers = #tpu.dot_dimension_numbers<[1], [0], [0], [1], [0, 0, 1, 1], [], []>} : vector<32x32xbf16>, vector<32x128xbf16>, vector<32x128xf32> -> vector<32x128xf32>
    %663 = arith.addf %653, %662 : vector<32x128xf32>
    %c0_502 = arith.constant 0 : index
    %c0_503 = arith.constant 0 : index
    %664 = vector.load %arg6[%c0_502, %c0_503] : memref<128x128xf32, #tpu.memory_space<vmem>>, vector<128x128xf32>
    %cst_504 = arith.constant dense<0.000000e+00> : vector<16x128xf32>
    %665 = tpu.matmul %478, %664, %cst_504 {dimension_numbers = #tpu.dot_dimension_numbers<[1], [0], [0], [1], [0, 0, 1, 1], [], []>} : vector<16x128xf32>, vector<128x128xf32>, vector<16x128xf32> -> vector<16x128xf32>
    %c0_505 = arith.constant 0 : index
    %c0_506 = arith.constant 0 : index
    %666 = vector.load %arg24[%c0_505, %c0_506] : memref<32x16xbf16, #tpu.memory_space<vmem>>, vector<32x16xbf16>
    %667 = arith.truncf %665 : vector<16x128xf32> to vector<16x128xbf16>
    %cst_507 = arith.constant dense<0.000000e+00> : vector<32x128xf32>
    %668 = tpu.matmul %666, %667, %cst_507 {dimension_numbers = #tpu.dot_dimension_numbers<[1], [0], [0], [1], [0, 0, 1, 1], [], []>} : vector<32x16xbf16>, vector<16x128xbf16>, vector<32x128xf32> -> vector<32x128xf32>
    %c0_508 = arith.constant 0 : index
    %c0_509 = arith.constant 0 : index
    %669 = vector.load %arg25[%c0_508, %c0_509] : memref<32x1xf32, #tpu.memory_space<vmem>>, vector<32x1xf32>
    %670 = vector.broadcast %669 : vector<32x1xf32> to vector<32x128xf32>
    %671 = arith.addf %668, %670 : vector<32x128xf32>
    %c0_510 = arith.constant 0 : index
    %c0_511 = arith.constant 0 : index
    %672 = vector.load %arg23[%c0_510, %c0_511] : memref<32x1xf32, #tpu.memory_space<vmem>>, vector<32x1xf32>
    %673 = vector.broadcast %672 : vector<32x1xf32> to vector<32x128xf32>
    %674 = arith.addf %663, %673 : vector<32x128xf32>
    %675 = arith.addf %674, %671 : vector<32x128xf32>
    %cst_512 = arith.constant 0.000000e+00 : f32
    %676 = vector.broadcast %cst_512 : f32 to vector<32x128xf32>
    %677 = arith.maximumf %675, %676 : vector<32x128xf32>
    %678 = arith.truncf %677 : vector<32x128xf32> to vector<32x128xbf16>
    %c0_513 = arith.constant 0 : index
    %c0_514 = arith.constant 0 : index
    %679 = vector.load %arg33[%c0_513, %c0_514] : memref<32x128xbf16, #tpu.memory_space<vmem>>, vector<32x128xbf16>
    tpu.vector_store %arg33[%c0_513, %c0_514], %678 {strides = array<i32>} : memref<32x128xbf16, #tpu.memory_space<vmem>>, vector<32x128xbf16>,
    %c5_i32_515 = arith.constant 5 : i32
    %680 = tpu.dynamic_rotate %677 by %c5_i32_515 dim 1 : vector<32x128xf32>, i32 -> vector<32x128xf32>
    %c0_516 = arith.constant 0 : index
    %c0_517 = arith.constant 0 : index
    %c0_518 = arith.constant 0 : index
    %681 = vector.load %arg3[%c0_516, %c0_517, %c0_518] : memref<9x1x128xf32, #tpu.memory_space<vmem>>, vector<1x1x128xf32>
    %682 = vector.shape_cast %681 : vector<1x1x128xf32> to vector<1x128xf32>
    %683 = vector.broadcast %682 : vector<1x128xf32> to vector<32x128xf32>
    %684 = arith.mulf %680, %683 : vector<32x128xf32>
    %685 = arith.truncf %684 : vector<32x128xf32> to vector<32x128xbf16>
    %c0_519 = arith.constant 0 : index
    %c0_520 = arith.constant 0 : index
    %c0_521 = arith.constant 0 : index
    %686 = vector.load %arg26[%c0_519, %c0_520, %c0_521] : memref<9x64x32xbf16, #tpu.memory_space<vmem>>, vector<1x64x32xbf16>
    %687 = vector.shape_cast %686 : vector<1x64x32xbf16> to vector<64x32xbf16>
    %cst_522 = arith.constant dense<0.000000e+00> : vector<64x128xf32>
    %688 = tpu.matmul %687, %685, %cst_522 {dimension_numbers = #tpu.dot_dimension_numbers<[1], [0], [0], [1], [0, 0, 1, 1], [], []>} : vector<64x32xbf16>, vector<32x128xbf16>, vector<64x128xf32> -> vector<64x128xf32>
    %c4_i32_523 = arith.constant 4 : i32
    %689 = tpu.dynamic_rotate %677 by %c4_i32_523 dim 1 : vector<32x128xf32>, i32 -> vector<32x128xf32>
    %c1_524 = arith.constant 1 : index
    %c0_525 = arith.constant 0 : index
    %c0_526 = arith.constant 0 : index
    %690 = vector.load %arg3[%c1_524, %c0_525, %c0_526] : memref<9x1x128xf32, #tpu.memory_space<vmem>>, vector<1x1x128xf32>
    %691 = vector.shape_cast %690 : vector<1x1x128xf32> to vector<1x128xf32>
    %692 = vector.broadcast %691 : vector<1x128xf32> to vector<32x128xf32>
    %693 = arith.mulf %689, %692 : vector<32x128xf32>
    %694 = arith.truncf %693 : vector<32x128xf32> to vector<32x128xbf16>
    %c1_527 = arith.constant 1 : index
    %c0_528 = arith.constant 0 : index
    %c0_529 = arith.constant 0 : index
    %695 = vector.load %arg26[%c1_527, %c0_528, %c0_529] : memref<9x64x32xbf16, #tpu.memory_space<vmem>>, vector<1x64x32xbf16>
    %696 = vector.shape_cast %695 : vector<1x64x32xbf16> to vector<64x32xbf16>
    %cst_530 = arith.constant dense<0.000000e+00> : vector<64x128xf32>
    %697 = tpu.matmul %696, %694, %cst_530 {dimension_numbers = #tpu.dot_dimension_numbers<[1], [0], [0], [1], [0, 0, 1, 1], [], []>} : vector<64x32xbf16>, vector<32x128xbf16>, vector<64x128xf32> -> vector<64x128xf32>
    %698 = arith.addf %688, %697 : vector<64x128xf32>
    %c3_i32_531 = arith.constant 3 : i32
    %699 = tpu.dynamic_rotate %677 by %c3_i32_531 dim 1 : vector<32x128xf32>, i32 -> vector<32x128xf32>
    %c2_532 = arith.constant 2 : index
    %c0_533 = arith.constant 0 : index
    %c0_534 = arith.constant 0 : index
    %700 = vector.load %arg3[%c2_532, %c0_533, %c0_534] : memref<9x1x128xf32, #tpu.memory_space<vmem>>, vector<1x1x128xf32>
    %701 = vector.shape_cast %700 : vector<1x1x128xf32> to vector<1x128xf32>
    %702 = vector.broadcast %701 : vector<1x128xf32> to vector<32x128xf32>
    %703 = arith.mulf %699, %702 : vector<32x128xf32>
    %704 = arith.truncf %703 : vector<32x128xf32> to vector<32x128xbf16>
    %c2_535 = arith.constant 2 : index
    %c0_536 = arith.constant 0 : index
    %c0_537 = arith.constant 0 : index
    %705 = vector.load %arg26[%c2_535, %c0_536, %c0_537] : memref<9x64x32xbf16, #tpu.memory_space<vmem>>, vector<1x64x32xbf16>
    %706 = vector.shape_cast %705 : vector<1x64x32xbf16> to vector<64x32xbf16>
    %cst_538 = arith.constant dense<0.000000e+00> : vector<64x128xf32>
    %707 = tpu.matmul %706, %704, %cst_538 {dimension_numbers = #tpu.dot_dimension_numbers<[1], [0], [0], [1], [0, 0, 1, 1], [], []>} : vector<64x32xbf16>, vector<32x128xbf16>, vector<64x128xf32> -> vector<64x128xf32>
    %708 = arith.addf %698, %707 : vector<64x128xf32>
    %c1_i32_539 = arith.constant 1 : i32
    %709 = tpu.dynamic_rotate %677 by %c1_i32_539 dim 1 : vector<32x128xf32>, i32 -> vector<32x128xf32>
    %c3_540 = arith.constant 3 : index
    %c0_541 = arith.constant 0 : index
    %c0_542 = arith.constant 0 : index
    %710 = vector.load %arg3[%c3_540, %c0_541, %c0_542] : memref<9x1x128xf32, #tpu.memory_space<vmem>>, vector<1x1x128xf32>
    %711 = vector.shape_cast %710 : vector<1x1x128xf32> to vector<1x128xf32>
    %712 = vector.broadcast %711 : vector<1x128xf32> to vector<32x128xf32>
    %713 = arith.mulf %709, %712 : vector<32x128xf32>
    %714 = arith.truncf %713 : vector<32x128xf32> to vector<32x128xbf16>
    %c3_543 = arith.constant 3 : index
    %c0_544 = arith.constant 0 : index
    %c0_545 = arith.constant 0 : index
    %715 = vector.load %arg26[%c3_543, %c0_544, %c0_545] : memref<9x64x32xbf16, #tpu.memory_space<vmem>>, vector<1x64x32xbf16>
    %716 = vector.shape_cast %715 : vector<1x64x32xbf16> to vector<64x32xbf16>
    %cst_546 = arith.constant dense<0.000000e+00> : vector<64x128xf32>
    %717 = tpu.matmul %716, %714, %cst_546 {dimension_numbers = #tpu.dot_dimension_numbers<[1], [0], [0], [1], [0, 0, 1, 1], [], []>} : vector<64x32xbf16>, vector<32x128xbf16>, vector<64x128xf32> -> vector<64x128xf32>
    %718 = arith.addf %708, %717 : vector<64x128xf32>
    %c4_547 = arith.constant 4 : index
    %c0_548 = arith.constant 0 : index
    %c0_549 = arith.constant 0 : index
    %719 = vector.load %arg3[%c4_547, %c0_548, %c0_549] : memref<9x1x128xf32, #tpu.memory_space<vmem>>, vector<1x1x128xf32>
    %720 = vector.shape_cast %719 : vector<1x1x128xf32> to vector<1x128xf32>
    %721 = vector.broadcast %720 : vector<1x128xf32> to vector<32x128xf32>
    %722 = arith.mulf %677, %721 : vector<32x128xf32>
    %723 = arith.truncf %722 : vector<32x128xf32> to vector<32x128xbf16>
    %c4_550 = arith.constant 4 : index
    %c0_551 = arith.constant 0 : index
    %c0_552 = arith.constant 0 : index
    %724 = vector.load %arg26[%c4_550, %c0_551, %c0_552] : memref<9x64x32xbf16, #tpu.memory_space<vmem>>, vector<1x64x32xbf16>
    %725 = vector.shape_cast %724 : vector<1x64x32xbf16> to vector<64x32xbf16>
    %cst_553 = arith.constant dense<0.000000e+00> : vector<64x128xf32>
    %726 = tpu.matmul %725, %723, %cst_553 {dimension_numbers = #tpu.dot_dimension_numbers<[1], [0], [0], [1], [0, 0, 1, 1], [], []>} : vector<64x32xbf16>, vector<32x128xbf16>, vector<64x128xf32> -> vector<64x128xf32>
    %727 = arith.addf %718, %726 : vector<64x128xf32>
    %c127_i32_554 = arith.constant 127 : i32
    %728 = tpu.dynamic_rotate %677 by %c127_i32_554 dim 1 : vector<32x128xf32>, i32 -> vector<32x128xf32>
    %c5_555 = arith.constant 5 : index
    %c0_556 = arith.constant 0 : index
    %c0_557 = arith.constant 0 : index
    %729 = vector.load %arg3[%c5_555, %c0_556, %c0_557] : memref<9x1x128xf32, #tpu.memory_space<vmem>>, vector<1x1x128xf32>
    %730 = vector.shape_cast %729 : vector<1x1x128xf32> to vector<1x128xf32>
    %731 = vector.broadcast %730 : vector<1x128xf32> to vector<32x128xf32>
    %732 = arith.mulf %728, %731 : vector<32x128xf32>
    %733 = arith.truncf %732 : vector<32x128xf32> to vector<32x128xbf16>
    %c5_558 = arith.constant 5 : index
    %c0_559 = arith.constant 0 : index
    %c0_560 = arith.constant 0 : index
    %734 = vector.load %arg26[%c5_558, %c0_559, %c0_560] : memref<9x64x32xbf16, #tpu.memory_space<vmem>>, vector<1x64x32xbf16>
    %735 = vector.shape_cast %734 : vector<1x64x32xbf16> to vector<64x32xbf16>
    %cst_561 = arith.constant dense<0.000000e+00> : vector<64x128xf32>
    %736 = tpu.matmul %735, %733, %cst_561 {dimension_numbers = #tpu.dot_dimension_numbers<[1], [0], [0], [1], [0, 0, 1, 1], [], []>} : vector<64x32xbf16>, vector<32x128xbf16>, vector<64x128xf32> -> vector<64x128xf32>
    %737 = arith.addf %727, %736 : vector<64x128xf32>
    %c125_i32_562 = arith.constant 125 : i32
    %738 = tpu.dynamic_rotate %677 by %c125_i32_562 dim 1 : vector<32x128xf32>, i32 -> vector<32x128xf32>
    %c6_563 = arith.constant 6 : index
    %c0_564 = arith.constant 0 : index
    %c0_565 = arith.constant 0 : index
    %739 = vector.load %arg3[%c6_563, %c0_564, %c0_565] : memref<9x1x128xf32, #tpu.memory_space<vmem>>, vector<1x1x128xf32>
    %740 = vector.shape_cast %739 : vector<1x1x128xf32> to vector<1x128xf32>
    %741 = vector.broadcast %740 : vector<1x128xf32> to vector<32x128xf32>
    %742 = arith.mulf %738, %741 : vector<32x128xf32>
    %743 = arith.truncf %742 : vector<32x128xf32> to vector<32x128xbf16>
    %c6_566 = arith.constant 6 : index
    %c0_567 = arith.constant 0 : index
    %c0_568 = arith.constant 0 : index
    %744 = vector.load %arg26[%c6_566, %c0_567, %c0_568] : memref<9x64x32xbf16, #tpu.memory_space<vmem>>, vector<1x64x32xbf16>
    %745 = vector.shape_cast %744 : vector<1x64x32xbf16> to vector<64x32xbf16>
    %cst_569 = arith.constant dense<0.000000e+00> : vector<64x128xf32>
    %746 = tpu.matmul %745, %743, %cst_569 {dimension_numbers = #tpu.dot_dimension_numbers<[1], [0], [0], [1], [0, 0, 1, 1], [], []>} : vector<64x32xbf16>, vector<32x128xbf16>, vector<64x128xf32> -> vector<64x128xf32>
    %747 = arith.addf %737, %746 : vector<64x128xf32>
    %c124_i32_570 = arith.constant 124 : i32
    %748 = tpu.dynamic_rotate %677 by %c124_i32_570 dim 1 : vector<32x128xf32>, i32 -> vector<32x128xf32>
    %c7_571 = arith.constant 7 : index
    %c0_572 = arith.constant 0 : index
    %c0_573 = arith.constant 0 : index
    %749 = vector.load %arg3[%c7_571, %c0_572, %c0_573] : memref<9x1x128xf32, #tpu.memory_space<vmem>>, vector<1x1x128xf32>
    %750 = vector.shape_cast %749 : vector<1x1x128xf32> to vector<1x128xf32>
    %751 = vector.broadcast %750 : vector<1x128xf32> to vector<32x128xf32>
    %752 = arith.mulf %748, %751 : vector<32x128xf32>
    %753 = arith.truncf %752 : vector<32x128xf32> to vector<32x128xbf16>
    %c7_574 = arith.constant 7 : index
    %c0_575 = arith.constant 0 : index
    %c0_576 = arith.constant 0 : index
    %754 = vector.load %arg26[%c7_574, %c0_575, %c0_576] : memref<9x64x32xbf16, #tpu.memory_space<vmem>>, vector<1x64x32xbf16>
    %755 = vector.shape_cast %754 : vector<1x64x32xbf16> to vector<64x32xbf16>
    %cst_577 = arith.constant dense<0.000000e+00> : vector<64x128xf32>
    %756 = tpu.matmul %755, %753, %cst_577 {dimension_numbers = #tpu.dot_dimension_numbers<[1], [0], [0], [1], [0, 0, 1, 1], [], []>} : vector<64x32xbf16>, vector<32x128xbf16>, vector<64x128xf32> -> vector<64x128xf32>
    %757 = arith.addf %747, %756 : vector<64x128xf32>
    %c123_i32_578 = arith.constant 123 : i32
    %758 = tpu.dynamic_rotate %677 by %c123_i32_578 dim 1 : vector<32x128xf32>, i32 -> vector<32x128xf32>
    %c8_579 = arith.constant 8 : index
    %c0_580 = arith.constant 0 : index
    %c0_581 = arith.constant 0 : index
    %759 = vector.load %arg3[%c8_579, %c0_580, %c0_581] : memref<9x1x128xf32, #tpu.memory_space<vmem>>, vector<1x1x128xf32>
    %760 = vector.shape_cast %759 : vector<1x1x128xf32> to vector<1x128xf32>
    %761 = vector.broadcast %760 : vector<1x128xf32> to vector<32x128xf32>
    %762 = arith.mulf %758, %761 : vector<32x128xf32>
    %763 = arith.truncf %762 : vector<32x128xf32> to vector<32x128xbf16>
    %c8_582 = arith.constant 8 : index
    %c0_583 = arith.constant 0 : index
    %c0_584 = arith.constant 0 : index
    %764 = vector.load %arg26[%c8_582, %c0_583, %c0_584] : memref<9x64x32xbf16, #tpu.memory_space<vmem>>, vector<1x64x32xbf16>
    %765 = vector.shape_cast %764 : vector<1x64x32xbf16> to vector<64x32xbf16>
    %cst_585 = arith.constant dense<0.000000e+00> : vector<64x128xf32>
    %766 = tpu.matmul %765, %763, %cst_585 {dimension_numbers = #tpu.dot_dimension_numbers<[1], [0], [0], [1], [0, 0, 1, 1], [], []>} : vector<64x32xbf16>, vector<32x128xbf16>, vector<64x128xf32> -> vector<64x128xf32>
    %767 = arith.addf %757, %766 : vector<64x128xf32>
    %c0_586 = arith.constant 0 : index
    %c0_587 = arith.constant 0 : index
    %768 = vector.load %arg7[%c0_586, %c0_587] : memref<128x128xf32, #tpu.memory_space<vmem>>, vector<128x128xf32>
    %cst_588 = arith.constant dense<0.000000e+00> : vector<64x128xf32>
    %769 = tpu.matmul %767, %768, %cst_588 {dimension_numbers = #tpu.dot_dimension_numbers<[1], [0], [0], [1], [0, 0, 1, 1], [], []>} : vector<64x128xf32>, vector<128x128xf32>, vector<64x128xf32> -> vector<64x128xf32>
    %c0_589 = arith.constant 0 : index
    %c0_590 = arith.constant 0 : index
    %770 = vector.load %arg27[%c0_589, %c0_590] : memref<64x1xf32, #tpu.memory_space<vmem>>, vector<64x1xf32>
    %771 = vector.broadcast %770 : vector<64x1xf32> to vector<64x128xf32>
    %772 = arith.addf %769, %771 : vector<64x128xf32>
    %cst_591 = arith.constant 0.000000e+00 : f32
    %773 = vector.broadcast %cst_591 : f32 to vector<64x128xf32>
    %774 = arith.maximumf %772, %773 : vector<64x128xf32>
    %c3_i32_592 = arith.constant 3 : i32
    %775 = tpu.dynamic_rotate %774 by %c3_i32_592 dim 1 : vector<64x128xf32>, i32 -> vector<64x128xf32>
    %c0_593 = arith.constant 0 : index
    %c0_594 = arith.constant 0 : index
    %c0_595 = arith.constant 0 : index
    %776 = vector.load %arg4[%c0_593, %c0_594, %c0_595] : memref<9x1x128xf32, #tpu.memory_space<vmem>>, vector<1x1x128xf32>
    %777 = vector.shape_cast %776 : vector<1x1x128xf32> to vector<1x128xf32>
    %778 = vector.broadcast %777 : vector<1x128xf32> to vector<64x128xf32>
    %779 = arith.mulf %775, %778 : vector<64x128xf32>
    %780 = arith.truncf %779 : vector<64x128xf32> to vector<64x128xbf16>
    %c0_596 = arith.constant 0 : index
    %c0_597 = arith.constant 0 : index
    %c0_598 = arith.constant 0 : index
    %781 = vector.load %arg28[%c0_596, %c0_597, %c0_598] : memref<9x64x64xbf16, #tpu.memory_space<vmem>>, vector<1x64x64xbf16>
    %782 = vector.shape_cast %781 : vector<1x64x64xbf16> to vector<64x64xbf16>
    %cst_599 = arith.constant dense<0.000000e+00> : vector<64x128xf32>
    %783 = tpu.matmul %782, %780, %cst_599 {dimension_numbers = #tpu.dot_dimension_numbers<[1], [0], [0], [1], [0, 0, 1, 1], [], []>} : vector<64x64xbf16>, vector<64x128xbf16>, vector<64x128xf32> -> vector<64x128xf32>
    %c2_i32 = arith.constant 2 : i32
    %784 = tpu.dynamic_rotate %774 by %c2_i32 dim 1 : vector<64x128xf32>, i32 -> vector<64x128xf32>
    %c1_600 = arith.constant 1 : index
    %c0_601 = arith.constant 0 : index
    %c0_602 = arith.constant 0 : index
    %785 = vector.load %arg4[%c1_600, %c0_601, %c0_602] : memref<9x1x128xf32, #tpu.memory_space<vmem>>, vector<1x1x128xf32>
    %786 = vector.shape_cast %785 : vector<1x1x128xf32> to vector<1x128xf32>
    %787 = vector.broadcast %786 : vector<1x128xf32> to vector<64x128xf32>
    %788 = arith.mulf %784, %787 : vector<64x128xf32>
    %789 = arith.truncf %788 : vector<64x128xf32> to vector<64x128xbf16>
    %c1_603 = arith.constant 1 : index
    %c0_604 = arith.constant 0 : index
    %c0_605 = arith.constant 0 : index
    %790 = vector.load %arg28[%c1_603, %c0_604, %c0_605] : memref<9x64x64xbf16, #tpu.memory_space<vmem>>, vector<1x64x64xbf16>
    %791 = vector.shape_cast %790 : vector<1x64x64xbf16> to vector<64x64xbf16>
    %cst_606 = arith.constant dense<0.000000e+00> : vector<64x128xf32>
    %792 = tpu.matmul %791, %789, %cst_606 {dimension_numbers = #tpu.dot_dimension_numbers<[1], [0], [0], [1], [0, 0, 1, 1], [], []>} : vector<64x64xbf16>, vector<64x128xbf16>, vector<64x128xf32> -> vector<64x128xf32>
    %793 = arith.addf %783, %792 : vector<64x128xf32>
    %c1_i32_607 = arith.constant 1 : i32
    %794 = tpu.dynamic_rotate %774 by %c1_i32_607 dim 1 : vector<64x128xf32>, i32 -> vector<64x128xf32>
    %c2_608 = arith.constant 2 : index
    %c0_609 = arith.constant 0 : index
    %c0_610 = arith.constant 0 : index
    %795 = vector.load %arg4[%c2_608, %c0_609, %c0_610] : memref<9x1x128xf32, #tpu.memory_space<vmem>>, vector<1x1x128xf32>
    %796 = vector.shape_cast %795 : vector<1x1x128xf32> to vector<1x128xf32>
    %797 = vector.broadcast %796 : vector<1x128xf32> to vector<64x128xf32>
    %798 = arith.mulf %794, %797 : vector<64x128xf32>
    %799 = arith.truncf %798 : vector<64x128xf32> to vector<64x128xbf16>
    %c2_611 = arith.constant 2 : index
    %c0_612 = arith.constant 0 : index
    %c0_613 = arith.constant 0 : index
    %800 = vector.load %arg28[%c2_611, %c0_612, %c0_613] : memref<9x64x64xbf16, #tpu.memory_space<vmem>>, vector<1x64x64xbf16>
    %801 = vector.shape_cast %800 : vector<1x64x64xbf16> to vector<64x64xbf16>
    %cst_614 = arith.constant dense<0.000000e+00> : vector<64x128xf32>
    %802 = tpu.matmul %801, %799, %cst_614 {dimension_numbers = #tpu.dot_dimension_numbers<[1], [0], [0], [1], [0, 0, 1, 1], [], []>} : vector<64x64xbf16>, vector<64x128xbf16>, vector<64x128xf32> -> vector<64x128xf32>
    %803 = arith.addf %793, %802 : vector<64x128xf32>
    %c1_i32_615 = arith.constant 1 : i32
    %804 = tpu.dynamic_rotate %774 by %c1_i32_615 dim 1 : vector<64x128xf32>, i32 -> vector<64x128xf32>
    %c3_616 = arith.constant 3 : index
    %c0_617 = arith.constant 0 : index
    %c0_618 = arith.constant 0 : index
    %805 = vector.load %arg4[%c3_616, %c0_617, %c0_618] : memref<9x1x128xf32, #tpu.memory_space<vmem>>, vector<1x1x128xf32>
    %806 = vector.shape_cast %805 : vector<1x1x128xf32> to vector<1x128xf32>
    %807 = vector.broadcast %806 : vector<1x128xf32> to vector<64x128xf32>
    %808 = arith.mulf %804, %807 : vector<64x128xf32>
    %809 = arith.truncf %808 : vector<64x128xf32> to vector<64x128xbf16>
    %c3_619 = arith.constant 3 : index
    %c0_620 = arith.constant 0 : index
    %c0_621 = arith.constant 0 : index
    %810 = vector.load %arg28[%c3_619, %c0_620, %c0_621] : memref<9x64x64xbf16, #tpu.memory_space<vmem>>, vector<1x64x64xbf16>
    %811 = vector.shape_cast %810 : vector<1x64x64xbf16> to vector<64x64xbf16>
    %cst_622 = arith.constant dense<0.000000e+00> : vector<64x128xf32>
    %812 = tpu.matmul %811, %809, %cst_622 {dimension_numbers = #tpu.dot_dimension_numbers<[1], [0], [0], [1], [0, 0, 1, 1], [], []>} : vector<64x64xbf16>, vector<64x128xbf16>, vector<64x128xf32> -> vector<64x128xf32>
    %813 = arith.addf %803, %812 : vector<64x128xf32>
    %c4_623 = arith.constant 4 : index
    %c0_624 = arith.constant 0 : index
    %c0_625 = arith.constant 0 : index
    %814 = vector.load %arg4[%c4_623, %c0_624, %c0_625] : memref<9x1x128xf32, #tpu.memory_space<vmem>>, vector<1x1x128xf32>
    %815 = vector.shape_cast %814 : vector<1x1x128xf32> to vector<1x128xf32>
    %816 = vector.broadcast %815 : vector<1x128xf32> to vector<64x128xf32>
    %817 = arith.mulf %774, %816 : vector<64x128xf32>
    %818 = arith.truncf %817 : vector<64x128xf32> to vector<64x128xbf16>
    %c4_626 = arith.constant 4 : index
    %c0_627 = arith.constant 0 : index
    %c0_628 = arith.constant 0 : index
    %819 = vector.load %arg28[%c4_626, %c0_627, %c0_628] : memref<9x64x64xbf16, #tpu.memory_space<vmem>>, vector<1x64x64xbf16>
    %820 = vector.shape_cast %819 : vector<1x64x64xbf16> to vector<64x64xbf16>
    %cst_629 = arith.constant dense<0.000000e+00> : vector<64x128xf32>
    %821 = tpu.matmul %820, %818, %cst_629 {dimension_numbers = #tpu.dot_dimension_numbers<[1], [0], [0], [1], [0, 0, 1, 1], [], []>} : vector<64x64xbf16>, vector<64x128xbf16>, vector<64x128xf32> -> vector<64x128xf32>
    %822 = arith.addf %813, %821 : vector<64x128xf32>
    %c127_i32_630 = arith.constant 127 : i32
    %823 = tpu.dynamic_rotate %774 by %c127_i32_630 dim 1 : vector<64x128xf32>, i32 -> vector<64x128xf32>
    %c5_631 = arith.constant 5 : index
    %c0_632 = arith.constant 0 : index
    %c0_633 = arith.constant 0 : index
    %824 = vector.load %arg4[%c5_631, %c0_632, %c0_633] : memref<9x1x128xf32, #tpu.memory_space<vmem>>, vector<1x1x128xf32>
    %825 = vector.shape_cast %824 : vector<1x1x128xf32> to vector<1x128xf32>
    %826 = vector.broadcast %825 : vector<1x128xf32> to vector<64x128xf32>
    %827 = arith.mulf %823, %826 : vector<64x128xf32>
    %828 = arith.truncf %827 : vector<64x128xf32> to vector<64x128xbf16>
    %c5_634 = arith.constant 5 : index
    %c0_635 = arith.constant 0 : index
    %c0_636 = arith.constant 0 : index
    %829 = vector.load %arg28[%c5_634, %c0_635, %c0_636] : memref<9x64x64xbf16, #tpu.memory_space<vmem>>, vector<1x64x64xbf16>
    %830 = vector.shape_cast %829 : vector<1x64x64xbf16> to vector<64x64xbf16>
    %cst_637 = arith.constant dense<0.000000e+00> : vector<64x128xf32>
    %831 = tpu.matmul %830, %828, %cst_637 {dimension_numbers = #tpu.dot_dimension_numbers<[1], [0], [0], [1], [0, 0, 1, 1], [], []>} : vector<64x64xbf16>, vector<64x128xbf16>, vector<64x128xf32> -> vector<64x128xf32>
    %832 = arith.addf %822, %831 : vector<64x128xf32>
    %c127_i32_638 = arith.constant 127 : i32
    %833 = tpu.dynamic_rotate %774 by %c127_i32_638 dim 1 : vector<64x128xf32>, i32 -> vector<64x128xf32>
    %c6_639 = arith.constant 6 : index
    %c0_640 = arith.constant 0 : index
    %c0_641 = arith.constant 0 : index
    %834 = vector.load %arg4[%c6_639, %c0_640, %c0_641] : memref<9x1x128xf32, #tpu.memory_space<vmem>>, vector<1x1x128xf32>
    %835 = vector.shape_cast %834 : vector<1x1x128xf32> to vector<1x128xf32>
    %836 = vector.broadcast %835 : vector<1x128xf32> to vector<64x128xf32>
    %837 = arith.mulf %833, %836 : vector<64x128xf32>
    %838 = arith.truncf %837 : vector<64x128xf32> to vector<64x128xbf16>
    %c6_642 = arith.constant 6 : index
    %c0_643 = arith.constant 0 : index
    %c0_644 = arith.constant 0 : index
    %839 = vector.load %arg28[%c6_642, %c0_643, %c0_644] : memref<9x64x64xbf16, #tpu.memory_space<vmem>>, vector<1x64x64xbf16>
    %840 = vector.shape_cast %839 : vector<1x64x64xbf16> to vector<64x64xbf16>
    %cst_645 = arith.constant dense<0.000000e+00> : vector<64x128xf32>
    %841 = tpu.matmul %840, %838, %cst_645 {dimension_numbers = #tpu.dot_dimension_numbers<[1], [0], [0], [1], [0, 0, 1, 1], [], []>} : vector<64x64xbf16>, vector<64x128xbf16>, vector<64x128xf32> -> vector<64x128xf32>
    %842 = arith.addf %832, %841 : vector<64x128xf32>
    %c126_i32 = arith.constant 126 : i32
    %843 = tpu.dynamic_rotate %774 by %c126_i32 dim 1 : vector<64x128xf32>, i32 -> vector<64x128xf32>
    %c7_646 = arith.constant 7 : index
    %c0_647 = arith.constant 0 : index
    %c0_648 = arith.constant 0 : index
    %844 = vector.load %arg4[%c7_646, %c0_647, %c0_648] : memref<9x1x128xf32, #tpu.memory_space<vmem>>, vector<1x1x128xf32>
    %845 = vector.shape_cast %844 : vector<1x1x128xf32> to vector<1x128xf32>
    %846 = vector.broadcast %845 : vector<1x128xf32> to vector<64x128xf32>
    %847 = arith.mulf %843, %846 : vector<64x128xf32>
    %848 = arith.truncf %847 : vector<64x128xf32> to vector<64x128xbf16>
    %c7_649 = arith.constant 7 : index
    %c0_650 = arith.constant 0 : index
    %c0_651 = arith.constant 0 : index
    %849 = vector.load %arg28[%c7_649, %c0_650, %c0_651] : memref<9x64x64xbf16, #tpu.memory_space<vmem>>, vector<1x64x64xbf16>
    %850 = vector.shape_cast %849 : vector<1x64x64xbf16> to vector<64x64xbf16>
    %cst_652 = arith.constant dense<0.000000e+00> : vector<64x128xf32>
    %851 = tpu.matmul %850, %848, %cst_652 {dimension_numbers = #tpu.dot_dimension_numbers<[1], [0], [0], [1], [0, 0, 1, 1], [], []>} : vector<64x64xbf16>, vector<64x128xbf16>, vector<64x128xf32> -> vector<64x128xf32>
    %852 = arith.addf %842, %851 : vector<64x128xf32>
    %c125_i32_653 = arith.constant 125 : i32
    %853 = tpu.dynamic_rotate %774 by %c125_i32_653 dim 1 : vector<64x128xf32>, i32 -> vector<64x128xf32>
    %c8_654 = arith.constant 8 : index
    %c0_655 = arith.constant 0 : index
    %c0_656 = arith.constant 0 : index
    %854 = vector.load %arg4[%c8_654, %c0_655, %c0_656] : memref<9x1x128xf32, #tpu.memory_space<vmem>>, vector<1x1x128xf32>
    %855 = vector.shape_cast %854 : vector<1x1x128xf32> to vector<1x128xf32>
    %856 = vector.broadcast %855 : vector<1x128xf32> to vector<64x128xf32>
    %857 = arith.mulf %853, %856 : vector<64x128xf32>
    %858 = arith.truncf %857 : vector<64x128xf32> to vector<64x128xbf16>
    %c8_657 = arith.constant 8 : index
    %c0_658 = arith.constant 0 : index
    %c0_659 = arith.constant 0 : index
    %859 = vector.load %arg28[%c8_657, %c0_658, %c0_659] : memref<9x64x64xbf16, #tpu.memory_space<vmem>>, vector<1x64x64xbf16>
    %860 = vector.shape_cast %859 : vector<1x64x64xbf16> to vector<64x64xbf16>
    %cst_660 = arith.constant dense<0.000000e+00> : vector<64x128xf32>
    %861 = tpu.matmul %860, %858, %cst_660 {dimension_numbers = #tpu.dot_dimension_numbers<[1], [0], [0], [1], [0, 0, 1, 1], [], []>} : vector<64x64xbf16>, vector<64x128xbf16>, vector<64x128xf32> -> vector<64x128xf32>
    %862 = arith.addf %852, %861 : vector<64x128xf32>
    %c0_661 = arith.constant 0 : index
    %c0_662 = arith.constant 0 : index
    %863 = vector.load %arg7[%c0_661, %c0_662] : memref<128x128xf32, #tpu.memory_space<vmem>>, vector<128x128xf32>
    %cst_663 = arith.constant dense<0.000000e+00> : vector<32x128xf32>
    %864 = tpu.matmul %677, %863, %cst_663 {dimension_numbers = #tpu.dot_dimension_numbers<[1], [0], [0], [1], [0, 0, 1, 1], [], []>} : vector<32x128xf32>, vector<128x128xf32>, vector<32x128xf32> -> vector<32x128xf32>
    %c0_664 = arith.constant 0 : index
    %c0_665 = arith.constant 0 : index
    %865 = vector.load %arg30[%c0_664, %c0_665] : memref<64x32xbf16, #tpu.memory_space<vmem>>, vector<64x32xbf16>
    %866 = arith.truncf %864 : vector<32x128xf32> to vector<32x128xbf16>
    %cst_666 = arith.constant dense<0.000000e+00> : vector<64x128xf32>
    %867 = tpu.matmul %865, %866, %cst_666 {dimension_numbers = #tpu.dot_dimension_numbers<[1], [0], [0], [1], [0, 0, 1, 1], [], []>} : vector<64x32xbf16>, vector<32x128xbf16>, vector<64x128xf32> -> vector<64x128xf32>
    %c0_667 = arith.constant 0 : index
    %c0_668 = arith.constant 0 : index
    %868 = vector.load %arg31[%c0_667, %c0_668] : memref<64x1xf32, #tpu.memory_space<vmem>>, vector<64x1xf32>
    %869 = vector.broadcast %868 : vector<64x1xf32> to vector<64x128xf32>
    %870 = arith.addf %867, %869 : vector<64x128xf32>
    %c0_669 = arith.constant 0 : index
    %c0_670 = arith.constant 0 : index
    %871 = vector.load %arg29[%c0_669, %c0_670] : memref<64x1xf32, #tpu.memory_space<vmem>>, vector<64x1xf32>
    %872 = vector.broadcast %871 : vector<64x1xf32> to vector<64x128xf32>
    %873 = arith.addf %862, %872 : vector<64x128xf32>
    %874 = arith.addf %873, %870 : vector<64x128xf32>
    %cst_671 = arith.constant 0.000000e+00 : f32
    %875 = vector.broadcast %cst_671 : f32 to vector<64x128xf32>
    %876 = arith.maximumf %874, %875 : vector<64x128xf32>
    %877 = arith.truncf %876 : vector<64x128xf32> to vector<64x128xbf16>
    %c0_672 = arith.constant 0 : index
    %c0_673 = arith.constant 0 : index
    %878 = vector.load %arg32[%c0_672, %c0_673] : memref<64x128xbf16, #tpu.memory_space<vmem>>, vector<64x128xbf16>
    tpu.vector_store %arg32[%c0_672, %c0_673], %877 {strides = array<i32>} : memref<64x128xbf16, #tpu.memory_space<vmem>>, vector<64x128xbf16>,
    return
  }
}

</mosaic_0001>

<bundles_post_ra>
// kernel: resnet_encoder_forward.1
= control target key start
LH: loop header
LB: loop body
LE: loop exit
PB: predicated region body
PF: predicated region fallthrough
CT: control target
= control target key end

     0   :  { %s14576_s6 = smov 1   ;;  %s14577_s10 = smov 2   ;;  %s17135_s0 = inlined_call_operand.smem [shape: u32[35], index: -1, kind: input, shape index: {}] }
   0x1   :  { %s14674_s5 = sld [smem:[%s17135_s0]]   ;;  %s14578_s14 = smov 3  }
   0x2   :  { %s14679_s9 = sld [smem:[%s17135_s0 + %s14576_s6]]   ;;  %s14579_s18 = smov 4  }
   0x3   :  { %s14684_s13 = sld [smem:[%s17135_s0 + %s14577_s10]]   ;;  %s14580_s22 = smov 5  }
   0x4   :  { %s14689_s17 = sld [smem:[%s17135_s0 + %s14578_s14]]   ;;  %s14581_s26 = smov 6  }
   0x5   :  { %s14694_s21 = sld [smem:[%s17135_s0 + %s14579_s18]]   ;;  %s14582_s30 = smov 7  }
   0x6   :  { %s14699_s25 = sld [smem:[%s17135_s0 + %s14580_s22]]   ;;  %s14583_s4 = smov 8  }
   0x7   :  { %17158 = sst [smem:[#allocation60_spill]] %s14674_s5  ;;  %s14584_s10 = smov 9  }
   0x8   :  { %s14704_s29 = sld [smem:[%s17135_s0 + %s14581_s26]]   ;;  %s14585_s15 = smov 10  }
   0x9   :  { %s14709_s3 = sld [smem:[%s17135_s0 + %s14582_s30]]   ;;  %s14586_s20 = smov 11  }
   0xa   :  { %17159 = sst [smem:[#allocation61_spill]] %s14689_s17  ;;  %s14587_s26 = smov 12  }
   0xb   :  { %17160 = sst [smem:[#allocation62_spill]] %s14694_s21  ;;  %s14588_s1 = smov 13  }
   0xc   :  { %s14714_s8 = sld [smem:[%s17135_s0 + %s14583_s4]]   ;;  %s14589_s7 = smov 14  }
   0xd   :  { %s14719_s14 = sld [smem:[%s17135_s0 + %s14584_s10]]   ;;  %s14591_s22 = smov 16  }
   0xe   :  { %17161 = sst [smem:[#allocation63_spill]] %s14704_s29  ;;  %s14592_s28 = smov 17  }
   0xf   :  { %s14724_s19 = sld [smem:[%s17135_s0 + %s14585_s15]]   ;;  %s14590_s15 = smov 15  }
  0x10   :  { %s14729_s24 = sld [smem:[%s17135_s0 + %s14586_s20]]  }
  0x11   :  { %s14734_s30 = sld [smem:[%s17135_s0 + %s14587_s26]]  }
  0x12   :  { %17162 = sst [smem:[#allocation64_spill]] %s14714_s8 }
  0x13   :  { %s14739_s6 = sld [smem:[%s17135_s0 + %s14588_s1]]  }
  0x14   :  { %s14744_s12 = sld [smem:[%s17135_s0 + %s14589_s7]]   ;;  %s14593_s7 = smov 18  }
  0x15   :  { %17163 = sst [smem:[#allocation65_spill]] %s14724_s19 }
  0x16   :  { %s14749_s20 = sld [smem:[%s17135_s0 + %s14590_s15]]   ;;  %s14594_s15 = smov 19  }
  0x17   :  { %17164 = sst [smem:[#allocation66_spill]] %s14734_s30 }
  0x18   :  { %s14754_s27 = sld [smem:[%s17135_s0 + %s14591_s22]]   ;;  %s14595_s22 = smov 20  }
  0x19   :  { %s14759_s4 = sld [smem:[%s17135_s0 + %s14592_s28]]   ;;  %s14596_s28 = smov 21  }
  0x1a   :  { %17165 = sst [smem:[#allocation67_spill]] %s14744_s12 }
  0x1b   :  { %s14764_s21 = sld [smem:[%s17135_s0 + %s14593_s7]]   ;;  %s14597_s7 = smov 22  }
  0x1c   :  { %s14769_s5 = sld [smem:[%s17135_s0 + %s14594_s15]]   ;;  %s14598_s15 = smov 23  }
  0x1d   :  { %s14779_s12 = sld [smem:[%s17135_s0 + %s14596_s28]]   ;;  %s14600_s28 = smov 25  }
  0x1e   :  { %17166 = sst [smem:[#allocation68_spill]] %s14754_s27 }
  0x1f   :  { %s14774_s27 = sld [smem:[%s17135_s0 + %s14595_s22]]   ;;  %s14599_s22 = smov 24  }
  0x20   :  { %s14789_s30 = sld [smem:[%s17135_s0 + %s14598_s15]]   ;;  %s14602_s15 = smov 27  }
  0x21   :  { %17167 = sst [smem:[#allocation69_spill]] %s14764_s21 }
  0x22   :  { %s14784_s21 = sld [smem:[%s17135_s0 + %s14597_s7]]   ;;  %s14601_s7 = smov 26  }
  0x23   :  { %s14799_s19 = sld [smem:[%s17135_s0 + %s14600_s28]]   ;;  %s14604_s28 = smov 29  }
  0x25   :  { %17168 = sst [smem:[#allocation70_spill]] %s14774_s27 }
  0x26   :  { %17170 = sst [smem:[#allocation72_spill]] %s14789_s30 }
  0x27   :  { %s14794_s27 = sld [smem:[%s17135_s0 + %s14599_s22]]   ;;  %s14603_s22 = smov 28  }
  0x28   :  { %17169 = sst [smem:[#allocation71_spill]] %s14784_s21 }
  0x29   :  { %17171 = sst [smem:[#allocation73_spill]] %s14799_s19 }
  0x2a   :  { %s14804_s21 = sld [smem:[%s17135_s0 + %s14601_s7]]   ;;  %s14605_s7 = smov 30  }
  0x2b   :  { %s14809_s30 = sld [smem:[%s17135_s0 + %s14602_s15]]   ;;  %s14606_s15 = smov 31  }
  0x2c   :  { %s14814_s8 = sld [smem:[%s17135_s0 + %s14603_s22]]   ;;  %s14607_s22 = smov 32  }
  0x2d   :  { %s14819_s19 = sld [smem:[%s17135_s0 + %s14604_s28]]   ;;  %s14608_s28 = smov 33  }
  0x2e   :  { %s14824_s29 = sld [smem:[%s17135_s0 + %s14605_s7]]   ;;  %s14609_s7 = smov 34  }
  0x2f   :  { %s14839_s17 = sld [smem:[%s17135_s0 + %s14608_s28]]  }
  0x31   :  { %17172 = sst [smem:[#allocation74_spill]] %s14809_s30 }
  0x32   :  { %17173 = sst [smem:[#allocation75_spill]] %s14814_s8 }
  0x33   :  { %s14829_s30 = sld [smem:[%s17135_s0 + %s14606_s15]]  }
  0x34   :  { %17174 = sst [smem:[#allocation76_spill]] %s14824_s29 }
  0x35   :  { %s14834_s8 = sld [smem:[%s17135_s0 + %s14607_s22]]  }
  0x36   :  { %s14844_s29 = sld [smem:[%s17135_s0 + %s14609_s7]]  }
  0x37   :  { %75 = vsyncpa [#allocation3], 0 }
  0x38   :  { %76 = vsyncpa [#allocation5], 0 }
  0x39   :  { %77 = vsyncpa [#allocation8], 0 }
  0x3a   :  { %78 = vsyncpa [#allocation11], 0 }
  0x3b   :  { %79 = vsyncpa [#allocation14], 0 }
  0x3c   :  { %80 = vsyncpa [#allocation17], 0 }
  0x3d   :  { %81 = vsyncpa [#allocation20], 0 }
  0x3e   :  { %82 = vsyncpa [#allocation23], 0 }
  0x3f   :  { %83 = vsyncpa [#allocation26], 0 }
  0x40   :  { %84 = vsyncpa [#allocation29], 0 }
  0x41   :  { %85 = vsyncpa [#allocation32], 0 }
  0x42   :  { %86 = vsyncpa [#allocation35], 0 }
  0x43   :  { %87 = vsyncpa [#allocation38], 0 }
  0x44   :  { %88 = vsyncpa [#allocation41], 0 }
  0x45   :  { %89 = vsyncpa [#allocation44], 0  ;;  %s14610_s0 = smov [#allocation4]   ;;  %s13930_s16 = scalar_lea.hbm %s14684_s13, 144 }
  0x46   :  { %s109_s15 = sshll.u32 %s14610_s0, 4  ;;  %p13931_p0 = scmp.ne.s32.totalorder %s14684_s13, %s13930_s16  ;;  %s110_s15 = int_to_ptr.vmem [resolvable:$true] %s109_s15 }
  0x47   :  { %p13934_p1 = scmp.lt.u32.totalorder %s13930_s16, %s14684_s13 }
  0x49   :  { %p13936_p2 = pnand %p13934_p1, %p13931_p0 }
  0x4b   :  { %13939 = shalt.err (!%p13936_p2)
}
  0x4c   :  { %s13940_s18 = scalar_lea.vmem %s110_s15, 144  ;;  %s13944_s22 = scalar_lea.vmem %s110_s15, 160 }
  0x4d   :  { %p13941_p3 = scmp.ne.s32.totalorder %s110_s15, %s13940_s18  ;;  %p13945_p4 = scmp.lt.s32.totalorder %s110_s15, %s110_s15 }
  0x4e   :  { %p13946_p5 = scmp.lt.s32.totalorder %s13944_s22, %s13940_s18 }
  0x50   :  { %p13947_p6 = por %p13946_p5, %p13945_p4 }
  0x52   :  { %p13948_p7 = pnand %p13947_p6, %p13941_p3 }
  0x54   :  { %13951 = shalt.err (!%p13948_p7)
}
  0x55   :  { %s14611_s23 = smov 16   ;;  %s14612_s26 = smov 1  }
  0x56   :  { %115 = dma.hbm_to_vmem [thread:$0]  %s14684_s13, 144, %s110_s15, [#allocation5], %s14611_s23, %s14611_s23, %s14612_s26  }
  0x57   :  { %s14613_s28 = smov [#allocation7]   ;;  %s13952_s2 = scalar_lea.hbm %s14699_s25, 8192 }
  0x58   :  { %s135_s1 = sshll.u32 %s14613_s28, 4  ;;  %p13953_p8 = scmp.ne.s32.totalorder %s14699_s25, %s13952_s2  ;;  %s136_s1 = int_to_ptr.vmem [resolvable:$true] %s135_s1 }
  0x59   :  { %p13956_p9 = scmp.lt.u32.totalorder %s13952_s2, %s14699_s25 }
  0x5b   :  { %p13958_p10 = pnand %p13956_p9, %p13953_p8 }
  0x5d   :  { %13961 = shalt.err (!%p13958_p10)
}
  0x5e   :  { %s13962_s7 = scalar_lea.vmem %s136_s1, 8192  ;;  %p13967_p12 = scmp.lt.s32.totalorder %s136_s1, %s136_s1 }
  0x5f   :  { %p13963_p11 = scmp.ne.s32.totalorder %s136_s1, %s13962_s7  ;;  %p13968_p13 = scmp.lt.s32.totalorder %s13962_s7, %s13962_s7 }
  0x61   :  { %p13969_p0 = por %p13968_p13, %p13967_p12 }
  0x63   :  { %p13970_p1 = pnand %p13969_p0, %p13963_p11 }
  0x65   :  { %13973 = shalt.err (!%p13970_p1)
}
  0x66   :  { %s14614_s10 = smov 128   ;;  %s14615_s13 = smov 8  }
  0x67   :  { %141 = dma.hbm_to_vmem [thread:$0]  %s14699_s25, 8192, %s136_s1, [#allocation8], %s14614_s10, %s14614_s10, %s14615_s13  }
  0x68   :  { %s14616_s11 = smov [#allocation10]   ;;  %s14617_s15 = smov [#allocation13]  }
  0x69   :  { %s159_s0 = sshll.u32 %s14616_s11, 4  ;;  %s184_s16 = sshll.u32 %s14617_s15, 4  ;;  %s160_s0 = int_to_ptr.vmem [resolvable:$true] %s159_s0  ;;  %s185_s16 = int_to_ptr.vmem [resolvable:$true] %s184_s16 }
  0x6a   :  { %s13974_s18 = scalar_lea.hbm %s14709_s3, 2048 }
  0x6b   :  { %p13975_p2 = scmp.ne.s32.totalorder %s14709_s3, %s13974_s18  ;;  %p13978_p3 = scmp.lt.u32.totalorder %s13974_s18, %s14709_s3 }
  0x6d   :  { %p13980_p4 = pnand %p13978_p3, %p13975_p2 }
  0x6f   :  { %13983 = shalt.err (!%p13980_p4)
}
  0x70   :  { %s13984_s22 = scalar_lea.vmem %s160_s0, 2048  ;;  %p13989_p6 = scmp.lt.s32.totalorder %s160_s0, %s160_s0 }
  0x71   :  { %p13985_p5 = scmp.ne.s32.totalorder %s160_s0, %s13984_s22  ;;  %p13990_p7 = scmp.lt.s32.totalorder %s13984_s22, %s13984_s22 }
  0x73   :  { %p13991_p8 = por %p13990_p7, %p13989_p6 }
  0x75   :  { %p13992_p9 = pnand %p13991_p8, %p13985_p5 }
  0x77   :  { %13995 = shalt.err (!%p13992_p9)
}
  0x78   :  { %165 = dma.hbm_to_vmem [thread:$0]  %s14709_s3, 2048, %s160_s0, [#allocation11], %s14614_s10, %s14614_s10, %s14615_s13  }
  0x79   :  { %s13996_s25 = scalar_lea.hbm %s14719_s14, 128 }
  0x7a   :  { %p13997_p10 = scmp.ne.s32.totalorder %s14719_s14, %s13996_s25  ;;  %p14000_p11 = scmp.lt.u32.totalorder %s13996_s25, %s14719_s14 }
  0x7c   :  { %p14002_p12 = pnand %p14000_p11, %p13997_p10 }
  0x7e   :  { %14005 = shalt.err (!%p14002_p12)
}
  0x7f   :  { %s14006_s28 = scalar_lea.vmem %s185_s16, 128  ;;  %p14011_p0 = scmp.lt.s32.totalorder %s185_s16, %s185_s16 }
  0x80   :  { %p14007_p13 = scmp.ne.s32.totalorder %s185_s16, %s14006_s28  ;;  %p14012_p1 = scmp.lt.s32.totalorder %s14006_s28, %s14006_s28 }
  0x82   :  { %p14013_p2 = por %p14012_p1, %p14011_p0 }
  0x84   :  { %p14014_p3 = pnand %p14013_p2, %p14007_p13 }
  0x86   :  { %14017 = shalt.err (!%p14014_p3)
}
  0x87   :  { %187 = dma.hbm_to_vmem [thread:$0]  %s14719_s14, 128, %s185_s16, [#allocation14]  }
  0x88   :  { %s14618_s1 = smov [#allocation16]   ;;  %s14619_s3 = smov [#allocation19]  }
  0x89   :  { %s206_s2 = sshll.u32 %s14618_s1, 4  ;;  %s228_s7 = sshll.u32 %s14619_s3, 4  ;;  %s207_s2 = int_to_ptr.vmem [resolvable:$true] %s206_s2  ;;  %s229_s7 = int_to_ptr.vmem [resolvable:$true] %s228_s7 }
  0x8a   :  { %s14018_s11 = scalar_lea.hbm %s14729_s24, 128 }
  0x8b   :  { %p14019_p4 = scmp.ne.s32.totalorder %s14729_s24, %s14018_s11  ;;  %p14022_p5 = scmp.lt.u32.totalorder %s14018_s11, %s14729_s24 }
  0x8d   :  { %p14024_p6 = pnand %p14022_p5, %p14019_p4 }
  0x8f   :  { %14027 = shalt.err (!%p14024_p6)
}
  0x90   :  { %s14028_s0 = scalar_lea.vmem %s207_s2, 128  ;;  %p14033_p8 = scmp.lt.s32.totalorder %s207_s2, %s207_s2 }
  0x91   :  { %p14029_p7 = scmp.ne.s32.totalorder %s207_s2, %s14028_s0  ;;  %p14034_p9 = scmp.lt.s32.totalorder %s14028_s0, %s14028_s0 }
  0x93   :  { %p14035_p10 = por %p14034_p9, %p14033_p8 }
  0x95   :  { %p14036_p11 = pnand %p14035_p10, %p14029_p7 }
  0x97   :  { %14039 = shalt.err (!%p14036_p11)
}
  0x98   :  { %209 = dma.hbm_to_vmem [thread:$0]  %s14729_s24, 128, %s207_s2, [#allocation17]  }
  0x99   :  { %s14040_s14 = scalar_lea.hbm %s14739_s6, 128 }
  0x9a   :  { %p14041_p12 = scmp.ne.s32.totalorder %s14739_s6, %s14040_s14  ;;  %p14044_p13 = scmp.lt.u32.totalorder %s14040_s14, %s14739_s6 }
  0x9c   :  { %p14046_p0 = pnand %p14044_p13, %p14041_p12 }
  0x9e   :  { %14049 = shalt.err (!%p14046_p0)
}
  0x9f   :  { %s14050_s15 = scalar_lea.vmem %s229_s7, 128  ;;  %p14055_p2 = scmp.lt.s32.totalorder %s229_s7, %s229_s7 }
  0xa0   :  { %p14051_p1 = scmp.ne.s32.totalorder %s229_s7, %s14050_s15  ;;  %p14056_p3 = scmp.lt.s32.totalorder %s14050_s15, %s14050_s15 }
  0xa2   :  { %p14057_p4 = por %p14056_p3, %p14055_p2 }
  0xa4   :  { %p14058_p5 = pnand %p14057_p4, %p14051_p1 }
  0xa6   :  { %14061 = shalt.err (!%p14058_p5)
}
  0xa7   :  { %231 = dma.hbm_to_vmem [thread:$0]  %s14739_s6, 128, %s229_s7, [#allocation20]  }
  0xa8   :  { %s14620_s16 = smov [#allocation22]   ;;  %s14621_s24 = smov [#allocation25]  }
  0xa9   :  { %s249_s18 = sshll.u32 %s14620_s16, 4  ;;  %s273_s22 = sshll.u32 %s14621_s24, 4  ;;  %s250_s18 = int_to_ptr.vmem [resolvable:$true] %s249_s18  ;;  %s14879_s22 = int_to_ptr.vmem [resolvable:$true] %s273_s22 }
  0xaa   :  { %s14062_s25 = scalar_lea.hbm %s14749_s20, 256 }
  0xab   :  { %p14063_p6 = scmp.ne.s32.totalorder %s14749_s20, %s14062_s25  ;;  %p14066_p7 = scmp.lt.u32.totalorder %s14062_s25, %s14749_s20 }
  0xad   :  { %p14068_p8 = pnand %p14066_p7, %p14063_p6 }
  0xaf   :  { %14071 = shalt.err (!%p14068_p8)
}
  0xb0   :  { %s14072_s28 = scalar_lea.vmem %s250_s18, 256  ;;  %p14077_p10 = scmp.lt.s32.totalorder %s250_s18, %s250_s18 }
  0xb1   :  { %p14073_p9 = scmp.ne.s32.totalorder %s250_s18, %s14072_s28  ;;  %p14078_p11 = scmp.lt.s32.totalorder %s14072_s28, %s14072_s28 }
  0xb3   :  { %p14079_p12 = por %p14078_p11, %p14077_p10 }
  0xb5   :  { %p14080_p13 = pnand %p14079_p12, %p14073_p9 }
  0xb7   :  { %14083 = shalt.err (!%p14080_p13)
}
  0xb8   :  { %255 = dma.hbm_to_vmem [thread:$0]  %s14749_s20, 256, %s250_s18, [#allocation23], %s14614_s10, %s14614_s10, %s14615_s13  }
  0xb9   :  { %s14084_s6 = scalar_lea.hbm %s14759_s4, 256 }
  0xba   :  { %p14085_p0 = scmp.ne.s32.totalorder %s14759_s4, %s14084_s6  ;;  %p14088_p1 = scmp.lt.u32.totalorder %s14084_s6, %s14759_s4 }
  0xbc   :  { %p14090_p2 = pnand %p14088_p1, %p14085_p0 }
  0xbe   :  { %14093 = shalt.err (!%p14090_p2)
}
  0xbf   :  { %s14094_s1 = scalar_lea.vmem %s14879_s22, 256  ;;  %p14099_p4 = scmp.lt.s32.totalorder %s14879_s22, %s14879_s22 }
  0xc0   :  { %p14095_p3 = scmp.ne.s32.totalorder %s14879_s22, %s14094_s1  ;;  %p14100_p5 = scmp.lt.s32.totalorder %s14094_s1, %s14094_s1 }
  0xc2   :  { %p14101_p6 = por %p14100_p5, %p14099_p4 }
  0xc4   :  { %p14102_p7 = pnand %p14101_p6, %p14095_p3 }
  0xc6   :  { %14105 = shalt.err (!%p14102_p7)
}
  0xc7   :  { %279 = dma.hbm_to_vmem [thread:$0]  %s14759_s4, 256, %s14879_s22, [#allocation26], %s14614_s10, %s14614_s10, %s14615_s13  }
  0xc8   :  { %s14622_s20 = smov [#allocation28]   ;;  %s14623_s3 = smov [#allocation31]  }
  0xc9   :  { %s297_s2 = sshll.u32 %s14622_s20, 4  ;;  %s321_s7 = sshll.u32 %s14623_s3, 4  ;;  %s298_s2 = int_to_ptr.vmem [resolvable:$true] %s297_s2  ;;  %s14900_s7 = int_to_ptr.vmem [resolvable:$true] %s321_s7 }
  0xca   :  { %s14106_s11 = scalar_lea.hbm %s14769_s5, 256 }
  0xcb   :  { %p14107_p8 = scmp.ne.s32.totalorder %s14769_s5, %s14106_s11  ;;  %p14110_p9 = scmp.lt.u32.totalorder %s14106_s11, %s14769_s5 }
  0xcd   :  { %p14112_p10 = pnand %p14110_p9, %p14107_p8 }
  0xcf   :  { %14115 = shalt.err (!%p14112_p10)
}
  0xd0   :  { %s14116_s0 = scalar_lea.vmem %s298_s2, 256  ;;  %p14121_p12 = scmp.lt.s32.totalorder %s298_s2, %s298_s2 }
  0xd1   :  { %p14117_p11 = scmp.ne.s32.totalorder %s298_s2, %s14116_s0  ;;  %p14122_p13 = scmp.lt.s32.totalorder %s14116_s0, %s14116_s0 }
  0xd3   :  { %p14123_p0 = por %p14122_p13, %p14121_p12 }
  0xd5   :  { %p14124_p1 = pnand %p14123_p0, %p14117_p11 }
  0xd7   :  { %14127 = shalt.err (!%p14124_p1)
}
  0xd8   :  { %303 = dma.hbm_to_vmem [thread:$0]  %s14769_s5, 256, %s298_s2, [#allocation29], %s14614_s10, %s14614_s10, %s14615_s13  }
  0xd9   :  { %s14128_s4 = scalar_lea.hbm %s14779_s12, 512 }
  0xda   :  { %p14129_p2 = scmp.ne.s32.totalorder %s14779_s12, %s14128_s4  ;;  %p14132_p3 = scmp.lt.u32.totalorder %s14128_s4, %s14779_s12 }
  0xdc   :  { %p14134_p4 = pnand %p14132_p3, %p14129_p2 }
  0xde   :  { %14137 = shalt.err (!%p14134_p4)
}
  0xdf   :  { %s14138_s14 = scalar_lea.vmem %s14900_s7, 512  ;;  %p14143_p6 = scmp.lt.s32.totalorder %s14900_s7, %s14900_s7 }
  0xe0   :  { %p14139_p5 = scmp.ne.s32.totalorder %s14900_s7, %s14138_s14  ;;  %p14144_p7 = scmp.lt.s32.totalorder %s14138_s14, %s14138_s14 }
  0xe2   :  { %p14145_p8 = por %p14144_p7, %p14143_p6 }
  0xe4   :  { %p14146_p9 = pnand %p14145_p8, %p14139_p5 }
  0xe6   :  { %14149 = shalt.err (!%p14146_p9)
}
  0xe7   :  { %327 = dma.hbm_to_vmem [thread:$0]  %s14779_s12, 512, %s14900_s7, [#allocation32], %s14614_s10, %s14614_s10, %s14615_s13  }
  0xe8   :  { %s14624_s5 = smov [#allocation34]   ;;  %s14625_s16 = smov [#allocation37]  }
  0xe9   :  { %s347_s15 = sshll.u32 %s14624_s5, 4  ;;  %s371_s18 = sshll.u32 %s14625_s16, 4  ;;  %s348_s15 = int_to_ptr.vmem [resolvable:$true] %s347_s15  ;;  %s14921_s18 = int_to_ptr.vmem [resolvable:$true] %s371_s18 }
  0xea   :  { %s14150_s24 = scalar_lea.hbm %s14794_s27, 256 }
  0xeb   :  { %p14151_p10 = scmp.ne.s32.totalorder %s14794_s27, %s14150_s24  ;;  %p14154_p11 = scmp.lt.u32.totalorder %s14150_s24, %s14794_s27 }
  0xed   :  { %p14156_p12 = pnand %p14154_p11, %p14151_p10 }
  0xef   :  { %14159 = shalt.err (!%p14156_p12)
}
  0xf0   :  { %s14160_s22 = scalar_lea.vmem %s348_s15, 256  ;;  %p14165_p0 = scmp.lt.s32.totalorder %s348_s15, %s348_s15 }
  0xf1   :  { %p14161_p13 = scmp.ne.s32.totalorder %s348_s15, %s14160_s22  ;;  %p14166_p1 = scmp.lt.s32.totalorder %s14160_s22, %s14160_s22 }
  0xf3   :  { %p14167_p2 = por %p14166_p1, %p14165_p0 }
  0xf5   :  { %p14168_p3 = pnand %p14167_p2, %p14161_p13 }
  0xf7   :  { %14171 = shalt.err (!%p14168_p3)
}
  0xf8   :  { %s14626_s12 = smov 64   ;;  %s14627_s25 = smov 4  }
  0xf9   :  { %353 = dma.hbm_to_vmem [thread:$0]  %s14794_s27, 256, %s348_s15, [#allocation35], %s14626_s12, %s14626_s12, %s14627_s25  }
  0xfa   :  { %s14172_s28 = scalar_lea.hbm %s14804_s21, 4608 }
  0xfb   :  { %p14173_p4 = scmp.ne.s32.totalorder %s14804_s21, %s14172_s28  ;;  %p14176_p5 = scmp.lt.u32.totalorder %s14172_s28, %s14804_s21 }
  0xfd   :  { %p14178_p6 = pnand %p14176_p5, %p14173_p4 }
  0xff   :  { %14181 = shalt.err (!%p14178_p6)
}
 0x100   :  { %s14182_s6 = scalar_lea.vmem %s14921_s18, 4608  ;;  %p14187_p8 = scmp.lt.s32.totalorder %s14921_s18, %s14921_s18 }
 0x101   :  { %p14183_p7 = scmp.ne.s32.totalorder %s14921_s18, %s14182_s6  ;;  %p14188_p9 = scmp.lt.s32.totalorder %s14182_s6, %s14182_s6 }
 0x103   :  { %p14189_p10 = por %p14188_p9, %p14187_p8 }
 0x105   :  { %p14190_p11 = pnand %p14189_p10, %p14183_p7 }
 0x107   :  { %14193 = shalt.err (!%p14190_p11)
}
 0x108   :  { %377 = dma.hbm_to_vmem [thread:$0]  %s14804_s21, 4608, %s14921_s18, [#allocation38], %s14626_s12, %s14626_s12, %s14627_s25  }
 0x109   :  { %s14628_s27 = smov [#allocation40]   ;;  %s14629_s20 = smov [#allocation2]  }
 0x10a   :  { %s397_s1 = sshll.u32 %s14628_s27, 4  ;;  %s97_s2 = sshll.u32 %s14629_s20, 4  ;;  %s398_s1 = int_to_ptr.vmem [resolvable:$true] %s397_s1  ;;  %s14942_s2 = int_to_ptr.vmem [resolvable:$true] %s97_s2 }
 0x10b   :  { %s14194_s3 = scalar_lea.hbm %s14819_s19, 1024 }
 0x10c   :  { %p14195_p12 = scmp.ne.s32.totalorder %s14819_s19, %s14194_s3  ;;  %p14198_p13 = scmp.lt.u32.totalorder %s14194_s3, %s14819_s19 }
 0x10e   :  { %p14200_p0 = pnand %p14198_p13, %p14195_p12 }
 0x110   :  { %14203 = shalt.err (!%p14200_p0)
}
 0x111   :  { %s14204_s7 = scalar_lea.vmem %s398_s1, 1024  ;;  %p14209_p2 = scmp.lt.s32.totalorder %s398_s1, %s398_s1 }
 0x112   :  { %p14205_p1 = scmp.ne.s32.totalorder %s398_s1, %s14204_s7  ;;  %p14210_p3 = scmp.lt.s32.totalorder %s14204_s7, %s14204_s7 }
 0x114   :  { %p14211_p4 = por %p14210_p3, %p14209_p2 }
 0x116   :  { %p14212_p5 = pnand %p14211_p4, %p14205_p1 }
 0x118   :  { %14215 = shalt.err (!%p14212_p5)
}
 0x119   :  { %403 = dma.hbm_to_vmem [thread:$0]  %s14819_s19, 1024, %s398_s1, [#allocation41], %s14614_s10, %s14614_s10, %s14615_s13  }
 0x11a   :  { %s14216_s21 = scalar_lea.hbm %s14679_s9, 576 }
 0x11b   :  { %p14217_p6 = scmp.ne.s32.totalorder %s14679_s9, %s14216_s21  ;;  %p14220_p7 = scmp.lt.u32.totalorder %s14216_s21, %s14679_s9 }
 0x11d   :  { %p14222_p8 = pnand %p14220_p7, %p14217_p6 }
 0x11f   :  { %14225 = shalt.err (!%p14222_p8)
}
 0x120   :  { %s14226_s11 = scalar_lea.vmem %s14942_s2, 576  ;;  %p14231_p10 = scmp.lt.s32.totalorder %s14942_s2, %s14942_s2 }
 0x121   :  { %p14227_p9 = scmp.ne.s32.totalorder %s14942_s2, %s14226_s11  ;;  %p14232_p11 = scmp.lt.s32.totalorder %s14226_s11, %s14226_s11 }
 0x123   :  { %p14233_p12 = por %p14232_p11, %p14231_p10 }
 0x125   :  { %p14234_p13 = pnand %p14233_p12, %p14227_p9 }
 0x127   :  { %14237 = shalt.err (!%p14234_p13)
}
 0x128   :  { %s17175_s19 = sld [smem:[#allocation61_spill]]  ;;  %s14630_s0 = smov [#allocation6]  }
 0x129   :  { %103 = dma.hbm_to_vmem [thread:$0]  %s14679_s9, 576, %s14942_s2, [#allocation3], %s14626_s12, %s14626_s12, %s14627_s25  }
 0x12a   :  { %s121_s4 = sshll.u32 %s14630_s0, 4  ;;  %s14631_s14 = smov [#allocation9]   ;;  %s122_s4 = int_to_ptr.vmem [resolvable:$true] %s121_s4 }
 0x12b   :  { %s147_s5 = sshll.u32 %s14631_s14, 4  ;;  %s14963_s5 = int_to_ptr.vmem [resolvable:$true] %s147_s5 }
 0x12e   :  { %s14238_s15 = scalar_lea.hbm %s17175_s19, 144 }
 0x12f   :  { %p14239_p0 = scmp.ne.s32.totalorder %s17175_s19, %s14238_s15  ;;  %p14242_p1 = scmp.lt.u32.totalorder %s14238_s15, %s17175_s19 }
 0x131   :  { %p14244_p2 = pnand %p14242_p1, %p14239_p0 }
 0x133   :  { %14247 = shalt.err (!%p14244_p2)
}
 0x134   :  { %s14248_s16 = scalar_lea.vmem %s122_s4, 144  ;;  %s14252_s18 = scalar_lea.vmem %s122_s4, 160 }
 0x135   :  { %p14249_p3 = scmp.ne.s32.totalorder %s122_s4, %s14248_s16  ;;  %p14253_p4 = scmp.lt.s32.totalorder %s122_s4, %s122_s4 }
 0x136   :  { %p14254_p5 = scmp.lt.s32.totalorder %s14252_s18, %s14248_s16 }
 0x138   :  { %p14255_p6 = por %p14254_p5, %p14253_p4 }
 0x13a   :  { %p14256_p7 = pnand %p14255_p6, %p14249_p3 }
 0x13c   :  { %14259 = shalt.err (!%p14256_p7)
}
 0x13d   :  { %s17176_s9 = sld [smem:[#allocation63_spill]] }
 0x13e   :  { %127 = dma.hbm_to_vmem [thread:$0]  %s17175_s19, 144, %s122_s4, [#allocation5], %s14611_s23, %s14611_s23, %s14612_s26  }
 0x143   :  { %s14260_s24 = scalar_lea.hbm %s17176_s9, 2048 }
 0x144   :  { %p14261_p8 = scmp.ne.s32.totalorder %s17176_s9, %s14260_s24  ;;  %p14264_p9 = scmp.lt.u32.totalorder %s14260_s24, %s17176_s9 }
 0x146   :  { %p14266_p10 = pnand %p14264_p9, %p14261_p8 }
 0x148   :  { %14269 = shalt.err (!%p14266_p10)
}
 0x149   :  { %s14270_s22 = scalar_lea.vmem %s14963_s5, 2048  ;;  %p14275_p12 = scmp.lt.s32.totalorder %s14963_s5, %s14963_s5 }
 0x14a   :  { %p14271_p11 = scmp.ne.s32.totalorder %s14963_s5, %s14270_s22  ;;  %p14276_p13 = scmp.lt.s32.totalorder %s14270_s22, %s14270_s22 }
 0x14c   :  { %p14277_p0 = por %p14276_p13, %p14275_p12 }
 0x14e   :  { %p14278_p1 = pnand %p14277_p0, %p14271_p11 }
 0x150   :  { %14281 = shalt.err (!%p14278_p1)
}
 0x151   :  { %s17177_s28 = sld [smem:[#allocation64_spill]]  ;;  %s14632_s6 = smov [#allocation12]  }
 0x152   :  { %153 = dma.hbm_to_vmem [thread:$0]  %s17176_s9, 2048, %s14963_s5, [#allocation8], %s14614_s10, %s14614_s10, %s14615_s13  }
 0x153   :  { %s171_s27 = sshll.u32 %s14632_s6, 4  ;;  %s14633_s1 = smov [#allocation15]   ;;  %s172_s27 = int_to_ptr.vmem [resolvable:$true] %s171_s27 }
 0x154   :  { %s193_s20 = sshll.u32 %s14633_s1, 4  ;;  %s14984_s20 = int_to_ptr.vmem [resolvable:$true] %s193_s20 }
 0x157   :  { %s14282_s2 = scalar_lea.hbm %s17177_s28, 576 }
 0x158   :  { %p14283_p2 = scmp.ne.s32.totalorder %s17177_s28, %s14282_s2  ;;  %p14286_p3 = scmp.lt.u32.totalorder %s14282_s2, %s17177_s28 }
 0x15a   :  { %p14288_p4 = pnand %p14286_p3, %p14283_p2 }
 0x15c   :  { %14291 = shalt.err (!%p14288_p4)
}
 0x15d   :  { %s14292_s3 = scalar_lea.vmem %s172_s27, 576  ;;  %p14297_p6 = scmp.lt.s32.totalorder %s172_s27, %s172_s27 }
 0x15e   :  { %p14293_p5 = scmp.ne.s32.totalorder %s172_s27, %s14292_s3  ;;  %p14298_p7 = scmp.lt.s32.totalorder %s14292_s3, %s14292_s3 }
 0x160   :  { %p14299_p8 = por %p14298_p7, %p14297_p6 }
 0x162   :  { %p14300_p9 = pnand %p14299_p8, %p14293_p5 }
 0x164   :  { %14303 = shalt.err (!%p14300_p9)
}
 0x165   :  { %s17178_s7 = sld [smem:[#allocation65_spill]] }
 0x166   :  { %177 = dma.hbm_to_vmem [thread:$0]  %s17177_s28, 576, %s172_s27, [#allocation11], %s14626_s12, %s14626_s12, %s14627_s25  }
 0x16b   :  { %s14304_s21 = scalar_lea.hbm %s17178_s7, 576 }
 0x16c   :  { %p14305_p10 = scmp.ne.s32.totalorder %s17178_s7, %s14304_s21  ;;  %p14308_p11 = scmp.lt.u32.totalorder %s14304_s21, %s17178_s7 }
 0x16e   :  { %p14310_p12 = pnand %p14308_p11, %p14305_p10 }
 0x170   :  { %14313 = shalt.err (!%p14310_p12)
}
 0x171   :  { %s14314_s11 = scalar_lea.vmem %s14984_s20, 576  ;;  %p14319_p0 = scmp.lt.s32.totalorder %s14984_s20, %s14984_s20 }
 0x172   :  { %p14315_p13 = scmp.ne.s32.totalorder %s14984_s20, %s14314_s11  ;;  %p14320_p1 = scmp.lt.s32.totalorder %s14314_s11, %s14314_s11 }
 0x174   :  { %p14321_p2 = por %p14320_p1, %p14319_p0 }
 0x176   :  { %p14322_p3 = pnand %p14321_p2, %p14315_p13 }
 0x178   :  { %14325 = shalt.err (!%p14322_p3)
}
 0x179   :  { %s17179_s19 = sld [smem:[#allocation66_spill]]  ;;  %s14634_s0 = smov [#allocation18]  }
 0x17a   :  { %199 = dma.hbm_to_vmem [thread:$0]  %s17178_s7, 576, %s14984_s20, [#allocation14], %s14626_s12, %s14626_s12, %s14627_s25  }
 0x17b   :  { %s215_s4 = sshll.u32 %s14634_s0, 4  ;;  %s14635_s14 = smov [#allocation21]   ;;  %s216_s4 = int_to_ptr.vmem [resolvable:$true] %s215_s4 }
 0x17c   :  { %s237_s5 = sshll.u32 %s14635_s14, 4  ;;  %s15005_s5 = int_to_ptr.vmem [resolvable:$true] %s237_s5 }
 0x17f   :  { %s14326_s15 = scalar_lea.hbm %s17179_s19, 576 }
 0x180   :  { %p14327_p4 = scmp.ne.s32.totalorder %s17179_s19, %s14326_s15  ;;  %p14330_p5 = scmp.lt.u32.totalorder %s14326_s15, %s17179_s19 }
 0x182   :  { %p14332_p6 = pnand %p14330_p5, %p14327_p4 }
 0x184   :  { %14335 = shalt.err (!%p14332_p6)
}
 0x185   :  { %s14336_s16 = scalar_lea.vmem %s216_s4, 576  ;;  %p14341_p8 = scmp.lt.s32.totalorder %s216_s4, %s216_s4 }
 0x186   :  { %p14337_p7 = scmp.ne.s32.totalorder %s216_s4, %s14336_s16  ;;  %p14342_p9 = scmp.lt.s32.totalorder %s14336_s16, %s14336_s16 }
 0x188   :  { %p14343_p10 = por %p14342_p9, %p14341_p8 }
 0x18a   :  { %p14344_p11 = pnand %p14343_p10, %p14337_p7 }
 0x18c   :  { %14347 = shalt.err (!%p14344_p11)
}
 0x18d   :  { %s17180_s18 = sld [smem:[#allocation67_spill]] }
 0x18e   :  { %221 = dma.hbm_to_vmem [thread:$0]  %s17179_s19, 576, %s216_s4, [#allocation17], %s14626_s12, %s14626_s12, %s14627_s25  }
 0x193   :  { %s14348_s9 = scalar_lea.hbm %s17180_s18, 1152 }
 0x194   :  { %p14349_p12 = scmp.ne.s32.totalorder %s17180_s18, %s14348_s9  ;;  %p14352_p13 = scmp.lt.u32.totalorder %s14348_s9, %s17180_s18 }
 0x196   :  { %p14354_p0 = pnand %p14352_p13, %p14349_p12 }
 0x198   :  { %14357 = shalt.err (!%p14354_p0)
}
 0x199   :  { %s14358_s24 = scalar_lea.vmem %s15005_s5, 1152  ;;  %p14363_p2 = scmp.lt.s32.totalorder %s15005_s5, %s15005_s5 }
 0x19a   :  { %p14359_p1 = scmp.ne.s32.totalorder %s15005_s5, %s14358_s24  ;;  %p14364_p3 = scmp.lt.s32.totalorder %s14358_s24, %s14358_s24 }
 0x19c   :  { %p14365_p4 = por %p14364_p3, %p14363_p2 }
 0x19e   :  { %p14366_p5 = pnand %p14365_p4, %p14359_p1 }
 0x1a0   :  { %14369 = shalt.err (!%p14366_p5)
}
 0x1a1   :  { %s17181_s22 = sld [smem:[#allocation68_spill]]  ;;  %s14636_s28 = smov [#allocation24]  }
 0x1a2   :  { %243 = dma.hbm_to_vmem [thread:$0]  %s17180_s18, 1152, %s15005_s5, [#allocation20], %s14626_s12, %s14626_s12, %s14627_s25  }
 0x1a3   :  { %s261_s6 = sshll.u32 %s14636_s28, 4  ;;  %s14637_s27 = smov [#allocation27]   ;;  %s262_s6 = int_to_ptr.vmem [resolvable:$true] %s261_s6 }
 0x1a4   :  { %s285_s1 = sshll.u32 %s14637_s27, 4  ;;  %s15026_s1 = int_to_ptr.vmem [resolvable:$true] %s285_s1 }
 0x1a7   :  { %s14370_s20 = scalar_lea.hbm %s17181_s22, 1152 }
 0x1a8   :  { %p14371_p6 = scmp.ne.s32.totalorder %s17181_s22, %s14370_s20  ;;  %p14374_p7 = scmp.lt.u32.totalorder %s14370_s20, %s17181_s22 }
 0x1aa   :  { %p14376_p8 = pnand %p14374_p7, %p14371_p6 }
 0x1ac   :  { %14379 = shalt.err (!%p14376_p8)
}
 0x1ad   :  { %s14380_s2 = scalar_lea.vmem %s262_s6, 1152  ;;  %p14385_p10 = scmp.lt.s32.totalorder %s262_s6, %s262_s6 }
 0x1ae   :  { %p14381_p9 = scmp.ne.s32.totalorder %s262_s6, %s14380_s2  ;;  %p14386_p11 = scmp.lt.s32.totalorder %s14380_s2, %s14380_s2 }
 0x1b0   :  { %p14387_p12 = por %p14386_p11, %p14385_p10 }
 0x1b2   :  { %p14388_p13 = pnand %p14387_p12, %p14381_p9 }
 0x1b4   :  { %14391 = shalt.err (!%p14388_p13)
}
 0x1b5   :  { %s17182_s3 = sld [smem:[#allocation69_spill]] }
 0x1b6   :  { %267 = dma.hbm_to_vmem [thread:$0]  %s17181_s22, 1152, %s262_s6, [#allocation23], %s14626_s12, %s14626_s12, %s14627_s25  }
 0x1bb   :  { %s14392_s7 = scalar_lea.hbm %s17182_s3, 128 }
 0x1bc   :  { %p14393_p0 = scmp.ne.s32.totalorder %s17182_s3, %s14392_s7  ;;  %p14396_p1 = scmp.lt.u32.totalorder %s14392_s7, %s17182_s3 }
 0x1be   :  { %p14398_p2 = pnand %p14396_p1, %p14393_p0 }
 0x1c0   :  { %14401 = shalt.err (!%p14398_p2)
}
 0x1c1   :  { %s14402_s21 = scalar_lea.vmem %s15026_s1, 128  ;;  %p14407_p4 = scmp.lt.s32.totalorder %s15026_s1, %s15026_s1 }
 0x1c2   :  { %p14403_p3 = scmp.ne.s32.totalorder %s15026_s1, %s14402_s21  ;;  %p14408_p5 = scmp.lt.s32.totalorder %s14402_s21, %s14402_s21 }
 0x1c4   :  { %p14409_p6 = por %p14408_p5, %p14407_p4 }
 0x1c6   :  { %p14410_p7 = pnand %p14409_p6, %p14403_p3 }
 0x1c8   :  { %14413 = shalt.err (!%p14410_p7)
}
 0x1c9   :  { %s17183_s11 = sld [smem:[#allocation70_spill]]  ;;  %s14638_s19 = smov [#allocation30]  }
 0x1ca   :  { %291 = dma.hbm_to_vmem [thread:$0]  %s17182_s3, 128, %s15026_s1, [#allocation26], %s14626_s12, %s14626_s12, %s14627_s25  }
 0x1cb   :  { %s309_s0 = sshll.u32 %s14638_s19, 4  ;;  %s14639_s4 = smov [#allocation33]   ;;  %s310_s0 = int_to_ptr.vmem [resolvable:$true] %s309_s0 }
 0x1cc   :  { %s335_s14 = sshll.u32 %s14639_s4, 4  ;;  %s15047_s14 = int_to_ptr.vmem [resolvable:$true] %s335_s14 }
 0x1cf   :  { %s14414_s5 = scalar_lea.hbm %s17183_s11, 2304 }
 0x1d0   :  { %p14415_p8 = scmp.ne.s32.totalorder %s17183_s11, %s14414_s5  ;;  %p14418_p9 = scmp.lt.u32.totalorder %s14414_s5, %s17183_s11 }
 0x1d2   :  { %p14420_p10 = pnand %p14418_p9, %p14415_p8 }
 0x1d4   :  { %14423 = shalt.err (!%p14420_p10)
}
 0x1d5   :  { %s14424_s15 = scalar_lea.vmem %s310_s0, 2304  ;;  %p14429_p12 = scmp.lt.s32.totalorder %s310_s0, %s310_s0 }
 0x1d6   :  { %p14425_p11 = scmp.ne.s32.totalorder %s310_s0, %s14424_s15  ;;  %p14430_p13 = scmp.lt.s32.totalorder %s14424_s15, %s14424_s15 }
 0x1d8   :  { %p14431_p0 = por %p14430_p13, %p14429_p12 }
 0x1da   :  { %p14432_p1 = pnand %p14431_p0, %p14425_p11 }
 0x1dc   :  { %14435 = shalt.err (!%p14432_p1)
}
 0x1dd   :  { %s17184_s16 = sld [smem:[#allocation72_spill]] }
 0x1de   :  { %315 = dma.hbm_to_vmem [thread:$0]  %s17183_s11, 2304, %s310_s0, [#allocation29], %s14626_s12, %s14626_s12, %s14627_s25  }
 0x1e3   :  { %s14436_s18 = scalar_lea.hbm %s17184_s16, 512 }
 0x1e4   :  { %p14437_p2 = scmp.ne.s32.totalorder %s17184_s16, %s14436_s18  ;;  %p14440_p3 = scmp.lt.u32.totalorder %s14436_s18, %s17184_s16 }
 0x1e6   :  { %p14442_p4 = pnand %p14440_p3, %p14437_p2 }
 0x1e8   :  { %14445 = shalt.err (!%p14442_p4)
}
 0x1e9   :  { %s14446_s9 = scalar_lea.vmem %s15047_s14, 512  ;;  %p14451_p6 = scmp.lt.s32.totalorder %s15047_s14, %s15047_s14 }
 0x1ea   :  { %p14447_p5 = scmp.ne.s32.totalorder %s15047_s14, %s14446_s9  ;;  %p14452_p7 = scmp.lt.s32.totalorder %s14446_s9, %s14446_s9 }
 0x1ec   :  { %p14453_p8 = por %p14452_p7, %p14451_p6 }
 0x1ee   :  { %p14454_p9 = pnand %p14453_p8, %p14447_p5 }
 0x1f0   :  { %14457 = shalt.err (!%p14454_p9)
}
 0x1f1   :  { %s17185_s24 = sld [smem:[#allocation73_spill]]  ;;  %s14640_s22 = smov [#allocation36]  }
 0x1f2   :  { %341 = dma.hbm_to_vmem [thread:$0]  %s17184_s16, 512, %s15047_s14, [#allocation32], %s14614_s10, %s14614_s10, %s14615_s13  }
 0x1f3   :  { %s359_s28 = sshll.u32 %s14640_s22, 4  ;;  %s14641_s6 = smov [#allocation39]   ;;  %s360_s28 = int_to_ptr.vmem [resolvable:$true] %s359_s28 }
 0x1f4   :  { %s383_s27 = sshll.u32 %s14641_s6, 4  ;;  %s15068_s27 = int_to_ptr.vmem [resolvable:$true] %s383_s27 }
 0x1f7   :  { %s14458_s1 = scalar_lea.hbm %s17185_s24, 512 }
 0x1f8   :  { %p14459_p10 = scmp.ne.s32.totalorder %s17185_s24, %s14458_s1  ;;  %p14462_p11 = scmp.lt.u32.totalorder %s14458_s1, %s17185_s24 }
 0x1fa   :  { %p14464_p12 = pnand %p14462_p11, %p14459_p10 }
 0x1fc   :  { %14467 = shalt.err (!%p14464_p12)
}
 0x1fd   :  { %s14468_s20 = scalar_lea.vmem %s360_s28, 512  ;;  %p14473_p0 = scmp.lt.s32.totalorder %s360_s28, %s360_s28 }
 0x1fe   :  { %p14469_p13 = scmp.ne.s32.totalorder %s360_s28, %s14468_s20  ;;  %p14474_p1 = scmp.lt.s32.totalorder %s14468_s20, %s14468_s20 }
 0x200   :  { %p14475_p2 = por %p14474_p1, %p14473_p0 }
 0x202   :  { %p14476_p3 = pnand %p14475_p2, %p14469_p13 }
 0x204   :  { %14479 = shalt.err (!%p14476_p3)
}
 0x205   :  { %s17186_s2 = sld [smem:[#allocation74_spill]] }
 0x206   :  { %365 = dma.hbm_to_vmem [thread:$0]  %s17185_s24, 512, %s360_s28, [#allocation35], %s14614_s10, %s14614_s10, %s14615_s13  }
 0x20b   :  { %s14480_s3 = scalar_lea.hbm %s17186_s2, 1024 }
 0x20c   :  { %p14481_p4 = scmp.ne.s32.totalorder %s17186_s2, %s14480_s3  ;;  %p14484_p5 = scmp.lt.u32.totalorder %s14480_s3, %s17186_s2 }
 0x20e   :  { %p14486_p6 = pnand %p14484_p5, %p14481_p4 }
 0x210   :  { %14489 = shalt.err (!%p14486_p6)
}
 0x211   :  { %s14490_s7 = scalar_lea.vmem %s15068_s27, 1024  ;;  %p14495_p8 = scmp.lt.s32.totalorder %s15068_s27, %s15068_s27 }
 0x212   :  { %p14491_p7 = scmp.ne.s32.totalorder %s15068_s27, %s14490_s7  ;;  %p14496_p9 = scmp.lt.s32.totalorder %s14490_s7, %s14490_s7 }
 0x214   :  { %p14497_p10 = por %p14496_p9, %p14495_p8 }
 0x216   :  { %p14498_p11 = pnand %p14497_p10, %p14491_p7 }
 0x218   :  { %14501 = shalt.err (!%p14498_p11)
}
 0x219   :  { %s17187_s21 = sld [smem:[#allocation76_spill]]  ;;  %s14642_s11 = smov [#allocation42]  }
 0x21a   :  { %389 = dma.hbm_to_vmem [thread:$0]  %s17186_s2, 1024, %s15068_s27, [#allocation38], %s14614_s10, %s14614_s10, %s14615_s13  }
 0x21b   :  { %s409_s19 = sshll.u32 %s14642_s11, 4  ;;  %s14643_s0 = smov [#allocation43]   ;;  %s410_s19 = int_to_ptr.vmem [resolvable:$true] %s409_s19 }
 0x21c   :  { %s421_s4 = sshll.u32 %s14643_s0, 4  ;;  %s15089_s4 = int_to_ptr.vmem [resolvable:$true] %s421_s4 }
 0x21f   :  { %s14502_s14 = scalar_lea.hbm %s17187_s21, 512 }
 0x220   :  { %p14503_p12 = scmp.ne.s32.totalorder %s17187_s21, %s14502_s14  ;;  %p14506_p13 = scmp.lt.u32.totalorder %s14502_s14, %s17187_s21 }
 0x222   :  { %p14508_p0 = pnand %p14506_p13, %p14503_p12 }
 0x224   :  { %14511 = shalt.err (!%p14508_p0)
}
 0x225   :  { %s14512_s5 = scalar_lea.vmem %s410_s19, 512  ;;  %p14517_p2 = scmp.lt.s32.totalorder %s410_s19, %s410_s19 }
 0x226   :  { %p14513_p1 = scmp.ne.s32.totalorder %s410_s19, %s14512_s5  ;;  %p14518_p3 = scmp.lt.s32.totalorder %s14512_s5, %s14512_s5 }
 0x228   :  { %p14519_p4 = por %p14518_p3, %p14517_p2 }
 0x22a   :  { %p14520_p5 = pnand %p14519_p4, %p14513_p1 }
 0x22c   :  { %14523 = shalt.err (!%p14520_p5)
}
 0x22d   :  { %415 = dma.hbm_to_vmem [thread:$0]  %s17187_s21, 512, %s410_s19, [#allocation41], %s14626_s12, %s14626_s12, %s14627_s25  }
 0x22e   :  { %s14524_s15 = scalar_lea.hbm %s14829_s30, 1024 }
 0x22f   :  { %p14525_p6 = scmp.ne.s32.totalorder %s14829_s30, %s14524_s15  ;;  %p14528_p7 = scmp.lt.u32.totalorder %s14524_s15, %s14829_s30 }
 0x231   :  { %p14530_p8 = pnand %p14528_p7, %p14525_p6 }
 0x233   :  { %14533 = shalt.err (!%p14530_p8)
}
 0x234   :  { %s14534_s16 = scalar_lea.vmem %s15089_s4, 1024  ;;  %p14539_p10 = scmp.lt.s32.totalorder %s15089_s4, %s15089_s4 }
 0x235   :  { %p14535_p9 = scmp.ne.s32.totalorder %s15089_s4, %s14534_s16  ;;  %p14540_p11 = scmp.lt.s32.totalorder %s14534_s16, %s14534_s16 }
 0x237   :  { %p14541_p12 = por %p14540_p11, %p14539_p10 }
 0x239   :  { %p14542_p13 = pnand %p14541_p12, %p14535_p9 }
 0x23b   :  { %14545 = shalt.err (!%p14542_p13)
}
 0x23c   :  { %427 = dma.hbm_to_vmem [thread:$0]  %s14829_s30, 1024, %s15089_s4, [#allocation44], %s14614_s10, %s14614_s10, %s14615_s13  }
 0x23d   :  { %14546 = dma.done.wait [#allocation3], 576  }
 0x23e   :  { %14547 = vsyncadd [#allocation3], 4294966720 }
 0x23f   :  { %14548 = dma.done.wait [#allocation5], 288  }
 0x240   :  { %14549 = vsyncadd [#allocation5], 4294967008 }
 0x241   :  { %14550 = dma.done.wait [#allocation8], 10240  }
 0x242   :  { %14551 = vsyncadd [#allocation8], 4294957056 }
 0x243   :  { %14552 = dma.done.wait [#allocation11], 2624  }
 0x244   :  { %14553 = vsyncadd [#allocation11], 4294964672 }
 0x245   :  { %14554 = dma.done.wait [#allocation14], 704  }
 0x246   :  { %14555 = vsyncadd [#allocation14], 4294966592 }
 0x247   :  { %14556 = dma.done.wait [#allocation17], 704  }
 0x248   :  { %14557 = vsyncadd [#allocation17], 4294966592 }
 0x249   :  { %14558 = dma.done.wait [#allocation20], 1280  }
 0x24a   :  { %14559 = vsyncadd [#allocation20], 4294966016 }
 0x24b   :  { %14560 = dma.done.wait [#allocation23], 1408  }
 0x24c   :  { %14561 = vsyncadd [#allocation23], 4294965888 }
 0x24d   :  { %14562 = dma.done.wait [#allocation26], 384  }
 0x24e   :  { %14563 = vsyncadd [#allocation26], 4294966912 }
 0x24f   :  { %14564 = dma.done.wait [#allocation29], 2560  }
 0x250   :  { %14565 = vsyncadd [#allocation29], 4294964736 }
 0x251   :  { %14566 = dma.done.wait [#allocation32], 1024  }
 0x252   :  { %14567 = vsyncadd [#allocation32], 4294966272 }
 0x253   :  { %14568 = dma.done.wait [#allocation35], 768  }
 0x254   :  { %14569 = vsyncadd [#allocation35], 4294966528 }
 0x255   :  { %14570 = dma.done.wait [#allocation38], 5632  }
 0x256   :  { %14571 = vsyncadd [#allocation38], 4294961664 }
 0x257   :  { %14572 = dma.done.wait [#allocation41], 1536  }
 0x258   :  { %14573 = vsyncadd [#allocation41], 4294965760 }
 0x259   :  { %14574 = dma.done.wait [#allocation44], 1024  }
 0x25a   :  { %14575 = vsyncadd [#allocation44], 4294966272  ;;  %s17188_s30 = sld [smem:[#allocation60_spill]]  ;;  %s14644_s10 = smov 17   ;;  %v17152_v7 = vmov 0   ;;  %v1833_v8 = vld [vmem:[#allocation13] sm:$0xff]  ;;  %v530_v9 = vlaneseq }
 0x25b   :  { %666 = vmatprep.mubr.bf16.mxu0 %v17152_v7  ;;  %707 = vmatprep.mubr.bf16.mxu1 %v17152_v7  ;;  %s14646_s12 = smov 15   ;;  %s14647_s18 = smov 127   ;;  %vm618_vm0 = vcmask 1040384   ;;  %v537_v14 = vld [vmem:[#allocation2] sm:$0xf]  ;;  %vm619_vm1 = vcmask 1041408  }
 0x25c   :  { %13795 = vset.pattern.permute.xlu0 %v17152_v7  ;;  %13796 = vset.pattern.permute.xlu1 %v17152_v7  ;;  %s14648_s9 = smov 113   ;;  %s14649_s24 = smov 112   ;;  %v540_v10 = vshrl.u32 %v530_v9, 7  ;;  %v15141_v11 = vand.u32 127, %v530_v9  ;;  %v14651_v16 = vmov 65535   ;;  %vm614_vm5 = vcmask 23552  }
 0x25d   :  { %s14650_s22 = smov 111   ;;  %v620_v17 = vsel %vm618_vm0, 4294967295, %v14651_v16  ;;  %v582_v19 = vld [vmem:[#allocation2 + $0x4] sm:$0xf]  ;;  %v827_v20 = vld [vmem:[#allocation2 + $0x8] sm:$0xf] }
 0x25e   :  { %v15143_v12 = vsub.s32 0, %v540_v10  ;;  %v15145_v13 = vsub.s32 2, %v540_v10  ;;  %v15147_v15 = vsub.s32 1, %v540_v10  ;;  %v15149_v18 = vsub.s32 3, %v540_v10  ;;  %v1108_v28 = vld [vmem:[#allocation2 + $0x10] sm:$0xf] }
 0x25f   :  { %vm576_vm2 = vcmp.lt.s32.totalorder %v15141_v11, 16  ;;  %vm532_vm3 = vcmp.lt.s32.totalorder %v15141_v11, 17  ;;  %v15159_v23 = vsel %vm619_vm1, %v620_v17, 0  ;;  %v15185_v35 = vld [vmem:[#allocation2 + $0xc] sm:$0xf]  ;;  %vm821_vm4 = vcmp.lt.s32.totalorder %v15141_v11, 15 }
 0x260   :  { %v513_v0 = vld [vmem:[%s17188_s30] sm:$0xff]  ;;  %v15154_v21 = vrot.slane %v537_v14, %v15143_v12  ;;  %v15157_v22 = vrot.slane %v537_v14, %v15145_v13  ;;  %v15162_v24 = vrot.slane %v582_v19, %v15147_v15  ;;  %v15165_v25 = vrot.slane %v582_v19, %v15143_v12  ;;  %s14655_s28 = smov 7   ;;  %s14656_s6 = smov 121  }
 0x261   :  { %v15111_v1 = vunpack.c.l.bf16 %v513_v0  ;;  %v15113_v2 = vunpack.c.h.bf16 %v513_v0  ;;  %v15168_v26 = vrot.slane %v582_v19, %v15149_v18  ;;  %v15171_v27 = vrot.slane %v582_v19, %v15145_v13  ;;  %s14657_s27 = smov 120   ;;  %s14658_s1 = smov 119  }
 0x262   :  { %v15174_v31 = vrot.slane %v537_v14, %v15147_v15  ;;  %v15177_v32 = vrot.slane %v827_v20, %v15143_v12  ;;  %v15180_v33 = vrot.slane %v827_v20, %v15145_v13  ;;  %v15183_v34 = vrot.slane %v537_v14, %v15149_v18  ;;  %s14660_s20 = smov 3   ;;  %s14661_s2 = smov 125  }
 0x263   :  { %v518_v3 = vcombine.high %v15111_v1, %v15111_v1  ;;  %v519_v4 = vcombine.high %v15113_v2, %v15113_v2  ;;  %v15189_v40 = vrot.slane %v827_v20, %v15147_v15  ;;  %v15192_v41 = vrot.slane %v827_v20, %v15149_v18  ;;  %s14662_s3 = smov 124   ;;  %s14663_s7 = smov 123  }
 0x264   :  { %v15195_v42 = vrot.slane %v1108_v28, %v15143_v12  ;;  %v15198_v43 = vrot.slane %v1108_v28, %v15147_v15  ;;  %v15206_v46 = vrot.slane %v15185_v35, %v15143_v12  ;;  %v15210_v47 = vrot.slane %v15185_v35, %v15145_v13  ;;  %s17200_s21 = sld [smem:[#allocation62_spill]] }
 0x265   :  { %v13715_v5 = vpack.i.bf16 %v518_v3, %v15111_v1  ;;  %v13720_v6 = vpack.i.bf16 %v519_v4, %v15113_v2  ;;  %v15216_v52 = vrot.slane %v15185_v35, %v15147_v15  ;;  %v15219_v53 = vrot.slane %v1108_v28, %v15145_v13 }
 0x266   :  { %v1126_v60 = vcombine.low %v15195_v42, %v15198_v43  ;;  %v15224_v61 = vrot.slane %v1108_v28, %v15149_v18  ;;  %vm968_vm6 = vcmp.lt.s32.totalorder %v15141_v11, 1  ;;  %vm1253_vm7 = vcmp.lt.s32.totalorder %v15141_v11, 127 }
 0x267   :  { %13716 = vrot.lane.b32.xlu0 %v13715_v5, %s14611_s23  ;;  %13726 = vrot.lane.b32.xlu1 %v13715_v5, %s14644_s10  ;;  %vm1400_vm8 = vcmp.lt.s32.totalorder %v15141_v11, 113  ;;  %vm1547_vm9 = vcmp.lt.s32.totalorder %v15141_v11, 112  ;;  %vm1694_vm10 = vcmp.lt.s32.totalorder %v15141_v11, 111  ;;  %vm1894_vm11 = vcmask 1043456  }
 0x268   :  { %vm1890_vm12 = vcmask 64512   ;;  %vm14653_vm13 = vmmov 0   ;;  %vm5528_vm14 = vcmask 130048   ;;  %vm7306_vm15 = vcmask 261120  }
 0x269   :  { %vm9791_vm0 = vcmask 523264  }
 0x26b   :  { %13721 = vrot.lane.b32.xlu0 %v13720_v6, %s14611_s23  ;;  %13731 = vrot.lane.b32.xlu1 %v13720_v6, %s14644_s10 }
 0x26f   :  { %13741 = vrot.lane.b32.xlu1 %v13720_v6, %s14646_s12  ;;  %13736 = vrot.lane.b32.xlu0 %v13715_v5, %s14646_s12 }
 0x273   :  { %13751 = vrot.lane.b32.xlu1 %v13720_v6, %s14612_s26  ;;  %13746 = vrot.lane.b32.xlu0 %v13715_v5, %s14612_s26 }
 0x277   :  { %13761 = vrot.lane.b32.xlu1 %v13720_v6, %s14647_s18  ;;  %13756 = vrot.lane.b32.xlu0 %v13715_v5, %s14647_s18 }
 0x27b   :  { %13771 = vrot.lane.b32.xlu1 %v13720_v6, %s14648_s9  ;;  %13766 = vrot.lane.b32.xlu0 %v13715_v5, %s14648_s9 }
 0x27f   :  { %13781 = vrot.lane.b32.xlu1 %v13720_v6, %s14649_s24  ;;  %13776 = vrot.lane.b32.xlu0 %v13715_v5, %s14649_s24 }
 0x283   :  { %13791 = vrot.lane.b32.xlu1 %v13720_v6, %s14650_s22  ;;  %13786 = vrot.lane.b32.xlu0 %v13715_v5, %s14650_s22 }
 0x287   :  { %1836 = vperm.xlu0 %13795, %v1833_v8  }
 0x2d9   :  { %v13717_v29 = vpop.permute.xlu0 %13716  ;;  %v13727_v30 = vpop.permute.xlu1 %13726 }
 0x2da   :  { %v13719_v36 = vunpack.i.h.bf16 %v13717_v29  ;;  %v13718_v37 = vunpack.i.l.bf16 %v13717_v29  ;;  %v13729_v38 = vunpack.i.h.bf16 %v13727_v30  ;;  %v13728_v39 = vunpack.i.l.bf16 %v13727_v30 }
 0x2dc   :  { %v579_v44 = vsel %vm576_vm2, %v13718_v37, %v13719_v36  ;;  %v535_v45 = vsel %vm532_vm3, %v13728_v39, %v13729_v38 }
 0x2dd   :  { %v13722_v48 = vpop.permute.xlu0 %13721  ;;  %v13732_v49 = vpop.permute.xlu1 %13731  ;;  %v605_v50 = vmul.f32 %v15162_v24, %v579_v44  ;;  %v560_v51 = vmul.f32 %v15174_v31, %v535_v45 }
 0x2de   :  { %v13724_v54 = vunpack.i.h.bf16 %v13722_v48  ;;  %v13723_v55 = vunpack.i.l.bf16 %v13722_v48  ;;  %v13734_v56 = vunpack.i.h.bf16 %v13732_v49  ;;  %v13733_v57 = vunpack.i.l.bf16 %v13732_v49 }
 0x2df   :  { %v609_v58 = vpack.c.bf16 %v605_v50, %v605_v50  ;;  %v564_v59 = vpack.c.bf16 %v560_v51, %v560_v51 }
 0x2e0   :  { %v534_v62 = vsel %vm532_vm3, %v13729_v38, %v13733_v57  ;;  %v536_v63 = vsel %vm532_vm3, %v13734_v56, %v13728_v39  ;;  %v580_v0 = vsel %vm576_vm2, %v13724_v54, %v13718_v37  ;;  %v577_v3 = vsel %vm576_vm2, %v13723_v55, %v13724_v54 }
 0x2e1   :  { %v559_v4 = vmul.f32 %v15154_v21, %v536_v63  ;;  %v561_v5 = vmul.f32 %v15157_v22, %v534_v62  ;;  %v626_v6 = vand.u32 %v15159_v23, %v609_v58  ;;  %v604_v8 = vmul.f32 %v15165_v25, %v580_v0  ;;  %v13742_v9 = vpop.permute.xlu1 %13741  ;;  %v13737_v10 = vpop.permute.xlu0 %13736 }
 0x2e2   :  { %v607_v14 = vmul.f32 %v15168_v26, %v577_v3  ;;  %v578_v16 = vsel %vm576_vm2, %v13719_v36, %v13723_v55  ;;  %v723_v17 = vand.u32 %v15159_v23, %v564_v59  ;;  %v13744_v19 = vunpack.i.h.bf16 %v13742_v9 }
 0x2e3   :  { %634 = vmatprep.subr.bf16.mxu0 %v626_v6  ;;  %v608_v20 = vpack.c.bf16 %v604_v8, %v604_v8  ;;  %v606_v28 = vmul.f32 %v15171_v27, %v578_v16  ;;  %v13743_v29 = vunpack.i.l.bf16 %v13742_v9  ;;  %v13739_v30 = vunpack.i.h.bf16 %v13737_v10 }
 0x2e4   :  { %v611_v37 = vpack.c.bf16 %v607_v14, %v607_v14  ;;  %v13738_v38 = vunpack.i.l.bf16 %v13737_v10  ;;  %v563_v39 = vpack.c.bf16 %v559_v4, %v559_v4  ;;  %v533_v44 = vsel %vm532_vm3, %v13733_v57, %v13734_v56  ;;  %v613_v57 = vld [vmem:[#allocation12 + $0x4] sm:$0xf] }
 0x2e5   :  { %v623_v45 = vand.u32 %v15159_v23, %v608_v20  ;;  %v610_v48 = vpack.c.bf16 %v606_v28, %v606_v28  ;;  %v823_v36 = vsel %vm821_vm4, %v13739_v30, %v13743_v29  ;;  %v562_v49 = vmul.f32 %v15183_v34, %v533_v44  ;;  %v13752_v50 = vpop.permute.xlu1 %13751  ;;  %v13747_v51 = vpop.permute.xlu0 %13746 }
 0x2e6   :  { %v632_v54 = vand.u32 %v15159_v23, %v611_v37  ;;  %v851_v55 = vmul.f32 %v15180_v33, %v823_v36  ;;  %v825_v58 = vsel %vm821_vm4, %v13744_v19, %v13738_v38  ;;  %v720_v59 = vand.u32 %v15159_v23, %v563_v39 }
 0x2e7   :  { %635 = vmatpush1.bf16.msra.mxu0 %v623_v45  ;;  %v629_v56 = vand.u32 %v15159_v23, %v610_v48  ;;  %v849_v62 = vmul.f32 %v15177_v32, %v825_v58  ;;  %v566_v63 = vpack.c.bf16 %v562_v49, %v562_v49  ;;  %v565_v0 = vpack.c.bf16 %v561_v5, %v561_v5 }
 0x2e8   :  { %675 = vmatprep.subr.bf16.mxu1 %v632_v54  ;;  %731 = vmatprep.subr.bf16.mxu0 %v723_v17  ;;  %v13754_v3 = vunpack.i.h.bf16 %v13752_v50  ;;  %v13753_v4 = vunpack.i.l.bf16 %v13752_v50  ;;  %v13749_v6 = vunpack.i.h.bf16 %v13747_v51  ;;  %v13748_v8 = vunpack.i.l.bf16 %v13747_v51  ;;  %v567_v51 = vld [vmem:[#allocation12] sm:$0xf] }
 0x2e9   :  { %676 = vmatpush1.bf16.msra.mxu1 %v629_v56  ;;  %v729_v9 = vand.u32 %v15159_v23, %v566_v63  ;;  %v726_v10 = vand.u32 %v15159_v23, %v565_v0  ;;  %v824_v14 = vsel %vm821_vm4, %v13738_v38, %v13739_v30  ;;  %v822_v16 = vsel %vm821_vm4, %v13743_v29, %v13744_v19  ;;  %v15289_v36 = vpop.permute.xlu1 %13761  ;;  %v13757_v49 = vpop.permute.xlu0 %13756 }
 0x2ea   :  { %11381 = vmatmul.mubr.msk.bf16.vlgmr.msra.gmra.mrb[0].mxu0 %vm614_vm5, %v613_v57  ;;  %v850_v5 = vmul.f32 %v15189_v40, %v824_v14  ;;  %v852_v17 = vmul.f32 %v15192_v41, %v822_v16  ;;  %v15268_v20 = vrot.slane %v15185_v35, %v15149_v18  ;;  %v1127_v28 = vcombine.low %v15219_v53, %v15224_v61 }
 0x2eb   :  { %732 = vmatpush1.bf16.msra.mxu0 %v720_v59  ;;  %772 = vmatprep.subr.bf16.mxu1 %v729_v9  ;;  %v970_v30 = vsel %vm968_vm6, %v13749_v6, %v13753_v4  ;;  %v853_v37 = vpack.c.bf16 %v849_v62, %v849_v62  ;;  %v15275_v19 = vmul.f32 %v1126_v60, %v15111_v1  ;;  %v13763_v0 = vunpack.i.l.bf16 %v15289_v36 }
 0x2ec   :  { %11382 = vmatmul.mubr.msk.bf16.vlgmr.msra.gmra.mrb[0].mxu1 %vm614_vm5, %v613_v57  ;;  %763 = vmatprep.mubr.bf16.mxu0 %v17152_v7  ;;  %v972_v35 = vsel %vm968_vm6, %v13754_v3, %v13748_v8  ;;  %v854_v29 = vpack.c.bf16 %v850_v5, %v850_v5  ;;  %v856_v38 = vpack.c.bf16 %v852_v17, %v852_v17  ;;  %v13758_v14 = vunpack.i.l.bf16 %v13757_v49 }
 0x2ed   :  { %773 = vmatpush1.bf16.msra.mxu1 %v726_v10  ;;  %804 = vmatprep.mubr.bf16.mxu1 %v17152_v7  ;;  %v855_v39 = vpack.c.bf16 %v851_v55, %v851_v55  ;;  %v971_v44 = vsel %vm968_vm6, %v13748_v8, %v13749_v6  ;;  %v969_v1 = vsel %vm968_vm6, %v13753_v4, %v13754_v3  ;;  %v13759_v3 = vunpack.i.h.bf16 %v13757_v49 }
 0x2ee   :  { %v866_v60 = vand.u32 %v854_v29, %v15159_v23  ;;  %v872_v45 = vand.u32 %v856_v38, %v15159_v23  ;;  %v997_v48 = vmul.f32 %v15216_v52, %v971_v44  ;;  %v15292_v50 = vmul.f32 %v1127_v28, %v15113_v2  ;;  %v1259_v2 = vld [vmem:[#allocation2 + $0x14] sm:$0xf]  ;;  %v858_v38 = vld [vmem:[#allocation12 + $0x8] sm:$0xf] }
 0x2ef   :  { %v996_v54 = vmul.f32 %v15206_v46, %v972_v35  ;;  %v863_v55 = vand.u32 %v853_v37, %v15159_v23  ;;  %v999_v58 = vmul.f32 %v15268_v20, %v969_v1  ;;  %v998_v59 = vmul.f32 %v15210_v47, %v970_v30  ;;  %v15317_v37 = vpop.permute.xlu1 %13771  ;;  %v13767_v35 = vpop.permute.xlu0 %13766 }
 0x2f0   :  { %874 = vmatprep.subr.bf16.mxu0 %v866_v60  ;;  %915 = vmatprep.subr.bf16.mxu1 %v872_v45  ;;  %v1001_v56 = vpack.c.bf16 %v997_v48, %v997_v48  ;;  %v1134_v57 = vcombine.high %v15275_v19, %v15275_v19  ;;  %v869_v62 = vand.u32 %v855_v39, %v15159_v23  ;;  %v13764_v10 = vunpack.i.h.bf16 %v15289_v36  ;;  %v1406_v48 = vld [vmem:[#allocation2 + $0x18] sm:$0xf] }
 0x2f1   :  { %v1003_v63 = vpack.c.bf16 %v999_v58, %v999_v58  ;;  %v1135_v6 = vcombine.high %v15292_v50, %v15292_v50  ;;  %v1000_v9 = vpack.c.bf16 %v996_v54, %v996_v54  ;;  %v15312_v5 = vrot.slane %v1259_v2, %v15147_v15 }
 0x2f2   :  { %11383 = vmatmul.mubr.msk.bf16.vlgmr.msra.gmra.mrb[4].mxu0 %vm614_vm5, %v567_v51  ;;  %v1013_v4 = vand.u32 %v1001_v56, %v15159_v23  ;;  %v1139_v16 = vpack.c.bf16 %v1134_v57, %v1134_v57  ;;  %v1002_v17 = vpack.c.bf16 %v998_v59, %v998_v59  ;;  %v1255_v28 = vsel %vm1253_vm7, %v13759_v3, %v13763_v0 }
 0x2f3   :  { %875 = vmatpush1.bf16.msra.mxu0 %v863_v55  ;;  %906 = vmatprep.mubr.bf16.mxu0 %v17152_v7  ;;  %v1019_v8 = vand.u32 %v1003_v63, %v15159_v23  ;;  %v1141_v30 = vpack.c.bf16 %v1135_v6, %v1135_v6  ;;  %v15320_v29 = vrot.slane %v1259_v2, %v15149_v18  ;;  %v13773_v36 = vunpack.i.l.bf16 %v15317_v37 }
 0x2f4   :  { %11384 = vmatmul.mubr.msk.bf16.vlgmr.msra.gmra.mrb[4].mxu1 %vm614_vm5, %v567_v51  ;;  %1021 = vmatprep.subr.bf16.mxu0 %v1013_v4  ;;  %v1010_v39 = vand.u32 %v1000_v9, %v15159_v23  ;;  %v1257_v44 = vsel %vm1253_vm7, %v13764_v10, %v13758_v14  ;;  %v1151_v1 = vand.u32 %v1139_v16, %v15159_v23  ;;  %v13769_v49 = vunpack.i.h.bf16 %v13767_v35  ;;  %v15356_v9 = vpop.permute.xlu1 %13781 }
 0x2f5   :  { %916 = vmatpush1.bf16.msra.mxu1 %v869_v62  ;;  %947 = vmatprep.mubr.bf16.mxu1 %v17152_v7  ;;  %v1282_v60 = vmul.f32 %v15312_v5, %v1255_v28  ;;  %v1016_v45 = vand.u32 %v1002_v17, %v15159_v23  ;;  %v1157_v51 = vand.u32 %v1141_v30, %v15159_v23  ;;  %v13774_v59 = vunpack.i.h.bf16 %v15317_v37 }
 0x2f6   :  { %1062 = vmatprep.subr.bf16.mxu1 %v1019_v8  ;;  %v1284_v54 = vmul.f32 %v15320_v29, %v1257_v44  ;;  %v15335_v55 = vrot.slane %v1259_v2, %v15143_v12  ;;  %v1138_v58 = vpack.c.bf16 %v15275_v19, %v15275_v19  ;;  %v13768_v56 = vunpack.i.l.bf16 %v13767_v35  ;;  %v1553_v35 = vld [vmem:[#allocation2 + $0x1c] sm:$0xf] }
 0x2f7   :  { %v1256_v57 = vsel %vm1253_vm7, %v13758_v14, %v13759_v3  ;;  %v1286_v62 = vpack.c.bf16 %v1282_v60, %v1282_v60  ;;  %v15344_v63 = vrot.slane %v1406_v48, %v15147_v15  ;;  %v15348_v4 = vrot.slane %v1259_v2, %v15145_v13  ;;  %v15358_v14 = vpop.permute.xlu0 %13776  ;;  %v1005_v2 = vld [vmem:[#allocation12 + $0xc] sm:$0xf] }
 0x2f8   :  { %v1140_v19 = vpack.c.bf16 %v15292_v50, %v15292_v50  ;;  %v1402_v6 = vsel %vm1400_vm8, %v13769_v49, %v13773_v36  ;;  %v1254_v3 = vsel %vm1253_vm7, %v13763_v0, %v13764_v10  ;;  %v1288_v8 = vpack.c.bf16 %v1284_v54, %v1284_v54 }
 0x2f9   :  { %v15361_v16 = vrot.slane %v1406_v48, %v15149_v18  ;;  %v1281_v17 = vmul.f32 %v15335_v55, %v1256_v57  ;;  %v1148_v50 = vand.u32 %v1138_v58, %v15159_v23  ;;  %v1404_v28 = vsel %vm1400_vm8, %v13774_v59, %v13768_v56 }
 0x2fa   :  { %11385 = vmatmul.mubr.msk.bf16.vlgmr.msra.gmra.mrb[8].mxu0 %vm614_vm5, %v858_v38  ;;  %v1298_v30 = vand.u32 %v1286_v62, %v15159_v23  ;;  %v1429_v0 = vmul.f32 %v15344_v63, %v1402_v6  ;;  %v1283_v10 = vmul.f32 %v15348_v4, %v1254_v3  ;;  %v1154_v37 = vand.u32 %v1140_v19, %v15159_v23 }
 0x2fb   :  { %1022 = vmatpush1.bf16.msra.mxu0 %v1010_v39  ;;  %1053 = vmatprep.mubr.bf16.mxu0 %v17152_v7  ;;  %v13779_v39 = vunpack.i.h.bf16 %v15358_v14  ;;  %v1304_v44 = vand.u32 %v1288_v8, %v15159_v23  ;;  %v15379_v60 = vrot.slane %v1406_v48, %v15143_v12  ;;  %v13778_v54 = vunpack.i.l.bf16 %v15358_v14 }
 0x2fc   :  { %11386 = vmatmul.mubr.msk.bf16.vlgmr.msra.gmra.mrb[8].mxu1 %vm614_vm5, %v858_v38  ;;  %1159 = vmatprep.subr.bf16.mxu0 %v1151_v1  ;;  %v13783_v38 = vunpack.i.l.bf16 %v15356_v9  ;;  %v1431_v1 = vmul.f32 %v15361_v16, %v1404_v28  ;;  %v1403_v58 = vsel %vm1400_vm8, %v13768_v56, %v13769_v49  ;;  %v1433_v57 = vpack.c.bf16 %v1429_v0, %v1429_v0  ;;  %v15397_v56 = vpop.permute.xlu1 %13791  ;;  %v1700_v0 = vld [vmem:[#allocation2 + $0x20] sm:$0xf] }
 0x2fd   :  { %1063 = vmatpush1.bf16.msra.mxu1 %v1016_v45  ;;  %1094 = vmatprep.mubr.bf16.mxu1 %v17152_v7  ;;  %v1285_v45 = vpack.c.bf16 %v1281_v17, %v1281_v17  ;;  %v15387_v62 = vrot.slane %v1553_v35, %v15147_v15  ;;  %v15391_v19 = vrot.slane %v1406_v48, %v15145_v13 }
 0x2fe   :  { %1200 = vmatprep.subr.bf16.mxu1 %v1157_v51  ;;  %v13784_v51 = vunpack.i.h.bf16 %v15356_v9  ;;  %v1287_v6 = vpack.c.bf16 %v1283_v10, %v1283_v10  ;;  %v1549_v3 = vsel %vm1547_vm9, %v13779_v39, %v13783_v38  ;;  %v1401_v8 = vsel %vm1400_vm8, %v13773_v36, %v13774_v59  ;;  %v13787_v9 = vpop.permute.xlu0 %13786 }
 0x2ff   :  { %v1435_v49 = vpack.c.bf16 %v1431_v1, %v1431_v1  ;;  %v15400_v14 = vrot.slane %v1553_v35, %v15149_v18  ;;  %v1428_v17 = vmul.f32 %v15379_v60, %v1403_v58  ;;  %v1295_v48 = vand.u32 %v1285_v45, %v15159_v23 }
 0x300   :  { %v1445_v28 = vand.u32 %v1433_v57, %v15159_v23  ;;  %v1576_v36 = vmul.f32 %v15387_v62, %v1549_v3  ;;  %v1430_v59 = vmul.f32 %v15391_v19, %v1401_v8  ;;  %v13793_v10 = vunpack.i.l.bf16 %v15397_v56 }
 0x301   :  { %v15417_v45 = vrot.slane %v1553_v35, %v15143_v12  ;;  %v1432_v58 = vpack.c.bf16 %v1428_v17, %v1428_v17  ;;  %v13794_v57 = vunpack.i.h.bf16 %v15397_v56  ;;  %v1550_v3 = vsel %vm1547_vm9, %v13778_v54, %v13779_v39 }
 0x302   :  { %11387 = vmatmul.mubr.msk.bf16.vlgmr.msra.gmra.mrb[12].mxu0 %vm614_vm5, %v1005_v2  ;;  %v1580_v8 = vpack.c.bf16 %v1576_v36, %v1576_v36  ;;  %v1434_v17 = vpack.c.bf16 %v1430_v59, %v1430_v59 }
 0x303   :  { %1160 = vmatpush1.bf16.msra.mxu0 %v1148_v50  ;;  %1191 = vmatprep.mubr.bf16.mxu0 %v17152_v7  ;;  %v1551_v50 = vsel %vm1547_vm9, %v13784_v51, %v13778_v54  ;;  %v15435_v54 = vrot.slane %v1700_v0, %v15149_v18 }
 0x304   :  { %11388 = vmatmul.mubr.msk.bf16.vlgmr.msra.gmra.mrb[12].mxu1 %vm614_vm5, %v1005_v2  ;;  %1306 = vmatprep.subr.bf16.mxu0 %v1298_v30  ;;  %v1143_v2 = vld [vmem:[#allocation12 + $0x10] sm:$0xf]  ;;  %v1301_v30 = vand.u32 %v1287_v6, %v15159_v23  ;;  %v1578_v1 = vmul.f32 %v15400_v14, %v1551_v50  ;;  %v13788_v6 = vunpack.i.l.bf16 %v13787_v9  ;;  %v1442_v50 = vand.u32 %v1432_v58, %v15159_v23 }
 0x305   :  { %1201 = vmatpush1.bf16.msra.mxu1 %v1154_v37  ;;  %1232 = vmatprep.mubr.bf16.mxu1 %v17152_v7  ;;  %v13789_v37 = vunpack.i.h.bf16 %v13787_v9  ;;  %v1548_v9 = vsel %vm1547_vm9, %v13783_v38, %v13784_v51  ;;  %v1448_v38 = vand.u32 %v1434_v17, %v15159_v23  ;;  %v1695_v17 = vsel %vm1694_vm10, %v13793_v10, %v13794_v57 }
 0x306   :  { %1347 = vmatprep.subr.bf16.mxu1 %v1304_v44  ;;  %v1451_v44 = vand.u32 %v1435_v49, %v15159_v23  ;;  %v15424_v49 = vrot.slane %v1700_v0, %v15147_v15  ;;  %v1582_v39 = vpack.c.bf16 %v1578_v1, %v1578_v1  ;;  %v1290_v15 = vld [vmem:[#allocation12 + $0x14] sm:$0xf] }
 0x307   :  { %v1696_v56 = vsel %vm1694_vm10, %v13789_v37, %v13793_v10  ;;  %v1697_v1 = vsel %vm1694_vm10, %v13788_v6, %v13789_v37 }
 0x308   :  { %v1723_v36 = vmul.f32 %v15424_v49, %v1696_v56  ;;  %v1598_v18 = vand.u32 %v1582_v39, %v15159_v23  ;;  %v1437_v56 = vld [vmem:[#allocation12 + $0x18] sm:$0xf] }
 0x30a   :  { %11389 = vmatmul.mubr.msk.bf16.vlgmr.msra.gmra.mrb[16].mxu0 %vm614_vm5, %v1143_v2  ;;  %v1727_v58 = vpack.c.bf16 %v1723_v36, %v1723_v36 }
 0x30b   :  { %1307 = vmatpush1.bf16.msra.mxu0 %v1295_v48  ;;  %1338 = vmatprep.mubr.bf16.mxu0 %v17152_v7  ;;  %v15428_v48 = vrot.slane %v1553_v35, %v15145_v13  ;;  %v1698_v35 = vsel %vm1694_vm10, %v13794_v57, %v13788_v6  ;;  %v1584_v57 = vld [vmem:[#allocation12 + $0x1c] sm:$0xf] }
 0x30c   :  { %11390 = vmatmul.mubr.msk.bf16.vlgmr.msra.gmra.mrb[16].mxu1 %vm614_vm5, %v1143_v2  ;;  %1453 = vmatprep.subr.bf16.mxu0 %v1445_v28  ;;  %v1575_v2 = vmul.f32 %v15417_v45, %v1550_v3  ;;  %v1592_v28 = vand.u32 %v1580_v8, %v15159_v23  ;;  %v1725_v51 = vmul.f32 %v15435_v54, %v1698_v35  ;;  %v1731_v35 = vld [vmem:[#allocation12 + $0x20] sm:$0xf] }
 0x30d   :  { %1348 = vmatpush1.bf16.msra.mxu1 %v1301_v30  ;;  %1379 = vmatprep.mubr.bf16.mxu1 %v17152_v7  ;;  %v1577_v59 = vmul.f32 %v15428_v48, %v1548_v9  ;;  %v15450_v30 = vrot.slane %v1700_v0, %v15143_v12  ;;  %v15457_v3 = vrot.slane %v1700_v0, %v15145_v13 }
 0x30e   :  { %1494 = vmatprep.subr.bf16.mxu1 %v1451_v44  ;;  %v1579_v44 = vpack.c.bf16 %v1575_v2, %v1575_v2  ;;  %v1729_v12 = vpack.c.bf16 %v1725_v51, %v1725_v51  ;;  %v1739_v37 = vand.u32 %v1727_v58, %v15159_v23 }
 0x30f   :  { %17189 = vst [vmem:[#allocation77_spill] sm:$0xff] %v15457_v3  ;;  %v1581_v8 = vpack.c.bf16 %v1577_v59, %v1577_v59  ;;  %v1722_v9 = vmul.f32 %v15450_v30, %v1697_v1  ;;  %v1724_v6 = vmul.f32 %v15457_v3, %v1695_v17 }
 0x310   :  { %v1589_v39 = vand.u32 %v1579_v44, %v15159_v23  ;;  %v1745_v13 = vand.u32 %v1729_v12, %v15159_v23 }
 0x311   :  { %v1726_v0 = vpack.c.bf16 %v1722_v9, %v1722_v9  ;;  %v1728_v10 = vpack.c.bf16 %v1724_v6, %v1724_v6 }
 0x312   :  { %11391 = vmatmul.mubr.msk.bf16.vlgmr.msra.gmra.mrb[20].mxu0 %vm614_vm5, %v1290_v15 }
 0x313   :  { %1454 = vmatpush1.bf16.msra.mxu0 %v1442_v50  ;;  %1485 = vmatprep.mubr.bf16.mxu0 %v17152_v7  ;;  %v1736_v2 = vand.u32 %v1726_v0, %v15159_v23  ;;  %v1742_v50 = vand.u32 %v1728_v10, %v15159_v23 }
 0x314   :  { %11392 = vmatmul.mubr.msk.bf16.vlgmr.msra.gmra.mrb[20].mxu1 %vm614_vm5, %v1290_v15  ;;  %1600 = vmatprep.subr.bf16.mxu0 %v1592_v28  ;;  %v1595_v15 = vand.u32 %v1581_v8, %v15159_v23 }
 0x315   :  { %1495 = vmatpush1.bf16.msra.mxu1 %v1448_v38  ;;  %1526 = vmatprep.mubr.bf16.mxu1 %v17152_v7 }
 0x316   :  { %1641 = vmatprep.subr.bf16.mxu1 %v1598_v18 }
 0x31a   :  { %11393 = vmatmul.mubr.msk.bf16.vlgmr.msra.gmra.mrb[24].mxu0 %vm614_vm5, %v1437_v56 }
 0x31b   :  { %1601 = vmatpush1.bf16.msra.mxu0 %v1589_v39  ;;  %1632 = vmatprep.mubr.bf16.mxu0 %v17152_v7 }
 0x31c   :  { %11394 = vmatmul.mubr.msk.bf16.vlgmr.msra.gmra.mrb[24].mxu1 %vm614_vm5, %v1437_v56  ;;  %1747 = vmatprep.subr.bf16.mxu0 %v1739_v37 }
 0x31d   :  { %1642 = vmatpush1.bf16.msra.mxu1 %v1595_v15  ;;  %1673 = vmatprep.mubr.bf16.mxu1 %v17152_v7 }
 0x31e   :  { %1788 = vmatprep.subr.bf16.mxu1 %v1745_v13 }
 0x322   :  { %11395 = vmatmul.mubr.msk.bf16.vlgmr.msra.gmra.mrb[28].mxu0 %vm614_vm5, %v1584_v57 }
 0x323   :  { %1748 = vmatpush1.bf16.msra.mxu0 %v1736_v2  ;;  %1779 = vmatprep.mubr.bf16.mxu0 %v17152_v7 }
 0x324   :  { %11396 = vmatmul.mubr.msk.bf16.vlgmr.msra.gmra.mrb[28].mxu1 %vm614_vm5, %v1584_v57 }
 0x325   :  { %1789 = vmatpush1.bf16.msra.mxu1 %v1742_v50  ;;  %1820 = vmatprep.mubr.bf16.mxu1 %v17152_v7 }
 0x32a   :  { %11397 = vmatmul.mubr.msk.bf16.vlgmr.msra.gmra.mrb[32].mxu0 %vm614_vm5, %v1731_v35 }
 0x32b   :  { %1939 = vmatprep.mubr.bf16.mxu0 %v17152_v7 }
 0x32c   :  { %11398 = vmatmul.mubr.msk.bf16.vlgmr.msra.gmra.mrb[32].mxu1 %vm614_vm5, %v1731_v35 }
 0x32d   :  { %1980 = vmatprep.mubr.bf16.mxu1 %v17152_v7 }
 0x3bd   :  { %v668_v23 = vpop.f32.mrb[0].mxu0 }
 0x3be   :  { %v670_v28 = vpop.f32.mrb[1].mxu0 }
 0x3bf   :  { %v672_v36 = vpop.f32.mrb[2].mxu0  ;;  %v709_v59 = vpop.f32.mrb[0].mxu1 }
 0x3c0   :  { %v673_v38 = vpop.f32.mrb[3].mxu0  ;;  %v711_v18 = vpop.f32.mrb[1].mxu1 }
 0x3c1   :  { %v713_v51 = vpop.f32.mrb[2].mxu1 }
 0x3c2   :  { %v714_v44 = vpop.f32.mrb[3].mxu1 }
 0x3c5   :  { %v765_v1 = vpop.f32.mrb[4].mxu0 }
 0x3c6   :  { %v766_v58 = vadd.f32 %v765_v1, %v668_v23  ;;  %v767_v8 = vpop.f32.mrb[5].mxu0 }
 0x3c7   :  { %v768_v17 = vadd.f32 %v767_v8, %v670_v28  ;;  %v806_v12 = vpop.f32.mrb[4].mxu1  ;;  %v769_v56 = vpop.f32.mrb[6].mxu0 }
 0x3c8   :  { %v807_v9 = vadd.f32 %v806_v12, %v709_v59  ;;  %v808_v39 = vpop.f32.mrb[5].mxu1  ;;  %v770_v37 = vpop.f32.mrb[7].mxu0 }
 0x3c9   :  { %v809_v6 = vadd.f32 %v808_v39, %v711_v18  ;;  %v810_v15 = vpop.f32.mrb[6].mxu1 }
 0x3ca   :  { %v811_v13 = vpop.f32.mrb[7].mxu1 }
 0x3cd   :  { %v908_v0 = vpop.f32.mrb[8].mxu0 }
 0x3ce   :  { %v956_v10 = vadd.f32 %v908_v0, %v766_v58  ;;  %v910_v57 = vpop.f32.mrb[9].mxu0 }
 0x3cf   :  { %v957_v2 = vadd.f32 %v910_v57, %v768_v17  ;;  %v949_v50 = vpop.f32.mrb[8].mxu1  ;;  %v912_v35 = vpop.f32.mrb[10].mxu0 }
 0x3d0   :  { %v958_v36 = vadd.f32 %v949_v50, %v807_v9  ;;  %v951_v38 = vpop.f32.mrb[9].mxu1  ;;  %v913_v51 = vpop.f32.mrb[11].mxu0 }
 0x3d1   :  { %v959_v23 = vadd.f32 %v951_v38, %v809_v6  ;;  %v953_v44 = vpop.f32.mrb[10].mxu1 }
 0x3d2   :  { %v954_v28 = vpop.f32.mrb[11].mxu1 }
 0x3d5   :  { %v1055_v1 = vpop.f32.mrb[12].mxu0 }
 0x3d6   :  { %v1103_v8 = vadd.f32 %v1055_v1, %v956_v10  ;;  %v1057_v59 = vpop.f32.mrb[13].mxu0 }
 0x3d7   :  { %v1104_v12 = vadd.f32 %v1057_v59, %v957_v2  ;;  %v1096_v56 = vpop.f32.mrb[12].mxu1  ;;  %v1059_v18 = vpop.f32.mrb[14].mxu0 }
 0x3d8   :  { %v1105_v39 = vadd.f32 %v1096_v56, %v958_v36  ;;  %v1098_v37 = vpop.f32.mrb[13].mxu1  ;;  %v1060_v15 = vpop.f32.mrb[15].mxu0 }
 0x3d9   :  { %v1106_v58 = vadd.f32 %v1098_v37, %v959_v23  ;;  %v1100_v13 = vpop.f32.mrb[14].mxu1 }
 0x3da   :  { %v1101_v17 = vpop.f32.mrb[15].mxu1 }
 0x3dd   :  { %v1193_v0 = vpop.f32.mrb[16].mxu0 }
 0x3de   :  { %v1241_v57 = vadd.f32 %v1193_v0, %v1103_v8  ;;  %v1195_v9 = vpop.f32.mrb[17].mxu0 }
 0x3df   :  { %v1242_v50 = vadd.f32 %v1195_v9, %v1104_v12  ;;  %v1234_v35 = vpop.f32.mrb[16].mxu1  ;;  %v1197_v6 = vpop.f32.mrb[18].mxu0 }
 0x3e0   :  { %v1243_v38 = vadd.f32 %v1234_v35, %v1105_v39  ;;  %v1236_v51 = vpop.f32.mrb[17].mxu1  ;;  %v1198_v44 = vpop.f32.mrb[19].mxu0 }
 0x3e1   :  { %v1244_v10 = vadd.f32 %v1236_v51, %v1106_v58  ;;  %v1238_v28 = vpop.f32.mrb[18].mxu1 }
 0x3e2   :  { %v1239_v2 = vpop.f32.mrb[19].mxu1 }
 0x3e5   :  { %v1340_v1 = vpop.f32.mrb[20].mxu0 }
 0x3e6   :  { %v1388_v59 = vadd.f32 %v1340_v1, %v1241_v57  ;;  %v1342_v36 = vpop.f32.mrb[21].mxu0 }
 0x3e7   :  { %v1389_v56 = vadd.f32 %v1342_v36, %v1242_v50  ;;  %v1381_v18 = vpop.f32.mrb[20].mxu1  ;;  %v1344_v23 = vpop.f32.mrb[22].mxu0 }
 0x3e8   :  { %v1390_v37 = vadd.f32 %v1381_v18, %v1243_v38  ;;  %v1383_v15 = vpop.f32.mrb[21].mxu1  ;;  %v1345_v13 = vpop.f32.mrb[23].mxu0 }
 0x3e9   :  { %v1391_v8 = vadd.f32 %v1383_v15, %v1244_v10  ;;  %v1385_v17 = vpop.f32.mrb[22].mxu1 }
 0x3ea   :  { %v1386_v12 = vpop.f32.mrb[23].mxu1 }
 0x3ed   :  { %v1487_v0 = vpop.f32.mrb[24].mxu0 }
 0x3ee   :  { %v1535_v9 = vadd.f32 %v1487_v0, %v1388_v59  ;;  %v1489_v39 = vpop.f32.mrb[25].mxu0 }
 0x3ef   :  { %v1536_v35 = vadd.f32 %v1489_v39, %v1389_v56  ;;  %v1528_v6 = vpop.f32.mrb[24].mxu1  ;;  %v1491_v58 = vpop.f32.mrb[26].mxu0 }
 0x3f0   :  { %v1537_v51 = vadd.f32 %v1528_v6, %v1390_v37  ;;  %v1530_v44 = vpop.f32.mrb[25].mxu1  ;;  %v1492_v28 = vpop.f32.mrb[27].mxu0 }
 0x3f1   :  { %v1538_v57 = vadd.f32 %v1530_v44, %v1391_v8  ;;  %v1532_v2 = vpop.f32.mrb[26].mxu1  ;;  %v1837_v39 = vpop.permute.xlu0 %1836 }
 0x3f2   :  { %v1533_v50 = vpop.f32.mrb[27].mxu1 }
 0x3f5   :  { %v1634_v1 = vpop.f32.mrb[28].mxu0 }
 0x3f6   :  { %v1682_v36 = vadd.f32 %v1634_v1, %v1535_v9  ;;  %v1636_v38 = vpop.f32.mrb[29].mxu0 }
 0x3f7   :  { %v1683_v18 = vadd.f32 %v1636_v38, %v1536_v35  ;;  %v1675_v23 = vpop.f32.mrb[28].mxu1  ;;  %v1638_v10 = vpop.f32.mrb[30].mxu0 }
 0x3f8   :  { %v1684_v15 = vadd.f32 %v1675_v23, %v1537_v51  ;;  %v1677_v13 = vpop.f32.mrb[29].mxu1  ;;  %v1639_v17 = vpop.f32.mrb[31].mxu0 }
 0x3f9   :  { %v1685_v59 = vadd.f32 %v1677_v13, %v1538_v57  ;;  %v1679_v12 = vpop.f32.mrb[30].mxu1  ;;  %v2939_v13 = vld [vmem:[#allocation16] sm:$0xff] }
 0x3fa   :  { %v1680_v56 = vpop.f32.mrb[31].mxu1 }
 0x3fd   :  { %v1781_v0 = vpop.f32.mrb[32].mxu0 }
 0x3fe   :  { %v1829_v37 = vadd.f32 %v1781_v0, %v1682_v36  ;;  %v1783_v6 = vpop.f32.mrb[33].mxu0 }
 0x3ff   :  { %v1830_v58 = vadd.f32 %v1783_v6, %v1683_v18  ;;  %v1822_v8 = vpop.f32.mrb[32].mxu1  ;;  %v1785_v44 = vpop.f32.mrb[34].mxu0 }
 0x400   :  { %v1831_v28 = vadd.f32 %v1822_v8, %v1684_v15  ;;  %v1839_v2 = vadd.f32 %v1837_v39, %v1829_v37  ;;  %v1824_v9 = vpop.f32.mrb[33].mxu1  ;;  %v1786_v50 = vpop.f32.mrb[35].mxu0 }
 0x401   :  { %v1832_v35 = vadd.f32 %v1824_v9, %v1685_v59  ;;  %v1826_v1 = vpop.f32.mrb[34].mxu1  ;;  %v1840_v38 = vadd.f32 %v1837_v39, %v1830_v58 }
 0x402   :  { %v1841_v51 = vadd.f32 %v1837_v39, %v1831_v28  ;;  %v15481_v23 = vmax.f32 %v1839_v2, 0.0  ;;  %v1827_v57 = vpop.f32.mrb[35].mxu1 }
 0x403   :  { %v15487_v36 = vmax.f32 %v1840_v38, 0.0  ;;  %v1842_v18 = vadd.f32 %v1837_v39, %v1832_v35 }
 0x404   :  { %v15483_v10 = vmax.f32 %v1841_v51, 0.0  ;;  %1868 = vrot.lane.b32.xlu1 %v15481_v23, %s14611_s23 }
 0x405   :  { %17191 = vst [vmem:[#allocation79_spill] sm:$0xff] %v15487_v36  ;;  %v15493_v15 = vmax.f32 %v1842_v18, 0.0 }
 0x406   :  { %17190 = vst [vmem:[#allocation78_spill] sm:$0xff] %v15483_v10  ;;  %1872 = vrot.lane.b32.xlu0 %v15483_v10, %s14611_s23 }
 0x407   :  { %17192 = vst [vmem:[#allocation80_spill] sm:$0xff] %v15493_v15 }
 0x408   :  { %1870 = vrot.lane.b32.xlu1 %v15487_v36, %s14611_s23 }
 0x40a   :  { %1847 = vrot.lane.b32.xlu0 %v15481_v23, %s14644_s10 }
 0x40c   :  { %1874 = vrot.lane.b32.xlu1 %v15493_v15, %s14611_s23 }
 0x40e   :  { %1851 = vrot.lane.b32.xlu0 %v15483_v10, %s14644_s10 }
 0x410   :  { %1849 = vrot.lane.b32.xlu1 %v15487_v36, %s14644_s10 }
 0x412   :  { %2086 = vrot.lane.b32.xlu0 %v15481_v23, %s14646_s12 }
 0x414   :  { %1853 = vrot.lane.b32.xlu1 %v15493_v15, %s14644_s10 }
 0x416   :  { %2090 = vrot.lane.b32.xlu0 %v15483_v10, %s14646_s12 }
 0x418   :  { %2088 = vrot.lane.b32.xlu1 %v15487_v36, %s14646_s12 }
 0x41a   :  { %2209 = vrot.lane.b32.xlu0 %v15481_v23, %s14612_s26 }
 0x41c   :  { %2092 = vrot.lane.b32.xlu1 %v15493_v15, %s14646_s12 }
 0x41e   :  { %2213 = vrot.lane.b32.xlu0 %v15483_v10, %s14612_s26 }
 0x420   :  { %2211 = vrot.lane.b32.xlu1 %v15487_v36, %s14612_s26 }
 0x422   :  { %2447 = vrot.lane.b32.xlu0 %v15481_v23, %s14647_s18 }
 0x424   :  { %2215 = vrot.lane.b32.xlu1 %v15493_v15, %s14612_s26 }
 0x426   :  { %2451 = vrot.lane.b32.xlu0 %v15483_v10, %s14647_s18 }
 0x428   :  { %2449 = vrot.lane.b32.xlu1 %v15487_v36, %s14647_s18 }
 0x42a   :  { %2570 = vrot.lane.b32.xlu0 %v15481_v23, %s14648_s9 }
 0x42c   :  { %2453 = vrot.lane.b32.xlu1 %v15493_v15, %s14647_s18 }
 0x42e   :  { %2574 = vrot.lane.b32.xlu0 %v15483_v10, %s14648_s9 }
 0x430   :  { %2572 = vrot.lane.b32.xlu1 %v15487_v36, %s14648_s9 }
 0x432   :  { %2693 = vrot.lane.b32.xlu0 %v15481_v23, %s14649_s24 }
 0x434   :  { %2576 = vrot.lane.b32.xlu1 %v15493_v15, %s14648_s9 }
 0x436   :  { %2697 = vrot.lane.b32.xlu0 %v15483_v10, %s14649_s24 }
 0x438   :  { %2695 = vrot.lane.b32.xlu1 %v15487_v36, %s14649_s24 }
 0x43a   :  { %2816 = vrot.lane.b32.xlu0 %v15481_v23, %s14650_s22 }
 0x43c   :  { %2699 = vrot.lane.b32.xlu1 %v15493_v15, %s14649_s24 }
 0x43e   :  { %2820 = vrot.lane.b32.xlu0 %v15483_v10, %s14650_s22 }
 0x440   :  { %2818 = vrot.lane.b32.xlu1 %v15487_v36, %s14650_s22 }
 0x442   :  { %2942 = vperm.xlu0 %13795, %v2939_v13  }
 0x444   :  { %2822 = vrot.lane.b32.xlu1 %v15493_v15, %s14650_s22 }
 0x476   :  { %v1869_v17 = vpop.permute.xlu1 %1868 }
 0x478   :  { %v1873_v59 = vpop.permute.xlu0 %1872 }
 0x47a   :  { %v1871_v12 = vpop.permute.xlu1 %1870 }
 0x47b   :  { %v1877_v56 = vsel %vm576_vm2, %v1871_v12, %v1873_v59  ;;  %v1878_v0 = vsel %vm576_vm2, %v1869_v17, %v1871_v12 }
 0x47c   :  { %v1881_v39 = vmul.f32 %v1878_v0, %v15162_v24  ;;  %v1882_v37 = vmul.f32 %v1877_v56, %v15171_v27  ;;  %v1848_v6 = vpop.permute.xlu0 %1847  ;;  %v1889_v0 = vld [vmem:[#allocation15 + $0x4] sm:$0xf] }
 0x47e   :  { %v1885_v58 = vpack.c.bf16 %v1881_v39, %v1881_v39  ;;  %v1875_v8 = vpop.permute.xlu1 %1874  ;;  %v1886_v2 = vpack.c.bf16 %v1882_v37, %v1882_v37 }
 0x47f   :  { %v1876_v44 = vsel %vm576_vm2, %v1873_v59, %v1875_v8  ;;  %v1879_v28 = vsel %vm576_vm2, %v1875_v8, %v1869_v17 }
 0x480   :  { %v1880_v9 = vmul.f32 %v1879_v28, %v15165_v25  ;;  %v1883_v50 = vmul.f32 %v1876_v44, %v15168_v26  ;;  %v1852_v35 = vpop.permute.xlu0 %1851  ;;  %11399 = vmatprep.subr.msk.bf16.mxu0 %vm1894_vm11, %v1885_v58  ;;  %v1902_v56 = vsel %vm1894_vm11, %v1886_v2, 0 }
 0x482   :  { %v1884_v1 = vpack.c.bf16 %v1880_v9, %v1880_v9  ;;  %v1887_v38 = vpack.c.bf16 %v1883_v50, %v1883_v50  ;;  %v1850_v51 = vpop.permute.xlu1 %1849 }
 0x483   :  { %v1856_v57 = vsel %vm532_vm3, %v1850_v51, %v1852_v35  ;;  %v1857_v18 = vsel %vm532_vm3, %v1848_v6, %v1850_v51 }
 0x484   :  { %v1860_v13 = vmul.f32 %v1857_v18, %v15174_v31  ;;  %v1861_v17 = vmul.f32 %v1856_v57, %v15157_v22  ;;  %v2087_v59 = vpop.permute.xlu0 %2086  ;;  %11401 = vmatprep.subr.msk.bf16.mxu1 %vm1894_vm11, %v1887_v38  ;;  %v1896_v12 = vsel %vm1894_vm11, %v1884_v1, 0 }
 0x485   :  { %1908 = vmatpush1.bf16.msra.mxu0 %v1896_v12  ;;  %1949 = vmatpush1.bf16.msra.mxu1 %v1902_v56  ;;  %v1867_v12 = vld [vmem:[#allocation15] sm:$0xf] }
 0x486   :  { %v1864_v39 = vpack.c.bf16 %v1860_v13, %v1860_v13  ;;  %v1854_v37 = vpop.permute.xlu1 %1853  ;;  %v1865_v44 = vpack.c.bf16 %v1861_v17, %v1861_v17 }
 0x487   :  { %v1855_v58 = vsel %vm532_vm3, %v1852_v35, %v1854_v37  ;;  %v1858_v8 = vsel %vm532_vm3, %v1854_v37, %v1848_v6 }
 0x488   :  { %v1859_v28 = vmul.f32 %v1858_v8, %v15154_v21  ;;  %v1862_v9 = vmul.f32 %v1855_v58, %v15183_v34  ;;  %v2091_v50 = vpop.permute.xlu0 %2090  ;;  %11400 = vmatmul.mubr.msk.bf16.vlgmr.msra.gmra.mrb[36].mxu0 %vm1890_vm12, %v1889_v0  ;;  %11402 = vmatmul.mubr.msk.bf16.vlgmr.msra.gmra.mrb[36].mxu1 %vm1890_vm12, %v1889_v0  ;;  %v1999_v17 = vsel %vm1894_vm11, %v1865_v44, 0 }
 0x489   :  { %11403 = vmatprep.subr.msk.bf16.mxu0 %vm1894_vm11, %v1864_v39  ;;  %2036 = vmatprep.mubr.bf16.mxu0 %v17152_v7 }
 0x48a   :  { %v1863_v2 = vpack.c.bf16 %v1859_v28, %v1859_v28  ;;  %v1866_v1 = vpack.c.bf16 %v1862_v9, %v1862_v9  ;;  %v2089_v35 = vpop.permute.xlu1 %2088  ;;  %2077 = vmatprep.mubr.bf16.mxu1 %v17152_v7 }
 0x48b   :  { %v2095_v6 = vsel %vm821_vm4, %v2089_v35, %v2091_v50  ;;  %v2096_v38 = vsel %vm821_vm4, %v2087_v59, %v2089_v35 }
 0x48c   :  { %v2099_v51 = vmul.f32 %v2096_v38, %v15189_v40  ;;  %v2100_v57 = vmul.f32 %v2095_v6, %v15180_v33  ;;  %v2210_v18 = vpop.permute.xlu0 %2209  ;;  %11405 = vmatprep.subr.msk.bf16.mxu1 %vm1894_vm11, %v1866_v1  ;;  %v1993_v13 = vsel %vm1894_vm11, %v1863_v2, 0 }
 0x48d   :  { %2005 = vmatpush1.bf16.msra.mxu0 %v1993_v13  ;;  %2046 = vmatpush1.bf16.msra.mxu1 %v1999_v17  ;;  %v2107_v13 = vld [vmem:[#allocation15 + $0x8] sm:$0xf] }
 0x48e   :  { %v2103_v56 = vpack.c.bf16 %v2099_v51, %v2099_v51  ;;  %v2093_v0 = vpop.permute.xlu1 %2092  ;;  %v2104_v58 = vpack.c.bf16 %v2100_v57, %v2100_v57 }
 0x48f   :  { %v2094_v39 = vsel %vm821_vm4, %v2091_v50, %v2093_v0  ;;  %v2097_v37 = vsel %vm821_vm4, %v2093_v0, %v2087_v59  ;;  %v2336_v0 = vmul.f32 %v15481_v23, %v15195_v42 }
 0x490   :  { %v2098_v8 = vmul.f32 %v2097_v37, %v15177_v32  ;;  %v2101_v28 = vmul.f32 %v2094_v39, %v15192_v41  ;;  %v2214_v9 = vpop.permute.xlu0 %2213  ;;  %11404 = vmatmul.mubr.msk.bf16.vlgmr.msra.gmra.mrb[40].mxu0 %vm1890_vm12, %v1867_v12  ;;  %11406 = vmatmul.mubr.msk.bf16.vlgmr.msra.gmra.mrb[40].mxu1 %vm1890_vm12, %v1867_v12  ;;  %v2118_v57 = vsel %vm1894_vm11, %v2104_v58, 0  ;;  %v2339_v58 = vmul.f32 %v15493_v15, %v15224_v61 }
 0x491   :  { %11407 = vmatprep.subr.msk.bf16.mxu0 %vm1894_vm11, %v2103_v56  ;;  %2155 = vmatprep.mubr.bf16.mxu0 %v17152_v7  ;;  %v2337_v56 = vmul.f32 %v15487_v36, %v15198_v43 }
 0x492   :  { %v2102_v44 = vpack.c.bf16 %v2098_v8, %v2098_v8  ;;  %v2105_v2 = vpack.c.bf16 %v2101_v28, %v2101_v28  ;;  %v2212_v50 = vpop.permute.xlu1 %2211  ;;  %2196 = vmatprep.mubr.bf16.mxu1 %v17152_v7  ;;  %v2338_v8 = vmul.f32 %v15483_v10, %v15219_v53 }
 0x493   :  { %v2218_v59 = vsel %vm968_vm6, %v2212_v50, %v2214_v9  ;;  %v2219_v1 = vsel %vm968_vm6, %v2210_v18, %v2212_v50 }
 0x494   :  { %v2222_v35 = vmul.f32 %v2219_v1, %v15216_v52  ;;  %v2223_v6 = vmul.f32 %v2218_v59, %v15210_v47  ;;  %v2448_v38 = vpop.permute.xlu0 %2447  ;;  %11409 = vmatprep.subr.msk.bf16.mxu1 %vm1894_vm11, %v2105_v2  ;;  %v2112_v51 = vsel %vm1894_vm11, %v2102_v44, 0  ;;  %v2340_v1 = vpack.c.bf16 %v2336_v0, %v2336_v0  ;;  %v2230_v0 = vld [vmem:[#allocation15 + $0xc] sm:$0xf] }
 0x495   :  { %2124 = vmatpush1.bf16.msra.mxu0 %v2112_v51  ;;  %2165 = vmatpush1.bf16.msra.mxu1 %v2118_v57  ;;  %v2343_v51 = vpack.c.bf16 %v2339_v58, %v2339_v58  ;;  %v2342_v57 = vpack.c.bf16 %v2338_v8, %v2338_v8 }
 0x496   :  { %v2226_v17 = vpack.c.bf16 %v2222_v35, %v2222_v35  ;;  %v2216_v12 = vpop.permute.xlu1 %2215  ;;  %v2227_v28 = vpack.c.bf16 %v2223_v6, %v2223_v6  ;;  %v2341_v6 = vpack.c.bf16 %v2337_v56, %v2337_v56 }
 0x497   :  { %v2217_v39 = vsel %vm968_vm6, %v2214_v9, %v2216_v12  ;;  %v2220_v37 = vsel %vm968_vm6, %v2216_v12, %v2210_v18 }
 0x498   :  { %v2221_v44 = vmul.f32 %v2220_v37, %v15206_v46  ;;  %v2224_v2 = vmul.f32 %v2217_v39, %v15268_v20  ;;  %v2452_v50 = vpop.permute.xlu0 %2451  ;;  %11408 = vmatmul.mubr.msk.bf16.vlgmr.msra.gmra.mrb[44].mxu0 %vm1890_vm12, %v2107_v13  ;;  %11410 = vmatmul.mubr.msk.bf16.vlgmr.msra.gmra.mrb[44].mxu1 %vm1890_vm12, %v2107_v13  ;;  %v2241_v37 = vsel %vm1894_vm11, %v2227_v28, 0 }
 0x499   :  { %11411 = vmatprep.subr.msk.bf16.mxu0 %vm1894_vm11, %v2226_v17  ;;  %2278 = vmatprep.mubr.bf16.mxu0 %v17152_v7 }
 0x49a   :  { %v2225_v18 = vpack.c.bf16 %v2221_v44, %v2221_v44  ;;  %v2228_v9 = vpack.c.bf16 %v2224_v2, %v2224_v2  ;;  %v2450_v59 = vpop.permute.xlu1 %2449  ;;  %2319 = vmatprep.mubr.bf16.mxu1 %v17152_v7  ;;  %v2350_v2 = vsel %vm1894_vm11, %v2340_v1, 0 }
 0x49b   :  { %v2456_v35 = vsel %vm1253_vm7, %v2450_v59, %v2452_v50  ;;  %v2457_v12 = vsel %vm1253_vm7, %v2448_v38, %v2450_v59 }
 0x49c   :  { %v2460_v13 = vmul.f32 %v2456_v35, %v15312_v5  ;;  %v2571_v17 = vpop.permute.xlu0 %2570  ;;  %11413 = vmatprep.subr.msk.bf16.mxu1 %vm1894_vm11, %v2228_v9  ;;  %v2235_v39 = vsel %vm1894_vm11, %v2225_v18, 0  ;;  %v2459_v58 = vmul.f32 %v2457_v12, %v15335_v55  ;;  %v2356_v35 = vsel %vm1894_vm11, %v2342_v57, 0 }
 0x49d   :  { %2247 = vmatpush1.bf16.msra.mxu0 %v2235_v39  ;;  %2288 = vmatpush1.bf16.msra.mxu1 %v2241_v37  ;;  %v2345_v39 = vld [vmem:[#allocation15 + $0x10] sm:$0xf] }
 0x49e   :  { %11415 = vmatprep.subr.msk.bf16.mxu0 %vm1894_vm11, %v2341_v6  ;;  %11417 = vmatprep.subr.msk.bf16.mxu1 %vm1894_vm11, %v2343_v51  ;;  %v2454_v56 = vpop.permute.xlu1 %2453  ;;  %v2464_v18 = vpack.c.bf16 %v2460_v13, %v2460_v13 }
 0x49f   :  { %v2455_v8 = vsel %vm1253_vm7, %v2452_v50, %v2454_v56  ;;  %v2458_v44 = vsel %vm1253_vm7, %v2454_v56, %v2448_v38  ;;  %v2463_v38 = vpack.c.bf16 %v2459_v58, %v2459_v58 }
 0x4a0   :  { %v2461_v28 = vmul.f32 %v2455_v8, %v15348_v4  ;;  %v2462_v9 = vmul.f32 %v2458_v44, %v15320_v29  ;;  %v2575_v59 = vpop.permute.xlu0 %2574  ;;  %11412 = vmatmul.mubr.msk.bf16.vlgmr.msra.gmra.mrb[48].mxu0 %vm1890_vm12, %v2230_v0  ;;  %11414 = vmatmul.mubr.msk.bf16.vlgmr.msra.gmra.mrb[48].mxu1 %vm1890_vm12, %v2230_v0 }
 0x4a1   :  { %2362 = vmatpush1.bf16.msra.mxu0 %v2350_v2  ;;  %2403 = vmatpush1.bf16.msra.mxu1 %v2356_v35  ;;  %v2473_v8 = vsel %vm1894_vm11, %v2463_v38, 0 }
 0x4a2   :  { %v2466_v50 = vpack.c.bf16 %v2462_v9, %v2462_v9  ;;  %v2573_v6 = vpop.permute.xlu1 %2572  ;;  %11419 = vmatprep.subr.msk.bf16.mxu0 %vm1894_vm11, %v2464_v18  ;;  %2393 = vmatprep.mubr.bf16.mxu0 %v17152_v7  ;;  %v2465_v51 = vpack.c.bf16 %v2461_v28, %v2461_v28 }
 0x4a3   :  { %v2579_v1 = vsel %vm1400_vm8, %v2573_v6, %v2575_v59  ;;  %2434 = vmatprep.mubr.bf16.mxu1 %v17152_v7  ;;  %v2580_v57 = vsel %vm1400_vm8, %v2571_v17, %v2573_v6 }
 0x4a4   :  { %v2583_v12 = vmul.f32 %v2579_v1, %v15344_v63  ;;  %v2694_v13 = vpop.permute.xlu0 %2693  ;;  %11421 = vmatprep.subr.msk.bf16.mxu1 %vm1894_vm11, %v2466_v50  ;;  %v2582_v44 = vmul.f32 %v2580_v57, %v15379_v60  ;;  %v2479_v9 = vsel %vm1894_vm11, %v2465_v51, 0 }
 0x4a6   :  { %v2587_v37 = vpack.c.bf16 %v2583_v12, %v2583_v12  ;;  %v2577_v0 = vpop.permute.xlu1 %2576  ;;  %v2586_v50 = vpack.c.bf16 %v2582_v44, %v2582_v44  ;;  %v2468_v12 = vld [vmem:[#allocation15 + $0x14] sm:$0xf] }
 0x4a7   :  { %v2578_v56 = vsel %vm1400_vm8, %v2575_v59, %v2577_v0  ;;  %v2581_v58 = vsel %vm1400_vm8, %v2577_v0, %v2571_v17 }
 0x4a8   :  { %v2584_v2 = vmul.f32 %v2578_v56, %v15391_v19  ;;  %v2585_v18 = vmul.f32 %v2581_v58, %v15361_v16  ;;  %v2698_v28 = vpop.permute.xlu0 %2697  ;;  %11416 = vmatmul.mubr.msk.bf16.vlgmr.msra.gmra.mrb[52].mxu0 %vm1890_vm12, %v2345_v39  ;;  %11418 = vmatmul.mubr.msk.bf16.vlgmr.msra.gmra.mrb[52].mxu1 %vm1890_vm12, %v2345_v39  ;;  %v2596_v44 = vsel %vm1894_vm11, %v2586_v50, 0 }
 0x4a9   :  { %2485 = vmatpush1.bf16.msra.mxu0 %v2473_v8  ;;  %2526 = vmatpush1.bf16.msra.mxu1 %v2479_v9 }
 0x4aa   :  { %v2589_v59 = vpack.c.bf16 %v2585_v18, %v2585_v18  ;;  %11423 = vmatprep.subr.msk.bf16.mxu0 %vm1894_vm11, %v2587_v37  ;;  %v2696_v17 = vpop.permute.xlu1 %2695  ;;  %2516 = vmatprep.mubr.bf16.mxu0 %v17152_v7  ;;  %v2588_v6 = vpack.c.bf16 %v2584_v2, %v2584_v2 }
 0x4ab   :  { %v2702_v35 = vsel %vm1547_vm9, %v2696_v17, %v2698_v28  ;;  %2557 = vmatprep.mubr.bf16.mxu1 %v17152_v7  ;;  %v2703_v38 = vsel %vm1547_vm9, %v2694_v13, %v2696_v17 }
 0x4ac   :  { %v2706_v1 = vmul.f32 %v2702_v35, %v15387_v62  ;;  %v2817_v51 = vpop.permute.xlu0 %2816  ;;  %11425 = vmatprep.subr.msk.bf16.mxu1 %vm1894_vm11, %v2589_v59  ;;  %v2705_v37 = vmul.f32 %v2703_v38, %v15417_v45  ;;  %v2602_v2 = vsel %vm1894_vm11, %v2588_v6, 0  ;;  %v2591_v6 = vld [vmem:[#allocation15 + $0x18] sm:$0xf] }
 0x4ae   :  { %v2710_v57 = vpack.c.bf16 %v2706_v1, %v2706_v1  ;;  %v2700_v39 = vpop.permute.xlu1 %2699 }
 0x4af   :  { %v2701_v0 = vsel %vm1547_vm9, %v2698_v28, %v2700_v39  ;;  %v2704_v56 = vsel %vm1547_vm9, %v2700_v39, %v2694_v13  ;;  %v2709_v13 = vpack.c.bf16 %v2705_v37, %v2705_v37 }
 0x4b0   :  { %v2707_v58 = vmul.f32 %v2701_v0, %v15428_v48  ;;  %v2708_v8 = vmul.f32 %v2704_v56, %v15400_v14  ;;  %11420 = vmatmul.mubr.msk.bf16.vlgmr.msra.gmra.mrb[56].mxu0 %vm1890_vm12, %v2468_v12  ;;  %11422 = vmatmul.mubr.msk.bf16.vlgmr.msra.gmra.mrb[56].mxu1 %vm1890_vm12, %v2468_v12  ;;  %v2821_v9 = vpop.permute.xlu0 %2820 }
 0x4b1   :  { %2608 = vmatpush1.bf16.msra.mxu0 %v2596_v44  ;;  %2649 = vmatpush1.bf16.msra.mxu1 %v2602_v2  ;;  %v2719_v39 = vsel %vm1894_vm11, %v2709_v13, 0  ;;  %v2714_v2 = vld [vmem:[#allocation15 + $0x1c] sm:$0xf] }
 0x4b2   :  { %v2712_v18 = vpack.c.bf16 %v2708_v8, %v2708_v8  ;;  %11427 = vmatprep.subr.msk.bf16.mxu0 %vm1894_vm11, %v2710_v57  ;;  %v2819_v28 = vpop.permute.xlu1 %2818  ;;  %2639 = vmatprep.mubr.bf16.mxu0 %v17152_v7  ;;  %v2711_v17 = vpack.c.bf16 %v2707_v58, %v2707_v58 }
 0x4b3   :  { %v2825_v59 = vsel %vm1694_vm10, %v2819_v28, %v2821_v9  ;;  %2680 = vmatprep.mubr.bf16.mxu1 %v17152_v7  ;;  %v2826_v50 = vsel %vm1694_vm10, %v2817_v51, %v2819_v28  ;;  %v2837_v28 = vld [vmem:[#allocation15 + $0x20] sm:$0xf] }
 0x4b4   :  { %v2829_v35 = vmul.f32 %v2825_v59, %v15424_v49  ;;  %11429 = vmatprep.subr.msk.bf16.mxu1 %vm1894_vm11, %v2712_v18  ;;  %v2828_v37 = vmul.f32 %v2826_v50, %v15450_v30  ;;  %v2725_v58 = vsel %vm1894_vm11, %v2711_v17, 0 }
 0x4b6   :  { %v2833_v38 = vpack.c.bf16 %v2829_v35, %v2829_v35  ;;  %v2823_v1 = vpop.permute.xlu1 %2822 }
 0x4b7   :  { %v2824_v12 = vsel %vm1694_vm10, %v2821_v9, %v2823_v1  ;;  %v2827_v57 = vsel %vm1694_vm10, %v2823_v1, %v2817_v51  ;;  %v2832_v51 = vpack.c.bf16 %v2828_v37, %v2828_v37 }
 0x4b8   :  { %v2830_v0 = vmul.f32 %v2824_v12, %v15457_v3  ;;  %v2831_v56 = vmul.f32 %v2827_v57, %v15435_v54  ;;  %11424 = vmatmul.mubr.msk.bf16.vlgmr.msra.gmra.mrb[60].mxu0 %vm1890_vm12, %v2591_v6  ;;  %11426 = vmatmul.mubr.msk.bf16.vlgmr.msra.gmra.mrb[60].mxu1 %vm1890_vm12, %v2591_v6 }
 0x4b9   :  { %2731 = vmatpush1.bf16.msra.mxu0 %v2719_v39  ;;  %2772 = vmatpush1.bf16.msra.mxu1 %v2725_v58  ;;  %v2842_v18 = vsel %vm1894_vm11, %v2832_v51, 0 }
 0x4ba   :  { %v2835_v8 = vpack.c.bf16 %v2831_v56, %v2831_v56  ;;  %11431 = vmatprep.subr.msk.bf16.mxu0 %vm1894_vm11, %v2833_v38  ;;  %2762 = vmatprep.mubr.bf16.mxu0 %v17152_v7  ;;  %v2834_v44 = vpack.c.bf16 %v2830_v0, %v2830_v0 }
 0x4bb   :  { %2803 = vmatprep.mubr.bf16.mxu1 %v17152_v7 }
 0x4bc   :  { %11433 = vmatprep.subr.msk.bf16.mxu1 %vm1894_vm11, %v2835_v8  ;;  %v2848_v9 = vsel %vm1894_vm11, %v2834_v44, 0 }
 0x4c0   :  { %11428 = vmatmul.mubr.msk.bf16.vlgmr.msra.gmra.mrb[64].mxu0 %vm1890_vm12, %v2714_v2  ;;  %11430 = vmatmul.mubr.msk.bf16.vlgmr.msra.gmra.mrb[64].mxu1 %vm1890_vm12, %v2714_v2 }
 0x4c1   :  { %2854 = vmatpush1.bf16.msra.mxu0 %v2842_v18  ;;  %2895 = vmatpush1.bf16.msra.mxu1 %v2848_v9 }
 0x4c2   :  { %2885 = vmatprep.mubr.bf16.mxu0 %v17152_v7  ;;  %2926 = vmatprep.mubr.bf16.mxu1 %v17152_v7 }
 0x4c8   :  { %11432 = vmatmul.mubr.msk.bf16.vlgmr.msra.gmra.mrb[68].mxu0 %vm1890_vm12, %v2837_v28  ;;  %11434 = vmatmul.mubr.msk.bf16.vlgmr.msra.gmra.mrb[68].mxu1 %vm1890_vm12, %v2837_v28 }
 0x4c9   :  { %3043 = vmatprep.mubr.bf16.mxu0 %v17152_v7  ;;  %3084 = vmatprep.mubr.bf16.mxu1 %v17152_v7 }
 0x55b   :  { %v1941_v13 = vpop.f32.mrb[36].mxu0  ;;  %v1982_v59 = vpop.f32.mrb[36].mxu1 }
 0x55c   :  { %v1943_v17 = vpop.f32.mrb[37].mxu0  ;;  %v1984_v35 = vpop.f32.mrb[37].mxu1 }
 0x55d   :  { %v1945_v50 = vpop.f32.mrb[38].mxu0  ;;  %v1986_v6 = vpop.f32.mrb[38].mxu1 }
 0x55e   :  { %v1946_v38 = vpop.f32.mrb[39].mxu0  ;;  %v1987_v1 = vpop.f32.mrb[39].mxu1 }
 0x563   :  { %v2038_v12 = vpop.f32.mrb[40].mxu0  ;;  %v2079_v57 = vpop.f32.mrb[40].mxu1 }
 0x564   :  { %v2039_v39 = vadd.f32 %v2038_v12, %v1941_v13  ;;  %v2080_v37 = vadd.f32 %v2079_v57, %v1982_v59  ;;  %v2040_v0 = vpop.f32.mrb[41].mxu0  ;;  %v2081_v56 = vpop.f32.mrb[41].mxu1 }
 0x565   :  { %v2041_v58 = vadd.f32 %v2040_v0, %v1943_v17  ;;  %v2082_v8 = vadd.f32 %v2081_v56, %v1984_v35  ;;  %v2042_v51 = vpop.f32.mrb[42].mxu0  ;;  %v2083_v44 = vpop.f32.mrb[42].mxu1 }
 0x566   :  { %v2043_v2 = vpop.f32.mrb[43].mxu0  ;;  %v2084_v18 = vpop.f32.mrb[43].mxu1 }
 0x56b   :  { %v2157_v9 = vpop.f32.mrb[44].mxu0  ;;  %v2198_v28 = vpop.f32.mrb[44].mxu1 }
 0x56c   :  { %v2205_v7 = vadd.f32 %v2157_v9, %v2039_v39  ;;  %v2207_v10 = vadd.f32 %v2198_v28, %v2080_v37  ;;  %v2159_v50 = vpop.f32.mrb[45].mxu0  ;;  %v2200_v6 = vpop.f32.mrb[45].mxu1 }
 0x56d   :  { %v2206_v38 = vadd.f32 %v2159_v50, %v2041_v58  ;;  %v2208_v1 = vadd.f32 %v2200_v6, %v2082_v8  ;;  %v2161_v15 = vpop.f32.mrb[46].mxu0  ;;  %v2202_v36 = vpop.f32.mrb[46].mxu1 }
 0x56e   :  { %v2162_v13 = vpop.f32.mrb[47].mxu0  ;;  %v2203_v59 = vpop.f32.mrb[47].mxu1 }
 0x573   :  { %v2280_v12 = vpop.f32.mrb[48].mxu0  ;;  %v2321_v57 = vpop.f32.mrb[48].mxu1 }
 0x574   :  { %v2328_v17 = vadd.f32 %v2280_v12, %v2205_v7  ;;  %v2330_v35 = vadd.f32 %v2321_v57, %v2207_v10  ;;  %v2282_v0 = vpop.f32.mrb[49].mxu0  ;;  %v2323_v56 = vpop.f32.mrb[49].mxu1 }
 0x575   :  { %v2329_v51 = vadd.f32 %v2282_v0, %v2206_v38  ;;  %v2331_v44 = vadd.f32 %v2323_v56, %v2208_v1  ;;  %v2284_v2 = vpop.f32.mrb[50].mxu0  ;;  %v2325_v18 = vpop.f32.mrb[50].mxu1 }
 0x576   :  { %v2285_v39 = vpop.f32.mrb[51].mxu0  ;;  %v2326_v37 = vpop.f32.mrb[51].mxu1 }
 0x57b   :  { %v2395_v9 = vpop.f32.mrb[52].mxu0  ;;  %v2436_v28 = vpop.f32.mrb[52].mxu1 }
 0x57c   :  { %v2443_v58 = vadd.f32 %v2395_v9, %v2328_v17  ;;  %v2445_v8 = vadd.f32 %v2436_v28, %v2330_v35  ;;  %v2397_v15 = vpop.f32.mrb[53].mxu0  ;;  %v2438_v36 = vpop.f32.mrb[53].mxu1 }
 0x57d   :  { %v2444_v50 = vadd.f32 %v2397_v15, %v2329_v51  ;;  %v2446_v6 = vadd.f32 %v2438_v36, %v2331_v44  ;;  %v2399_v13 = vpop.f32.mrb[54].mxu0  ;;  %v2440_v59 = vpop.f32.mrb[54].mxu1 }
 0x57e   :  { %v2400_v7 = vpop.f32.mrb[55].mxu0  ;;  %v2441_v10 = vpop.f32.mrb[55].mxu1 }
 0x583   :  { %v2518_v12 = vpop.f32.mrb[56].mxu0  ;;  %v2559_v57 = vpop.f32.mrb[56].mxu1 }
 0x584   :  { %v2566_v38 = vadd.f32 %v2518_v12, %v2443_v58  ;;  %v2568_v1 = vadd.f32 %v2559_v57, %v2445_v8  ;;  %v2520_v0 = vpop.f32.mrb[57].mxu0  ;;  %v2561_v56 = vpop.f32.mrb[57].mxu1 }
 0x585   :  { %v2567_v2 = vadd.f32 %v2520_v0, %v2444_v50  ;;  %v2569_v18 = vadd.f32 %v2561_v56, %v2446_v6  ;;  %v2522_v39 = vpop.f32.mrb[58].mxu0  ;;  %v2563_v37 = vpop.f32.mrb[58].mxu1 }
 0x586   :  { %v2523_v17 = vpop.f32.mrb[59].mxu0  ;;  %v2564_v35 = vpop.f32.mrb[59].mxu1 }
 0x58b   :  { %v2641_v9 = vpop.f32.mrb[60].mxu0  ;;  %v2682_v28 = vpop.f32.mrb[60].mxu1 }
 0x58c   :  { %v2689_v51 = vadd.f32 %v2641_v9, %v2566_v38  ;;  %v2691_v44 = vadd.f32 %v2682_v28, %v2568_v1  ;;  %v2643_v15 = vpop.f32.mrb[61].mxu0  ;;  %v2684_v36 = vpop.f32.mrb[61].mxu1 }
 0x58d   :  { %v2690_v13 = vadd.f32 %v2643_v15, %v2567_v2  ;;  %v2692_v59 = vadd.f32 %v2684_v36, %v2569_v18  ;;  %v2645_v7 = vpop.f32.mrb[62].mxu0  ;;  %v2686_v10 = vpop.f32.mrb[62].mxu1 }
 0x58e   :  { %v2646_v58 = vpop.f32.mrb[63].mxu0  ;;  %v2687_v8 = vpop.f32.mrb[63].mxu1 }
 0x58f   :  { %v2943_v9 = vpop.permute.xlu0 %2942 }
 0x593   :  { %v2764_v12 = vpop.f32.mrb[64].mxu0  ;;  %v2805_v57 = vpop.f32.mrb[64].mxu1 }
 0x594   :  { %v2812_v50 = vadd.f32 %v2764_v12, %v2689_v51  ;;  %v2814_v6 = vadd.f32 %v2805_v57, %v2691_v44  ;;  %v2766_v0 = vpop.f32.mrb[65].mxu0  ;;  %v2807_v56 = vpop.f32.mrb[65].mxu1 }
 0x595   :  { %v2813_v39 = vadd.f32 %v2766_v0, %v2690_v13  ;;  %v2815_v37 = vadd.f32 %v2807_v56, %v2692_v59  ;;  %v2768_v17 = vpop.f32.mrb[66].mxu0  ;;  %v2809_v35 = vpop.f32.mrb[66].mxu1 }
 0x596   :  { %v2769_v38 = vpop.f32.mrb[67].mxu0  ;;  %v2810_v1 = vpop.f32.mrb[67].mxu1 }
 0x59b   :  { %v2887_v28 = vpop.f32.mrb[68].mxu0  ;;  %v2928_v2 = vpop.f32.mrb[68].mxu1 }
 0x59c   :  { %v2935_v18 = vadd.f32 %v2887_v28, %v2812_v50  ;;  %v2937_v15 = vadd.f32 %v2928_v2, %v2814_v6  ;;  %v2889_v36 = vpop.f32.mrb[69].mxu0  ;;  %v2930_v7 = vpop.f32.mrb[69].mxu1 }
 0x59d   :  { %v2936_v10 = vadd.f32 %v2889_v36, %v2813_v39  ;;  %v2938_v58 = vadd.f32 %v2930_v7, %v2815_v37  ;;  %v2891_v8 = vpop.f32.mrb[70].mxu0  ;;  %v2932_v51 = vpop.f32.mrb[70].mxu1  ;;  %v4039_v39 = vld [vmem:[#allocation19] sm:$0xff] }
 0x59e   :  { %v2945_v44 = vadd.f32 %v2943_v9, %v2935_v18  ;;  %v2892_v12 = vpop.f32.mrb[71].mxu0  ;;  %v2933_v57 = vpop.f32.mrb[71].mxu1  ;;  %v2947_v0 = vadd.f32 %v2943_v9, %v2937_v15 }
 0x59f   :  { %v2946_v13 = vadd.f32 %v2943_v9, %v2936_v10  ;;  %v2948_v17 = vadd.f32 %v2943_v9, %v2938_v58 }
 0x5a0   :  { %v15729_v59 = vmax.f32 %v2945_v44, 0.0  ;;  %v15737_v50 = vmax.f32 %v2947_v0, 0.0 }
 0x5a1   :  { %v15731_v56 = vmax.f32 %v2946_v13, 0.0  ;;  %v15739_v6 = vmax.f32 %v2948_v17, 0.0 }
 0x5a2   :  { %2974 = vrot.lane.b32.xlu1 %v15729_v59, %s14611_s23 }
 0x5a3   :  { %2976 = vrot.lane.b32.xlu0 %v15731_v56, %s14611_s23 }
 0x5a6   :  { %2978 = vrot.lane.b32.xlu1 %v15737_v50, %s14611_s23 }
 0x5a7   :  { %2980 = vrot.lane.b32.xlu0 %v15739_v6, %s14611_s23 }
 0x5aa   :  { %2953 = vrot.lane.b32.xlu1 %v15729_v59, %s14644_s10 }
 0x5ab   :  { %2955 = vrot.lane.b32.xlu0 %v15731_v56, %s14644_s10 }
 0x5ae   :  { %2957 = vrot.lane.b32.xlu1 %v15737_v50, %s14644_s10 }
 0x5af   :  { %2959 = vrot.lane.b32.xlu0 %v15739_v6, %s14644_s10 }
 0x5b2   :  { %3190 = vrot.lane.b32.xlu1 %v15729_v59, %s14646_s12 }
 0x5b3   :  { %3192 = vrot.lane.b32.xlu0 %v15731_v56, %s14646_s12 }
 0x5b6   :  { %3194 = vrot.lane.b32.xlu1 %v15737_v50, %s14646_s12 }
 0x5b7   :  { %3196 = vrot.lane.b32.xlu0 %v15739_v6, %s14646_s12 }
 0x5ba   :  { %3313 = vrot.lane.b32.xlu1 %v15729_v59, %s14612_s26 }
 0x5bb   :  { %3315 = vrot.lane.b32.xlu0 %v15731_v56, %s14612_s26 }
 0x5be   :  { %3317 = vrot.lane.b32.xlu1 %v15737_v50, %s14612_s26 }
 0x5bf   :  { %3319 = vrot.lane.b32.xlu0 %v15739_v6, %s14612_s26 }
 0x5c2   :  { %3547 = vrot.lane.b32.xlu1 %v15729_v59, %s14647_s18 }
 0x5c3   :  { %3549 = vrot.lane.b32.xlu0 %v15731_v56, %s14647_s18 }
 0x5c6   :  { %3551 = vrot.lane.b32.xlu1 %v15737_v50, %s14647_s18 }
 0x5c7   :  { %3553 = vrot.lane.b32.xlu0 %v15739_v6, %s14647_s18 }
 0x5ca   :  { %3670 = vrot.lane.b32.xlu1 %v15729_v59, %s14648_s9 }
 0x5cb   :  { %3672 = vrot.lane.b32.xlu0 %v15731_v56, %s14648_s9 }
 0x5ce   :  { %3674 = vrot.lane.b32.xlu1 %v15737_v50, %s14648_s9 }
 0x5cf   :  { %3676 = vrot.lane.b32.xlu0 %v15739_v6, %s14648_s9 }
 0x5d2   :  { %3793 = vrot.lane.b32.xlu1 %v15729_v59, %s14649_s24 }
 0x5d3   :  { %3795 = vrot.lane.b32.xlu0 %v15731_v56, %s14649_s24 }
 0x5d6   :  { %3797 = vrot.lane.b32.xlu1 %v15737_v50, %s14649_s24 }
 0x5d7   :  { %3799 = vrot.lane.b32.xlu0 %v15739_v6, %s14649_s24 }
 0x5da   :  { %3916 = vrot.lane.b32.xlu1 %v15729_v59, %s14650_s22 }
 0x5db   :  { %3918 = vrot.lane.b32.xlu0 %v15731_v56, %s14650_s22 }
 0x5de   :  { %3920 = vrot.lane.b32.xlu1 %v15737_v50, %s14650_s22 }
 0x5df   :  { %3922 = vrot.lane.b32.xlu0 %v15739_v6, %s14650_s22 }
 0x5e2   :  { %4042 = vperm.xlu1 %13796, %v4039_v39  }
 0x614   :  { %v2975_v37 = vpop.permute.xlu1 %2974 }
 0x615   :  { %v2977_v35 = vpop.permute.xlu0 %2976 }
 0x616   :  { %v2984_v38 = vsel %vm576_vm2, %v2975_v37, %v2977_v35 }
 0x617   :  { %v2987_v1 = vmul.f32 %v2984_v38, %v15162_v24 }
 0x618   :  { %v2979_v9 = vpop.permute.xlu1 %2978 }
 0x619   :  { %v2991_v28 = vpack.c.bf16 %v2987_v1, %v2987_v1  ;;  %v2983_v2 = vsel %vm576_vm2, %v2977_v35, %v2979_v9  ;;  %v2981_v18 = vpop.permute.xlu0 %2980  ;;  %v2995_v35 = vld [vmem:[#allocation18 + $0x4] sm:$0xf] }
 0x61a   :  { %v2988_v15 = vmul.f32 %v2983_v2, %v15171_v27  ;;  %v2982_v36 = vsel %vm576_vm2, %v2979_v9, %v2981_v18  ;;  %v2985_v7 = vsel %vm576_vm2, %v2981_v18, %v2975_v37 }
 0x61b   :  { %v2986_v10 = vmul.f32 %v2985_v7, %v15165_v25  ;;  %v2989_v58 = vmul.f32 %v2982_v36, %v15168_v26  ;;  %11435 = vmatprep.subr.msk.bf16.mxu0 %vm1894_vm11, %v2991_v28 }
 0x61c   :  { %v2992_v8 = vpack.c.bf16 %v2988_v15, %v2988_v15  ;;  %v2954_v51 = vpop.permute.xlu1 %2953 }
 0x61d   :  { %v2990_v44 = vpack.c.bf16 %v2986_v10, %v2986_v10  ;;  %v2993_v12 = vpack.c.bf16 %v2989_v58, %v2989_v58  ;;  %v2956_v57 = vpop.permute.xlu0 %2955  ;;  %v17193_v58 = vmov 0  }
 0x61e   :  { %v2963_v13 = vsel %vm532_vm3, %v2954_v51, %v2956_v57  ;;  %v3006_v0 = vsel %vm1894_vm11, %v2992_v8, 0 }
 0x61f   :  { %v2966_v17 = vmul.f32 %v2963_v13, %v15174_v31  ;;  %11437 = vmatprep.subr.msk.bf16.mxu1 %vm1894_vm11, %v2993_v12  ;;  %v3000_v39 = vsel %vm1894_vm11, %v2990_v44, 0 }
 0x620   :  { %v2958_v37 = vpop.permute.xlu1 %2957  ;;  %3012 = vmatpush1.bf16.msra.mxu0 %v3000_v39  ;;  %3053 = vmatpush1.bf16.msra.mxu1 %v3006_v0  ;;  %v2973_v39 = vld [vmem:[#allocation18] sm:$0xf] }
 0x621   :  { %v2970_v38 = vpack.c.bf16 %v2966_v17, %v2966_v17  ;;  %v2962_v1 = vsel %vm532_vm3, %v2956_v57, %v2958_v37  ;;  %v2960_v9 = vpop.permute.xlu0 %2959 }
 0x622   :  { %v2967_v28 = vmul.f32 %v2962_v1, %v15157_v22  ;;  %v2961_v2 = vsel %vm532_vm3, %v2958_v37, %v2960_v9  ;;  %v2964_v18 = vsel %vm532_vm3, %v2960_v9, %v2954_v51 }
 0x623   :  { %v2965_v15 = vmul.f32 %v2964_v18, %v15154_v21  ;;  %v2968_v36 = vmul.f32 %v2961_v2, %v15183_v34  ;;  %11436 = vmatmul.mubr.msk.bf16.vlgmr.msra.gmra.mrb[72].mxu0 %vm1890_vm12, %v2995_v35  ;;  %11438 = vmatmul.mubr.msk.bf16.vlgmr.msra.gmra.mrb[72].mxu1 %vm1890_vm12, %v2995_v35 }
 0x624   :  { %v2971_v7 = vpack.c.bf16 %v2967_v28, %v2967_v28  ;;  %11439 = vmatprep.subr.msk.bf16.mxu0 %vm1894_vm11, %v2970_v38  ;;  %v3191_v10 = vpop.permute.xlu1 %3190  ;;  %3140 = vmatprep.mubr.bf16.mxu0 %v17193_v58 }
 0x625   :  { %v2969_v8 = vpack.c.bf16 %v2965_v15, %v2965_v15  ;;  %v2972_v44 = vpack.c.bf16 %v2968_v36, %v2968_v36  ;;  %v3193_v12 = vpop.permute.xlu0 %3192  ;;  %3181 = vmatprep.mubr.bf16.mxu1 %v17193_v58 }
 0x626   :  { %v3200_v51 = vsel %vm821_vm4, %v3191_v10, %v3193_v12  ;;  %v3103_v57 = vsel %vm1894_vm11, %v2971_v7, 0 }
 0x627   :  { %v3203_v13 = vmul.f32 %v3200_v51, %v15189_v40  ;;  %11441 = vmatprep.subr.msk.bf16.mxu1 %vm1894_vm11, %v2972_v44  ;;  %v3097_v0 = vsel %vm1894_vm11, %v2969_v8, 0 }
 0x628   :  { %v3195_v17 = vpop.permute.xlu1 %3194  ;;  %3109 = vmatpush1.bf16.msra.mxu0 %v3097_v0  ;;  %3150 = vmatpush1.bf16.msra.mxu1 %v3103_v57  ;;  %v3211_v0 = vld [vmem:[#allocation18 + $0x8] sm:$0xf] }
 0x629   :  { %v3207_v37 = vpack.c.bf16 %v3203_v13, %v3203_v13  ;;  %v3199_v35 = vsel %vm821_vm4, %v3193_v12, %v3195_v17  ;;  %v3197_v38 = vpop.permute.xlu0 %3196 }
 0x62a   :  { %v3204_v1 = vmul.f32 %v3199_v35, %v15180_v33  ;;  %v3198_v9 = vsel %vm821_vm4, %v3195_v17, %v3197_v38  ;;  %v3201_v28 = vsel %vm821_vm4, %v3197_v38, %v3191_v10  ;;  %v3436_v35 = vmul.f32 %v15729_v59, %v15195_v42 }
 0x62b   :  { %v3202_v2 = vmul.f32 %v3201_v28, %v15177_v32  ;;  %v3205_v18 = vmul.f32 %v3198_v9, %v15192_v41  ;;  %11440 = vmatmul.mubr.msk.bf16.vlgmr.msra.gmra.mrb[76].mxu0 %vm1890_vm12, %v2973_v39  ;;  %11442 = vmatmul.mubr.msk.bf16.vlgmr.msra.gmra.mrb[76].mxu1 %vm1890_vm12, %v2973_v39  ;;  %v3438_v38 = vmul.f32 %v15737_v50, %v15219_v53 }
 0x62c   :  { %v3208_v15 = vpack.c.bf16 %v3204_v1, %v3204_v1  ;;  %11443 = vmatprep.subr.msk.bf16.mxu0 %vm1894_vm11, %v3207_v37  ;;  %v3314_v36 = vpop.permute.xlu1 %3313  ;;  %3259 = vmatprep.mubr.bf16.mxu0 %v17193_v58  ;;  %v3437_v59 = vmul.f32 %v15731_v56, %v15198_v43 }
 0x62d   :  { %v3206_v7 = vpack.c.bf16 %v3202_v2, %v3202_v2  ;;  %v3209_v8 = vpack.c.bf16 %v3205_v18, %v3205_v18  ;;  %v3316_v44 = vpop.permute.xlu0 %3315  ;;  %3300 = vmatprep.mubr.bf16.mxu1 %v17193_v58  ;;  %v3439_v2 = vmul.f32 %v15739_v6, %v15224_v61 }
 0x62e   :  { %v3323_v10 = vsel %vm968_vm6, %v3314_v36, %v3316_v44  ;;  %v3222_v12 = vsel %vm1894_vm11, %v3208_v15, 0 }
 0x62f   :  { %v3326_v51 = vmul.f32 %v3323_v10, %v15216_v52  ;;  %11445 = vmatprep.subr.msk.bf16.mxu1 %vm1894_vm11, %v3209_v8  ;;  %v3216_v57 = vsel %vm1894_vm11, %v3206_v7, 0  ;;  %v3440_v10 = vpack.c.bf16 %v3436_v35, %v3436_v35 }
 0x630   :  { %v3318_v13 = vpop.permute.xlu1 %3317  ;;  %3228 = vmatpush1.bf16.msra.mxu0 %v3216_v57  ;;  %3269 = vmatpush1.bf16.msra.mxu1 %v3222_v12  ;;  %v3442_v12 = vpack.c.bf16 %v3438_v38, %v3438_v38  ;;  %v3443_v57 = vpack.c.bf16 %v3439_v2, %v3439_v2 }
 0x631   :  { %v3330_v17 = vpack.c.bf16 %v3326_v51, %v3326_v51  ;;  %v3322_v39 = vsel %vm968_vm6, %v3316_v44, %v3318_v13  ;;  %v3320_v37 = vpop.permute.xlu0 %3319 }
 0x632   :  { %v3327_v1 = vmul.f32 %v3322_v39, %v15210_v47  ;;  %v3321_v9 = vsel %vm968_vm6, %v3318_v13, %v3320_v37  ;;  %v3324_v28 = vsel %vm968_vm6, %v3320_v37, %v3314_v36  ;;  %v3441_v13 = vpack.c.bf16 %v3437_v59, %v3437_v59 }
 0x633   :  { %v3325_v18 = vmul.f32 %v3324_v28, %v15206_v46  ;;  %v3328_v15 = vmul.f32 %v3321_v9, %v15268_v20  ;;  %11444 = vmatmul.mubr.msk.bf16.vlgmr.msra.gmra.mrb[80].mxu0 %vm1890_vm12, %v3211_v0  ;;  %11446 = vmatmul.mubr.msk.bf16.vlgmr.msra.gmra.mrb[80].mxu1 %vm1890_vm12, %v3211_v0 }
 0x634   :  { %v3331_v50 = vpack.c.bf16 %v3327_v1, %v3327_v1  ;;  %11447 = vmatprep.subr.msk.bf16.mxu0 %vm1894_vm11, %v3330_v17  ;;  %v3548_v7 = vpop.permute.xlu1 %3547  ;;  %3382 = vmatprep.mubr.bf16.mxu0 %v17193_v58  ;;  %v3334_v17 = vld [vmem:[#allocation18 + $0xc] sm:$0xf] }
 0x635   :  { %v3329_v36 = vpack.c.bf16 %v3325_v18, %v3325_v18  ;;  %v3332_v8 = vpack.c.bf16 %v3328_v15, %v3328_v15  ;;  %v3550_v6 = vpop.permute.xlu0 %3549  ;;  %3423 = vmatprep.mubr.bf16.mxu1 %v17193_v58  ;;  %v3450_v18 = vsel %vm1894_vm11, %v3440_v10, 0  ;;  %v3456_v15 = vsel %vm1894_vm11, %v3442_v12, 0  ;;  %v3445_v12 = vld [vmem:[#allocation18 + $0x10] sm:$0xf] }
 0x636   :  { %v3345_v44 = vsel %vm1894_vm11, %v3331_v50, 0  ;;  %v3557_v51 = vsel %vm1253_vm7, %v3548_v7, %v3550_v6 }
 0x637   :  { %11449 = vmatprep.subr.msk.bf16.mxu1 %vm1894_vm11, %v3332_v8  ;;  %v3339_v56 = vsel %vm1894_vm11, %v3329_v36, 0  ;;  %v3559_v35 = vmul.f32 %v3557_v51, %v15335_v55 }
 0x638   :  { %v3552_v0 = vpop.permute.xlu1 %3551  ;;  %3351 = vmatpush1.bf16.msra.mxu0 %v3339_v56  ;;  %3392 = vmatpush1.bf16.msra.mxu1 %v3345_v44 }
 0x639   :  { %v3556_v39 = vsel %vm1253_vm7, %v3550_v6, %v3552_v0  ;;  %11453 = vmatprep.subr.msk.bf16.mxu1 %vm1894_vm11, %v3443_v57  ;;  %v3554_v37 = vpop.permute.xlu0 %3553  ;;  %11451 = vmatprep.subr.msk.bf16.mxu0 %vm1894_vm11, %v3441_v13 }
 0x63a   :  { %v3560_v38 = vmul.f32 %v3556_v39, %v15312_v5  ;;  %v3555_v1 = vsel %vm1253_vm7, %v3552_v0, %v3554_v37  ;;  %v3558_v9 = vsel %vm1253_vm7, %v3554_v37, %v3548_v7  ;;  %v3563_v7 = vpack.c.bf16 %v3559_v35, %v3559_v35 }
 0x63b   :  { %v3561_v28 = vmul.f32 %v3555_v1, %v15348_v4  ;;  %v3562_v2 = vmul.f32 %v3558_v9, %v15320_v29  ;;  %11448 = vmatmul.mubr.msk.bf16.vlgmr.msra.gmra.mrb[84].mxu0 %vm1890_vm12, %v3334_v17  ;;  %11450 = vmatmul.mubr.msk.bf16.vlgmr.msra.gmra.mrb[84].mxu1 %vm1890_vm12, %v3334_v17 }
 0x63c   :  { %v3564_v59 = vpack.c.bf16 %v3560_v38, %v3560_v38  ;;  %v3671_v50 = vpop.permute.xlu1 %3670  ;;  %3462 = vmatpush1.bf16.msra.mxu0 %v3450_v18  ;;  %3503 = vmatpush1.bf16.msra.mxu1 %v3456_v15  ;;  %v3573_v17 = vsel %vm1894_vm11, %v3563_v7, 0 }
 0x63d   :  { %v3566_v36 = vpack.c.bf16 %v3562_v2, %v3562_v2  ;;  %v3673_v8 = vpop.permute.xlu0 %3672  ;;  %3493 = vmatprep.mubr.bf16.mxu0 %v17193_v58  ;;  %3534 = vmatprep.mubr.bf16.mxu1 %v17193_v58  ;;  %v3565_v6 = vpack.c.bf16 %v3561_v28, %v3561_v28 }
 0x63e   :  { %11455 = vmatprep.subr.msk.bf16.mxu0 %vm1894_vm11, %v3564_v59  ;;  %v3680_v44 = vsel %vm1400_vm8, %v3671_v50, %v3673_v8 }
 0x63f   :  { %11457 = vmatprep.subr.msk.bf16.mxu1 %vm1894_vm11, %v3566_v36  ;;  %v3682_v39 = vmul.f32 %v3680_v44, %v15379_v60  ;;  %v3579_v38 = vsel %vm1894_vm11, %v3565_v6, 0  ;;  %v3568_v36 = vld [vmem:[#allocation18 + $0x14] sm:$0xf] }
 0x640   :  { %v3675_v10 = vpop.permute.xlu1 %3674 }
 0x641   :  { %v3679_v51 = vsel %vm1400_vm8, %v3673_v8, %v3675_v10  ;;  %v3677_v56 = vpop.permute.xlu0 %3676  ;;  %v3686_v18 = vpack.c.bf16 %v3682_v39, %v3682_v39 }
 0x642   :  { %v3683_v57 = vmul.f32 %v3679_v51, %v15344_v63  ;;  %v3678_v13 = vsel %vm1400_vm8, %v3675_v10, %v3677_v56  ;;  %v3681_v0 = vsel %vm1400_vm8, %v3677_v56, %v3671_v50 }
 0x643   :  { %v3684_v37 = vmul.f32 %v3678_v13, %v15391_v19  ;;  %v3685_v35 = vmul.f32 %v3681_v0, %v15361_v16  ;;  %11452 = vmatmul.mubr.msk.bf16.vlgmr.msra.gmra.mrb[88].mxu0 %vm1890_vm12, %v3445_v12  ;;  %11454 = vmatmul.mubr.msk.bf16.vlgmr.msra.gmra.mrb[88].mxu1 %vm1890_vm12, %v3445_v12 }
 0x644   :  { %v3687_v1 = vpack.c.bf16 %v3683_v57, %v3683_v57  ;;  %3585 = vmatpush1.bf16.msra.mxu0 %v3573_v17  ;;  %3626 = vmatpush1.bf16.msra.mxu1 %v3579_v38  ;;  %v3794_v9 = vpop.permute.xlu1 %3793  ;;  %v3696_v57 = vsel %vm1894_vm11, %v3686_v18, 0 }
 0x645   :  { %v3689_v28 = vpack.c.bf16 %v3685_v35, %v3685_v35  ;;  %v3796_v2 = vpop.permute.xlu0 %3795  ;;  %3616 = vmatprep.mubr.bf16.mxu0 %v17193_v58  ;;  %3657 = vmatprep.mubr.bf16.mxu1 %v17193_v58  ;;  %v3688_v15 = vpack.c.bf16 %v3684_v37, %v3684_v37 }
 0x646   :  { %11459 = vmatprep.subr.msk.bf16.mxu0 %vm1894_vm11, %v3687_v1  ;;  %v3803_v59 = vsel %vm1547_vm9, %v3794_v9, %v3796_v2 }
 0x647   :  { %11461 = vmatprep.subr.msk.bf16.mxu1 %vm1894_vm11, %v3689_v28  ;;  %v3805_v6 = vmul.f32 %v3803_v59, %v15417_v45  ;;  %v3702_v13 = vsel %vm1894_vm11, %v3688_v15, 0  ;;  %v3691_v28 = vld [vmem:[#allocation18 + $0x18] sm:$0xf] }
 0x648   :  { %v3798_v50 = vpop.permute.xlu1 %3797 }
 0x649   :  { %v3802_v8 = vsel %vm1547_vm9, %v3796_v2, %v3798_v50  ;;  %v3800_v7 = vpop.permute.xlu0 %3799  ;;  %v3809_v35 = vpack.c.bf16 %v3805_v6, %v3805_v6 }
 0x64a   :  { %v3806_v44 = vmul.f32 %v3802_v8, %v15387_v62  ;;  %v3801_v10 = vsel %vm1547_vm9, %v3798_v50, %v3800_v7  ;;  %v3804_v12 = vsel %vm1547_vm9, %v3800_v7, %v3794_v9 }
 0x64b   :  { %v3807_v51 = vmul.f32 %v3801_v10, %v15428_v48  ;;  %v3808_v56 = vmul.f32 %v3804_v12, %v15400_v14  ;;  %11456 = vmatmul.mubr.msk.bf16.vlgmr.msra.gmra.mrb[92].mxu0 %vm1890_vm12, %v3568_v36  ;;  %11458 = vmatmul.mubr.msk.bf16.vlgmr.msra.gmra.mrb[92].mxu1 %vm1890_vm12, %v3568_v36  ;;  %v3819_v36 = vsel %vm1894_vm11, %v3809_v35, 0 }
 0x64c   :  { %v3810_v0 = vpack.c.bf16 %v3806_v44, %v3806_v44  ;;  %3708 = vmatpush1.bf16.msra.mxu0 %v3696_v57  ;;  %3749 = vmatpush1.bf16.msra.mxu1 %v3702_v13  ;;  %v3917_v17 = vpop.permute.xlu1 %3916  ;;  %v3814_v57 = vld [vmem:[#allocation18 + $0x1c] sm:$0xf] }
 0x64d   :  { %v3812_v39 = vpack.c.bf16 %v3808_v56, %v3808_v56  ;;  %v3919_v37 = vpop.permute.xlu0 %3918  ;;  %3739 = vmatprep.mubr.bf16.mxu0 %v17193_v58  ;;  %3780 = vmatprep.mubr.bf16.mxu1 %v17193_v58  ;;  %v3811_v38 = vpack.c.bf16 %v3807_v51, %v3807_v51 }
 0x64e   :  { %11463 = vmatprep.subr.msk.bf16.mxu0 %vm1894_vm11, %v3810_v0  ;;  %v3926_v1 = vsel %vm1694_vm10, %v3917_v17, %v3919_v37 }
 0x64f   :  { %11465 = vmatprep.subr.msk.bf16.mxu1 %vm1894_vm11, %v3812_v39  ;;  %v3928_v8 = vmul.f32 %v3926_v1, %v15450_v30  ;;  %v3825_v44 = vsel %vm1894_vm11, %v3811_v38, 0 }
 0x650   :  { %v3921_v9 = vpop.permute.xlu1 %3920 }
 0x651   :  { %v3925_v2 = vsel %vm1694_vm10, %v3919_v37, %v3921_v9  ;;  %v3923_v18 = vpop.permute.xlu0 %3922  ;;  %v3932_v51 = vpack.c.bf16 %v3928_v8, %v3928_v8 }
 0x652   :  { %v3929_v15 = vmul.f32 %v3925_v2, %v15424_v49  ;;  %v3924_v59 = vsel %vm1694_vm10, %v3921_v9, %v3923_v18  ;;  %v3927_v50 = vsel %vm1694_vm10, %v3923_v18, %v3917_v17  ;;  %v3937_v17 = vld [vmem:[#allocation18 + $0x20] sm:$0xf] }
 0x653   :  { %v3930_v7 = vmul.f32 %v3924_v59, %v15457_v3  ;;  %v3931_v6 = vmul.f32 %v3927_v50, %v15435_v54  ;;  %11460 = vmatmul.mubr.msk.bf16.vlgmr.msra.gmra.mrb[96].mxu0 %vm1890_vm12, %v3691_v28  ;;  %11462 = vmatmul.mubr.msk.bf16.vlgmr.msra.gmra.mrb[96].mxu1 %vm1890_vm12, %v3691_v28  ;;  %v3942_v13 = vsel %vm1894_vm11, %v3932_v51, 0 }
 0x654   :  { %v3933_v10 = vpack.c.bf16 %v3929_v15, %v3929_v15  ;;  %3831 = vmatpush1.bf16.msra.mxu0 %v3819_v36  ;;  %3872 = vmatpush1.bf16.msra.mxu1 %v3825_v44 }
 0x655   :  { %v3935_v12 = vpack.c.bf16 %v3931_v6, %v3931_v6  ;;  %3862 = vmatprep.mubr.bf16.mxu0 %v17193_v58  ;;  %3903 = vmatprep.mubr.bf16.mxu1 %v17193_v58  ;;  %v3934_v56 = vpack.c.bf16 %v3930_v7, %v3930_v7 }
 0x656   :  { %11467 = vmatprep.subr.msk.bf16.mxu0 %vm1894_vm11, %v3933_v10 }
 0x657   :  { %11469 = vmatprep.subr.msk.bf16.mxu1 %vm1894_vm11, %v3935_v12  ;;  %v3948_v0 = vsel %vm1894_vm11, %v3934_v56, 0 }
 0x65b   :  { %11464 = vmatmul.mubr.msk.bf16.vlgmr.msra.gmra.mrb[100].mxu0 %vm1890_vm12, %v3814_v57  ;;  %11466 = vmatmul.mubr.msk.bf16.vlgmr.msra.gmra.mrb[100].mxu1 %vm1890_vm12, %v3814_v57 }
 0x65c   :  { %3954 = vmatpush1.bf16.msra.mxu0 %v3942_v13  ;;  %3995 = vmatpush1.bf16.msra.mxu1 %v3948_v0 }
 0x65d   :  { %3985 = vmatprep.mubr.bf16.mxu0 %v17193_v58  ;;  %4026 = vmatprep.mubr.bf16.mxu1 %v17193_v58 }
 0x663   :  { %11468 = vmatmul.mubr.msk.bf16.vlgmr.msra.gmra.mrb[104].mxu0 %vm1890_vm12, %v3937_v17  ;;  %11470 = vmatmul.mubr.msk.bf16.vlgmr.msra.gmra.mrb[104].mxu1 %vm1890_vm12, %v3937_v17 }
 0x664   :  { %4154 = vmatprep.mubr.bf16.mxu0 %v17193_v58  ;;  %4197 = vmatprep.mubr.bf16.mxu1 %v17193_v58 }
 0x6f6   :  { %v3045_v39 = vpop.f32.mrb[72].mxu0  ;;  %v3086_v37 = vpop.f32.mrb[72].mxu1 }
 0x6f7   :  { %v3047_v35 = vpop.f32.mrb[73].mxu0  ;;  %v3088_v38 = vpop.f32.mrb[73].mxu1 }
 0x6f8   :  { %v3049_v1 = vpop.f32.mrb[74].mxu0  ;;  %v3090_v9 = vpop.f32.mrb[74].mxu1 }
 0x6f9   :  { %v3050_v28 = vpop.f32.mrb[75].mxu0  ;;  %v3091_v2 = vpop.f32.mrb[75].mxu1 }
 0x6fe   :  { %v3142_v18 = vpop.f32.mrb[76].mxu0  ;;  %v3183_v15 = vpop.f32.mrb[76].mxu1 }
 0x6ff   :  { %v3143_v59 = vadd.f32 %v3142_v18, %v3045_v39  ;;  %v3184_v50 = vadd.f32 %v3183_v15, %v3086_v37  ;;  %v3144_v36 = vpop.f32.mrb[77].mxu0  ;;  %v3185_v8 = vpop.f32.mrb[77].mxu1 }
 0x700   :  { %v3145_v7 = vadd.f32 %v3144_v36, %v3047_v35  ;;  %v3186_v6 = vadd.f32 %v3185_v8, %v3088_v38  ;;  %v3146_v44 = vpop.f32.mrb[78].mxu0  ;;  %v3187_v10 = vpop.f32.mrb[78].mxu1 }
 0x701   :  { %v3147_v12 = vpop.f32.mrb[79].mxu0  ;;  %v3188_v51 = vpop.f32.mrb[79].mxu1 }
 0x706   :  { %v3261_v56 = vpop.f32.mrb[80].mxu0  ;;  %v3302_v57 = vpop.f32.mrb[80].mxu1 }
 0x707   :  { %v3309_v13 = vadd.f32 %v3261_v56, %v3143_v59  ;;  %v3311_v0 = vadd.f32 %v3302_v57, %v3184_v50  ;;  %v3263_v17 = vpop.f32.mrb[81].mxu0  ;;  %v3304_v1 = vpop.f32.mrb[81].mxu1 }
 0x708   :  { %v3310_v9 = vadd.f32 %v3263_v17, %v3145_v7  ;;  %v3312_v28 = vadd.f32 %v3304_v1, %v3186_v6  ;;  %v3265_v2 = vpop.f32.mrb[82].mxu0  ;;  %v3306_v3 = vpop.f32.mrb[82].mxu1 }
 0x709   :  { %v3266_v39 = vpop.f32.mrb[83].mxu0  ;;  %v3307_v37 = vpop.f32.mrb[83].mxu1 }
 0x70e   :  { %v3384_v18 = vpop.f32.mrb[84].mxu0  ;;  %v3425_v15 = vpop.f32.mrb[84].mxu1 }
 0x70f   :  { %v3432_v35 = vadd.f32 %v3384_v18, %v3309_v13  ;;  %v3434_v38 = vadd.f32 %v3425_v15, %v3311_v0  ;;  %v3386_v36 = vpop.f32.mrb[85].mxu0  ;;  %v3427_v8 = vpop.f32.mrb[85].mxu1 }
 0x710   :  { %v3433_v44 = vadd.f32 %v3386_v36, %v3310_v9  ;;  %v3435_v10 = vadd.f32 %v3427_v8, %v3312_v28  ;;  %v3388_v12 = vpop.f32.mrb[86].mxu0  ;;  %v3429_v51 = vpop.f32.mrb[86].mxu1 }
 0x711   :  { %v3389_v59 = vpop.f32.mrb[87].mxu0  ;;  %v3430_v50 = vpop.f32.mrb[87].mxu1 }
 0x716   :  { %v3495_v56 = vpop.f32.mrb[88].mxu0  ;;  %v3536_v57 = vpop.f32.mrb[88].mxu1 }
 0x717   :  { %v3543_v7 = vadd.f32 %v3495_v56, %v3432_v35  ;;  %v3545_v6 = vadd.f32 %v3536_v57, %v3434_v38  ;;  %v3497_v17 = vpop.f32.mrb[89].mxu0  ;;  %v3538_v3 = vpop.f32.mrb[89].mxu1 }
 0x718   :  { %v3544_v1 = vadd.f32 %v3497_v17, %v3433_v44  ;;  %v3546_v2 = vadd.f32 %v3538_v3, %v3435_v10  ;;  %v3499_v39 = vpop.f32.mrb[90].mxu0  ;;  %v3540_v37 = vpop.f32.mrb[90].mxu1 }
 0x719   :  { %v3500_v13 = vpop.f32.mrb[91].mxu0  ;;  %v3541_v0 = vpop.f32.mrb[91].mxu1 }
 0x71e   :  { %v3618_v18 = vpop.f32.mrb[92].mxu0  ;;  %v3659_v15 = vpop.f32.mrb[92].mxu1 }
 0x71f   :  { %v3666_v9 = vadd.f32 %v3618_v18, %v3543_v7  ;;  %v3668_v28 = vadd.f32 %v3659_v15, %v3545_v6  ;;  %v3620_v36 = vpop.f32.mrb[93].mxu0  ;;  %v3661_v8 = vpop.f32.mrb[93].mxu1 }
 0x720   :  { %v3667_v12 = vadd.f32 %v3620_v36, %v3544_v1  ;;  %v3669_v51 = vadd.f32 %v3661_v8, %v3546_v2  ;;  %v3622_v59 = vpop.f32.mrb[94].mxu0  ;;  %v3663_v50 = vpop.f32.mrb[94].mxu1 }
 0x721   :  { %v3623_v35 = vpop.f32.mrb[95].mxu0  ;;  %v3664_v38 = vpop.f32.mrb[95].mxu1 }
 0x726   :  { %v3741_v56 = vpop.f32.mrb[96].mxu0  ;;  %v3782_v57 = vpop.f32.mrb[96].mxu1 }
 0x727   :  { %v3789_v44 = vadd.f32 %v3741_v56, %v3666_v9  ;;  %v3791_v10 = vadd.f32 %v3782_v57, %v3668_v28  ;;  %v3743_v17 = vpop.f32.mrb[97].mxu0  ;;  %v3784_v3 = vpop.f32.mrb[97].mxu1 }
 0x728   :  { %v3790_v39 = vadd.f32 %v3743_v17, %v3667_v12  ;;  %v3792_v37 = vadd.f32 %v3784_v3, %v3669_v51  ;;  %v3745_v13 = vpop.f32.mrb[98].mxu0  ;;  %v3786_v0 = vpop.f32.mrb[98].mxu1 }
 0x729   :  { %v3746_v7 = vpop.f32.mrb[99].mxu0  ;;  %v3787_v6 = vpop.f32.mrb[99].mxu1 }
 0x72a   :  { %v4043_v56 = vpop.permute.xlu1 %4042 }
 0x72e   :  { %v3864_v18 = vpop.f32.mrb[100].mxu0  ;;  %v3905_v15 = vpop.f32.mrb[100].mxu1 }
 0x72f   :  { %v3912_v1 = vadd.f32 %v3864_v18, %v3789_v44  ;;  %v3914_v2 = vadd.f32 %v3905_v15, %v3791_v10  ;;  %v3866_v36 = vpop.f32.mrb[101].mxu0  ;;  %v3907_v8 = vpop.f32.mrb[101].mxu1 }
 0x730   :  { %v3913_v59 = vadd.f32 %v3866_v36, %v3790_v39  ;;  %v3915_v50 = vadd.f32 %v3907_v8, %v3792_v37  ;;  %v3868_v35 = vpop.f32.mrb[102].mxu0  ;;  %v3909_v38 = vpop.f32.mrb[102].mxu1  ;;  %v17194_v8 = vld [vmem:[#allocation79_spill] sm:$0xff] }
 0x731   :  { %v3869_v9 = vpop.f32.mrb[103].mxu0  ;;  %v3910_v28 = vpop.f32.mrb[103].mxu1  ;;  %v17195_v38 = vld [vmem:[#allocation80_spill] sm:$0xff] }
 0x736   :  { %v3987_v57 = vpop.f32.mrb[104].mxu0  ;;  %v4028_v12 = vpop.f32.mrb[104].mxu1 }
 0x737   :  { %v4035_v51 = vadd.f32 %v3987_v57, %v3912_v1  ;;  %v4037_v17 = vadd.f32 %v4028_v12, %v3914_v2  ;;  %v3989_v3 = vpop.f32.mrb[105].mxu0  ;;  %v4030_v13 = vpop.f32.mrb[105].mxu1  ;;  %v5326_v12 = vld [vmem:[#allocation22 + $0x8] sm:$0xff] }
 0x738   :  { %v4036_v0 = vadd.f32 %v3989_v3, %v3913_v59  ;;  %v4038_v7 = vadd.f32 %v4030_v13, %v3915_v50  ;;  %v3991_v6 = vpop.f32.mrb[106].mxu0  ;;  %v4032_v44 = vpop.f32.mrb[106].mxu1  ;;  %v17196_v59 = vld [vmem:[#allocation78_spill] sm:$0xff] }
 0x739   :  { %v4045_v10 = vadd.f32 %v4043_v56, %v4035_v51  ;;  %v3992_v18 = vpop.f32.mrb[107].mxu0  ;;  %v4033_v15 = vpop.f32.mrb[107].mxu1 }
 0x73a   :  { %v4046_v39 = vadd.f32 %v4043_v56, %v4036_v0  ;;  %v4048_v37 = vadd.f32 %v4043_v56, %v4038_v7 }
 0x73b   :  { %v4049_v36 = vadd.f32 %v4045_v10, %v15481_v23  ;;  %v4047_v23 = vadd.f32 %v4043_v56, %v4037_v17  ;;  %v5325_v56 = vld [vmem:[#allocation22] sm:$0xff] }
 0x73c   :  { %v4050_v35 = vadd.f32 %v4046_v39, %v17194_v8  ;;  %v4052_v9 = vadd.f32 %v4048_v37, %v17195_v38 }
 0x73d   :  { %v15980_v28 = vmax.f32 %v4049_v36, 0.0  ;;  %v4051_v50 = vadd.f32 %v4047_v23, %v17196_v59 }
 0x73e   :  { %v15982_v1 = vmax.f32 %v4050_v35, 0.0  ;;  %v15988_v2 = vmax.f32 %v4052_v9, 0.0  ;;  %v13797_v35 = vld [vmem:[#allocation21 + $0x8] sm:$0xff]  }
 0x73f   :  { %4079 = vrot.lane.b32.xlu0 %v15980_v28, %s14611_s23  ;;  %v16003_v57 = vmax.f32 %v4051_v50, 0.0 }
 0x740   :  { %4081 = vrot.lane.b32.xlu1 %v15982_v1, %s14611_s23 }
 0x743   :  { %4085 = vrot.lane.b32.xlu0 %v15988_v2, %s14611_s23 }
 0x744   :  { %4057 = vrot.lane.b32.xlu1 %v15980_v28, %s14644_s10 }
 0x747   :  { %4059 = vrot.lane.b32.xlu0 %v15982_v1, %s14644_s10 }
 0x748   :  { %4063 = vrot.lane.b32.xlu1 %v15988_v2, %s14644_s10 }
 0x74b   :  { %4314 = vrot.lane.b32.xlu0 %v15980_v28, %s14646_s12 }
 0x74c   :  { %4316 = vrot.lane.b32.xlu1 %v15982_v1, %s14646_s12 }
 0x74f   :  { %4320 = vrot.lane.b32.xlu0 %v15988_v2, %s14646_s12 }
 0x750   :  { %4083 = vrot.lane.b32.xlu1 %v16003_v57, %s14611_s23  ;;  %s14654_s23 = smov 9  }
 0x753   :  { %4451 = vrot.lane.b32.xlu0 %v15980_v28, %s14612_s26 }
 0x754   :  { %4453 = vrot.lane.b32.xlu1 %v15982_v1, %s14612_s26 }
 0x757   :  { %4457 = vrot.lane.b32.xlu0 %v15988_v2, %s14612_s26 }
 0x758   :  { %4061 = vrot.lane.b32.xlu1 %v16003_v57, %s14644_s10 }
 0x75b   :  { %4318 = vrot.lane.b32.xlu0 %v16003_v57, %s14646_s12 }
 0x75c   :  { %4713 = vrot.lane.b32.xlu1 %v15980_v28, %s14647_s18 }
 0x75f   :  { %4715 = vrot.lane.b32.xlu0 %v15982_v1, %s14647_s18 }
 0x760   :  { %4717 = vrot.lane.b32.xlu1 %v16003_v57, %s14647_s18 }
 0x763   :  { %4455 = vrot.lane.b32.xlu0 %v16003_v57, %s14612_s26 }
 0x764   :  { %4850 = vrot.lane.b32.xlu1 %v15980_v28, %s14648_s9 }
 0x767   :  { %4852 = vrot.lane.b32.xlu0 %v15982_v1, %s14648_s9 }
 0x768   :  { %4854 = vrot.lane.b32.xlu1 %v16003_v57, %s14648_s9 }
 0x76b   :  { %4987 = vrot.lane.b32.xlu0 %v15980_v28, %s14649_s24 }
 0x76c   :  { %4989 = vrot.lane.b32.xlu1 %v15982_v1, %s14649_s24 }
 0x76f   :  { %4991 = vrot.lane.b32.xlu0 %v16003_v57, %s14649_s24 }
 0x770   :  { %4719 = vrot.lane.b32.xlu1 %v15988_v2, %s14647_s18 }
 0x773   :  { %5124 = vrot.lane.b32.xlu0 %v15980_v28, %s14650_s22 }
 0x774   :  { %5126 = vrot.lane.b32.xlu1 %v15982_v1, %s14650_s22 }
 0x777   :  { %5128 = vrot.lane.b32.xlu0 %v16003_v57, %s14650_s22 }
 0x778   :  { %4856 = vrot.lane.b32.xlu1 %v15988_v2, %s14648_s9 }
 0x77b   :  { %4993 = vrot.lane.b32.xlu0 %v15988_v2, %s14649_s24 }
 0x77c   :  { %5130 = vrot.lane.b32.xlu1 %v15988_v2, %s14650_s22 }
 0x77f   :  { %5329 = vperm.xlu0 %13795, %v5325_v56  }
 0x780   :  { %5334 = vperm.xlu1 %13796, %v5326_v12  }
 0x7b1   :  { %v4080_v51 = vpop.permute.xlu0 %4079 }
 0x7b2   :  { %v4082_v17 = vpop.permute.xlu1 %4081 }
 0x7b3   :  { %v4089_v3 = vsel %vm576_vm2, %v4080_v51, %v4082_v17 }
 0x7b4   :  { %v4092_v13 = vmul.f32 %v4089_v3, %v15162_v24 }
 0x7b5   :  { %v4086_v0 = vpop.permute.xlu0 %4085 }
 0x7b6   :  { %v4096_v7 = vpack.c.bf16 %v4092_v13, %v4092_v13  ;;  %v4090_v6 = vsel %vm576_vm2, %v4086_v0, %v4080_v51  ;;  %v4058_v44 = vpop.permute.xlu1 %4057 }
 0x7b7   :  { %v4091_v10 = vmul.f32 %v4090_v6, %v15165_v25 }
 0x7b8   :  { %11472 = vmatprep.subr.msk.bf16.mxu0 %vm1894_vm11, %v4096_v7 }
 0x7b9   :  { %v4095_v18 = vpack.c.bf16 %v4091_v10, %v4091_v10  ;;  %v4060_v15 = vpop.permute.xlu0 %4059 }
 0x7ba   :  { %v4067_v39 = vsel %vm532_vm3, %v4058_v44, %v4060_v15  ;;  %v4064_v37 = vpop.permute.xlu1 %4063 }
 0x7bb   :  { %v4070_v36 = vmul.f32 %v4067_v39, %v15174_v31  ;;  %v4068_v24 = vsel %vm532_vm3, %v4064_v37, %v4058_v44  ;;  %v4111_v8 = vsel %vm1894_vm11, %v4095_v18, 0 }
 0x7bc   :  { %v4069_v38 = vmul.f32 %v4068_v24, %v15154_v21  ;;  %4123 = vmatpush1.bf16.msra.mxu0 %v4111_v8  ;;  %v13798_v8 = vld [vmem:[#allocation21] sm:$0xff]  }
 0x7bd   :  { %v4074_v25 = vpack.c.bf16 %v4070_v36, %v4070_v36  ;;  %v4315_v9 = vpop.permute.xlu0 %4314 }
 0x7be   :  { %v4073_v23 = vpack.c.bf16 %v4069_v38, %v4069_v38  ;;  %v4317_v59 = vpop.permute.xlu1 %4316 }
 0x7bf   :  { %v4324_v50 = vsel %vm821_vm4, %v4315_v9, %v4317_v59  ;;  %11473 = vmatmul.mubr.msk.bf16.vlgmr.msra.gmra.mrb[108].mxu0 %vm1890_vm12, %v13797_v35  ;;  %11477 = vmatprep.subr.msk.bf16.mxu0 %vm1894_vm11, %v4074_v25 }
 0x7c0   :  { %v4327_v31 = vmul.f32 %v4324_v50, %v15189_v40  ;;  %v4217_v56 = vsel %vm1894_vm11, %v4073_v23, 0  ;;  %4260 = vmatprep.mubr.bf16.mxu0 %v17193_v58 }
 0x7c1   :  { %4229 = vmatpush1.bf16.msra.mxu0 %v4217_v56  ;;  %v4321_v21 = vpop.permute.xlu0 %4320 }
 0x7c2   :  { %v4331_v12 = vpack.c.bf16 %v4327_v31, %v4327_v31  ;;  %v4325_v51 = vsel %vm821_vm4, %v4321_v21, %v4315_v9  ;;  %v4084_v3 = vpop.permute.xlu1 %4083 }
 0x7c3   :  { %v4326_v13 = vmul.f32 %v4325_v51, %v15177_v32  ;;  %v4087_v7 = vsel %vm576_vm2, %v4084_v3, %v4086_v0  ;;  %v4088_v6 = vsel %vm576_vm2, %v4082_v17, %v4084_v3 }
 0x7c4   :  { %v4093_v40 = vmul.f32 %v4088_v6, %v15171_v27  ;;  %v4094_v44 = vmul.f32 %v4087_v7, %v15168_v26  ;;  %11482 = vmatprep.subr.msk.bf16.mxu0 %vm1894_vm11, %v4331_v12 }
 0x7c5   :  { %v4452_v10 = vpop.permute.xlu0 %4451  ;;  %v4330_v24 = vpack.c.bf16 %v4326_v13, %v4326_v13 }
 0x7c6   :  { %v4097_v18 = vpack.c.bf16 %v4093_v40, %v4093_v40  ;;  %v4098_v39 = vpack.c.bf16 %v4094_v44, %v4094_v44  ;;  %v4454_v36 = vpop.permute.xlu1 %4453  ;;  %v13799_v40 = vld [vmem:[#allocation21 + $0x10] sm:$0xff]  }
 0x7c7   :  { %v4461_v32 = vsel %vm968_vm6, %v4452_v10, %v4454_v36  ;;  %v4346_v23 = vsel %vm1894_vm11, %v4330_v24, 0 }
 0x7c8   :  { %v4464_v0 = vmul.f32 %v4461_v32, %v15216_v52  ;;  %11474 = vmatprep.subr.msk.bf16.mxu1 %vm1894_vm11, %v4098_v39  ;;  %v4117_v17 = vsel %vm1894_vm11, %v4097_v18, 0 }
 0x7c9   :  { %4166 = vmatpush1.bf16.msra.mxu1 %v4117_v17  ;;  %v4458_v27 = vpop.permute.xlu0 %4457 }
 0x7ca   :  { %v4468_v26 = vpack.c.bf16 %v4464_v0, %v4464_v0  ;;  %v4062_v38 = vpop.permute.xlu1 %4061  ;;  %v4462_v52 = vsel %vm968_vm6, %v4458_v27, %v4452_v10 }
 0x7cb   :  { %v4065_v25 = vsel %vm532_vm3, %v4062_v38, %v4064_v37  ;;  %v4066_v9 = vsel %vm532_vm3, %v4060_v15, %v4062_v38  ;;  %11478 = vmatmul.mubr.msk.bf16.vlgmr.msra.gmra.mrb[108].mxu0 %vm1890_vm12, %v13798_v8 }
 0x7cc   :  { %v4071_v50 = vmul.f32 %v4066_v9, %v15157_v22  ;;  %v4072_v31 = vmul.f32 %v4065_v25, %v15183_v34  ;;  %4358 = vmatpush1.bf16.msra.mxu0 %v4346_v23  ;;  %11475 = vmatmul.mubr.msk.bf16.vlgmr.msra.gmra.mrb[108].mxu1 %vm1890_vm12, %v13797_v35  ;;  %v4463_v22 = vmul.f32 %v4462_v52, %v15206_v46 }
 0x7cd   :  { %11487 = vmatprep.subr.msk.bf16.mxu0 %vm1894_vm11, %v4468_v26  ;;  %v4319_v37 = vpop.permute.xlu0 %4318  ;;  %4389 = vmatprep.mubr.bf16.mxu0 %v17193_v58  ;;  %v4589_v46 = vmul.f32 %v15982_v1, %v15198_v43  ;;  %v13800_v26 = vld [vmem:[#allocation21 + $0x18] sm:$0xff]   ;;  %v4591_v52 = vmul.f32 %v15988_v2, %v15224_v61 }
 0x7ce   :  { %v4075_v15 = vpack.c.bf16 %v4071_v50, %v4071_v50  ;;  %v4076_v56 = vpack.c.bf16 %v4072_v31, %v4072_v31  ;;  %v4322_v12 = vsel %vm821_vm4, %v4319_v37, %v4321_v21  ;;  %v4323_v51 = vsel %vm821_vm4, %v4317_v59, %v4319_v37  ;;  %v16106_v3 = vpop.permute.xlu1 %4713  ;;  %4303 = vmatprep.mubr.bf16.mxu1 %v17193_v58 }
 0x7cf   :  { %v4329_v34 = vmul.f32 %v4322_v12, %v15192_v41  ;;  %v4328_v35 = vmul.f32 %v4323_v51, %v15180_v33  ;;  %v4467_v59 = vpack.c.bf16 %v4463_v22, %v4463_v22  ;;  %v4593_v24 = vpack.c.bf16 %v4589_v46, %v4589_v46 }
 0x7d0   :  { %11479 = vmatprep.subr.msk.bf16.mxu1 %vm1894_vm11, %v4076_v56  ;;  %v4223_v13 = vsel %vm1894_vm11, %v4075_v15, 0  ;;  %v4590_v12 = vmul.f32 %v16003_v57, %v15219_v53 }
 0x7d1   :  { %v4333_v7 = vpack.c.bf16 %v4329_v34, %v4329_v34  ;;  %4272 = vmatpush1.bf16.msra.mxu1 %v4223_v13  ;;  %v4716_v21 = vpop.permute.xlu0 %4715  ;;  %v4332_v44 = vpack.c.bf16 %v4328_v35, %v4328_v35  ;;  %v4483_v39 = vsel %vm1894_vm11, %v4467_v59, 0  ;;  %v13801_v35 = vld [vmem:[#allocation21 + $0x20] sm:$0xff]  }
 0x7d2   :  { %v16114_v6 = vpop.permute.xlu1 %4717  ;;  %v4723_v31 = vsel %vm1253_vm7, %v16106_v3, %v4716_v21 }
 0x7d3   :  { %11484 = vmatprep.subr.msk.bf16.mxu1 %vm1894_vm11, %v4333_v7  ;;  %v4352_v32 = vsel %vm1894_vm11, %v4332_v44, 0  ;;  %v4725_v15 = vmul.f32 %v4723_v31, %v15335_v55 }
 0x7d5   :  { %v4456_v41 = vpop.permute.xlu0 %4455  ;;  %v4729_v22 = vpack.c.bf16 %v4725_v15, %v4725_v15 }
 0x7d6   :  { %v4459_v33 = vsel %vm968_vm6, %v4456_v41, %v4458_v27  ;;  %v16121_v10 = vpop.permute.xlu1 %4850  ;;  %v4460_v43 = vsel %vm968_vm6, %v4454_v36, %v4456_v41 }
 0x7d7   :  { %v4466_v18 = vmul.f32 %v4459_v33, %v15268_v20  ;;  %11483 = vmatmul.mubr.msk.bf16.vlgmr.msra.gmra.mrb[108].mxu0 %vm1890_vm12, %v13799_v40  ;;  %v4588_v20 = vmul.f32 %v15980_v28, %v15195_v42  ;;  %v4465_v36 = vmul.f32 %v4460_v43, %v15210_v47 }
 0x7d8   :  { %4495 = vmatpush1.bf16.msra.mxu0 %v4483_v39  ;;  %11480 = vmatmul.mubr.msk.bf16.vlgmr.msra.gmra.mrb[108].mxu1 %vm1890_vm12, %v13798_v8  ;;  %v4722_v8 = vsel %vm1253_vm7, %v4716_v21, %v16114_v6  ;;  %v4594_v21 = vpack.c.bf16 %v4590_v12, %v4590_v12 }
 0x7d9   :  { %v4470_v0 = vpack.c.bf16 %v4466_v18, %v4466_v18  ;;  %4401 = vmatpush1.bf16.msra.mxu1 %v4352_v32  ;;  %11492 = vmatprep.subr.msk.bf16.mxu0 %vm1894_vm11, %v4593_v24  ;;  %v4726_v27 = vmul.f32 %v4722_v8, %v15312_v5  ;;  %v4592_v38 = vpack.c.bf16 %v4588_v20, %v4588_v20  ;;  %v4853_v9 = vpop.permute.xlu0 %4852  ;;  %v13802_v32 = vld [vmem:[#allocation21 + $0x28] sm:$0xff]  }
 0x7da   :  { %v16131_v17 = vpop.permute.xlu1 %4854  ;;  %4526 = vmatprep.mubr.bf16.mxu0 %v17193_v58  ;;  %4432 = vmatprep.mubr.bf16.mxu1 %v17193_v58  ;;  %v4469_v25 = vpack.c.bf16 %v4465_v36, %v4465_v36  ;;  %v4595_v5 = vpack.c.bf16 %v4591_v52, %v4591_v52  ;;  %v4860_v53 = vsel %vm1400_vm8, %v16121_v10, %v4853_v9 }
 0x7db   :  { %11489 = vmatprep.subr.msk.bf16.mxu1 %vm1894_vm11, %v4470_v0  ;;  %v4730_v50 = vpack.c.bf16 %v4726_v27, %v4726_v27  ;;  %v4608_v42 = vsel %vm1894_vm11, %v4592_v38, 0  ;;  %v4859_v56 = vsel %vm1400_vm8, %v4853_v9, %v16131_v17  ;;  %v4862_v41 = vmul.f32 %v4860_v53, %v15379_v60  ;;  %v5262_v53 = vld [vmem:[#allocation7 + $0x8] sm:$0xff] }
 0x7dc   :  { %v4489_v47 = vsel %vm1894_vm11, %v4469_v25, 0  ;;  %v4863_v34 = vmul.f32 %v4859_v56, %v15344_v63  ;;  %v4614_v63 = vsel %vm1894_vm11, %v4594_v21, 0  ;;  %v13804_v56 = vld [vmem:[#allocation21 + $0x38] sm:$0xff]  }
 0x7dd   :  { %v4988_v37 = vpop.permute.xlu0 %4987  ;;  %v4866_v39 = vpack.c.bf16 %v4862_v41, %v4862_v41  ;;  %v5264_v41 = vld [vmem:[#allocation7 + $0x18] sm:$0xff] }
 0x7de   :  { %v4990_v23 = vpop.permute.xlu1 %4989  ;;  %v4867_v59 = vpack.c.bf16 %v4863_v34, %v4863_v34 }
 0x7df   :  { %v4882_v8 = vsel %vm1894_vm11, %v4866_v39, 0  ;;  %v5265_v39 = vld [vmem:[#allocation7 + $0x20] sm:$0xff] }
 0x7e1   :  { %v16166_v13 = vpop.permute.xlu0 %4991 }
 0x7e2   :  { %v4720_v61 = vpop.permute.xlu1 %4719  ;;  %v4996_v33 = vsel %vm1547_vm9, %v4990_v23, %v16166_v13 }
 0x7e3   :  { %11488 = vmatmul.mubr.msk.bf16.vlgmr.msra.gmra.mrb[108].mxu0 %vm1890_vm12, %v13800_v26  ;;  %v4724_v51 = vsel %vm1253_vm7, %v4720_v61, %v16106_v3  ;;  %v5000_v24 = vmul.f32 %v4996_v33, %v15387_v62  ;;  %v5281_v33 = vld [vmem:[#allocation7 + $0xa0] sm:$0xff] }
 0x7e4   :  { %4620 = vmatpush1.bf16.msra.mxu0 %v4608_v42  ;;  %11485 = vmatmul.mubr.msk.bf16.vlgmr.msra.gmra.mrb[108].mxu1 %vm1890_vm12, %v13799_v40  ;;  %v4728_v55 = vmul.f32 %v4724_v51, %v15320_v29  ;;  %v4745_v40 = vsel %vm1894_vm11, %v4729_v22, 0  ;;  %v4721_v29 = vsel %vm1253_vm7, %v16114_v6, %v4720_v61 }
 0x7e5   :  { %4538 = vmatpush1.bf16.msra.mxu1 %v4489_v47  ;;  %11497 = vmatprep.subr.msk.bf16.mxu0 %vm1894_vm11, %v4730_v50  ;;  %v5125_v46 = vpop.permute.xlu0 %5124  ;;  %v4727_v18 = vmul.f32 %v4721_v29, %v15348_v4  ;;  %v5004_v20 = vpack.c.bf16 %v5000_v24, %v5000_v24  ;;  %v4997_v4 = vsel %vm1547_vm9, %v4988_v37, %v4990_v23  ;;  %v13803_v23 = vld [vmem:[#allocation21 + $0x30] sm:$0xff]   ;;  %v5266_v24 = vld [vmem:[#allocation7 + $0x28] sm:$0xff] }
 0x7e6   :  { %11494 = vmatprep.subr.msk.bf16.mxu1 %vm1894_vm11, %v4595_v5  ;;  %4651 = vmatprep.mubr.bf16.mxu0 %v17193_v58  ;;  %v5127_v7 = vpop.permute.xlu1 %5126  ;;  %v4732_v3 = vpack.c.bf16 %v4728_v55, %v4728_v55  ;;  %v4999_v27 = vmul.f32 %v4997_v4, %v15417_v45  ;;  %v5277_v55 = vld [vmem:[#allocation7 + $0x80] sm:$0xff] }
 0x7e7   :  { %4569 = vmatprep.mubr.bf16.mxu1 %v17193_v58  ;;  %v4731_v43 = vpack.c.bf16 %v4727_v18, %v4727_v18  ;;  %v5134_v31 = vsel %vm1694_vm10, %v5125_v46, %v5127_v7  ;;  %v5282_v18 = vld [vmem:[#allocation7 + $0xa8] sm:$0xff]  ;;  %v5285_v4 = vld [vmem:[#allocation7 + $0xc0] sm:$0xff] }
 0x7e8   :  { %v5003_v25 = vpack.c.bf16 %v4999_v27, %v4999_v27  ;;  %v5136_v5 = vmul.f32 %v5134_v31, %v15450_v30  ;;  %v5270_v27 = vld [vmem:[#allocation7 + $0x48] sm:$0xff]  ;;  %v5273_v31 = vld [vmem:[#allocation7 + $0x60] sm:$0xff] }
 0x7e9   :  { %v5129_v0 = vpop.permute.xlu0 %5128 }
 0x7ea   :  { %v4857_v44 = vpop.permute.xlu1 %4856  ;;  %v5019_v45 = vsel %vm1894_vm11, %v5003_v25, 0  ;;  %v5140_v15 = vpack.c.bf16 %v5136_v5, %v5136_v5 }
 0x7eb   :  { %v4861_v6 = vsel %vm1400_vm8, %v4857_v44, %v16121_v10  ;;  %v4751_v10 = vsel %vm1894_vm11, %v4731_v43, 0  ;;  %v4858_v62 = vsel %vm1400_vm8, %v16131_v17, %v4857_v44  ;;  %v5263_v44 = vld [vmem:[#allocation7 + $0x10] sm:$0xff]  ;;  %v5284_v43 = vld [vmem:[#allocation7 + $0xb8] sm:$0xff] }
 0x7ec   :  { %v4865_v60 = vmul.f32 %v4861_v6, %v15361_v16  ;;  %v4864_v38 = vmul.f32 %v4858_v62, %v15391_v19  ;;  %v5156_v22 = vsel %vm1894_vm11, %v5140_v15, 0  ;;  %v16255_v6 = vpack.c.bf16 %v5264_v41, %v5263_v44  ;;  %v5297_v41 = vld [vmem:[#allocation7 + $0x120] sm:$0xff] }
 0x7ed   :  { %v4994_v16 = vpop.permute.xlu0 %4993 }
 0x7ee   :  { %v4869_v36 = vpack.c.bf16 %v4865_v60, %v4865_v60  ;;  %v4998_v17 = vsel %vm1547_vm9, %v4994_v16, %v4988_v37  ;;  %v4868_v52 = vpack.c.bf16 %v4864_v38, %v4864_v38  ;;  %v5288_v38 = vld [vmem:[#allocation7 + $0xd8] sm:$0xff] }
 0x7ef   :  { %11493 = vmatmul.mubr.msk.bf16.vlgmr.msra.gmra.mrb[108].mxu0 %vm1890_vm12, %v13801_v35  ;;  %v5002_v50 = vmul.f32 %v4998_v17, %v15400_v14  ;;  %v5131_v14 = vpop.permute.xlu1 %5130 }
 0x7f0   :  { %4757 = vmatpush1.bf16.msra.mxu0 %v4745_v40  ;;  %11490 = vmatmul.mubr.msk.bf16.vlgmr.msra.gmra.mrb[108].mxu1 %vm1890_vm12, %v13800_v26  ;;  %v5133_v26 = vsel %vm1694_vm10, %v5127_v7, %v5129_v0  ;;  %v4888_v19 = vsel %vm1894_vm11, %v4868_v52, 0  ;;  %v5135_v61 = vsel %vm1694_vm10, %v5131_v14, %v5125_v46  ;;  %v5278_v7 = vld [vmem:[#allocation7 + $0x88] sm:$0xff]  ;;  %v5261_v40 = vld [vmem:[#allocation7] sm:$0xff] }
 0x7f1   :  { %4663 = vmatpush1.bf16.msra.mxu1 %v4614_v63  ;;  %11502 = vmatprep.subr.msk.bf16.mxu0 %vm1894_vm11, %v4867_v59  ;;  %v5137_v9 = vmul.f32 %v5133_v26, %v15424_v49  ;;  %v5006_v47 = vpack.c.bf16 %v5002_v50, %v5002_v50  ;;  %v4995_v49 = vsel %vm1547_vm9, %v16166_v13, %v4994_v16  ;;  %v13805_v13 = vld [vmem:[#allocation21 + $0x40] sm:$0xff]   ;;  %v5280_v63 = vld [vmem:[#allocation7 + $0x98] sm:$0xff]  ;;  %v5287_v26 = vld [vmem:[#allocation7 + $0xd0] sm:$0xff] }
 0x7f2   :  { %11499 = vmatprep.subr.msk.bf16.mxu1 %vm1894_vm11, %v4732_v3  ;;  %4788 = vmatprep.mubr.bf16.mxu0 %v17193_v58  ;;  %v5001_v37 = vmul.f32 %v4995_v49, %v15428_v48  ;;  %v5139_v51 = vmul.f32 %v5135_v61, %v15435_v54  ;;  %v5132_v48 = vsel %vm1694_vm10, %v5129_v0, %v5131_v14  ;;  %v17197_v54 = vld [vmem:[#allocation77_spill] sm:$0xff]  ;;  %v5269_v16 = vld [vmem:[#allocation7 + $0x40] sm:$0xff]  ;;  %v5292_v49 = vld [vmem:[#allocation7 + $0xf8] sm:$0xff] }
 0x7f3   :  { %4694 = vmatprep.mubr.bf16.mxu1 %v17193_v58  ;;  %v5141_v42 = vpack.c.bf16 %v5137_v9, %v5137_v9  ;;  %v16242_v59 = vpack.c.bf16 %v5278_v7, %v5277_v55  ;;  %v5279_v3 = vld [vmem:[#allocation7 + $0x90] sm:$0xff]  ;;  %v16249_v29 = vpack.c.bf16 %v5262_v53, %v5261_v40  ;;  %v16261_v0 = vpack.c.bf16 %v5266_v24, %v5265_v39  ;;  %v5289_v52 = vld [vmem:[#allocation7 + $0xe0] sm:$0xff]  ;;  %v5290_v50 = vld [vmem:[#allocation7 + $0xe8] sm:$0xff] }
 0x7f4   :  { %v5005_v12 = vpack.c.bf16 %v5001_v37, %v5001_v37  ;;  %v5143_v34 = vpack.c.bf16 %v5139_v51, %v5139_v51  ;;  %v16251_v46 = vpack.c.bf16 %v5280_v63, %v5279_v3  ;;  %v16273_v17 = vpack.c.bf16 %v5270_v27, %v5269_v16  ;;  %v5271_v9 = vld [vmem:[#allocation7 + $0x50] sm:$0xff]  ;;  %v5276_v61 = vld [vmem:[#allocation7 + $0x78] sm:$0xff]  ;;  %v5313_v40 = vld [vmem:[#allocation7 + $0x1a0] sm:$0xff] }
 0x7f5   :  { %v16276_v25 = vpack.c.bf16 %v5288_v38, %v5287_v26  ;;  %v5275_v37 = vld [vmem:[#allocation7 + $0x70] sm:$0xff]  ;;  %v5314_v53 = vld [vmem:[#allocation7 + $0x1a8] sm:$0xff]  ;;  %v5316_v39 = vld [vmem:[#allocation7 + $0x1b8] sm:$0xff] }
 0x7f6   :  { %v5025_v30 = vsel %vm1894_vm11, %v5005_v12, 0  ;;  %v16291_v15 = vpack.c.bf16 %v5276_v61, %v5275_v37  ;;  %v5310_v12 = vld [vmem:[#allocation7 + $0x188] sm:$0xff]  ;;  %v5295_v7 = vld [vmem:[#allocation7 + $0x110] sm:$0xff]  ;;  %v16306_v44 = vpack.c.bf16 %v5314_v53, %v5313_v40  ;;  %v5301_v26 = vld [vmem:[#allocation7 + $0x140] sm:$0xff] }
 0x7f7   :  { %v5302_v38 = vld [vmem:[#allocation7 + $0x148] sm:$0xff]  ;;  %v5304_v37 = vld [vmem:[#allocation7 + $0x158] sm:$0xff]  ;;  %v5321_v61 = vld [vmem:[#allocation7 + $0x1e0] sm:$0xff] }
 0x7fb   :  { %11498 = vmatmul.mubr.msk.bf16.vlgmr.msra.gmra.mrb[108].mxu0 %vm1890_vm12, %v13802_v32 }
 0x7fc   :  { %4894 = vmatpush1.bf16.msra.mxu0 %v4882_v8  ;;  %11495 = vmatmul.mubr.msk.bf16.vlgmr.msra.gmra.mrb[108].mxu1 %vm1890_vm12, %v13801_v35  ;;  %v5138_v35 = vmul.f32 %v5132_v48, %v17197_v54  ;;  %v5268_v8 = vld [vmem:[#allocation7 + $0x38] sm:$0xff] }
 0x7fd   :  { %4800 = vmatpush1.bf16.msra.mxu1 %v4751_v10  ;;  %11507 = vmatprep.subr.msk.bf16.mxu0 %vm1894_vm11, %v5004_v20  ;;  %v5267_v20 = vld [vmem:[#allocation7 + $0x30] sm:$0xff]  ;;  %v5312_v48 = vld [vmem:[#allocation7 + $0x198] sm:$0xff] }
 0x7fe   :  { %11504 = vmatprep.subr.msk.bf16.mxu1 %vm1894_vm11, %v4869_v36  ;;  %4925 = vmatprep.mubr.bf16.mxu0 %v17193_v58  ;;  %v5142_v21 = vpack.c.bf16 %v5138_v35, %v5138_v35  ;;  %v5286_v36 = vld [vmem:[#allocation7 + $0xc8] sm:$0xff]  ;;  %v16267_v10 = vpack.c.bf16 %v5268_v8, %v5267_v20  ;;  %v5300_v20 = vld [vmem:[#allocation7 + $0x138] sm:$0xff]  ;;  %v5317_v8 = vld [vmem:[#allocation7 + $0x1c0] sm:$0xff] }
 0x7ff   :  { %4831 = vmatprep.mubr.bf16.mxu1 %v17193_v58  ;;  %v16270_v62 = vpack.c.bf16 %v5286_v36, %v5285_v4  ;;  %v5318_v4 = vld [vmem:[#allocation7 + $0x1c8] sm:$0xff] }
 0x800   :  { %v5162_v11 = vsel %vm1894_vm11, %v5142_v21, 0  ;;  %v5296_v21 = vld [vmem:[#allocation7 + $0x118] sm:$0xff]  ;;  %v16318_v27 = vpack.c.bf16 %v5318_v4, %v5317_v8 }
 0x801   :  { %v16303_v63 = vpack.c.bf16 %v5296_v21, %v5295_v7  ;;  %v5307_v21 = vld [vmem:[#allocation7 + $0x170] sm:$0xff] }
 0x807   :  { %11503 = vmatmul.mubr.msk.bf16.vlgmr.msra.gmra.mrb[108].mxu0 %vm1890_vm12, %v13803_v23 }
 0x808   :  { %5031 = vmatpush1.bf16.msra.mxu0 %v5019_v45  ;;  %11500 = vmatmul.mubr.msk.bf16.vlgmr.msra.gmra.mrb[108].mxu1 %vm1890_vm12, %v13802_v32  ;;  %v5283_v32 = vld [vmem:[#allocation7 + $0xb0] sm:$0xff]  ;;  %v16282_v45 = vpack.c.bf16 %v5290_v50, %v5289_v52  ;;  %v5320_v52 = vld [vmem:[#allocation7 + $0x1d8] sm:$0xff] }
 0x809   :  { %4937 = vmatpush1.bf16.msra.mxu1 %v4888_v19  ;;  %11512 = vmatprep.subr.msk.bf16.mxu0 %vm1894_vm11, %v5141_v42  ;;  %v16264_v60 = vpack.c.bf16 %v5284_v43, %v5283_v32  ;;  %v5291_v19 = vld [vmem:[#allocation7 + $0xf0] sm:$0xff] }
 0x80a   :  { %11509 = vmatprep.subr.msk.bf16.mxu1 %vm1894_vm11, %v5006_v47  ;;  %5062 = vmatprep.mubr.bf16.mxu0 %v17193_v58  ;;  %v5274_v47 = vld [vmem:[#allocation7 + $0x68] sm:$0xff]  ;;  %v16288_v5 = vpack.c.bf16 %v5292_v49, %v5291_v19  ;;  %v5299_v43 = vld [vmem:[#allocation7 + $0x130] sm:$0xff] }
 0x80b   :  { %4968 = vmatprep.mubr.bf16.mxu1 %v17193_v58  ;;  %v16285_v14 = vpack.c.bf16 %v5274_v47, %v5273_v31  ;;  %v16315_v36 = vpack.c.bf16 %v5300_v20, %v5299_v43  ;;  %v13087_v47 = vpack.c.bf16 %v5302_v38, %v5301_v26  ;;  %v5303_v49 = vld [vmem:[#allocation7 + $0x150] sm:$0xff]  ;;  %v16386_v38 = vld [vmem:[#allocation4] ss:$0 sm:$0xff] }
 0x813   :  { %11508 = vmatmul.mubr.msk.bf16.vlgmr.msra.gmra.mrb[108].mxu0 %vm1890_vm12, %v13804_v56 }
 0x814   :  { %5168 = vmatpush1.bf16.msra.mxu0 %v5156_v22  ;;  %11505 = vmatmul.mubr.msk.bf16.vlgmr.msra.gmra.mrb[108].mxu1 %vm1890_vm12, %v13803_v23  ;;  %v5272_v23 = vld [vmem:[#allocation7 + $0x58] sm:$0xff]  ;;  %v5293_v22 = vld [vmem:[#allocation7 + $0x100] sm:$0xff] }
 0x815   :  { %5074 = vmatpush1.bf16.msra.mxu1 %v5025_v30  ;;  %5199 = vmatprep.mubr.bf16.mxu0 %v17193_v58  ;;  %v16279_v42 = vpack.c.bf16 %v5272_v23, %v5271_v9  ;;  %v5311_v30 = vld [vmem:[#allocation7 + $0x190] sm:$0xff] }
 0x816   :  { %11514 = vmatprep.subr.msk.bf16.mxu1 %vm1894_vm11, %v5143_v34  ;;  %5105 = vmatprep.mubr.bf16.mxu1 %v17193_v58  ;;  %v5294_v34 = vld [vmem:[#allocation7 + $0x108] sm:$0xff]  ;;  %v16300_v55 = vpack.c.bf16 %v5312_v48, %v5311_v30  ;;  %v5319_v23 = vld [vmem:[#allocation7 + $0x1d0] sm:$0xff] }
 0x817   :  { %v16298_v35 = vpack.c.bf16 %v5294_v34, %v5293_v22  ;;  %v13089_v19 = vpack.c.bf16 %v5320_v52, %v5319_v23  ;;  %v5305_v34 = vld [vmem:[#allocation7 + $0x160] sm:$0xff]  ;;  %v5306_v30 = vld [vmem:[#allocation7 + $0x168] sm:$0xff]  ;;  %v5323_v48 = vld [vmem:[#allocation7 + $0x1f0] sm:$0xff] }
 0x81f   :  { %11513 = vmatmul.mubr.msk.bf16.vlgmr.msra.gmra.mrb[108].mxu0 %vm1890_vm12, %v13805_v13 }
 0x820   :  { %11510 = vmatmul.mubr.msk.bf16.vlgmr.msra.gmra.mrb[108].mxu1 %vm1890_vm12, %v13804_v56  ;;  %v5309_v56 = vld [vmem:[#allocation7 + $0x180] sm:$0xff] }
 0x821   :  { %5211 = vmatpush1.bf16.msra.mxu1 %v5162_v11  ;;  %5242 = vmatprep.mubr.bf16.mxu1 %v17193_v58  ;;  %v16258_v58 = vpack.c.bf16 %v5282_v18, %v5281_v33  ;;  %v16295_v51 = vpack.c.bf16 %v5310_v12, %v5309_v56  ;;  %v5298_v33 = vld [vmem:[#allocation7 + $0x128] sm:$0xff]  ;;  %v5315_v18 = vld [vmem:[#allocation7 + $0x1b0] sm:$0xff]  ;;  %v13091_v12 = vpack.c.bf16 %v5304_v37, %v5303_v49 }
 0x822   :  { %13038 = vmatprep.subr.bf16.mxu1 %v16242_v59  ;;  %v16309_v24 = vpack.c.bf16 %v5298_v33, %v5297_v41  ;;  %v16312_v32 = vpack.c.bf16 %v5316_v39, %v5315_v18  ;;  %v5322_v56 = vld [vmem:[#allocation7 + $0x1e8] sm:$0xff]  ;;  %v6244_v33 = vld [vmem:[#allocation28] sm:$0xff] }
 0x823   :  { %v13093_v22 = vpack.c.bf16 %v5322_v56, %v5321_v61  ;;  %v6308_v18 = vld [vmem:[#allocation25] sm:$0xff]  ;;  %v16395_v37 = vld [vmem:[#allocation4 + $0x2] ss:$0 sm:$0xff] }
 0x824   :  { %v6245_v39 = vld [vmem:[#allocation28 + $0x8] sm:$0xff] }
 0x82c   :  { %11515 = vmatmul.mubr.msk.bf16.vlgmr.msra.gmra.mrb[108].mxu1 %vm1890_vm12, %v13805_v13 }
 0x82d   :  { %13040 = vmatpush3.bf16.msra.mxu1 %v16249_v29 }
 0x82e   :  { %13042 = vmatprep.subr.bf16.mxu1 %v16251_v46 }
 0x831   :  { %13044 = vmatpush3.bf16.msra.mxu1 %v16255_v6 }
 0x832   :  { %13046 = vmatprep.subr.bf16.mxu1 %v16258_v58 }
 0x835   :  { %13048 = vmatpush3.bf16.msra.mxu1 %v16261_v0 }
 0x836   :  { %13050 = vmatprep.subr.bf16.mxu1 %v16264_v60 }
 0x839   :  { %13052 = vmatpush3.bf16.msra.mxu1 %v16267_v10 }
 0x83a   :  { %13054 = vmatprep.subr.bf16.mxu1 %v16270_v62 }
 0x83d   :  { %13056 = vmatpush3.bf16.msra.mxu1 %v16273_v17 }
 0x83e   :  { %13058 = vmatprep.subr.bf16.mxu1 %v16276_v25 }
 0x841   :  { %13060 = vmatpush3.bf16.msra.mxu1 %v16279_v42 }
 0x842   :  { %13062 = vmatprep.subr.bf16.mxu1 %v16282_v45 }
 0x845   :  { %13064 = vmatpush3.bf16.msra.mxu1 %v16285_v14 }
 0x846   :  { %13066 = vmatprep.subr.bf16.mxu1 %v16288_v5 }
 0x849   :  { %13068 = vmatpush3.bf16.msra.mxu1 %v16291_v15 }
 0x84a   :  { %13070 = vmatprep.subr.bf16.mxu1 %v16295_v51 }
 0x8f2   :  { %v5201_v54 = vpop.f32.mrb[108].mxu0 }
 0x8f3   :  { %v5203_v13 = vpop.f32.mrb[109].mxu0 }
 0x8f4   :  { %v5205_v11 = vpop.f32.mrb[110].mxu0  ;;  %5401 = vmatprep.mubr.f32.mxu1 %v5203_v13  ;;  %v13095_v13 = vpack.c.bf16 %v5306_v30, %v5305_v34 }
 0x8f5   :  { %v5207_v3 = vpop.f32.mrb[111].mxu0  ;;  %5402 = vmatmul.mubr.f32.vlgmr.msra.gmra.mrb[112].mxu1 %v5201_v54  ;;  %v5324_v54 = vld [vmem:[#allocation7 + $0x1f8] sm:$0xff] }
 0x8f6   :  { %13072 = vmatpush3.bf16.msra.mxu1 %v16298_v35  ;;  %5406 = vmatprep.mubr.f32.mxu1 %v5207_v3  ;;  %v13097_v7 = vpack.c.bf16 %v5324_v54, %v5323_v48  ;;  %v16403_v48 = vld [vmem:[#allocation4 + $0x3] ss:$0 sm:$0xff] }
 0x8f7   :  { %13074 = vmatprep.subr.bf16.mxu1 %v16300_v55 }
 0x8f9   :  { %5407 = vmatmul.mubr.f32.gmra.mrb[114].mxu1 %v5205_v11  ;;  %v5308_v11 = vld [vmem:[#allocation7 + $0x178] sm:$0xff] }
 0x8fa   :  { %13076 = vmatpush3.bf16.msra.mxu1 %v16303_v63  ;;  %v13099_v40 = vpack.c.bf16 %v5308_v11, %v5307_v21 }
 0x8fb   :  { %13078 = vmatprep.subr.bf16.mxu1 %v16306_v44 }
 0x8fe   :  { %13080 = vmatpush3.bf16.msra.mxu1 %v16309_v24 }
 0x8ff   :  { %v5244_v16 = vpop.f32.mrb[108].mxu1  ;;  %13082 = vmatprep.subr.bf16.mxu1 %v16312_v32 }
 0x900   :  { %v5246_v9 = vpop.f32.mrb[109].mxu1 }
 0x901   :  { %v5248_v50 = vpop.f32.mrb[110].mxu1  ;;  %5476 = vmatprep.mubr.f32.mxu1 %v5246_v9 }
 0x902   :  { %13084 = vmatpush3.bf16.msra.mxu1 %v16315_v36  ;;  %v5250_v31 = vpop.f32.mrb[111].mxu1 }
 0x903   :  { %13086 = vmatprep.subr.bf16.mxu1 %v16318_v27 }
 0x906   :  { %13088 = vmatpush3.bf16.msra.mxu1 %v13087_v47 }
 0x907   :  { %13090 = vmatprep.subr.bf16.mxu1 %v13089_v19 }
 0x90a   :  { %13092 = vmatpush3.bf16.msra.mxu1 %v13091_v12 }
 0x90b   :  { %13094 = vmatprep.subr.bf16.mxu1 %v13093_v22 }
 0x90e   :  { %13096 = vmatpush3.bf16.msra.mxu1 %v13095_v13 }
 0x90f   :  { %13098 = vmatprep.subr.bf16.mxu1 %v13097_v7 }
 0x912   :  { %13100 = vmatpush3.bf16.msra.mxu1 %v13099_v40 }
 0x913   :  { %13102 = vmatprep.subr.bf16.mxu1 %v16242_v59 }
 0x915   :  { %5477 = vmatmul.mubr.f32.vlgmr.msra.gmra.mrb[116].mxu1 %v5244_v16 }
 0x916   :  { %5481 = vmatprep.mubr.f32.mxu1 %v5250_v31  ;;  %13104 = vmatpush3.bf16.msra.mxu1 %v16249_v29 }
 0x917   :  { %13106 = vmatprep.subr.bf16.mxu1 %v16251_v46 }
 0x919   :  { %5482 = vmatmul.mubr.f32.gmra.mrb[118].mxu1 %v5248_v50  ;;  %v13806_v50 = vld [vmem:[#allocation24 + $0x8] sm:$0xff]  }
 0x91a   :  { %13108 = vmatpush3.bf16.msra.mxu1 %v16255_v6  ;;  %6165 = vmatprep.mubr.f32.mxu1 %v15982_v1 }
 0x91b   :  { %13110 = vmatprep.subr.bf16.mxu1 %v16258_v58  ;;  %v5330_v58 = vpop.permute.xlu0 %5329 }
 0x91e   :  { %13112 = vmatpush3.bf16.msra.mxu1 %v16261_v0 }
 0x91f   :  { %13114 = vmatprep.subr.bf16.mxu1 %v16264_v60 }
 0x922   :  { %13116 = vmatpush3.bf16.msra.mxu1 %v16267_v10 }
 0x923   :  { %13118 = vmatprep.subr.bf16.mxu1 %v16270_v62  ;;  %v14652_v62 = vmov 0.0  }
 0x924   :  { %12426 = vmatprep.subr.bf16.mxu0 %v14652_v62  ;;  %12428 = vmatprep.mubr.msk.bf16.mxu0 %vm14653_vm13, %v14652_v62 }
 0x926   :  { %13120 = vmatpush3.bf16.msra.mxu1 %v16273_v17 }
 0x927   :  { %13122 = vmatprep.subr.bf16.mxu1 %v16276_v25 }
 0x92a   :  { %13124 = vmatpush3.bf16.msra.mxu1 %v16279_v42  ;;  %v5335_v42 = vpop.permute.xlu1 %5334 }
 0x92b   :  { %13126 = vmatprep.subr.bf16.mxu1 %v16282_v45 }
 0x92e   :  { %13128 = vmatpush3.bf16.msra.mxu1 %v16285_v14 }
 0x92f   :  { %13130 = vmatprep.subr.bf16.mxu1 %v16288_v5 }
 0x932   :  { %13132 = vmatpush3.bf16.msra.mxu1 %v16291_v15 }
 0x933   :  { %13134 = vmatprep.subr.bf16.mxu1 %v16295_v51  ;;  %v16355_v51 = vld [vmem:[#allocation4 + $0x4] ss:$0 sm:$0xff] }
 0x935   :  { %6166 = vmatmul.mubr.f32.vlgmr.msra.gmra.mrb[120].mxu1 %v15980_v28 }
 0x936   :  { %13136 = vmatpush3.bf16.msra.mxu1 %v16298_v35  ;;  %6235 = vmatprep.mubr.f32.mxu1 %v15988_v2 }
 0x937   :  { %13138 = vmatprep.subr.bf16.mxu1 %v16300_v55 }
 0x93a   :  { %13140 = vmatpush3.bf16.msra.mxu1 %v16303_v63 }
 0x93b   :  { %13142 = vmatprep.subr.bf16.mxu1 %v16306_v44 }
 0x93e   :  { %13144 = vmatpush3.bf16.msra.mxu1 %v16309_v24  ;;  %v6309_v24 = vld [vmem:[#allocation25 + $0x8] sm:$0xff] }
 0x93f   :  { %13146 = vmatprep.subr.bf16.mxu1 %v16312_v32 }
 0x942   :  { %13148 = vmatpush3.bf16.msra.mxu1 %v16315_v36  ;;  %v16382_v36 = vld [vmem:[#allocation4 + $0x1] ss:$0 sm:$0xff] }
 0x943   :  { %13150 = vmatprep.subr.bf16.mxu1 %v16318_v27 }
 0x946   :  { %13152 = vmatpush3.bf16.msra.mxu1 %v13087_v47 }
 0x947   :  { %13154 = vmatprep.subr.bf16.mxu1 %v13089_v19 }
 0x94a   :  { %13156 = vmatpush3.bf16.msra.mxu1 %v13091_v12  ;;  %v13807_v12 = vld [vmem:[#allocation24] sm:$0xff]  }
 0x94b   :  { %13158 = vmatprep.subr.bf16.mxu1 %v13093_v22 }
 0x94e   :  { %13160 = vmatpush3.bf16.msra.mxu1 %v13095_v13 }
 0x94f   :  { %13162 = vmatprep.subr.bf16.mxu1 %v13097_v7  ;;  %v13808_v7 = vld [vmem:[#allocation24 + $0x10] sm:$0xff]  }
 0x952   :  { %13164 = vmatpush3.bf16.msra.mxu1 %v13099_v40  ;;  %v13809_v40 = vld [vmem:[#allocation24 + $0x18] sm:$0xff]  }
 0x955   :  { %6236 = vmatmul.mubr.f32.vlgmr.msra.gmra.mrb[122].mxu1 %v16003_v57 }
 0x9c8   :  { %v12012_v28 = vpop.f32.mrb[112].mxu1 }
 0x9c9   :  { %v12013_v1 = vpop.f32.mrb[113].mxu1 }
 0x9ca   :  { %v12014_v2 = vadd.f32 %v12013_v1, %v12012_v28  ;;  %v16418_v1 = vld [vmem:[#allocation4 + $0x5] ss:$0 sm:$0xff] }
 0x9cc   :  { %v12015_v59 = vpop.f32.mrb[114].mxu1  ;;  %v5404_v60 = vadd.f32 %v12014_v2, %v5330_v58 }
 0x9cd   :  { %v12016_v29 = vpop.f32.mrb[115].mxu1 }
 0x9ce   :  { %v12017_v46 = vadd.f32 %v12016_v29, %v12015_v59  ;;  %v13810_v29 = vld [vmem:[#allocation24 + $0x20] sm:$0xff]  }
 0x9d0   :  { %v5409_v14 = vadd.f32 %v12017_v46, %v5335_v42 }
 0x9e8   :  { %v12050_v6 = vpop.f32.mrb[116].mxu1 }
 0x9e9   :  { %v12051_v0 = vpop.f32.mrb[117].mxu1 }
 0x9ea   :  { %v12052_v10 = vadd.f32 %v12051_v0, %v12050_v6  ;;  %v16426_v0 = vld [vmem:[#allocation4 + $0x6] ss:$0 sm:$0xff] }
 0x9ec   :  { %v5479_v17 = vadd.f32 %v12052_v10, %v5404_v60  ;;  %v12053_v25 = vpop.f32.mrb[118].mxu1 }
 0x9ed   :  { %v12054_v45 = vpop.f32.mrb[119].mxu1 }
 0x9ee   :  { %v5487_v57 = vmax.f32 %v5479_v17, 0.0  ;;  %v12055_v5 = vadd.f32 %v12054_v45, %v12053_v25  ;;  %v13811_v17 = vld [vmem:[#allocation24 + $0x28] sm:$0xff]  }
 0x9f0   :  { %v5484_v15 = vadd.f32 %v12055_v5, %v5409_v14  ;;  %5505 = vrot.lane.b32.xlu0 %v5487_v57, %s14615_s13  ;;  %v16360_v55 = vmul.f32 %v16355_v51, %v5487_v57  ;;  %v16434_v14 = vld [vmem:[#allocation4 + $0x7] ss:$0 sm:$0xff] }
 0x9f2   :  { %v5488_v35 = vmax.f32 %v5484_v15, 0.0  ;;  %v13812_v15 = vld [vmem:[#allocation24 + $0x30] sm:$0xff]  }
 0x9f4   :  { %5489 = vrot.lane.b32.xlu0 %v5487_v57, %s14654_s23  ;;  %5507 = vrot.lane.b32.xlu1 %v5488_v35, %s14615_s13  ;;  %v16363_v53 = vmul.f32 %v16355_v51, %v5488_v35 }
 0x9f6   :  { %v5770_v3 = vpack.c.bf16 %v16363_v53, %v16360_v55 }
 0x9f8   :  { %5622 = vrot.lane.b32.xlu0 %v5487_v57, %s14655_s28  ;;  %5491 = vrot.lane.b32.xlu1 %v5488_v35, %s14654_s23 }
 0x9fc   :  { %5691 = vrot.lane.b32.xlu0 %v5487_v57, %s14612_s26  ;;  %5624 = vrot.lane.b32.xlu1 %v5488_v35, %s14655_s28 }
 0xa00   :  { %5825 = vrot.lane.b32.xlu0 %v5487_v57, %s14647_s18  ;;  %5693 = vrot.lane.b32.xlu1 %v5488_v35, %s14612_s26 }
 0xa04   :  { %5894 = vrot.lane.b32.xlu0 %v5487_v57, %s14656_s6  ;;  %5827 = vrot.lane.b32.xlu1 %v5488_v35, %s14647_s18 }
 0xa08   :  { %v12106_v63 = vpop.f32.mrb[120].mxu1  ;;  %5963 = vrot.lane.b32.xlu0 %v5487_v57, %s14657_s27  ;;  %5896 = vrot.lane.b32.xlu1 %v5488_v35, %s14656_s6 }
 0xa09   :  { %v12107_v44 = vpop.f32.mrb[121].mxu1 }
 0xa0a   :  { %v12108_v41 = vadd.f32 %v12107_v44, %v12106_v63 }
 0xa0c   :  { %6032 = vrot.lane.b32.xlu0 %v5487_v57, %s14658_s1  ;;  %5965 = vrot.lane.b32.xlu1 %v5488_v35, %s14657_s27 }
 0xa10   :  { %6248 = vperm.xlu0 %13795, %v6244_v33   ;;  %6034 = vrot.lane.b32.xlu1 %v5488_v35, %s14658_s1 }
 0xa14   :  { %6312 = vperm.xlu0 %13795, %v6308_v18   ;;  %6253 = vperm.xlu1 %13796, %v6245_v39  }
 0xa18   :  { %6317 = vperm.xlu1 %13796, %v6309_v24   ;;  %v13814_v24 = vld [vmem:[#allocation24 + $0x40] sm:$0xff]  }
 0xa28   :  { %v12141_v32 = vpop.f32.mrb[122].mxu1 }
 0xa29   :  { %v12142_v43 = vpop.f32.mrb[123].mxu1 }
 0xa2a   :  { %v12143_v20 = vadd.f32 %v12142_v43, %v12141_v32  ;;  %v13815_v43 = vld [vmem:[#allocation27] sm:$0xff]  }
 0xa2c   :  { %v16380_v8 = vadd.f32 %v12143_v20, %v12108_v41  ;;  %v13813_v41 = vld [vmem:[#allocation24 + $0x38] sm:$0xff]  }
 0xa2e   :  { %v6243_v39 = vpack.c.bf16 %v16380_v8, %v16380_v8 }
 0xa30   :  { %v6265_v32 = vsel %vm1894_vm11, %v6243_v39, 0 }
 0xa62   :  { %v5506_v4 = vpop.permute.xlu0 %5505 }
 0xa63   :  { %v5517_v27 = vmul.f32 %v16382_v36, %v5506_v4 }
 0xa66   :  { %v5508_v16 = vpop.permute.xlu1 %5507  ;;  %v5490_v9 = vpop.permute.xlu0 %5489 }
 0xa67   :  { %v5518_v26 = vmul.f32 %v16382_v36, %v5508_v16  ;;  %v5500_v31 = vmul.f32 %v16386_v38, %v5490_v9 }
 0xa69   :  { %v5519_v23 = vpack.c.bf16 %v5518_v26, %v5517_v27 }
 0xa6a   :  { %v5492_v52 = vpop.permute.xlu1 %5491  ;;  %v5623_v61 = vpop.permute.xlu0 %5622 }
 0xa6b   :  { %v5501_v47 = vmul.f32 %v16386_v38, %v5492_v52  ;;  %12427 = vmatpush3.bf16.msra.mxu0 %v5519_v23  ;;  %v5634_v22 = vmul.f32 %v16395_v37, %v5623_v61  ;;  %v13816_v23 = vld [vmem:[#allocation30 + $0x10] sm:$0xff]  }
 0xa6c   :  { %12432 = vmatprep.subr.bf16.mxu0 %v14652_v62  ;;  %12488 = vmatprep.mubr.msk.bf16.mxu1 %vm5528_vm14, %v13816_v23  ;;  %v13819_v23 = vld [vmem:[#allocation30 + $0x8] sm:$0xff]  }
 0xa6d   :  { %v5502_v19 = vpack.c.bf16 %v5501_v47, %v5500_v31 }
 0xa6e   :  { %12429 = vmatmul.mubr.msk.bf16.vlgmr.msra.gmra.mrb[112].mxu0 %vm5528_vm14, %v13806_v50  ;;  %v5625_v49 = vpop.permute.xlu1 %5624  ;;  %v5692_v54 = vpop.permute.xlu0 %5691 }
 0xa6f   :  { %12433 = vmatpush3.bf16.msra.mxu0 %v5502_v19  ;;  %12434 = vmatprep.mubr.msk.bf16.mxu0 %vm14653_vm13, %v14652_v62  ;;  %v5635_v56 = vmul.f32 %v16395_v37, %v5625_v49  ;;  %v5703_v21 = vmul.f32 %v16403_v48, %v5692_v54  ;;  %v7116_v54 = vld [vmem:[#allocation9 + $0x8] sm:$0xff] }
 0xa70   :  { %12438 = vmatprep.subr.bf16.mxu0 %v14652_v62 }
 0xa71   :  { %v5636_v34 = vpack.c.bf16 %v5635_v56, %v5634_v22  ;;  %v7131_v56 = vld [vmem:[#allocation31] sm:$0xff]  ;;  %v7133_v22 = vld [vmem:[#allocation31 + $0x10] sm:$0xff] }
 0xa72   :  { %v5694_v30 = vpop.permute.xlu1 %5693  ;;  %v5826_v2 = vpop.permute.xlu0 %5825 }
 0xa73   :  { %v5704_v13 = vmul.f32 %v16403_v48, %v5694_v30  ;;  %v5837_v46 = vmul.f32 %v16418_v1, %v5826_v2  ;;  %v7115_v30 = vld [vmem:[#allocation9] sm:$0xff] }
 0xa75   :  { %v5705_v11 = vpack.c.bf16 %v5704_v13, %v5703_v21  ;;  %v16497_v13 = vpack.c.bf16 %v7116_v54, %v7115_v30  ;;  %v7118_v21 = vld [vmem:[#allocation9 + $0x18] sm:$0xff]  ;;  %v13824_v30 = vld [vmem:[#allocation30 + $0x40] sm:$0xff]  }
 0xa76   :  { %v5828_v28 = vpop.permute.xlu1 %5827  ;;  %v5895_v60 = vpop.permute.xlu0 %5894 }
 0xa77   :  { %v5838_v59 = vmul.f32 %v16418_v1, %v5828_v28  ;;  %v5906_v25 = vmul.f32 %v16426_v0, %v5895_v60  ;;  %v7120_v28 = vld [vmem:[#allocation9 + $0x28] sm:$0xff] }
 0xa79   :  { %v5839_v6 = vpack.c.bf16 %v5838_v59, %v5837_v46  ;;  %v7121_v59 = vld [vmem:[#allocation9 + $0x30] sm:$0xff] }
 0xa7a   :  { %12435 = vmatmul.mubr.msk.bf16.vlgmr.msra.gmra.mrb[112].mxu0 %vm5528_vm14, %v13807_v12  ;;  %v5897_v58 = vpop.permute.xlu1 %5896  ;;  %v5964_v57 = vpop.permute.xlu0 %5963  ;;  %v7132_v12 = vld [vmem:[#allocation31 + $0x8] sm:$0xff] }
 0xa7b   :  { %12439 = vmatpush3.bf16.msra.mxu0 %v5636_v34  ;;  %12440 = vmatprep.mubr.msk.bf16.mxu0 %vm14653_vm13, %v14652_v62  ;;  %v5907_v10 = vmul.f32 %v16426_v0, %v5897_v58  ;;  %v5975_v35 = vmul.f32 %v16434_v14, %v5964_v57  ;;  %v7134_v34 = vld [vmem:[#allocation31 + $0x18] sm:$0xff]  ;;  %v7124_v58 = vld [vmem:[#allocation9 + $0x48] sm:$0xff] }
 0xa7c   :  { %12444 = vmatprep.subr.bf16.mxu0 %v14652_v62  ;;  %v7128_v57 = vld [vmem:[#allocation9 + $0x68] sm:$0xff] }
 0xa7d   :  { %v5908_v42 = vpack.c.bf16 %v5907_v10, %v5906_v25  ;;  %v7125_v10 = vld [vmem:[#allocation9 + $0x50] sm:$0xff] }
 0xa7e   :  { %v5966_v45 = vpop.permute.xlu1 %5965  ;;  %v6033_v63 = vpop.permute.xlu0 %6032 }
 0xa7f   :  { %v5976_v5 = vmul.f32 %v16434_v14, %v5966_v45  ;;  %v7127_v45 = vld [vmem:[#allocation9 + $0x60] sm:$0xff] }
 0xa81   :  { %v5977_v55 = vpack.c.bf16 %v5976_v5, %v5975_v35  ;;  %v16521_v5 = vpack.c.bf16 %v7128_v57, %v7127_v45 }
 0xa82   :  { %v6035_v53 = vpop.permute.xlu1 %6034 }
 0xa86   :  { %12441 = vmatmul.mubr.msk.bf16.vlgmr.msra.gmra.mrb[112].mxu0 %vm5528_vm14, %v13808_v7  ;;  %v7117_v7 = vld [vmem:[#allocation9 + $0x10] sm:$0xff] }
 0xa87   :  { %12445 = vmatpush3.bf16.msra.mxu0 %v5705_v11  ;;  %12446 = vmatprep.mubr.msk.bf16.mxu0 %vm14653_vm13, %v14652_v62  ;;  %v16501_v11 = vpack.c.bf16 %v7118_v21, %v7117_v7 }
 0xa88   :  { %12450 = vmatprep.subr.bf16.mxu0 %v14652_v62 }
 0xa8f   :  { %v6249_v20 = vpop.permute.xlu0 %6248 }
 0xa92   :  { %12447 = vmatmul.mubr.msk.bf16.vlgmr.msra.gmra.mrb[112].mxu0 %vm5528_vm14, %v13809_v40  ;;  %v7119_v40 = vld [vmem:[#allocation9 + $0x20] sm:$0xff] }
 0xa93   :  { %12451 = vmatpush3.bf16.msra.mxu0 %v5770_v3  ;;  %12452 = vmatprep.mubr.msk.bf16.mxu0 %vm14653_vm13, %v14652_v62  ;;  %v16442_v3 = vld [vmem:[#allocation4 + $0x8] ss:$0 sm:$0xff]  ;;  %v6254_v4 = vpop.permute.xlu1 %6253  ;;  %v6313_v9 = vpop.permute.xlu0 %6312  ;;  %v16505_v2 = vpack.c.bf16 %v7120_v28, %v7119_v40 }
 0xa94   :  { %12456 = vmatprep.subr.bf16.mxu0 %v14652_v62  ;;  %v6045_v44 = vmul.f32 %v16442_v3, %v6035_v53  ;;  %v6044_v33 = vmul.f32 %v16442_v3, %v6033_v63  ;;  %v7129_v63 = vld [vmem:[#allocation9 + $0x70] sm:$0xff] }
 0xa95   :  { %v13825_v28 = vld [vmem:[#allocation30 + $0x48] sm:$0xff]  }
 0xa96   :  { %v6046_v18 = vpack.c.bf16 %v6045_v44, %v6044_v33  ;;  %v7130_v44 = vld [vmem:[#allocation9 + $0x78] sm:$0xff] }
 0xa97   :  { %v6318_v47 = vpop.permute.xlu1 %6317  ;;  %v16527_v33 = vpack.c.bf16 %v7130_v44, %v7129_v63 }
 0xa9e   :  { %12453 = vmatmul.mubr.msk.bf16.vlgmr.msra.gmra.mrb[112].mxu0 %vm5528_vm14, %v13810_v29  ;;  %v7122_v29 = vld [vmem:[#allocation9 + $0x38] sm:$0xff] }
 0xa9f   :  { %12457 = vmatpush3.bf16.msra.mxu0 %v5839_v6  ;;  %12458 = vmatprep.mubr.msk.bf16.mxu0 %vm14653_vm13, %v14652_v62  ;;  %v16509_v46 = vpack.c.bf16 %v7122_v29, %v7121_v59  ;;  %v7123_v6 = vld [vmem:[#allocation9 + $0x40] sm:$0xff] }
 0xaa0   :  { %12462 = vmatprep.subr.bf16.mxu0 %v14652_v62  ;;  %v16513_v60 = vpack.c.bf16 %v7124_v58, %v7123_v6  ;;  %v13826_v59 = vld [vmem:[#allocation30 + $0x50] sm:$0xff]  }
 0xaaa   :  { %12459 = vmatmul.mubr.msk.bf16.vlgmr.msra.gmra.mrb[112].mxu0 %vm5528_vm14, %v13811_v17  ;;  %v7126_v17 = vld [vmem:[#allocation9 + $0x58] sm:$0xff] }
 0xaab   :  { %12463 = vmatpush3.bf16.msra.mxu0 %v5908_v42  ;;  %12464 = vmatprep.mubr.msk.bf16.mxu0 %vm14653_vm13, %v14652_v62  ;;  %v16517_v25 = vpack.c.bf16 %v7126_v17, %v7125_v10  ;;  %v13827_v17 = vld [vmem:[#allocation30 + $0x58] sm:$0xff]  }
 0xaac   :  { %12468 = vmatprep.subr.bf16.mxu0 %v14652_v62 }
 0xab6   :  { %12465 = vmatmul.mubr.msk.bf16.vlgmr.msra.gmra.mrb[112].mxu0 %vm5528_vm14, %v13812_v15 }
 0xab7   :  { %12469 = vmatpush3.bf16.msra.mxu0 %v5977_v55  ;;  %12470 = vmatprep.mubr.msk.bf16.mxu0 %vm14653_vm13, %v14652_v62 }
 0xab8   :  { %12474 = vmatprep.subr.bf16.mxu0 %v14652_v62 }
 0xac2   :  { %12471 = vmatmul.mubr.msk.bf16.vlgmr.msra.gmra.mrb[112].mxu0 %vm5528_vm14, %v13813_v41 }
 0xac3   :  { %12475 = vmatpush3.bf16.msra.mxu0 %v6046_v18  ;;  %12476 = vmatprep.mubr.msk.bf16.mxu0 %vm14653_vm13, %v14652_v62 }
 0xac4   :  { %12480 = vmatprep.subr.bf16.mxu0 %v14652_v62 }
 0xace   :  { %12477 = vmatmul.mubr.msk.bf16.vlgmr.msra.gmra.mrb[112].mxu0 %vm5528_vm14, %v13814_v24 }
 0xacf   :  { %12481 = vmatpush3.bf16.msra.mxu0 %v6265_v32  ;;  %12482 = vmatprep.mubr.msk.bf16.mxu0 %vm14653_vm13, %v14652_v62  ;;  %v13817_v32 = vld [vmem:[#allocation30 + $0x18] sm:$0xff]  }
 0xad0   :  { %13166 = vmatprep.subr.bf16.mxu0 %v16497_v13 }
 0xada   :  { %12483 = vmatmul.mubr.msk.bf16.vlgmr.msra.gmra.mrb[112].mxu0 %vm1890_vm12, %v13815_v43  ;;  %v13818_v43 = vld [vmem:[#allocation30] sm:$0xff]  }
 0xadb   :  { %13168 = vmatpush3.bf16.msra.mxu0 %v16497_v13 }
 0xadc   :  { %13170 = vmatprep.subr.bf16.mxu0 %v16501_v11 }
 0xadf   :  { %13172 = vmatpush3.bf16.msra.mxu0 %v16501_v11 }
 0xae0   :  { %13174 = vmatprep.subr.bf16.mxu0 %v16505_v2 }
 0xae3   :  { %13176 = vmatpush3.bf16.msra.mxu0 %v16505_v2 }
 0xae4   :  { %13178 = vmatprep.subr.bf16.mxu0 %v16509_v46 }
 0xae7   :  { %13180 = vmatpush3.bf16.msra.mxu0 %v16509_v46 }
 0xae8   :  { %13182 = vmatprep.subr.bf16.mxu0 %v16513_v60 }
 0xaeb   :  { %13184 = vmatpush3.bf16.msra.mxu0 %v16513_v60 }
 0xaec   :  { %13186 = vmatprep.subr.bf16.mxu0 %v16517_v25 }
 0xaef   :  { %13188 = vmatpush3.bf16.msra.mxu0 %v16517_v25 }
 0xaf0   :  { %13190 = vmatprep.subr.bf16.mxu0 %v16521_v5 }
 0xaf3   :  { %13192 = vmatpush3.bf16.msra.mxu0 %v16521_v5 }
 0xaf4   :  { %13194 = vmatprep.subr.bf16.mxu0 %v16527_v33 }
 0xaf7   :  { %13196 = vmatpush3.bf16.msra.mxu0 %v16527_v33 }
 0xbad   :  { %v6301_v16 = vpop.f32.mrb[112].mxu0 }
 0xbae   :  { %v6302_v27 = vadd.f32 %v6301_v16, %v6249_v20  ;;  %v12484_v26 = vpop.f32.mrb[113].mxu0 }
 0xbaf   :  { %v6304_v8 = vpop.f32.mrb[114].mxu0 }
 0xbb0   :  { %v13294_v52 = vadd.f32 %v6313_v9, %v6302_v27  ;;  %v6305_v50 = vadd.f32 %v6304_v8, %v6254_v4  ;;  %v12485_v31 = vpop.f32.mrb[115].mxu0 }
 0xbb2   :  { %v16458_v19 = vmax.f32 %v13294_v52, 0.0  ;;  %v13296_v62 = vadd.f32 %v6318_v47, %v6305_v50  ;;  %v13820_v52 = vld [vmem:[#allocation30 + $0x20] sm:$0xff]  }
 0xbb4   :  { %v16460_v49 = vmax.f32 %v13296_v62, 0.0  ;;  %6354 = vrot.lane.b32.xlu0 %v16458_v19, %s14615_s13  ;;  %v13822_v62 = vld [vmem:[#allocation30 + $0x30] sm:$0xff]  }
 0xbb6   :  { %v11944_v61 = vpack.c.bf16 %v16460_v49, %v16458_v19  ;;  %6356 = vrot.lane.b32.xlu1 %v16460_v49, %s14615_s13  ;;  %v6687_v47 = vmul.f32 %v16355_v51, %v16460_v49  ;;  %s14659_s13 = smov 5  }
 0xbb8   :  { %11945 = vst [vmem:[%s14844_s29] sm:$0xff] %v11944_v61   ;;  %6336 = vrot.lane.b32.xlu0 %v16458_v19, %s14654_s23  ;;  %v6686_v61 = vmul.f32 %v16355_v51, %v16458_v19  ;;  %s17198_s29 = sld [smem:[#allocation71_spill]] }
 0xbba   :  { %6338 = vrot.lane.b32.xlu1 %v16460_v49, %s14654_s23 }
 0xbbc   :  { %6503 = vrot.lane.b32.xlu0 %v16458_v19, %s14655_s28 }
 0xbbe   :  { %6505 = vrot.lane.b32.xlu1 %v16460_v49, %s14655_s28 }
 0xbc0   :  { %6591 = vrot.lane.b32.xlu0 %v16458_v19, %s14612_s26 }
 0xbc2   :  { %6593 = vrot.lane.b32.xlu1 %v16460_v49, %s14612_s26 }
 0xbc4   :  { %6763 = vrot.lane.b32.xlu0 %v16458_v19, %s14647_s18 }
 0xbc6   :  { %6765 = vrot.lane.b32.xlu1 %v16460_v49, %s14647_s18 }
 0xbc8   :  { %6851 = vrot.lane.b32.xlu0 %v16458_v19, %s14656_s6 }
 0xbca   :  { %6853 = vrot.lane.b32.xlu1 %v16460_v49, %s14656_s6 }
 0xbcc   :  { %6939 = vrot.lane.b32.xlu0 %v16458_v19, %s14657_s27 }
 0xbce   :  { %6941 = vrot.lane.b32.xlu1 %v16460_v49, %s14657_s27 }
 0xbd0   :  { %7027 = vrot.lane.b32.xlu0 %v16458_v19, %s14658_s1 }
 0xbd2   :  { %7029 = vrot.lane.b32.xlu1 %v16460_v49, %s14658_s1 }
 0xbd4   :  { %7137 = vperm.xlu0 %13795, %v7131_v56   ;;  %v6688_v56 = vpack.c.bf16 %v6687_v47, %v6686_v61  ;;  %v8172_v61 = vld [vmem:[#allocation36 + $0x8] sm:$0xff] }
 0xbd6   :  { %7142 = vperm.xlu1 %13796, %v7132_v12  }
 0xbd8   :  { %7147 = vperm.xlu0 %13795, %v7133_v22  }
 0xbda   :  { %7152 = vperm.xlu1 %13796, %v7134_v34   ;;  %v13823_v34 = vld [vmem:[#allocation30 + $0x38] sm:$0xff]  }
 0xc26   :  { %v6355_v42 = vpop.permute.xlu0 %6354 }
 0xc27   :  { %v6365_v35 = vmul.f32 %v16382_v36, %v6355_v42  ;;  %v13828_v42 = vld [vmem:[#allocation30 + $0x60] sm:$0xff]  }
 0xc28   :  { %v6357_v15 = vpop.permute.xlu1 %6356 }
 0xc29   :  { %v6366_v55 = vmul.f32 %v16382_v36, %v6357_v15 }
 0xc2a   :  { %v6337_v53 = vpop.permute.xlu0 %6336 }
 0xc2b   :  { %v6367_v41 = vpack.c.bf16 %v6366_v55, %v6365_v35  ;;  %v6347_v39 = vmul.f32 %v16386_v38, %v6337_v53  ;;  %v13829_v55 = vld [vmem:[#allocation30 + $0x68] sm:$0xff]   ;;  %v13830_v53 = vld [vmem:[#allocation30 + $0x70] sm:$0xff]  }
 0xc2c   :  { %v6339_v18 = vpop.permute.xlu1 %6338 }
 0xc2d   :  { %v6348_v24 = vmul.f32 %v16386_v38, %v6339_v18  ;;  %12486 = vmatprep.subr.bf16.mxu1 %v6367_v41  ;;  %v13833_v18 = vld [vmem:[#allocation30 + $0x88] sm:$0xff]  }
 0xc2e   :  { %v6504_v36 = vpop.permute.xlu0 %6503  ;;  %12487 = vmatpush3.bf16.msra.mxu1 %v6367_v41  ;;  %v13832_v41 = vld [vmem:[#allocation30 + $0x80] sm:$0xff]  }
 0xc2f   :  { %v6349_v20 = vpack.c.bf16 %v6348_v24, %v6347_v39  ;;  %v6514_v16 = vmul.f32 %v16395_v37, %v6504_v36 }
 0xc30   :  { %v6506_v4 = vpop.permute.xlu1 %6505 }
 0xc31   :  { %v6515_v27 = vmul.f32 %v16395_v37, %v6506_v4  ;;  %12489 = vmatmul.mubr.msk.bf16.vlgmr.msra.gmra.mrb[124].mxu1 %vm5528_vm14, %v13817_v32  ;;  %12492 = vmatprep.subr.bf16.mxu1 %v6349_v20  ;;  %v13821_v37 = vld [vmem:[#allocation30 + $0x28] sm:$0xff]  }
 0xc32   :  { %12493 = vmatpush3.bf16.msra.mxu1 %v6349_v20  ;;  %12494 = vmatprep.mubr.msk.bf16.mxu1 %vm5528_vm14, %v13818_v43  ;;  %v6592_v9 = vpop.permute.xlu0 %6591  ;;  %v13834_v43 = vld [vmem:[%s17198_s29 + $0x10] sm:$0xff]  }
 0xc33   :  { %v6516_v38 = vpack.c.bf16 %v6515_v27, %v6514_v16  ;;  %v6602_v50 = vmul.f32 %v16403_v48, %v6592_v9 }
 0xc34   :  { %v6594_v26 = vpop.permute.xlu1 %6593 }
 0xc35   :  { %12498 = vmatprep.subr.bf16.mxu1 %v6516_v38  ;;  %v6603_v8 = vmul.f32 %v16403_v48, %v6594_v26 }
 0xc36   :  { %v6764_v12 = vpop.permute.xlu0 %6763 }
 0xc37   :  { %v6604_v31 = vpack.c.bf16 %v6603_v8, %v6602_v50  ;;  %v6774_v54 = vmul.f32 %v16418_v1, %v6764_v12  ;;  %v8260_v12 = vld [vmem:[#allocation33] sm:$0xff] }
 0xc38   :  { %v6766_v48 = vpop.permute.xlu1 %6765 }
 0xc39   :  { %v6775_v22 = vmul.f32 %v16418_v1, %v6766_v48  ;;  %v8261_v48 = vld [vmem:[#allocation33 + $0x8] sm:$0xff] }
 0xc3a   :  { %v6852_v21 = vpop.permute.xlu0 %6851 }
 0xc3b   :  { %v6776_v7 = vpack.c.bf16 %v6775_v22, %v6774_v54  ;;  %v6862_v29 = vmul.f32 %v16426_v0, %v6852_v21  ;;  %v8174_v22 = vld [vmem:[#allocation36 + $0x18] sm:$0xff]  ;;  %v8262_v54 = vld [vmem:[#allocation33 + $0x10] sm:$0xff] }
 0xc3c   :  { %v6854_v51 = vpop.permute.xlu1 %6853 }
 0xc3d   :  { %12495 = vmatmul.mubr.msk.bf16.vlgmr.msra.gmra.mrb[124].mxu1 %vm5528_vm14, %v13819_v23  ;;  %v6863_v40 = vmul.f32 %v16426_v0, %v6854_v51 }
 0xc3e   :  { %12499 = vmatpush3.bf16.msra.mxu1 %v6516_v38  ;;  %12500 = vmatprep.mubr.msk.bf16.mxu1 %vm5528_vm14, %v13820_v52  ;;  %v6940_v58 = vpop.permute.xlu0 %6939 }
 0xc3f   :  { %12504 = vmatprep.subr.bf16.mxu1 %v6604_v31  ;;  %v6864_v6 = vpack.c.bf16 %v6863_v40, %v6862_v29  ;;  %v6950_v45 = vmul.f32 %v16434_v14, %v6940_v58 }
 0xc40   :  { %v6942_v1 = vpop.permute.xlu1 %6941 }
 0xc41   :  { %v6951_v10 = vmul.f32 %v16434_v14, %v6942_v1  ;;  %v13831_v14 = vld [vmem:[#allocation30 + $0x78] sm:$0xff]  }
 0xc42   :  { %v7028_v15 = vpop.permute.xlu0 %7027 }
 0xc43   :  { %v6952_v57 = vpack.c.bf16 %v6951_v10, %v6950_v45  ;;  %v7038_v63 = vmul.f32 %v16442_v3, %v7028_v15  ;;  %v16636_v10 = vld [vmem:[#allocation6] ss:$0 sm:$0xff]  ;;  %v13835_v15 = vld [vmem:[%s17198_s29 + $0x18] sm:$0xff]  }
 0xc44   :  { %v7030_v0 = vpop.permute.xlu1 %7029 }
 0xc45   :  { %v7039_v35 = vmul.f32 %v16442_v3, %v7030_v0 }
 0xc47   :  { %v7040_v44 = vpack.c.bf16 %v7039_v35, %v7038_v63  ;;  %v13836_v35 = vld [vmem:[%s17198_s29] sm:$0xff]  }
 0xc49   :  { %12501 = vmatmul.mubr.msk.bf16.vlgmr.msra.gmra.mrb[124].mxu1 %vm5528_vm14, %v13821_v37 }
 0xc4a   :  { %12505 = vmatpush3.bf16.msra.mxu1 %v6604_v31  ;;  %12506 = vmatprep.mubr.msk.bf16.mxu1 %vm5528_vm14, %v13822_v62 }
 0xc4b   :  { %12510 = vmatprep.subr.bf16.mxu1 %v6688_v56 }
 0xc55   :  { %12507 = vmatmul.mubr.msk.bf16.vlgmr.msra.gmra.mrb[124].mxu1 %vm5528_vm14, %v13823_v34  ;;  %v8173_v34 = vld [vmem:[#allocation36 + $0x10] sm:$0xff] }
 0xc56   :  { %12511 = vmatpush3.bf16.msra.mxu1 %v6688_v56  ;;  %12512 = vmatprep.mubr.msk.bf16.mxu1 %vm5528_vm14, %v13824_v30  ;;  %v8171_v56 = vld [vmem:[#allocation36] sm:$0xff]  ;;  %v8263_v30 = vld [vmem:[#allocation33 + $0x18] sm:$0xff] }
 0xc57   :  { %12516 = vmatprep.subr.bf16.mxu1 %v6776_v7 }
 0xc61   :  { %12513 = vmatmul.mubr.msk.bf16.vlgmr.msra.gmra.mrb[124].mxu1 %vm5528_vm14, %v13825_v28 }
 0xc62   :  { %12517 = vmatpush3.bf16.msra.mxu1 %v6776_v7  ;;  %12518 = vmatprep.mubr.msk.bf16.mxu1 %vm5528_vm14, %v13826_v59  ;;  %v16630_v7 = vld [vmem:[#allocation6 + $0x1] ss:$0 sm:$0xff] }
 0xc63   :  { %12522 = vmatprep.subr.bf16.mxu1 %v6864_v6 }
 0xc6d   :  { %12519 = vmatmul.mubr.msk.bf16.vlgmr.msra.gmra.mrb[124].mxu1 %vm5528_vm14, %v13827_v17 }
 0xc6e   :  { %12523 = vmatpush3.bf16.msra.mxu1 %v6864_v6  ;;  %12524 = vmatprep.mubr.msk.bf16.mxu1 %vm5528_vm14, %v13828_v42 }
 0xc6f   :  { %12528 = vmatprep.subr.bf16.mxu1 %v6952_v57 }
 0xc79   :  { %12525 = vmatmul.mubr.msk.bf16.vlgmr.msra.gmra.mrb[124].mxu1 %vm5528_vm14, %v13829_v55 }
 0xc7a   :  { %12529 = vmatpush3.bf16.msra.mxu1 %v6952_v57  ;;  %12530 = vmatprep.mubr.msk.bf16.mxu1 %vm5528_vm14, %v13830_v53 }
 0xc7b   :  { %12534 = vmatprep.subr.bf16.mxu1 %v7040_v44 }
 0xc85   :  { %12531 = vmatmul.mubr.msk.bf16.vlgmr.msra.gmra.mrb[124].mxu1 %vm5528_vm14, %v13831_v14 }
 0xc86   :  { %12535 = vmatpush3.bf16.msra.mxu1 %v7040_v44  ;;  %12536 = vmatprep.mubr.msk.bf16.mxu1 %vm5528_vm14, %v13832_v41  ;;  %v16645_v41 = vld [vmem:[#allocation6 + $0x2] ss:$0 sm:$0xff] }
 0xc87   :  { %13198 = vmatprep.subr.bf16.mxu1 %v16497_v13 }
 0xc91   :  { %12537 = vmatmul.mubr.msk.bf16.vlgmr.msra.gmra.mrb[124].mxu1 %vm5528_vm14, %v13833_v18 }
 0xc92   :  { %13200 = vmatpush3.bf16.msra.mxu1 %v16497_v13  ;;  %12682 = vmatprep.mubr.f32.mxu1 %v16458_v19 }
 0xc93   :  { %13202 = vmatprep.subr.bf16.mxu1 %v16501_v11 }
 0xc96   :  { %13204 = vmatpush3.bf16.msra.mxu1 %v16501_v11 }
 0xc97   :  { %13206 = vmatprep.subr.bf16.mxu1 %v16505_v2 }
 0xc9a   :  { %13208 = vmatpush3.bf16.msra.mxu1 %v16505_v2 }
 0xc9b   :  { %13210 = vmatprep.subr.bf16.mxu1 %v16509_v46 }
 0xc9e   :  { %13212 = vmatpush3.bf16.msra.mxu1 %v16509_v46 }
 0xc9f   :  { %13214 = vmatprep.subr.bf16.mxu1 %v16513_v60 }
 0xca2   :  { %13216 = vmatpush3.bf16.msra.mxu1 %v16513_v60 }
 0xca3   :  { %13218 = vmatprep.subr.bf16.mxu1 %v16517_v25 }
 0xca6   :  { %13220 = vmatpush3.bf16.msra.mxu1 %v16517_v25  ;;  %v7143_v25 = vpop.permute.xlu1 %7142 }
 0xca7   :  { %13222 = vmatprep.subr.bf16.mxu1 %v16521_v5 }
 0xcaa   :  { %13224 = vmatpush3.bf16.msra.mxu1 %v16521_v5  ;;  %v7138_v5 = vpop.permute.xlu0 %7137  ;;  %v7153_v20 = vpop.permute.xlu1 %7152 }
 0xcab   :  { %13226 = vmatprep.subr.bf16.mxu1 %v16527_v33 }
 0xcae   :  { %13228 = vmatpush3.bf16.msra.mxu1 %v16527_v33  ;;  %v7148_v27 = vpop.permute.xlu0 %7147 }
 0xcb1   :  { %12683 = vmatmul.mubr.f32.vlgmr.msra.gmra.mrb[128].mxu1 %v16460_v49  ;;  %v16586_v49 = vld [vmem:[#allocation6 + $0x4] ss:$0 sm:$0xff] }
 0xd64   :  { %v12538_v3 = vpop.f32.mrb[124].mxu1 }
 0xd65   :  { %v7096_v19 = vpop.f32.mrb[125].mxu1 }
 0xd66   :  { %v12539_v13 = vpop.f32.mrb[126].mxu1  ;;  %12572 = vmatprep.mubr.f32.mxu0 %v7096_v19 }
 0xd67   :  { %v7099_v11 = vpop.f32.mrb[127].mxu1 }
 0xd68   :  { %12573 = vmatmul.mubr.f32.vlgmr.msra.gmra.mrb[116].mxu0 %v7099_v11 }
 0xd69   :  { %12575 = vmatprep.mubr.f32.mxu0 %v12538_v3 }
 0xd6c   :  { %12576 = vmatmul.mubr.f32.gmra.mrb[118].mxu0 %v12539_v13 }
 0xd6d   :  { %12582 = vmatprep.mubr.msk.bf16.mxu0 %vm7306_vm15, %v13834_v43 }
 0xd84   :  { %v12684_v2 = vpop.f32.mrb[128].mxu1 }
 0xd85   :  { %v8157_v46 = vpop.f32.mrb[129].mxu1 }
 0xd86   :  { %v16584_v60 = vpack.c.bf16 %v12684_v2, %v8157_v46 }
 0xe3b   :  { %v12574_v39 = vpop.f32.mrb[116].mxu0 }
 0xe3c   :  { %v7227_v24 = vadd.f32 %v12574_v39, %v7143_v25  ;;  %v7221_v33 = vpop.f32.mrb[117].mxu0 }
 0xe3d   :  { %v7222_v32 = vadd.f32 %v7221_v33, %v7138_v5  ;;  %v13837_v33 = vld [vmem:[%s17198_s29 + $0x8] sm:$0xff]  }
 0xe3e   :  { %v7241_v36 = vmax.f32 %v7227_v24, 0.0  ;;  %v16652_v24 = vld [vmem:[#allocation6 + $0x3] ss:$0 sm:$0xff] }
 0xe3f   :  { %v7240_v4 = vmax.f32 %v7222_v32, 0.0  ;;  %v12577_v16 = vpop.f32.mrb[118].mxu0  ;;  %v13838_v32 = vld [vmem:[%s17198_s29 + $0x20] sm:$0xff]  }
 0xe40   :  { %v7237_v38 = vadd.f32 %v12577_v16, %v7153_v20  ;;  %7271 = vrot.lane.b32.xlu1 %v7241_v36, %s14627_s25  ;;  %v7231_v26 = vpop.f32.mrb[119].mxu0  ;;  %v7628_v9 = vmul.f32 %v16586_v49, %v7241_v36 }
 0xe41   :  { %v7232_v8 = vadd.f32 %v7231_v26, %v7148_v27  ;;  %7269 = vrot.lane.b32.xlu0 %v7240_v4, %s14627_s25  ;;  %v7627_v23 = vmul.f32 %v16586_v49, %v7240_v4 }
 0xe42   :  { %v7243_v52 = vmax.f32 %v7237_v38, 0.0 }
 0xe43   :  { %v7242_v50 = vmax.f32 %v7232_v8, 0.0  ;;  %v16594_v31 = vpack.c.bf16 %v7628_v9, %v7627_v23  ;;  %v13839_v23 = vld [vmem:[%s17198_s29 + $0x28] sm:$0xff]  }
 0xe44   :  { %7275 = vrot.lane.b32.xlu1 %v7243_v52, %s14627_s25  ;;  %v7630_v37 = vmul.f32 %v16586_v49, %v7243_v52 }
 0xe45   :  { %7273 = vrot.lane.b32.xlu0 %v7242_v50, %s14627_s25  ;;  %v7629_v47 = vmul.f32 %v16586_v49, %v7242_v50 }
 0xe47   :  { %v16600_v62 = vpack.c.bf16 %v7630_v37, %v7629_v47  ;;  %v13841_v37 = vld [vmem:[%s17198_s29 + $0x38] sm:$0xff]   ;;  %v16668_v47 = vld [vmem:[#allocation6 + $0x5] ss:$0 sm:$0xff] }
 0xe48   :  { %7246 = vrot.lane.b32.xlu1 %v7241_v36, %s14659_s13 }
 0xe49   :  { %7244 = vrot.lane.b32.xlu0 %v7240_v4, %s14659_s13 }
 0xe4c   :  { %7250 = vrot.lane.b32.xlu1 %v7243_v52, %s14659_s13 }
 0xe4d   :  { %7248 = vrot.lane.b32.xlu0 %v7242_v50, %s14659_s13 }
 0xe50   :  { %7429 = vrot.lane.b32.xlu1 %v7241_v36, %s14660_s20 }
 0xe51   :  { %7427 = vrot.lane.b32.xlu0 %v7240_v4, %s14660_s20 }
 0xe54   :  { %7433 = vrot.lane.b32.xlu1 %v7243_v52, %s14660_s20 }
 0xe55   :  { %7431 = vrot.lane.b32.xlu0 %v7242_v50, %s14660_s20 }
 0xe58   :  { %7525 = vrot.lane.b32.xlu1 %v7241_v36, %s14612_s26 }
 0xe59   :  { %7523 = vrot.lane.b32.xlu0 %v7240_v4, %s14612_s26 }
 0xe5c   :  { %7529 = vrot.lane.b32.xlu1 %v7243_v52, %s14612_s26 }
 0xe5d   :  { %7527 = vrot.lane.b32.xlu0 %v7242_v50, %s14612_s26 }
 0xe60   :  { %7709 = vrot.lane.b32.xlu1 %v7241_v36, %s14647_s18 }
 0xe61   :  { %7707 = vrot.lane.b32.xlu0 %v7240_v4, %s14647_s18 }
 0xe64   :  { %7713 = vrot.lane.b32.xlu1 %v7243_v52, %s14647_s18 }
 0xe65   :  { %7711 = vrot.lane.b32.xlu0 %v7242_v50, %s14647_s18 }
 0xe68   :  { %7805 = vrot.lane.b32.xlu1 %v7241_v36, %s14661_s2 }
 0xe69   :  { %7803 = vrot.lane.b32.xlu0 %v7240_v4, %s14661_s2 }
 0xe6c   :  { %7809 = vrot.lane.b32.xlu1 %v7243_v52, %s14661_s2 }
 0xe6d   :  { %7807 = vrot.lane.b32.xlu0 %v7242_v50, %s14661_s2 }
 0xe70   :  { %7901 = vrot.lane.b32.xlu1 %v7241_v36, %s14662_s3 }
 0xe71   :  { %7899 = vrot.lane.b32.xlu0 %v7240_v4, %s14662_s3 }
 0xe74   :  { %7905 = vrot.lane.b32.xlu1 %v7243_v52, %s14662_s3 }
 0xe75   :  { %7903 = vrot.lane.b32.xlu0 %v7242_v50, %s14662_s3 }
 0xe78   :  { %7997 = vrot.lane.b32.xlu1 %v7241_v36, %s14663_s7 }
 0xe79   :  { %7995 = vrot.lane.b32.xlu0 %v7240_v4, %s14663_s7 }
 0xe7c   :  { %8001 = vrot.lane.b32.xlu1 %v7243_v52, %s14663_s7  ;;  %v13840_v52 = vld [vmem:[%s17198_s29 + $0x30] sm:$0xff]  }
 0xe7d   :  { %7999 = vrot.lane.b32.xlu0 %v7242_v50, %s14663_s7 }
 0xe80   :  { %8182 = vperm.xlu1 %13796, %v8172_v61  }
 0xe81   :  { %8177 = vperm.xlu0 %13795, %v8171_v56  }
 0xe84   :  { %8271 = vperm.xlu1 %13796, %v8261_v48   ;;  %v13842_v48 = vld [vmem:[%s17198_s29 + $0x40] sm:$0xff]  }
 0xe85   :  { %8266 = vperm.xlu0 %13795, %v8260_v12  }
 0xe88   :  { %8192 = vperm.xlu1 %13796, %v8174_v22  }
 0xe89   :  { %8187 = vperm.xlu0 %13795, %v8173_v34  }
 0xe8c   :  { %8281 = vperm.xlu1 %13796, %v8263_v30  }
 0xe8d   :  { %8276 = vperm.xlu0 %13795, %v8262_v54  }
 0xeb2   :  { %v7272_v51 = vpop.permute.xlu1 %7271 }
 0xeb3   :  { %v7286_v21 = vmul.f32 %v16630_v7, %v7272_v51  ;;  %v7270_v40 = vpop.permute.xlu0 %7269 }
 0xeb4   :  { %v7285_v28 = vmul.f32 %v16630_v7, %v7270_v40  ;;  %v13843_v40 = vld [vmem:[%s17198_s29 + $0x48] sm:$0xff]  }
 0xeb6   :  { %v7289_v59 = vpack.c.bf16 %v7286_v21, %v7285_v28  ;;  %v7276_v29 = vpop.permute.xlu1 %7275  ;;  %v16681_v28 = vld [vmem:[#allocation6 + $0x6] ss:$0 sm:$0xff] }
 0xeb7   :  { %v7288_v6 = vmul.f32 %v16630_v7, %v7276_v29  ;;  %v7274_v1 = vpop.permute.xlu0 %7273 }
 0xeb8   :  { %v7287_v58 = vmul.f32 %v16630_v7, %v7274_v1  ;;  %12578 = vmatprep.subr.bf16.mxu0 %v7289_v59 }
 0xeb9   :  { %12579 = vmatpush3.bf16.msra.mxu0 %v7289_v59 }
 0xeba   :  { %v7290_v17 = vpack.c.bf16 %v7288_v6, %v7287_v58  ;;  %v7247_v42 = vpop.permute.xlu1 %7246 }
 0xebb   :  { %v7260_v45 = vmul.f32 %v16636_v10, %v7247_v42  ;;  %v7245_v57 = vpop.permute.xlu0 %7244 }
 0xebc   :  { %v7259_v0 = vmul.f32 %v16636_v10, %v7245_v57  ;;  %12580 = vmatprep.subr.bf16.mxu0 %v7290_v17 }
 0xebd   :  { %12581 = vmatpush3.bf16.msra.mxu0 %v7290_v17 }
 0xebe   :  { %v7263_v55 = vpack.c.bf16 %v7260_v45, %v7259_v0  ;;  %v7251_v53 = vpop.permute.xlu1 %7250  ;;  %v13845_v0 = vld [vmem:[%s17198_s29 + $0x58] sm:$0xff]  }
 0xebf   :  { %v7262_v63 = vmul.f32 %v16636_v10, %v7251_v53  ;;  %v7249_v44 = vpop.permute.xlu0 %7248  ;;  %v13846_v53 = vld [vmem:[%s17198_s29 + $0x60] sm:$0xff]  }
 0xec0   :  { %v7261_v14 = vmul.f32 %v16636_v10, %v7249_v44  ;;  %12583 = vmatmul.mubr.msk.bf16.vlgmr.msra.gmra.mrb[120].mxu0 %vm7306_vm15, %v13835_v15  ;;  %12586 = vmatprep.subr.bf16.mxu0 %v7263_v55  ;;  %v16691_v15 = vld [vmem:[#allocation6 + $0x7] ss:$0 sm:$0xff] }
 0xec1   :  { %12587 = vmatpush3.bf16.msra.mxu0 %v7263_v55  ;;  %12590 = vmatprep.mubr.msk.bf16.mxu0 %vm7306_vm15, %v13836_v35 }
 0xec2   :  { %v7264_v18 = vpack.c.bf16 %v7262_v63, %v7261_v14  ;;  %v7430_v3 = vpop.permute.xlu1 %7429 }
 0xec3   :  { %v7444_v19 = vmul.f32 %v16645_v41, %v7430_v3  ;;  %v7428_v13 = vpop.permute.xlu0 %7427 }
 0xec4   :  { %v7443_v11 = vmul.f32 %v16645_v41, %v7428_v13  ;;  %12588 = vmatprep.subr.bf16.mxu0 %v7264_v18 }
 0xec5   :  { %12589 = vmatpush3.bf16.msra.mxu0 %v7264_v18 }
 0xec6   :  { %v7447_v2 = vpack.c.bf16 %v7444_v19, %v7443_v11  ;;  %v7434_v46 = vpop.permute.xlu1 %7433 }
 0xec7   :  { %v7446_v25 = vmul.f32 %v16645_v41, %v7434_v46  ;;  %v7432_v5 = vpop.permute.xlu0 %7431  ;;  %v16701_v46 = vld [vmem:[#allocation6 + $0x8] ss:$0 sm:$0xff] }
 0xec8   :  { %v7445_v39 = vmul.f32 %v16645_v41, %v7432_v5  ;;  %12594 = vmatprep.subr.bf16.mxu0 %v7447_v2 }
 0xeca   :  { %v7448_v36 = vpack.c.bf16 %v7446_v25, %v7445_v39  ;;  %v7526_v43 = vpop.permute.xlu1 %7525  ;;  %v13848_v39 = vld [vmem:[%s17198_s29 + $0x70] sm:$0xff]  }
 0xecb   :  { %v7540_v20 = vmul.f32 %v16652_v24, %v7526_v43  ;;  %v7524_v4 = vpop.permute.xlu0 %7523 }
 0xecc   :  { %v7539_v16 = vmul.f32 %v16652_v24, %v7524_v4  ;;  %12591 = vmatmul.mubr.msk.bf16.vlgmr.msra.gmra.mrb[120].mxu0 %vm7306_vm15, %v13837_v33 }
 0xecd   :  { %12595 = vmatpush3.bf16.msra.mxu0 %v7447_v2  ;;  %12598 = vmatprep.mubr.msk.bf16.mxu0 %vm7306_vm15, %v13838_v32  ;;  %v13847_v2 = vld [vmem:[%s17198_s29 + $0x68] sm:$0xff]  }
 0xece   :  { %v7543_v27 = vpack.c.bf16 %v7540_v20, %v7539_v16  ;;  %12596 = vmatprep.subr.bf16.mxu0 %v7448_v36  ;;  %v7530_v38 = vpop.permute.xlu1 %7529 }
 0xecf   :  { %v7528_v26 = vpop.permute.xlu0 %7527  ;;  %v7542_v9 = vmul.f32 %v16652_v24, %v7530_v38  ;;  %v13849_v38 = vld [vmem:[%s17198_s29 + $0x78] sm:$0xff]  }
 0xed0   :  { %v7541_v8 = vmul.f32 %v16652_v24, %v7528_v26  ;;  %v13850_v26 = vld [vmem:[%s17198_s29 + $0x80] sm:$0xff]  }
 0xed1   :  { %12597 = vmatpush3.bf16.msra.mxu0 %v7448_v36 }
 0xed2   :  { %12602 = vmatprep.subr.bf16.mxu0 %v7543_v27  ;;  %v7544_v50 = vpack.c.bf16 %v7542_v9, %v7541_v8  ;;  %v7710_v61 = vpop.permute.xlu1 %7709  ;;  %v13851_v8 = vld [vmem:[%s17198_s29 + $0x88] sm:$0xff]  }
 0xed3   :  { %v7708_v56 = vpop.permute.xlu0 %7707  ;;  %v7724_v12 = vmul.f32 %v16668_v47, %v7710_v61 }
 0xed4   :  { %v7723_v22 = vmul.f32 %v16668_v47, %v7708_v56 }
 0xed6   :  { %v7714_v34 = vpop.permute.xlu1 %7713  ;;  %v7727_v54 = vpack.c.bf16 %v7724_v12, %v7723_v22 }
 0xed7   :  { %v7712_v30 = vpop.permute.xlu0 %7711  ;;  %v7726_v51 = vmul.f32 %v16668_v47, %v7714_v34 }
 0xed8   :  { %12599 = vmatmul.mubr.msk.bf16.vlgmr.msra.gmra.mrb[120].mxu0 %vm7306_vm15, %v13839_v23  ;;  %v7725_v21 = vmul.f32 %v16668_v47, %v7712_v30  ;;  %v13852_v23 = vld [vmem:[#allocation34] sm:$0xff]  }
 0xed9   :  { %12603 = vmatpush3.bf16.msra.mxu0 %v7543_v27  ;;  %12606 = vmatprep.mubr.msk.bf16.mxu0 %vm7306_vm15, %v13840_v52  ;;  %v13853_v52 = vld [vmem:[#allocation34 + $0x8] sm:$0xff]  }
 0xeda   :  { %12604 = vmatprep.subr.bf16.mxu0 %v7544_v50  ;;  %v7806_v59 = vpop.permute.xlu1 %7805  ;;  %v7728_v6 = vpack.c.bf16 %v7726_v51, %v7725_v21 }
 0xedb   :  { %v7804_v29 = vpop.permute.xlu0 %7803  ;;  %v7820_v1 = vmul.f32 %v16681_v28, %v7806_v59 }
 0xedc   :  { %v7819_v58 = vmul.f32 %v16681_v28, %v7804_v29 }
 0xedd   :  { %12605 = vmatpush3.bf16.msra.mxu0 %v7544_v50 }
 0xede   :  { %12610 = vmatprep.subr.bf16.mxu0 %v16594_v31  ;;  %v7823_v42 = vpack.c.bf16 %v7820_v1, %v7819_v58 }
 0xedf   :  { %v7808_v17 = vpop.permute.xlu0 %7807 }
 0xee0   :  { %v7821_v57 = vmul.f32 %v16681_v28, %v7808_v17 }
 0xee3   :  { %v7900_v55 = vpop.permute.xlu0 %7899 }
 0xee4   :  { %12607 = vmatmul.mubr.msk.bf16.vlgmr.msra.gmra.mrb[120].mxu0 %vm7306_vm15, %v13841_v37  ;;  %v7915_v14 = vmul.f32 %v16691_v15, %v7900_v55  ;;  %v9522_v55 = vld [vmem:[#allocation39] sm:$0xff] }
 0xee5   :  { %12611 = vmatpush3.bf16.msra.mxu0 %v16594_v31  ;;  %12614 = vmatprep.mubr.msk.bf16.mxu0 %vm7306_vm15, %v13842_v48  ;;  %v13844_v31 = vld [vmem:[%s17198_s29 + $0x50] sm:$0xff]  }
 0xee6   :  { %12612 = vmatprep.subr.bf16.mxu0 %v16600_v62 }
 0xee7   :  { %v7904_v3 = vpop.permute.xlu0 %7903 }
 0xee8   :  { %v7917_v11 = vmul.f32 %v16691_v15, %v7904_v3  ;;  %v9528_v3 = vld [vmem:[#allocation39 + $0x30] sm:$0xff] }
 0xee9   :  { %12613 = vmatpush3.bf16.msra.mxu0 %v16600_v62  ;;  %v7810_v62 = vpop.permute.xlu1 %7809 }
 0xeea   :  { %12618 = vmatprep.subr.bf16.mxu0 %v7727_v54  ;;  %v7822_v45 = vmul.f32 %v16681_v28, %v7810_v62 }
 0xeeb   :  { %v7996_v5 = vpop.permute.xlu0 %7995 }
 0xeec   :  { %v7824_v63 = vpack.c.bf16 %v7822_v45, %v7821_v57  ;;  %v8011_v36 = vmul.f32 %v16701_v46, %v7996_v5  ;;  %v13854_v45 = vld [vmem:[#allocation37 + $0x20] sm:$0xff]  }
 0xeed   :  { %v7902_v35 = vpop.permute.xlu1 %7901  ;;  %12695 = vmatprep.mubr.msk.bf16.mxu1 %vm7306_vm15, %v13854_v45 }
 0xeee   :  { %v7916_v44 = vmul.f32 %v16691_v15, %v7902_v35 }
 0xeef   :  { %v8000_v4 = vpop.permute.xlu0 %7999 }
 0xef0   :  { %12615 = vmatmul.mubr.msk.bf16.vlgmr.msra.gmra.mrb[120].mxu0 %vm7306_vm15, %v13843_v40  ;;  %v7919_v19 = vpack.c.bf16 %v7916_v44, %v7915_v14  ;;  %v8013_v27 = vmul.f32 %v16701_v46, %v8000_v4  ;;  %v9525_v44 = vld [vmem:[#allocation39 + $0x18] sm:$0xff]  ;;  %v9526_v14 = vld [vmem:[#allocation39 + $0x20] sm:$0xff] }
 0xef1   :  { %12619 = vmatpush3.bf16.msra.mxu0 %v7727_v54  ;;  %12622 = vmatprep.mubr.msk.bf16.mxu0 %vm7306_vm15, %v13844_v31  ;;  %v7906_v18 = vpop.permute.xlu1 %7905  ;;  %v9507_v4 = vld [vmem:[#allocation10 + $0x8] sm:$0xff] }
 0xef2   :  { %12620 = vmatprep.subr.bf16.mxu0 %v7728_v6  ;;  %v7918_v13 = vmul.f32 %v16691_v15, %v7906_v18  ;;  %v9527_v18 = vld [vmem:[#allocation39 + $0x28] sm:$0xff] }
 0xef4   :  { %v7920_v33 = vpack.c.bf16 %v7918_v13, %v7917_v11 }
 0xef5   :  { %12621 = vmatpush3.bf16.msra.mxu0 %v7728_v6  ;;  %v7998_v25 = vpop.permute.xlu1 %7997 }
 0xef6   :  { %12626 = vmatprep.subr.bf16.mxu0 %v7823_v42  ;;  %v8012_v32 = vmul.f32 %v16701_v46, %v7998_v25 }
 0xef8   :  { %v8015_v43 = vpack.c.bf16 %v8012_v32, %v8011_v36 }
 0xef9   :  { %v8002_v20 = vpop.permute.xlu1 %8001 }
 0xefa   :  { %v8014_v16 = vmul.f32 %v16701_v46, %v8002_v20  ;;  %v9506_v20 = vld [vmem:[#allocation10] sm:$0xff] }
 0xefc   :  { %12623 = vmatmul.mubr.msk.bf16.vlgmr.msra.gmra.mrb[120].mxu0 %vm7306_vm15, %v13845_v0  ;;  %v8016_v9 = vpack.c.bf16 %v8014_v16, %v8013_v27  ;;  %v16803_v27 = vpack.c.bf16 %v9507_v4, %v9506_v20  ;;  %v9520_v4 = vld [vmem:[#allocation10 + $0x70] sm:$0xff] }
 0xefd   :  { %12627 = vmatpush3.bf16.msra.mxu0 %v7823_v42  ;;  %12630 = vmatprep.mubr.msk.bf16.mxu0 %vm7306_vm15, %v13846_v53  ;;  %v9523_v53 = vld [vmem:[#allocation39 + $0x8] sm:$0xff] }
 0xefe   :  { %12628 = vmatprep.subr.bf16.mxu0 %v7824_v63 }
 0xeff   :  { %v8183_v37 = vpop.permute.xlu1 %8182 }
 0xf00   :  { %v8178_v50 = vpop.permute.xlu0 %8177 }
 0xf01   :  { %12629 = vmatpush3.bf16.msra.mxu0 %v7824_v63  ;;  %v9524_v63 = vld [vmem:[#allocation39 + $0x10] sm:$0xff] }
 0xf02   :  { %12634 = vmatprep.subr.bf16.mxu0 %v7919_v19 }
 0xf03   :  { %v8272_v56 = vpop.permute.xlu1 %8271 }
 0xf04   :  { %v8267_v61 = vpop.permute.xlu0 %8266 }
 0xf07   :  { %v8193_v12 = vpop.permute.xlu1 %8192 }
 0xf08   :  { %12631 = vmatmul.mubr.msk.bf16.vlgmr.msra.gmra.mrb[120].mxu0 %vm7306_vm15, %v13847_v2  ;;  %v8188_v48 = vpop.permute.xlu0 %8187 }
 0xf09   :  { %12635 = vmatpush3.bf16.msra.mxu0 %v7919_v19  ;;  %12638 = vmatprep.mubr.msk.bf16.mxu0 %vm7306_vm15, %v13848_v39  ;;  %v9529_v19 = vld [vmem:[#allocation39 + $0x38] sm:$0xff] }
 0xf0a   :  { %12636 = vmatprep.subr.bf16.mxu0 %v7920_v33 }
 0xf0b   :  { %v8282_v29 = vpop.permute.xlu1 %8281 }
 0xf0c   :  { %v8277_v54 = vpop.permute.xlu0 %8276 }
 0xf0d   :  { %12637 = vmatpush3.bf16.msra.mxu0 %v7920_v33 }
 0xf0e   :  { %12642 = vmatprep.subr.bf16.mxu0 %v8015_v43 }
 0xf14   :  { %12639 = vmatmul.mubr.msk.bf16.vlgmr.msra.gmra.mrb[120].mxu0 %vm7306_vm15, %v13849_v38 }
 0xf15   :  { %12643 = vmatpush3.bf16.msra.mxu0 %v8015_v43  ;;  %12646 = vmatprep.mubr.msk.bf16.mxu0 %vm7306_vm15, %v13850_v26 }
 0xf16   :  { %12644 = vmatprep.subr.bf16.mxu0 %v8016_v9 }
 0xf19   :  { %12645 = vmatpush3.bf16.msra.mxu0 %v8016_v9 }
 0xf1a   :  { %12685 = vmatprep.subr.bf16.mxu0 %v16584_v60 }
 0xf20   :  { %12647 = vmatmul.mubr.msk.bf16.vlgmr.msra.gmra.mrb[120].mxu0 %vm7306_vm15, %v13851_v8  ;;  %v13855_v8 = vld [vmem:[#allocation37 + $0x28] sm:$0xff]  }
 0xf21   :  { %12686 = vmatpush3.bf16.msra.mxu0 %v16584_v60  ;;  %12687 = vmatprep.mubr.msk.bf16.mxu0 %vm5528_vm14, %v13852_v23 }
 0xf22   :  { %13230 = vmatprep.subr.bf16.mxu0 %v16803_v27 }
 0xf2c   :  { %12688 = vmatmul.mubr.msk.bf16.vlgmr.msra.gmra.mrb[120].mxu0 %vm5528_vm14, %v13853_v52 }
 0xf2d   :  { %13232 = vmatpush3.bf16.msra.mxu0 %v16803_v27 }
 0xfff   :  { %v12689_v22 = vpop.f32.mrb[120].mxu0 }
0x1000   :  { %v8254_v34 = vadd.f32 %v12689_v22, %v8188_v48  ;;  %v8245_v30 = vpop.f32.mrb[121].mxu0  ;;  %v9508_v48 = vld [vmem:[#allocation10 + $0x10] sm:$0xff] }
0x1001   :  { %v8246_v51 = vadd.f32 %v8245_v30, %v8178_v50  ;;  %v12690_v21 = vpop.f32.mrb[122].mxu0 }
0x1002   :  { %v13298_v40 = vadd.f32 %v8277_v54, %v8254_v34  ;;  %v8257_v59 = vadd.f32 %v12690_v21, %v8193_v12  ;;  %v8248_v60 = vpop.f32.mrb[123].mxu0  ;;  %v9509_v12 = vld [vmem:[#allocation10 + $0x18] sm:$0xff]  ;;  %v13857_v21 = vld [vmem:[#allocation37 + $0x38] sm:$0xff]  }
0x1003   :  { %v13300_v31 = vadd.f32 %v8267_v61, %v8246_v51  ;;  %v8249_v6 = vadd.f32 %v8248_v60, %v8183_v37  ;;  %v16813_v34 = vpack.c.bf16 %v9509_v12, %v9508_v48  ;;  %v13866_v48 = vld [vmem:[#allocation37 + $0x60] sm:$0xff]  }
0x1004   :  { %v13302_v1 = vadd.f32 %v8282_v29, %v8257_v59  ;;  %v16722_v17 = vmax.f32 %v13298_v40, 0.0  ;;  %v9510_v40 = vld [vmem:[#allocation10 + $0x20] sm:$0xff]  ;;  %v9511_v59 = vld [vmem:[#allocation10 + $0x28] sm:$0xff] }
0x1005   :  { %v16720_v58 = vmax.f32 %v13300_v31, 0.0  ;;  %v13304_v62 = vadd.f32 %v8272_v56, %v8249_v6  ;;  %13234 = vmatprep.subr.bf16.mxu0 %v16813_v34  ;;  %v16819_v31 = vpack.c.bf16 %v9511_v59, %v9510_v40 }
0x1006   :  { %v16724_v42 = vmax.f32 %v13302_v1, 0.0  ;;  %13236 = vmatpush3.bf16.msra.mxu0 %v16813_v34  ;;  %v9512_v1 = vld [vmem:[#allocation10 + $0x30] sm:$0xff] }
0x1007   :  { %v16726_v57 = vmax.f32 %v13304_v62, 0.0  ;;  %8345 = vrot.lane.b32.xlu0 %v16720_v58, %s14627_s25  ;;  %v9513_v62 = vld [vmem:[#allocation10 + $0x38] sm:$0xff]  ;;  %13238 = vmatprep.subr.bf16.mxu0 %v16819_v31 }
0x1008   :  { %v11954_v0 = vpack.c.bf16 %v16724_v42, %v16722_v17  ;;  %v16824_v45 = vpack.c.bf16 %v9513_v62, %v9512_v1  ;;  %v8849_v12 = vmul.f32 %v16586_v49, %v16724_v42  ;;  %v13871_v62 = vld [vmem:[#allocation37 + $0x88] sm:$0xff]  }
0x1009   :  { %v11949_v35 = vpack.c.bf16 %v16726_v57, %v16720_v58  ;;  %8347 = vrot.lane.b32.xlu1 %v16726_v57, %s14627_s25 }
0x100a   :  { %11976 = vst [vmem:[%s14839_s17 + $0x8] sm:$0xff] %v11954_v0   ;;  %13240 = vmatpush3.bf16.msra.mxu0 %v16819_v31 }
0x100b   :  { %11950 = vst [vmem:[%s14839_s17] sm:$0xff] %v11949_v35   ;;  %8349 = vrot.lane.b32.xlu0 %v16722_v17, %s14627_s25  ;;  %v13859_v35 = vld [vmem:[#allocation37 + $0x8] sm:$0xff]   ;;  %13242 = vmatprep.subr.bf16.mxu0 %v16824_v45  ;;  %s14664_s17 = smov 2  }
0x100d   :  { %8351 = vrot.lane.b32.xlu1 %v16724_v42, %s14627_s25  ;;  %s17199_s25 = sld [smem:[#allocation75_spill]] }
0x100e   :  { %13244 = vmatpush3.bf16.msra.mxu0 %v16824_v45 }
0x100f   :  { %8316 = vrot.lane.b32.xlu0 %v16720_v58, %s14659_s13 }
0x1011   :  { %8318 = vrot.lane.b32.xlu1 %v16726_v57, %s14659_s13 }
0x1013   :  { %8320 = vrot.lane.b32.xlu0 %v16722_v17, %s14659_s13 }
0x1015   :  { %8322 = vrot.lane.b32.xlu1 %v16724_v42, %s14659_s13 }
0x1017   :  { %8569 = vrot.lane.b32.xlu0 %v16720_v58, %s14660_s20 }
0x1019   :  { %8571 = vrot.lane.b32.xlu1 %v16726_v57, %s14660_s20 }
0x101b   :  { %8573 = vrot.lane.b32.xlu0 %v16722_v17, %s14660_s20 }
0x101d   :  { %8575 = vrot.lane.b32.xlu1 %v16724_v42, %s14660_s20 }
0x101f   :  { %8704 = vrot.lane.b32.xlu0 %v16720_v58, %s14612_s26 }
0x1021   :  { %8706 = vrot.lane.b32.xlu1 %v16726_v57, %s14612_s26 }
0x1023   :  { %8708 = vrot.lane.b32.xlu0 %v16722_v17, %s14612_s26 }
0x1025   :  { %8710 = vrot.lane.b32.xlu1 %v16724_v42, %s14612_s26 }
0x1027   :  { %8966 = vrot.lane.b32.xlu0 %v16720_v58, %s14647_s18 }
0x1029   :  { %8968 = vrot.lane.b32.xlu1 %v16726_v57, %s14647_s18 }
0x102b   :  { %8970 = vrot.lane.b32.xlu0 %v16722_v17, %s14647_s18 }
0x102d   :  { %8972 = vrot.lane.b32.xlu1 %v16724_v42, %s14647_s18 }
0x102f   :  { %9101 = vrot.lane.b32.xlu0 %v16720_v58, %s14661_s2 }
0x1031   :  { %9103 = vrot.lane.b32.xlu1 %v16726_v57, %s14661_s2 }
0x1033   :  { %9105 = vrot.lane.b32.xlu0 %v16722_v17, %s14661_s2 }
0x1035   :  { %9107 = vrot.lane.b32.xlu1 %v16724_v42, %s14661_s2 }
0x1037   :  { %9236 = vrot.lane.b32.xlu0 %v16720_v58, %s14662_s3 }
0x1039   :  { %9238 = vrot.lane.b32.xlu1 %v16726_v57, %s14662_s3 }
0x103b   :  { %9240 = vrot.lane.b32.xlu0 %v16722_v17, %s14662_s3 }
0x103d   :  { %9242 = vrot.lane.b32.xlu1 %v16724_v42, %s14662_s3 }
0x103f   :  { %9371 = vrot.lane.b32.xlu0 %v16720_v58, %s14663_s7 }
0x1041   :  { %9373 = vrot.lane.b32.xlu1 %v16726_v57, %s14663_s7 }
0x1043   :  { %9375 = vrot.lane.b32.xlu0 %v16722_v17, %s14663_s7 }
0x1045   :  { %9377 = vrot.lane.b32.xlu1 %v16724_v42, %s14663_s7 }
0x1047   :  { %9532 = vperm.xlu0 %13795, %v9522_v55  }
0x1049   :  { %9537 = vperm.xlu1 %13796, %v9523_v53   ;;  %v13860_v53 = vld [vmem:[#allocation37 + $0x10] sm:$0xff]  }
0x104b   :  { %9542 = vperm.xlu0 %13795, %v9524_v63   ;;  %v9514_v63 = vld [vmem:[#allocation10 + $0x40] sm:$0xff] }
0x104d   :  { %9547 = vperm.xlu1 %13796, %v9525_v44   ;;  %v9515_v44 = vld [vmem:[#allocation10 + $0x48] sm:$0xff] }
0x104f   :  { %9552 = vperm.xlu0 %13795, %v9526_v14  }
0x1051   :  { %9557 = vperm.xlu1 %13796, %v9527_v18   ;;  %v16830_v18 = vpack.c.bf16 %v9515_v44, %v9514_v63 }
0x1053   :  { %9562 = vperm.xlu0 %13795, %v9528_v3   ;;  %13246 = vmatprep.subr.bf16.mxu0 %v16830_v18 }
0x1054   :  { %13248 = vmatpush3.bf16.msra.mxu0 %v16830_v18 }
0x1055   :  { %9567 = vperm.xlu1 %13796, %v9529_v19  }
0x1079   :  { %v8346_v13 = vpop.permute.xlu0 %8345 }
0x107a   :  { %v8360_v2 = vmul.f32 %v16630_v7, %v8346_v13 }
0x107b   :  { %v8348_v11 = vpop.permute.xlu1 %8347 }
0x107c   :  { %v8361_v25 = vmul.f32 %v16630_v7, %v8348_v11  ;;  %v9516_v11 = vld [vmem:[#allocation10 + $0x50] sm:$0xff] }
0x107d   :  { %v8350_v5 = vpop.permute.xlu0 %8349 }
0x107e   :  { %v8364_v39 = vpack.c.bf16 %v8361_v25, %v8360_v2  ;;  %v8362_v32 = vmul.f32 %v16630_v7, %v8350_v5  ;;  %v9517_v2 = vld [vmem:[#allocation10 + $0x58] sm:$0xff] }
0x107f   :  { %v8352_v33 = vpop.permute.xlu1 %8351 }
0x1080   :  { %v8363_v36 = vmul.f32 %v16630_v7, %v8352_v33  ;;  %12691 = vmatprep.subr.bf16.mxu1 %v8364_v39  ;;  %v13856_v7 = vld [vmem:[#allocation37 + $0x30] sm:$0xff]   ;;  %v13862_v33 = vld [vmem:[#allocation37 + $0x40] sm:$0xff]  }
0x1081   :  { %12692 = vmatpush3.bf16.msra.mxu1 %v8364_v39  ;;  %v8317_v43 = vpop.permute.xlu0 %8316  ;;  %v13861_v39 = vld [vmem:[#allocation37 + $0x18] sm:$0xff]  }
0x1082   :  { %v8365_v16 = vpack.c.bf16 %v8363_v36, %v8362_v32  ;;  %v8331_v26 = vmul.f32 %v16636_v10, %v8317_v43  ;;  %v9518_v32 = vld [vmem:[#allocation10 + $0x60] sm:$0xff]  ;;  %v9519_v36 = vld [vmem:[#allocation10 + $0x68] sm:$0xff] }
0x1083   :  { %v8319_v38 = vpop.permute.xlu1 %8318  ;;  %v16842_v43 = vpack.c.bf16 %v9519_v36, %v9518_v32 }
0x1084   :  { %v8332_v9 = vmul.f32 %v16636_v10, %v8319_v38  ;;  %12693 = vmatprep.subr.bf16.mxu1 %v8365_v16 }
0x1085   :  { %12694 = vmatpush3.bf16.msra.mxu1 %v8365_v16  ;;  %v8321_v23 = vpop.permute.xlu0 %8320  ;;  %v9521_v16 = vld [vmem:[#allocation10 + $0x78] sm:$0xff] }
0x1086   :  { %v8335_v52 = vpack.c.bf16 %v8332_v9, %v8331_v26  ;;  %v8333_v37 = vmul.f32 %v16636_v10, %v8321_v23  ;;  %v16848_v38 = vpack.c.bf16 %v9521_v16, %v9520_v4  ;;  %v13864_v23 = vld [vmem:[#allocation37 + $0x50] sm:$0xff]  }
0x1087   :  { %v8323_v50 = vpop.permute.xlu1 %8322 }
0x1088   :  { %v8334_v61 = vmul.f32 %v16636_v10, %v8323_v50  ;;  %12696 = vmatmul.mubr.msk.bf16.vlgmr.msra.gmra.mrb[132].mxu1 %vm7306_vm15, %v13855_v8  ;;  %12703 = vmatprep.subr.bf16.mxu1 %v8335_v52  ;;  %v13858_v10 = vld [vmem:[#allocation37] sm:$0xff]   ;;  %v13863_v8 = vld [vmem:[#allocation37 + $0x48] sm:$0xff]   ;;  %v8847_v50 = vmul.f32 %v16586_v49, %v16726_v57 }
0x1089   :  { %12704 = vmatpush3.bf16.msra.mxu1 %v8335_v52  ;;  %v8570_v56 = vpop.permute.xlu0 %8569  ;;  %12699 = vmatprep.mubr.msk.bf16.mxu1 %vm7306_vm15, %v13856_v7 }
0x108a   :  { %v8336_v22 = vpack.c.bf16 %v8334_v61, %v8333_v37  ;;  %v8584_v54 = vmul.f32 %v16645_v41, %v8570_v56  ;;  %v8846_v37 = vmul.f32 %v16586_v49, %v16720_v58  ;;  %v13865_v56 = vld [vmem:[#allocation37 + $0x58] sm:$0xff]  }
0x108b   :  { %v8572_v30 = vpop.permute.xlu1 %8571 }
0x108c   :  { %v8585_v51 = vmul.f32 %v16645_v41, %v8572_v30  ;;  %12705 = vmatprep.subr.bf16.mxu1 %v8336_v22  ;;  %v8850_v61 = vpack.c.bf16 %v8847_v50, %v8846_v37  ;;  %v13868_v30 = vld [vmem:[#allocation37 + $0x70] sm:$0xff]  }
0x108d   :  { %12706 = vmatpush3.bf16.msra.mxu1 %v8336_v22  ;;  %v8574_v6 = vpop.permute.xlu0 %8573  ;;  %v13880_v50 = vld [vmem:[#allocation37 + $0xd0] sm:$0xff]  }
0x108e   :  { %v8588_v60 = vpack.c.bf16 %v8585_v51, %v8584_v54  ;;  %v8586_v14 = vmul.f32 %v16645_v41, %v8574_v6  ;;  %v8848_v54 = vmul.f32 %v16586_v49, %v16722_v17 }
0x108f   :  { %v8576_v29 = vpop.permute.xlu1 %8575 }
0x1090   :  { %12700 = vmatmul.mubr.msk.bf16.gmra.mrb[136].mxu1 %vm7306_vm15, %v13857_v21  ;;  %12715 = vmatprep.subr.bf16.mxu1 %v8588_v60  ;;  %v8587_v0 = vmul.f32 %v16645_v41, %v8576_v29  ;;  %v16838_v41 = vpack.c.bf16 %v9517_v2, %v9516_v11  ;;  %v13870_v29 = vld [vmem:[#allocation37 + $0x80] sm:$0xff]  }
0x1091   :  { %12707 = vmatprep.mubr.msk.bf16.mxu1 %vm7306_vm15, %v13858_v10  ;;  %v8705_v3 = vpop.permute.xlu0 %8704  ;;  %v8851_v10 = vpack.c.bf16 %v8849_v12, %v8848_v54 }
0x1092   :  { %v8589_v19 = vpack.c.bf16 %v8587_v0, %v8586_v14  ;;  %v8719_v25 = vmul.f32 %v16652_v24, %v8705_v3  ;;  %13250 = vmatprep.subr.bf16.mxu0 %v16838_v41 }
0x1093   :  { %v8707_v55 = vpop.permute.xlu1 %8706  ;;  %13252 = vmatpush3.bf16.msra.mxu0 %v16838_v41 }
0x1094   :  { %v8720_v13 = vmul.f32 %v16652_v24, %v8707_v55  ;;  %13254 = vmatprep.subr.bf16.mxu0 %v16842_v43 }
0x1095   :  { %v8709_v26 = vpop.permute.xlu0 %8708 }
0x1096   :  { %v8723_v5 = vpack.c.bf16 %v8720_v13, %v8719_v25  ;;  %v8721_v7 = vmul.f32 %v16652_v24, %v8709_v26  ;;  %v13874_v13 = vld [vmem:[#allocation37 + $0xa0] sm:$0xff]   ;;  %v13875_v25 = vld [vmem:[#allocation37 + $0xa8] sm:$0xff]   ;;  %v13877_v26 = vld [vmem:[#allocation37 + $0xb8] sm:$0xff]  }
0x1097   :  { %v8711_v20 = vpop.permute.xlu1 %8710  ;;  %13256 = vmatpush3.bf16.msra.mxu0 %v16842_v43 }
0x1098   :  { %12708 = vmatmul.mubr.msk.bf16.vlgmr.msra.gmra.mrb[132].mxu1 %vm7306_vm15, %v13859_v35  ;;  %v8722_v9 = vmul.f32 %v16652_v24, %v8711_v20  ;;  %13258 = vmatprep.subr.bf16.mxu0 %v16848_v38  ;;  %v13867_v24 = vld [vmem:[#allocation37 + $0x68] sm:$0xff]   ;;  %v13872_v35 = vld [vmem:[#allocation37 + $0x90] sm:$0xff]  }
0x1099   :  { %12716 = vmatpush3.bf16.msra.mxu1 %v8588_v60  ;;  %12711 = vmatprep.mubr.msk.bf16.mxu1 %vm7306_vm15, %v13860_v53  ;;  %v8967_v51 = vpop.permute.xlu0 %8966  ;;  %v13869_v60 = vld [vmem:[#allocation37 + $0x78] sm:$0xff]  }
0x109a   :  { %12717 = vmatprep.subr.bf16.mxu1 %v8589_v19  ;;  %v8724_v52 = vpack.c.bf16 %v8722_v9, %v8721_v7  ;;  %v8981_v40 = vmul.f32 %v16668_v47, %v8967_v51  ;;  %v13878_v9 = vld [vmem:[#allocation37 + $0xc0] sm:$0xff]   ;;  %v13879_v7 = vld [vmem:[#allocation37 + $0xc8] sm:$0xff]  }
0x109b   :  { %13260 = vmatpush3.bf16.msra.mxu0 %v16848_v38  ;;  %v8969_v22 = vpop.permute.xlu1 %8968 }
0x109c   :  { %v8982_v21 = vmul.f32 %v16668_v47, %v8969_v22  ;;  %v13881_v22 = vld [vmem:[#allocation37 + $0xd8] sm:$0xff]  }
0x109d   :  { %12718 = vmatpush3.bf16.msra.mxu1 %v8589_v19  ;;  %v8971_v49 = vpop.permute.xlu0 %8970  ;;  %v13873_v19 = vld [vmem:[#allocation37 + $0x98] sm:$0xff]  }
0x109e   :  { %12727 = vmatprep.subr.bf16.mxu1 %v8723_v5  ;;  %v8985_v59 = vpack.c.bf16 %v8982_v21, %v8981_v40  ;;  %v8983_v55 = vmul.f32 %v16668_v47, %v8971_v49  ;;  %v13883_v21 = vld [vmem:[#allocation37 + $0xe8] sm:$0xff]   ;;  %v13888_v49 = vld [vmem:[#allocation37 + $0x110] sm:$0xff]  }
0x109f   :  { %v8973_v6 = vpop.permute.xlu1 %8972 }
0x10a0   :  { %12712 = vmatmul.mubr.msk.bf16.gmra.mrb[136].mxu1 %vm7306_vm15, %v13861_v39  ;;  %v8984_v1 = vmul.f32 %v16668_v47, %v8973_v6  ;;  %v13876_v39 = vld [vmem:[#allocation37 + $0xb0] sm:$0xff]   ;;  %v13887_v6 = vld [vmem:[#allocation37 + $0x108] sm:$0xff]  }
0x10a1   :  { %12719 = vmatprep.mubr.msk.bf16.mxu1 %vm7306_vm15, %v13862_v33  ;;  %v9102_v53 = vpop.permute.xlu0 %9101 }
0x10a2   :  { %v8986_v63 = vpack.c.bf16 %v8984_v1, %v8983_v55  ;;  %v9116_v14 = vmul.f32 %v16681_v28, %v9102_v53 }
0x10a3   :  { %v9104_v0 = vpop.permute.xlu1 %9103 }
0x10a4   :  { %v9117_v44 = vmul.f32 %v16681_v28, %v9104_v0 }
0x10a5   :  { %v9106_v47 = vpop.permute.xlu0 %9105 }
0x10a6   :  { %v9120_v3 = vpack.c.bf16 %v9117_v44, %v9116_v14  ;;  %v9118_v33 = vmul.f32 %v16681_v28, %v9106_v47 }
0x10a7   :  { %v9108_v11 = vpop.permute.xlu1 %9107 }
0x10a8   :  { %12720 = vmatmul.mubr.msk.bf16.vlgmr.msra.gmra.mrb[132].mxu1 %vm7306_vm15, %v13863_v8  ;;  %v9119_v2 = vmul.f32 %v16681_v28, %v9108_v11 }
0x10a9   :  { %12728 = vmatpush3.bf16.msra.mxu1 %v8723_v5  ;;  %12723 = vmatprep.mubr.msk.bf16.mxu1 %vm7306_vm15, %v13864_v23  ;;  %v9237_v32 = vpop.permute.xlu0 %9236 }
0x10aa   :  { %12729 = vmatprep.subr.bf16.mxu1 %v8724_v52  ;;  %v9121_v36 = vpack.c.bf16 %v9119_v2, %v9118_v33  ;;  %v9251_v4 = vmul.f32 %v16691_v15, %v9237_v32 }
0x10ab   :  { %v9239_v5 = vpop.permute.xlu1 %9238 }
0x10ac   :  { %v9252_v20 = vmul.f32 %v16691_v15, %v9239_v5 }
0x10ad   :  { %12730 = vmatpush3.bf16.msra.mxu1 %v8724_v52  ;;  %v9241_v28 = vpop.permute.xlu0 %9240 }
0x10ae   :  { %12739 = vmatprep.subr.bf16.mxu1 %v8850_v61  ;;  %v9255_v16 = vpack.c.bf16 %v9252_v20, %v9251_v4  ;;  %v9253_v37 = vmul.f32 %v16691_v15, %v9241_v28 }
0x10af   :  { %v9243_v8 = vpop.permute.xlu1 %9242 }
0x10b0   :  { %12724 = vmatmul.mubr.msk.bf16.gmra.mrb[136].mxu1 %vm7306_vm15, %v13865_v56  ;;  %v9254_v23 = vmul.f32 %v16691_v15, %v9243_v8 }
0x10b1   :  { %12731 = vmatprep.mubr.msk.bf16.mxu1 %vm7306_vm15, %v13866_v48 }
0x10b2   :  { %v9256_v56 = vpack.c.bf16 %v9254_v23, %v9253_v37 }
0x10b3   :  { %v9374_v52 = vpop.permute.xlu1 %9373 }
0x10b4   :  { %v9387_v48 = vmul.f32 %v16701_v46, %v9374_v52 }
0x10b7   :  { %v9378_v15 = vpop.permute.xlu1 %9377 }
0x10b8   :  { %12732 = vmatmul.mubr.msk.bf16.vlgmr.msra.gmra.mrb[132].mxu1 %vm7306_vm15, %v13867_v24  ;;  %v9389_v51 = vmul.f32 %v16701_v46, %v9378_v15  ;;  %v11067_v15 = vld [vmem:[#allocation43 + $0x20] sm:$0xff] }
0x10b9   :  { %12740 = vmatpush3.bf16.msra.mxu1 %v8850_v61  ;;  %12735 = vmatprep.mubr.msk.bf16.mxu1 %vm7306_vm15, %v13868_v30  ;;  %v9372_v61 = vpop.permute.xlu0 %9371  ;;  %v13882_v30 = vld [vmem:[#allocation37 + $0xe0] sm:$0xff]  }
0x10ba   :  { %12741 = vmatprep.subr.bf16.mxu1 %v8851_v10  ;;  %v9386_v24 = vmul.f32 %v16701_v46, %v9372_v61 }
0x10bc   :  { %v9390_v12 = vpack.c.bf16 %v9387_v48, %v9386_v24  ;;  %v11064_v48 = vld [vmem:[#allocation43 + $0x8] sm:$0xff]  ;;  %v11063_v24 = vld [vmem:[#allocation43] sm:$0xff] }
0x10bd   :  { %12742 = vmatpush3.bf16.msra.mxu1 %v8851_v10  ;;  %v9376_v54 = vpop.permute.xlu0 %9375  ;;  %v13884_v10 = vld [vmem:[#allocation37 + $0xf0] sm:$0xff]  }
0x10be   :  { %12751 = vmatprep.subr.bf16.mxu1 %v8985_v59  ;;  %v9388_v40 = vmul.f32 %v16701_v46, %v9376_v54  ;;  %v13889_v46 = vld [vmem:[#allocation37 + $0x118] sm:$0xff]  }
0x10bf   :  { %v11070_v54 = vld [vmem:[#allocation43 + $0x38] sm:$0xff] }
0x10c0   :  { %12736 = vmatmul.mubr.msk.bf16.gmra.mrb[136].mxu1 %vm7306_vm15, %v13869_v60  ;;  %v13885_v60 = vld [vmem:[#allocation37 + $0xf8] sm:$0xff]  }
0x10c1   :  { %12743 = vmatprep.mubr.msk.bf16.mxu1 %vm7306_vm15, %v13870_v29  ;;  %v13886_v29 = vld [vmem:[#allocation37 + $0x100] sm:$0xff]  }
0x10c8   :  { %12744 = vmatmul.mubr.msk.bf16.vlgmr.msra.gmra.mrb[132].mxu1 %vm7306_vm15, %v13871_v62  ;;  %v9538_v0 = vpop.permute.xlu1 %9537 }
0x10c9   :  { %12752 = vmatpush3.bf16.msra.mxu1 %v8985_v59  ;;  %12747 = vmatprep.mubr.msk.bf16.mxu1 %vm7306_vm15, %v13872_v35  ;;  %v9391_v59 = vpack.c.bf16 %v9389_v51, %v9388_v40  ;;  %v9533_v35 = vpop.permute.xlu0 %9532  ;;  %v11069_v51 = vld [vmem:[#allocation43 + $0x30] sm:$0xff]  ;;  %v11760_v40 = vld [vmem:[%s17200_s21 + $0x1] ss:$0 sm:$0xff] }
0x10ca   :  { %12753 = vmatprep.subr.bf16.mxu1 %v8986_v63 }
0x10cc   :  { %v9548_v55 = vpop.permute.xlu1 %9547 }
0x10cd   :  { %12754 = vmatpush3.bf16.msra.mxu1 %v8986_v63  ;;  %v9543_v63 = vpop.permute.xlu0 %9542 }
0x10ce   :  { %12763 = vmatprep.subr.bf16.mxu1 %v9120_v3 }
0x10d0   :  { %12748 = vmatmul.mubr.msk.bf16.gmra.mrb[136].mxu1 %vm7306_vm15, %v13873_v19 }
0x10d1   :  { %12755 = vmatprep.mubr.msk.bf16.mxu1 %vm7306_vm15, %v13874_v13 }
0x10d8   :  { %12756 = vmatmul.mubr.msk.bf16.vlgmr.msra.gmra.mrb[132].mxu1 %vm7306_vm15, %v13875_v25  ;;  %v9558_v25 = vpop.permute.xlu1 %9557 }
0x10d9   :  { %12764 = vmatpush3.bf16.msra.mxu1 %v9120_v3  ;;  %12759 = vmatprep.mubr.msk.bf16.mxu1 %vm7306_vm15, %v13876_v39  ;;  %v9553_v39 = vpop.permute.xlu0 %9552 }
0x10da   :  { %12765 = vmatprep.subr.bf16.mxu1 %v9121_v36 }
0x10dc   :  { %v9568_v8 = vpop.permute.xlu1 %9567 }
0x10dd   :  { %12766 = vmatpush3.bf16.msra.mxu1 %v9121_v36 }
0x10de   :  { %12775 = vmatprep.subr.bf16.mxu1 %v9255_v16 }
0x10e0   :  { %12760 = vmatmul.mubr.msk.bf16.gmra.mrb[136].mxu1 %vm7306_vm15, %v13877_v26 }
0x10e1   :  { %12767 = vmatprep.mubr.msk.bf16.mxu1 %vm7306_vm15, %v13878_v9  ;;  %v13890_v9 = vld [vmem:[%s17199_s25 + $0x20] sm:$0xff]  }
0x10e8   :  { %12768 = vmatmul.mubr.msk.bf16.vlgmr.msra.gmra.mrb[132].mxu1 %vm7306_vm15, %v13879_v7  ;;  %v9563_v7 = vpop.permute.xlu0 %9562 }
0x10e9   :  { %12776 = vmatpush3.bf16.msra.mxu1 %v9255_v16  ;;  %12771 = vmatprep.mubr.msk.bf16.mxu1 %vm7306_vm15, %v13880_v50 }
0x10ea   :  { %12777 = vmatprep.subr.bf16.mxu1 %v9256_v56 }
0x10ed   :  { %12778 = vmatpush3.bf16.msra.mxu1 %v9256_v56 }
0x10ee   :  { %12787 = vmatprep.subr.bf16.mxu1 %v9390_v12 }
0x10f0   :  { %12772 = vmatmul.mubr.msk.bf16.gmra.mrb[136].mxu1 %vm7306_vm15, %v13881_v22  ;;  %v11065_v22 = vld [vmem:[#allocation43 + $0x10] sm:$0xff] }
0x10f1   :  { %12779 = vmatprep.mubr.msk.bf16.mxu1 %vm7306_vm15, %v13882_v30  ;;  %v11068_v30 = vld [vmem:[#allocation43 + $0x28] sm:$0xff] }
0x10f8   :  { %12780 = vmatmul.mubr.msk.bf16.vlgmr.msra.gmra.mrb[132].mxu1 %vm7306_vm15, %v13883_v21  ;;  %v11209_v21 = vld [vmem:[#allocation40 + $0x8] sm:$0xff] }
0x10f9   :  { %12788 = vmatpush3.bf16.msra.mxu1 %v9390_v12  ;;  %12783 = vmatprep.mubr.msk.bf16.mxu1 %vm7306_vm15, %v13884_v10  ;;  %v11066_v12 = vld [vmem:[#allocation43 + $0x18] sm:$0xff]  ;;  %v11208_v10 = vld [vmem:[#allocation40] sm:$0xff] }
0x10fa   :  { %12789 = vmatprep.subr.bf16.mxu1 %v9391_v59 }
0x10fd   :  { %12790 = vmatpush3.bf16.msra.mxu1 %v9391_v59  ;;  %v11211_v59 = vld [vmem:[#allocation40 + $0x18] sm:$0xff] }
0x10fe   :  { %13262 = vmatprep.subr.bf16.mxu1 %v16803_v27 }
0x1100   :  { %12784 = vmatmul.mubr.msk.bf16.gmra.mrb[136].mxu1 %vm7306_vm15, %v13885_v60 }
0x1101   :  { %12791 = vmatprep.mubr.msk.bf16.mxu1 %vm7306_vm15, %v13886_v29  ;;  %v11210_v29 = vld [vmem:[#allocation40 + $0x10] sm:$0xff] }
0x1108   :  { %12792 = vmatmul.mubr.msk.bf16.vlgmr.msra.gmra.mrb[132].mxu1 %vm7306_vm15, %v13887_v6 }
0x1109   :  { %13264 = vmatpush3.bf16.msra.mxu1 %v16803_v27  ;;  %12795 = vmatprep.mubr.msk.bf16.mxu1 %vm7306_vm15, %v13888_v49 }
0x110a   :  { %13266 = vmatprep.subr.bf16.mxu1 %v16813_v34 }
0x110d   :  { %13268 = vmatpush3.bf16.msra.mxu1 %v16813_v34 }
0x110e   :  { %13270 = vmatprep.subr.bf16.mxu1 %v16819_v31 }
0x1110   :  { %12796 = vmatmul.mubr.msk.bf16.gmra.mrb[136].mxu1 %vm7306_vm15, %v13889_v46 }
0x1111   :  { %13272 = vmatpush3.bf16.msra.mxu1 %v16819_v31  ;;  %13019 = vmatprep.mubr.f32.mxu1 %v16720_v58 }
0x1112   :  { %13274 = vmatprep.subr.bf16.mxu1 %v16824_v45 }
0x1115   :  { %13276 = vmatpush3.bf16.msra.mxu1 %v16824_v45 }
0x1116   :  { %13278 = vmatprep.subr.bf16.mxu1 %v16830_v18 }
0x1119   :  { %13280 = vmatpush3.bf16.msra.mxu1 %v16830_v18 }
0x111a   :  { %13282 = vmatprep.subr.bf16.mxu1 %v16838_v41 }
0x111d   :  { %13284 = vmatpush3.bf16.msra.mxu1 %v16838_v41 }
0x111e   :  { %13286 = vmatprep.subr.bf16.mxu1 %v16842_v43 }
0x1121   :  { %13288 = vmatpush3.bf16.msra.mxu1 %v16842_v43 }
0x1122   :  { %13290 = vmatprep.subr.bf16.mxu1 %v16848_v38 }
0x1125   :  { %13292 = vmatpush3.bf16.msra.mxu1 %v16848_v38 }
0x1128   :  { %13020 = vmatmul.mubr.f32.vlgmr.msra.gmra.mrb[130].mxu1 %v16726_v57 }
0x1129   :  { %13022 = vmatprep.mubr.f32.mxu1 %v16722_v17 }
0x112c   :  { %13023 = vmatmul.mubr.f32.gmra.mrb[140].mxu1 %v16724_v42 }
0x11db   :  { %v12793_v58 = vpop.f32.mrb[132].mxu1 }
0x11dc   :  { %v9467_v27 = vpop.f32.mrb[133].mxu1 }
0x11dd   :  { %v12794_v34 = vpop.f32.mrb[134].mxu1  ;;  %12831 = vmatprep.mubr.f32.mxu0 %v9467_v27 }
0x11de   :  { %v9470_v31 = vpop.f32.mrb[135].mxu1 }
0x11df   :  { %12832 = vmatmul.mubr.f32.vlgmr.msra.gmra.mrb[124].mxu0 %v9470_v31  ;;  %v11212_v31 = vld [vmem:[#allocation40 + $0x20] sm:$0xff] }
0x11e0   :  { %12834 = vmatprep.mubr.f32.mxu0 %v12793_v58  ;;  %v11213_v58 = vld [vmem:[#allocation40 + $0x28] sm:$0xff] }
0x11e3   :  { %v12797_v45 = vpop.f32.mrb[136].mxu1  ;;  %12835 = vmatmul.mubr.f32.gmra.mrb[126].mxu0 %v12794_v34 }
0x11e4   :  { %v9483_v18 = vpop.f32.mrb[137].mxu1 }
0x11e5   :  { %v12798_v41 = vpop.f32.mrb[138].mxu1  ;;  %12837 = vmatprep.mubr.f32.mxu0 %v9483_v18 }
0x11e6   :  { %v9486_v43 = vpop.f32.mrb[139].mxu1 }
0x11e7   :  { %12838 = vmatmul.mubr.f32.gmra.mrb[128].mxu0 %v9486_v43  ;;  %v11215_v43 = vld [vmem:[#allocation40 + $0x38] sm:$0xff] }
0x11e8   :  { %12840 = vmatprep.mubr.f32.mxu0 %v12797_v45 }
0x11eb   :  { %12841 = vmatmul.mubr.f32.gmra.mrb[130].mxu0 %v12798_v41 }
0x11ec   :  { %12851 = vmatprep.mubr.msk.bf16.mxu0 %vm9791_vm0, %v13890_v9 }
0x11fb   :  { %v13021_v57 = vpop.f32.mrb[130].mxu1 }
0x11fc   :  { %v11034_v17 = vpop.f32.mrb[131].mxu1 }
0x11fd   :  { %v16926_v38 = vpack.c.bf16 %v13021_v57, %v11034_v17 }
0x11ff   :  { %v13024_v42 = vpop.f32.mrb[140].mxu1 }
0x1200   :  { %v11044_v1 = vpop.f32.mrb[141].mxu1 }
0x1201   :  { %v16928_v62 = vpack.c.bf16 %v13024_v42, %v11044_v1  ;;  %v11214_v42 = vld [vmem:[#allocation40 + $0x30] sm:$0xff] }
0x12b2   :  { %v12833_v53 = vpop.f32.mrb[124].mxu0 }
0x12b3   :  { %v9642_v44 = vadd.f32 %v12833_v53, %v9538_v0  ;;  %v9636_v14 = vpop.f32.mrb[125].mxu0 }
0x12b4   :  { %v9637_v3 = vadd.f32 %v9636_v14, %v9533_v35 }
0x12b5   :  { %v16930_v19 = vmax.f32 %v9642_v44, 0.0 }
0x12b6   :  { %v16932_v13 = vmax.f32 %v9637_v3, 0.0  ;;  %v12836_v11 = vpop.f32.mrb[126].mxu0  ;;  %v11758_v3 = vld [vmem:[%s17200_s21] ss:$0 sm:$0xff] }
0x12b7   :  { %v9652_v47 = vadd.f32 %v12836_v11, %v9548_v55  ;;  %9728 = vrot.lane.b32.xlu1 %v16930_v19, %s14664_s17  ;;  %v9646_v2 = vpop.f32.mrb[127].mxu0 }
0x12b8   :  { %v9647_v5 = vadd.f32 %v9646_v2, %v9543_v63  ;;  %9726 = vrot.lane.b32.xlu0 %v16932_v13, %s14664_s17 }
0x12b9   :  { %v16938_v33 = vmax.f32 %v9652_v47, 0.0 }
0x12ba   :  { %v16940_v32 = vmax.f32 %v9647_v5, 0.0  ;;  %v12839_v36 = vpop.f32.mrb[128].mxu0 }
0x12bb   :  { %v9662_v20 = vadd.f32 %v12839_v36, %v9558_v25  ;;  %9732 = vrot.lane.b32.xlu1 %v16938_v33, %s14664_s17  ;;  %v9656_v4 = vpop.f32.mrb[129].mxu0  ;;  %v13892_v36 = vld [vmem:[%s17199_s25 + $0x30] sm:$0xff]  }
0x12bc   :  { %v9657_v16 = vadd.f32 %v9656_v4, %v9553_v39  ;;  %9730 = vrot.lane.b32.xlu0 %v16940_v32, %s14664_s17  ;;  %v13891_v39 = vld [vmem:[%s17199_s25 + $0x28] sm:$0xff]  }
0x12bd   :  { %v16946_v26 = vmax.f32 %v9662_v20, 0.0 }
0x12be   :  { %v16949_v28 = vmax.f32 %v9657_v16, 0.0  ;;  %v12842_v23 = vpop.f32.mrb[130].mxu0 }
0x12bf   :  { %v9672_v52 = vadd.f32 %v12842_v23, %v9568_v8  ;;  %9736 = vrot.lane.b32.xlu1 %v16946_v26, %s14664_s17  ;;  %v9666_v50 = vpop.f32.mrb[131].mxu0 }
0x12c0   :  { %v9667_v37 = vadd.f32 %v9666_v50, %v9563_v7  ;;  %9734 = vrot.lane.b32.xlu0 %v16949_v28, %s14664_s17 }
0x12c1   :  { %v16956_v61 = vmax.f32 %v9672_v52, 0.0 }
0x12c2   :  { %v16958_v56 = vmax.f32 %v9667_v37, 0.0 }
0x12c3   :  { %9740 = vrot.lane.b32.xlu1 %v16956_v61, %s14664_s17 }
0x12c4   :  { %9738 = vrot.lane.b32.xlu0 %v16958_v56, %s14664_s17 }
0x12c7   :  { %9685 = vrot.lane.b32.xlu1 %v16930_v19, %s14660_s20 }
0x12c8   :  { %9683 = vrot.lane.b32.xlu0 %v16932_v13, %s14660_s20 }
0x12cb   :  { %9689 = vrot.lane.b32.xlu1 %v16938_v33, %s14660_s20 }
0x12cc   :  { %9687 = vrot.lane.b32.xlu0 %v16940_v32, %s14660_s20 }
0x12cf   :  { %9693 = vrot.lane.b32.xlu1 %v16946_v26, %s14660_s20 }
0x12d0   :  { %9691 = vrot.lane.b32.xlu0 %v16949_v28, %s14660_s20 }
0x12d3   :  { %9697 = vrot.lane.b32.xlu1 %v16956_v61, %s14660_s20 }
0x12d4   :  { %9695 = vrot.lane.b32.xlu0 %v16958_v56, %s14660_s20 }
0x12d7   :  { %9968 = vrot.lane.b32.xlu1 %v16930_v19, %s14612_s26 }
0x12d8   :  { %9966 = vrot.lane.b32.xlu0 %v16932_v13, %s14612_s26 }
0x12db   :  { %9972 = vrot.lane.b32.xlu1 %v16938_v33, %s14612_s26 }
0x12dc   :  { %9970 = vrot.lane.b32.xlu0 %v16940_v32, %s14612_s26 }
0x12df   :  { %9976 = vrot.lane.b32.xlu1 %v16946_v26, %s14612_s26 }
0x12e0   :  { %9974 = vrot.lane.b32.xlu0 %v16949_v28, %s14612_s26 }
0x12e3   :  { %9980 = vrot.lane.b32.xlu1 %v16956_v61, %s14612_s26 }
0x12e4   :  { %9978 = vrot.lane.b32.xlu0 %v16958_v56, %s14612_s26  ;;  %s14665_s26 = smov 126  }
0x12e7   :  { %10386 = vrot.lane.b32.xlu1 %v16930_v19, %s14647_s18 }
0x12e8   :  { %10384 = vrot.lane.b32.xlu0 %v16932_v13, %s14647_s18 }
0x12eb   :  { %10390 = vrot.lane.b32.xlu1 %v16938_v33, %s14647_s18 }
0x12ec   :  { %10388 = vrot.lane.b32.xlu0 %v16940_v32, %s14647_s18 }
0x12ef   :  { %10394 = vrot.lane.b32.xlu1 %v16946_v26, %s14647_s18 }
0x12f0   :  { %10392 = vrot.lane.b32.xlu0 %v16949_v28, %s14647_s18 }
0x12f3   :  { %10398 = vrot.lane.b32.xlu1 %v16956_v61, %s14647_s18 }
0x12f4   :  { %10396 = vrot.lane.b32.xlu0 %v16958_v56, %s14647_s18 }
0x12f7   :  { %10670 = vrot.lane.b32.xlu1 %v16930_v19, %s14665_s26 }
0x12f8   :  { %10668 = vrot.lane.b32.xlu0 %v16932_v13, %s14665_s26 }
0x12fb   :  { %10674 = vrot.lane.b32.xlu1 %v16938_v33, %s14665_s26 }
0x12fc   :  { %10672 = vrot.lane.b32.xlu0 %v16940_v32, %s14665_s26 }
0x12ff   :  { %10678 = vrot.lane.b32.xlu1 %v16946_v26, %s14665_s26 }
0x1300   :  { %10676 = vrot.lane.b32.xlu0 %v16949_v28, %s14665_s26 }
0x1303   :  { %10682 = vrot.lane.b32.xlu1 %v16956_v61, %s14665_s26 }
0x1304   :  { %10680 = vrot.lane.b32.xlu0 %v16958_v56, %s14665_s26 }
0x1307   :  { %10820 = vrot.lane.b32.xlu1 %v16930_v19, %s14661_s2 }
0x1308   :  { %10818 = vrot.lane.b32.xlu0 %v16932_v13, %s14661_s2 }
0x130b   :  { %10824 = vrot.lane.b32.xlu1 %v16938_v33, %s14661_s2 }
0x130c   :  { %10822 = vrot.lane.b32.xlu0 %v16940_v32, %s14661_s2 }
0x130f   :  { %10828 = vrot.lane.b32.xlu1 %v16946_v26, %s14661_s2 }
0x1310   :  { %10826 = vrot.lane.b32.xlu0 %v16949_v28, %s14661_s2 }
0x1313   :  { %10832 = vrot.lane.b32.xlu1 %v16956_v61, %s14661_s2 }
0x1314   :  { %10830 = vrot.lane.b32.xlu0 %v16958_v56, %s14661_s2 }
0x1317   :  { %11078 = vperm.xlu1 %13796, %v11064_v48   ;;  %v13893_v48 = vld [vmem:[%s17199_s25 + $0x38] sm:$0xff]  }
0x1318   :  { %11073 = vperm.xlu0 %13795, %v11063_v24   ;;  %v13894_v24 = vld [vmem:[%s17199_s25] sm:$0xff]  }
0x131b   :  { %11088 = vperm.xlu1 %13796, %v11066_v12  }
0x131c   :  { %11083 = vperm.xlu0 %13795, %v11065_v22  }
0x131f   :  { %11098 = vperm.xlu1 %13796, %v11068_v30  }
0x1320   :  { %11093 = vperm.xlu0 %13795, %v11067_v15  }
0x1323   :  { %11108 = vperm.xlu1 %13796, %v11070_v54  }
0x1324   :  { %11103 = vperm.xlu0 %13795, %v11069_v51   ;;  %v11786_v51 = vld [vmem:[%s17200_s21 + $0x2] ss:$0 sm:$0xff] }
0x1327   :  { %11223 = vperm.xlu1 %13796, %v11209_v21  }
0x1328   :  { %11218 = vperm.xlu0 %13795, %v11208_v10  }
0x1329   :  { %v9729_v60 = vpop.permute.xlu1 %9728 }
0x132a   :  { %v9751_v6 = vmul.f32 %v11760_v40, %v9729_v60  ;;  %v9727_v49 = vpop.permute.xlu0 %9726 }
0x132b   :  { %v9750_v46 = vmul.f32 %v11760_v40, %v9727_v49  ;;  %11233 = vperm.xlu1 %13796, %v11211_v59  }
0x132c   :  { %11228 = vperm.xlu0 %13795, %v11210_v29   ;;  %v13895_v29 = vld [vmem:[%s17199_s25 + $0x8] sm:$0xff]  }
0x132d   :  { %v9758_v27 = vpack.c.bf16 %v9751_v6, %v9750_v46  ;;  %v9733_v34 = vpop.permute.xlu1 %9732  ;;  %v13896_v6 = vld [vmem:[%s17199_s25 + $0x10] sm:$0xff]  }
0x132e   :  { %v9753_v45 = vmul.f32 %v11760_v40, %v9733_v34  ;;  %v9731_v18 = vpop.permute.xlu0 %9730 }
0x132f   :  { %v9752_v41 = vmul.f32 %v11760_v40, %v9731_v18  ;;  %12843 = vmatprep.subr.bf16.mxu0 %v9758_v27  ;;  %11243 = vperm.xlu1 %13796, %v11213_v58  }
0x1330   :  { %12844 = vmatpush3.bf16.msra.mxu0 %v9758_v27  ;;  %11238 = vperm.xlu0 %13795, %v11212_v31  }
0x1331   :  { %v9759_v57 = vpack.c.bf16 %v9753_v45, %v9752_v41  ;;  %v9737_v17 = vpop.permute.xlu1 %9736 }
0x1332   :  { %v9755_v1 = vmul.f32 %v11760_v40, %v9737_v17  ;;  %v9735_v0 = vpop.permute.xlu0 %9734  ;;  %v11804_v17 = vld [vmem:[%s17200_s21 + $0x3] ss:$0 sm:$0xff] }
0x1333   :  { %v9754_v35 = vmul.f32 %v11760_v40, %v9735_v0  ;;  %12845 = vmatprep.subr.bf16.mxu0 %v9759_v57  ;;  %11253 = vperm.xlu1 %13796, %v11215_v43  }
0x1334   :  { %12846 = vmatpush3.bf16.msra.mxu0 %v9759_v57  ;;  %11248 = vperm.xlu0 %13795, %v11214_v42   ;;  %v13897_v57 = vld [vmem:[%s17199_s25 + $0x18] sm:$0xff]   ;;  %v13898_v42 = vld [vmem:[%s17199_s25 + $0x40] sm:$0xff]  }
0x1335   :  { %v9760_v55 = vpack.c.bf16 %v9755_v1, %v9754_v35  ;;  %v9741_v53 = vpop.permute.xlu1 %9740 }
0x1336   :  { %v9757_v63 = vmul.f32 %v11760_v40, %v9741_v53  ;;  %v9739_v44 = vpop.permute.xlu0 %9738 }
0x1337   :  { %v9756_v14 = vmul.f32 %v11760_v40, %v9739_v44  ;;  %12847 = vmatprep.subr.bf16.mxu0 %v9760_v55 }
0x1338   :  { %12848 = vmatpush3.bf16.msra.mxu0 %v9760_v55 }
0x1339   :  { %v9761_v11 = vpack.c.bf16 %v9757_v63, %v9756_v14  ;;  %v9686_v47 = vpop.permute.xlu1 %9685 }
0x133a   :  { %v9707_v2 = vmul.f32 %v11758_v3, %v9686_v47  ;;  %v9684_v25 = vpop.permute.xlu0 %9683 }
0x133b   :  { %v9706_v5 = vmul.f32 %v11758_v3, %v9684_v25  ;;  %12849 = vmatprep.subr.bf16.mxu0 %v9761_v11  ;;  %v13900_v25 = vld [vmem:[%s17199_s25 + $0x50] sm:$0xff]  }
0x133c   :  { %12850 = vmatpush3.bf16.msra.mxu0 %v9761_v11 }
0x133d   :  { %v9714_v20 = vpack.c.bf16 %v9707_v2, %v9706_v5  ;;  %v9690_v4 = vpop.permute.xlu1 %9689  ;;  %v13899_v2 = vld [vmem:[%s17199_s25 + $0x48] sm:$0xff]  }
0x133e   :  { %v9709_v16 = vmul.f32 %v11758_v3, %v9690_v4  ;;  %v9688_v9 = vpop.permute.xlu0 %9687 }
0x133f   :  { %v9708_v8 = vmul.f32 %v11758_v3, %v9688_v9  ;;  %12852 = vmatmul.mubr.msk.bf16.vlgmr.msra.gmra.mrb[132].mxu0 %vm9791_vm0, %v13891_v39  ;;  %12859 = vmatprep.subr.bf16.mxu0 %v9714_v20  ;;  %v13901_v9 = vld [vmem:[%s17199_s25 + $0x58] sm:$0xff]  }
0x1340   :  { %12860 = vmatpush3.bf16.msra.mxu0 %v9714_v20  ;;  %12855 = vmatprep.mubr.msk.bf16.mxu0 %vm9791_vm0, %v13892_v36 }
0x1341   :  { %v9715_v23 = vpack.c.bf16 %v9709_v16, %v9708_v8  ;;  %v9694_v7 = vpop.permute.xlu1 %9693  ;;  %v11822_v8 = vld [vmem:[%s17200_s21 + $0x4] ss:$0 sm:$0xff] }
0x1342   :  { %v9711_v52 = vmul.f32 %v11758_v3, %v9694_v7  ;;  %v9692_v50 = vpop.permute.xlu0 %9691 }
0x1343   :  { %v9710_v37 = vmul.f32 %v11758_v3, %v9692_v50  ;;  %12861 = vmatprep.subr.bf16.mxu0 %v9715_v23  ;;  %v10259_v50 = vmul.f32 %v11822_v8, %v16930_v19 }
0x1344   :  { %12862 = vmatpush3.bf16.msra.mxu0 %v9715_v23  ;;  %v13902_v23 = vld [vmem:[%s17199_s25 + $0x60] sm:$0xff]  }
0x1345   :  { %v9716_v12 = vpack.c.bf16 %v9711_v52, %v9710_v37  ;;  %v9698_v22 = vpop.permute.xlu1 %9697  ;;  %v10258_v52 = vmul.f32 %v11822_v8, %v16932_v13  ;;  %v10262_v13 = vmul.f32 %v11822_v8, %v16949_v28 }
0x1346   :  { %v9713_v30 = vmul.f32 %v11758_v3, %v9698_v22  ;;  %v9696_v15 = vpop.permute.xlu0 %9695  ;;  %v13904_v22 = vld [vmem:[%s17199_s25 + $0x70] sm:$0xff]  }
0x1347   :  { %v9712_v54 = vmul.f32 %v11758_v3, %v9696_v15  ;;  %12856 = vmatmul.mubr.msk.bf16.gmra.mrb[136].mxu0 %vm9791_vm0, %v13893_v48  ;;  %12863 = vmatprep.subr.bf16.mxu0 %v9716_v12  ;;  %v10266_v37 = vpack.c.bf16 %v10259_v50, %v10258_v52  ;;  %v13903_v48 = vld [vmem:[%s17199_s25 + $0x68] sm:$0xff]   ;;  %v11876_v52 = vld [vmem:[%s17200_s21 + $0x7] ss:$0 sm:$0xff] }
0x1348   :  { %12864 = vmatpush3.bf16.msra.mxu0 %v9716_v12  ;;  %12867 = vmatprep.mubr.msk.bf16.mxu0 %vm9791_vm0, %v13894_v24  ;;  %v10260_v24 = vmul.f32 %v11822_v8, %v16940_v32  ;;  %v10261_v12 = vmul.f32 %v11822_v8, %v16938_v33  ;;  %v13905_v33 = vld [vmem:[%s17199_s25 + $0x78] sm:$0xff]   ;;  %v13914_v50 = vld [vmem:[%s17199_s25 + $0xc0] sm:$0xff]  }
0x1349   :  { %v9717_v21 = vpack.c.bf16 %v9713_v30, %v9712_v54  ;;  %v9969_v10 = vpop.permute.xlu1 %9968  ;;  %v10263_v54 = vmul.f32 %v11822_v8, %v16946_v26 }
0x134a   :  { %v9991_v40 = vmul.f32 %v11786_v51, %v9969_v10  ;;  %v9967_v59 = vpop.permute.xlu0 %9966  ;;  %v10125_v53 = vmul.f32 %v11804_v17, %v9969_v10  ;;  %v10267_v19 = vpack.c.bf16 %v10261_v12, %v10260_v24  ;;  %v11840_v10 = vld [vmem:[%s17200_s21 + $0x5] ss:$0 sm:$0xff] }
0x134b   :  { %v9990_v60 = vmul.f32 %v11786_v51, %v9967_v59  ;;  %12865 = vmatprep.subr.bf16.mxu0 %v9717_v21  ;;  %v10124_v63 = vmul.f32 %v11804_v17, %v9967_v59  ;;  %v10268_v32 = vpack.c.bf16 %v10263_v54, %v10262_v13  ;;  %v13915_v13 = vld [vmem:[%s17199_s25 + $0xc8] sm:$0xff]   ;;  %v13916_v54 = vld [vmem:[%s17199_s25 + $0xd0] sm:$0xff]  }
0x134c   :  { %12866 = vmatpush3.bf16.msra.mxu0 %v9717_v21  ;;  %v10265_v21 = vmul.f32 %v11822_v8, %v16956_v61 }
0x134d   :  { %v9998_v49 = vpack.c.bf16 %v9991_v40, %v9990_v60  ;;  %v9973_v46 = vpop.permute.xlu1 %9972  ;;  %v10132_v3 = vpack.c.bf16 %v10125_v53, %v10124_v63  ;;  %v13906_v60 = vld [vmem:[%s17199_s25 + $0x80] sm:$0xff]  }
0x134e   :  { %v9993_v58 = vmul.f32 %v11786_v51, %v9973_v46  ;;  %v9971_v27 = vpop.permute.xlu0 %9970  ;;  %v10127_v11 = vmul.f32 %v11804_v17, %v9973_v46 }
0x134f   :  { %v9992_v34 = vmul.f32 %v11786_v51, %v9971_v27  ;;  %12868 = vmatmul.mubr.msk.bf16.vlgmr.msra.gmra.mrb[132].mxu0 %vm9791_vm0, %v13895_v29  ;;  %12875 = vmatprep.subr.bf16.mxu0 %v9998_v49  ;;  %v10126_v47 = vmul.f32 %v11804_v17, %v9971_v27  ;;  %v13908_v27 = vld [vmem:[%s17199_s25 + $0x90] sm:$0xff]  }
0x1350   :  { %12876 = vmatpush3.bf16.msra.mxu0 %v9998_v49  ;;  %12871 = vmatprep.mubr.msk.bf16.mxu0 %vm9791_vm0, %v13896_v6 }
0x1351   :  { %v9999_v31 = vpack.c.bf16 %v9993_v58, %v9992_v34  ;;  %v9977_v45 = vpop.permute.xlu1 %9976  ;;  %v10133_v5 = vpack.c.bf16 %v10127_v11, %v10126_v47  ;;  %v13907_v58 = vld [vmem:[%s17199_s25 + $0x88] sm:$0xff]  }
0x1352   :  { %v9995_v18 = vmul.f32 %v11786_v51, %v9977_v45  ;;  %v9975_v41 = vpop.permute.xlu0 %9974  ;;  %v10129_v39 = vmul.f32 %v11804_v17, %v9977_v45  ;;  %v13911_v47 = vld [vmem:[%s17199_s25 + $0xa8] sm:$0xff]  }
0x1353   :  { %v9994_v43 = vmul.f32 %v11786_v51, %v9975_v41  ;;  %12877 = vmatprep.subr.bf16.mxu0 %v9999_v31  ;;  %v10128_v36 = vmul.f32 %v11804_v17, %v9975_v41 }
0x1354   :  { %12878 = vmatpush3.bf16.msra.mxu0 %v9999_v31 }
0x1355   :  { %v10000_v1 = vpack.c.bf16 %v9995_v18, %v9994_v43  ;;  %v9981_v0 = vpop.permute.xlu1 %9980  ;;  %v10134_v20 = vpack.c.bf16 %v10129_v39, %v10128_v36 }
0x1356   :  { %v9997_v35 = vmul.f32 %v11786_v51, %v9981_v0  ;;  %v9979_v55 = vpop.permute.xlu0 %9978  ;;  %v10131_v4 = vmul.f32 %v11804_v17, %v9981_v0  ;;  %v13910_v0 = vld [vmem:[%s17199_s25 + $0xa0] sm:$0xff]  }
0x1357   :  { %v9996_v44 = vmul.f32 %v11786_v51, %v9979_v55  ;;  %12872 = vmatmul.mubr.msk.bf16.gmra.mrb[136].mxu0 %vm9791_vm0, %v13897_v57  ;;  %12879 = vmatprep.subr.bf16.mxu0 %v10000_v1  ;;  %v10130_v16 = vmul.f32 %v11804_v17, %v9979_v55  ;;  %v10264_v51 = vmul.f32 %v11822_v8, %v16958_v56 }
0x1358   :  { %12880 = vmatpush3.bf16.msra.mxu0 %v10000_v1  ;;  %12883 = vmatprep.mubr.msk.bf16.mxu0 %vm9791_vm0, %v13898_v42  ;;  %v13909_v42 = vld [vmem:[%s17199_s25 + $0x98] sm:$0xff]   ;;  %v11858_v1 = vld [vmem:[%s17200_s21 + $0x6] ss:$0 sm:$0xff] }
0x1359   :  { %v10001_v14 = vpack.c.bf16 %v9997_v35, %v9996_v44  ;;  %v10135_v7 = vpack.c.bf16 %v10131_v4, %v10130_v16  ;;  %v10387_v30 = vpop.permute.xlu1 %10386  ;;  %v10269_v29 = vpack.c.bf16 %v10265_v21, %v10264_v51 }
0x135a   :  { %v10385_v15 = vpop.permute.xlu0 %10384  ;;  %v10409_v28 = vmul.f32 %v11840_v10, %v10387_v30  ;;  %v10543_v53 = vmul.f32 %v11858_v1, %v10387_v30 }
0x135b   :  { %12881 = vmatprep.subr.bf16.mxu0 %v10001_v14  ;;  %v10408_v26 = vmul.f32 %v11840_v10, %v10385_v15  ;;  %v10542_v63 = vmul.f32 %v11858_v1, %v10385_v15 }
0x135c   :  { %12882 = vmatpush3.bf16.msra.mxu0 %v10001_v14 }
0x135d   :  { %12891 = vmatprep.subr.bf16.mxu0 %v10132_v3  ;;  %v10391_v40 = vpop.permute.xlu1 %10390  ;;  %v10416_v61 = vpack.c.bf16 %v10409_v28, %v10408_v26  ;;  %v10550_v14 = vpack.c.bf16 %v10543_v53, %v10542_v63  ;;  %v13917_v28 = vld [vmem:[%s17199_s25 + $0xd8] sm:$0xff]   ;;  %v11894_v26 = vld [vmem:[%s17200_s21 + $0x8] ss:$0 sm:$0xff]  ;;  %v13922_v63 = vld [vmem:[%s17199_s25 + $0x100] sm:$0xff]  }
0x135e   :  { %v10389_v59 = vpop.permute.xlu0 %10388  ;;  %v10411_v49 = vmul.f32 %v11840_v10, %v10391_v40  ;;  %v13921_v53 = vld [vmem:[%s17199_s25 + $0xf8] sm:$0xff]  }
0x135f   :  { %12884 = vmatmul.mubr.msk.bf16.vlgmr.msra.gmra.mrb[132].mxu0 %vm9791_vm0, %v13899_v2  ;;  %v10410_v46 = vmul.f32 %v11840_v10, %v10389_v59  ;;  %v10544_v11 = vmul.f32 %v11858_v1, %v10389_v59 }
0x1360   :  { %12892 = vmatpush3.bf16.msra.mxu0 %v10132_v3  ;;  %12887 = vmatprep.mubr.msk.bf16.mxu0 %vm9791_vm0, %v13900_v25  ;;  %v10545_v3 = vmul.f32 %v11858_v1, %v10391_v40 }
0x1361   :  { %12893 = vmatprep.subr.bf16.mxu0 %v10133_v5  ;;  %v10395_v56 = vpop.permute.xlu1 %10394  ;;  %v10417_v34 = vpack.c.bf16 %v10411_v49, %v10410_v46 }
0x1362   :  { %v10393_v6 = vpop.permute.xlu0 %10392  ;;  %v10413_v31 = vmul.f32 %v11840_v10, %v10395_v56  ;;  %v10551_v39 = vpack.c.bf16 %v10545_v3, %v10544_v11  ;;  %v10547_v36 = vmul.f32 %v11858_v1, %v10395_v56  ;;  %v13924_v3 = vld [vmem:[%s17199_s25 + $0x110] sm:$0xff]   ;;  %v13925_v11 = vld [vmem:[%s17199_s25 + $0x118] sm:$0xff]  }
0x1363   :  { %v10412_v45 = vmul.f32 %v11840_v10, %v10393_v6 }
0x1364   :  { %12894 = vmatpush3.bf16.msra.mxu0 %v10133_v5  ;;  %v13912_v5 = vld [vmem:[%s17199_s25 + $0xb0] sm:$0xff]  }
0x1365   :  { %12895 = vmatprep.subr.bf16.mxu0 %v10134_v20  ;;  %v10399_v18 = vpop.permute.xlu1 %10398  ;;  %v10418_v43 = vpack.c.bf16 %v10413_v31, %v10412_v45 }
0x1366   :  { %v10397_v41 = vpop.permute.xlu0 %10396  ;;  %v10415_v57 = vmul.f32 %v11840_v10, %v10399_v18  ;;  %v10549_v8 = vmul.f32 %v11858_v1, %v10399_v18  ;;  %v13919_v18 = vld [vmem:[%s17199_s25 + $0xe8] sm:$0xff]  }
0x1367   :  { %12888 = vmatmul.mubr.msk.bf16.gmra.mrb[136].mxu0 %vm9791_vm0, %v13901_v9  ;;  %v10414_v17 = vmul.f32 %v11840_v10, %v10397_v41 }
0x1368   :  { %12896 = vmatpush3.bf16.msra.mxu0 %v10134_v20  ;;  %12899 = vmatprep.mubr.msk.bf16.mxu0 %vm9791_vm0, %v13902_v23  ;;  %v10546_v20 = vmul.f32 %v11858_v1, %v10393_v6  ;;  %v10548_v23 = vmul.f32 %v11858_v1, %v10397_v41  ;;  %v13918_v6 = vld [vmem:[%s17199_s25 + $0xe0] sm:$0xff]   ;;  %v13920_v41 = vld [vmem:[%s17199_s25 + $0xf0] sm:$0xff]  }
0x1369   :  { %12897 = vmatprep.subr.bf16.mxu0 %v10135_v7  ;;  %v10671_v35 = vpop.permute.xlu1 %10670  ;;  %v10419_v44 = vpack.c.bf16 %v10415_v57, %v10414_v17 }
0x136a   :  { %v10669_v55 = vpop.permute.xlu0 %10668  ;;  %v10552_v9 = vpack.c.bf16 %v10547_v36, %v10546_v20 }
0x136b   :  { %v10692_v24 = vmul.f32 %v11876_v52, %v10669_v55 }
0x136c   :  { %12898 = vmatpush3.bf16.msra.mxu0 %v10135_v7  ;;  %v13913_v7 = vld [vmem:[%s17199_s25 + $0xb8] sm:$0xff]  }
0x136d   :  { %12907 = vmatprep.subr.bf16.mxu0 %v10266_v37  ;;  %v10675_v2 = vpop.permute.xlu1 %10674 }
0x136e   :  { %v10673_v25 = vpop.permute.xlu0 %10672  ;;  %v10695_v15 = vmul.f32 %v11876_v52, %v10675_v2  ;;  %v13927_v2 = vld [vmem:[#allocation42 + $0x8] sm:$0xff]  }
0x136f   :  { %12900 = vmatmul.mubr.msk.bf16.vlgmr.msra.gmra.mrb[132].mxu0 %vm9791_vm0, %v13903_v48  ;;  %v10693_v48 = vmul.f32 %v11876_v52, %v10671_v35 }
0x1370   :  { %12908 = vmatpush3.bf16.msra.mxu0 %v10266_v37  ;;  %12903 = vmatprep.mubr.msk.bf16.mxu0 %vm9791_vm0, %v13904_v22  ;;  %v10553_v37 = vpack.c.bf16 %v10549_v8, %v10548_v23 }
0x1371   :  { %12909 = vmatprep.subr.bf16.mxu0 %v10267_v19  ;;  %v10679_v4 = vpop.permute.xlu1 %10678  ;;  %v10700_v30 = vpack.c.bf16 %v10693_v48, %v10692_v24 }
0x1372   :  { %v10677_v16 = vpop.permute.xlu0 %10676  ;;  %v10697_v21 = vmul.f32 %v11876_v52, %v10679_v4 }
0x1373   :  { %v10696_v10 = vmul.f32 %v11876_v52, %v10677_v16 }
0x1374   :  { %12910 = vmatpush3.bf16.msra.mxu0 %v10267_v19  ;;  %v10694_v19 = vmul.f32 %v11876_v52, %v10673_v25  ;;  %v13928_v25 = vld [vmem:[#allocation42 + $0x10] sm:$0xff]  }
0x1375   :  { %12911 = vmatprep.subr.bf16.mxu0 %v10268_v32  ;;  %v10683_v12 = vpop.permute.xlu1 %10682  ;;  %v10702_v40 = vpack.c.bf16 %v10697_v21, %v10696_v10 }
0x1376   :  { %v10681_v22 = vpop.permute.xlu0 %10680  ;;  %v10701_v51 = vpack.c.bf16 %v10695_v15, %v10694_v19  ;;  %v10699_v59 = vmul.f32 %v11876_v52, %v10683_v12 }
0x1377   :  { %12904 = vmatmul.mubr.msk.bf16.gmra.mrb[136].mxu0 %vm9791_vm0, %v13905_v33 }
0x1378   :  { %12912 = vmatpush3.bf16.msra.mxu0 %v10268_v32  ;;  %12915 = vmatprep.mubr.msk.bf16.mxu0 %vm9791_vm0, %v13906_v60  ;;  %v10698_v60 = vmul.f32 %v11876_v52, %v10681_v22 }
0x1379   :  { %12913 = vmatprep.subr.bf16.mxu0 %v10269_v29  ;;  %v10821_v32 = vpop.permute.xlu1 %10820 }
0x137a   :  { %v10819_v33 = vpop.permute.xlu0 %10818  ;;  %v10843_v49 = vmul.f32 %v11894_v26, %v10821_v32 }
0x137b   :  { %v10842_v46 = vmul.f32 %v11894_v26, %v10819_v33 }
0x137c   :  { %12914 = vmatpush3.bf16.msra.mxu0 %v10269_v29 }
0x137d   :  { %12923 = vmatprep.subr.bf16.mxu0 %v10416_v61  ;;  %v10825_v29 = vpop.permute.xlu1 %10824 }
0x137e   :  { %v10823_v56 = vpop.permute.xlu0 %10822  ;;  %v10845_v31 = vmul.f32 %v11894_v26, %v10825_v29 }
0x137f   :  { %12916 = vmatmul.mubr.msk.bf16.vlgmr.msra.gmra.mrb[132].mxu0 %vm9791_vm0, %v13907_v58  ;;  %v10844_v45 = vmul.f32 %v11894_v26, %v10823_v56 }
0x1380   :  { %12924 = vmatpush3.bf16.msra.mxu0 %v10416_v61  ;;  %12919 = vmatprep.mubr.msk.bf16.mxu0 %vm9791_vm0, %v13908_v27  ;;  %v10703_v61 = vpack.c.bf16 %v10699_v59, %v10698_v60 }
0x1381   :  { %12925 = vmatprep.subr.bf16.mxu0 %v10417_v34  ;;  %v10829_v58 = vpop.permute.xlu1 %10828 }
0x1382   :  { %v10827_v27 = vpop.permute.xlu0 %10826  ;;  %v10847_v57 = vmul.f32 %v11894_v26, %v10829_v58 }
0x1383   :  { %v10846_v17 = vmul.f32 %v11894_v26, %v10827_v27 }
0x1384   :  { %12926 = vmatpush3.bf16.msra.mxu0 %v10417_v34  ;;  %v10850_v34 = vpack.c.bf16 %v10843_v49, %v10842_v46 }
0x1385   :  { %12927 = vmatprep.subr.bf16.mxu0 %v10418_v43 }
0x1386   :  { %v10831_v1 = vpop.permute.xlu0 %10830 }
0x1387   :  { %12920 = vmatmul.mubr.msk.bf16.gmra.mrb[136].mxu0 %vm9791_vm0, %v13909_v42  ;;  %v10833_v42 = vpop.permute.xlu1 %10832  ;;  %v10848_v55 = vmul.f32 %v11894_v26, %v10831_v1 }
0x1388   :  { %12928 = vmatpush3.bf16.msra.mxu0 %v10418_v43  ;;  %12931 = vmatprep.mubr.msk.bf16.mxu0 %vm9791_vm0, %v13910_v0  ;;  %v10851_v43 = vpack.c.bf16 %v10845_v31, %v10844_v45  ;;  %v10852_v0 = vpack.c.bf16 %v10847_v57, %v10846_v17  ;;  %v10849_v35 = vmul.f32 %v11894_v26, %v10833_v42 }
0x1389   :  { %12929 = vmatprep.subr.bf16.mxu0 %v10419_v44 }
0x138c   :  { %12930 = vmatpush3.bf16.msra.mxu0 %v10419_v44  ;;  %v10853_v44 = vpack.c.bf16 %v10849_v35, %v10848_v55 }
0x138d   :  { %12939 = vmatprep.subr.bf16.mxu0 %v10550_v14 }
0x138f   :  { %12932 = vmatmul.mubr.msk.bf16.vlgmr.msra.gmra.mrb[132].mxu0 %vm9791_vm0, %v13911_v47  ;;  %v13926_v47 = vld [vmem:[#allocation42] sm:$0xff]  }
0x1390   :  { %12940 = vmatpush3.bf16.msra.mxu0 %v10550_v14  ;;  %12935 = vmatprep.mubr.msk.bf16.mxu0 %vm9791_vm0, %v13912_v5  ;;  %v13923_v14 = vld [vmem:[%s17199_s25 + $0x108] sm:$0xff]   ;;  %v13929_v5 = vld [vmem:[#allocation42 + $0x18] sm:$0xff]  }
0x1391   :  { %12941 = vmatprep.subr.bf16.mxu0 %v10551_v39 }
0x1394   :  { %12942 = vmatpush3.bf16.msra.mxu0 %v10551_v39 }
0x1395   :  { %12943 = vmatprep.subr.bf16.mxu0 %v10552_v9 }
0x1396   :  { %v11079_v39 = vpop.permute.xlu1 %11078 }
0x1397   :  { %12936 = vmatmul.mubr.msk.bf16.gmra.mrb[136].mxu0 %vm9791_vm0, %v13913_v7 }
0x1398   :  { %12944 = vmatpush3.bf16.msra.mxu0 %v10552_v9  ;;  %12947 = vmatprep.mubr.msk.bf16.mxu0 %vm9791_vm0, %v13914_v50 }
0x1399   :  { %12945 = vmatprep.subr.bf16.mxu0 %v10553_v37 }
0x139a   :  { %v11089_v20 = vpop.permute.xlu1 %11088 }
0x139c   :  { %12946 = vmatpush3.bf16.msra.mxu0 %v10553_v37 }
0x139d   :  { %12955 = vmatprep.subr.bf16.mxu0 %v10700_v30 }
0x139f   :  { %12948 = vmatmul.mubr.msk.bf16.vlgmr.msra.gmra.mrb[132].mxu0 %vm9791_vm0, %v13915_v13 }
0x13a0   :  { %12956 = vmatpush3.bf16.msra.mxu0 %v10700_v30  ;;  %12951 = vmatprep.mubr.msk.bf16.mxu0 %vm9791_vm0, %v13916_v54 }
0x13a1   :  { %12957 = vmatprep.subr.bf16.mxu0 %v10701_v51 }
0x13a4   :  { %12958 = vmatpush3.bf16.msra.mxu0 %v10701_v51 }
0x13a5   :  { %12959 = vmatprep.subr.bf16.mxu0 %v10702_v40 }
0x13a7   :  { %12952 = vmatmul.mubr.msk.bf16.gmra.mrb[136].mxu0 %vm9791_vm0, %v13917_v28 }
0x13a8   :  { %12960 = vmatpush3.bf16.msra.mxu0 %v10702_v40  ;;  %12963 = vmatprep.mubr.msk.bf16.mxu0 %vm9791_vm0, %v13918_v6 }
0x13a9   :  { %12961 = vmatprep.subr.bf16.mxu0 %v10703_v61 }
0x13ac   :  { %12962 = vmatpush3.bf16.msra.mxu0 %v10703_v61 }
0x13ad   :  { %12971 = vmatprep.subr.bf16.mxu0 %v10850_v34 }
0x13af   :  { %12964 = vmatmul.mubr.msk.bf16.vlgmr.msra.gmra.mrb[132].mxu0 %vm9791_vm0, %v13919_v18 }
0x13b0   :  { %12972 = vmatpush3.bf16.msra.mxu0 %v10850_v34  ;;  %12967 = vmatprep.mubr.msk.bf16.mxu0 %vm9791_vm0, %v13920_v41 }
0x13b1   :  { %12973 = vmatprep.subr.bf16.mxu0 %v10851_v43 }
0x13b4   :  { %12974 = vmatpush3.bf16.msra.mxu0 %v10851_v43 }
0x13b5   :  { %12975 = vmatprep.subr.bf16.mxu0 %v10852_v0 }
0x13b7   :  { %12968 = vmatmul.mubr.msk.bf16.gmra.mrb[136].mxu0 %vm9791_vm0, %v13921_v53 }
0x13b8   :  { %12976 = vmatpush3.bf16.msra.mxu0 %v10852_v0  ;;  %12979 = vmatprep.mubr.msk.bf16.mxu0 %vm9791_vm0, %v13922_v63 }
0x13b9   :  { %12977 = vmatprep.subr.bf16.mxu0 %v10853_v44 }
0x13bc   :  { %12978 = vmatpush3.bf16.msra.mxu0 %v10853_v44 }
0x13bd   :  { %13025 = vmatprep.subr.bf16.mxu0 %v16926_v38 }
0x13bf   :  { %12980 = vmatmul.mubr.msk.bf16.vlgmr.msra.gmra.mrb[132].mxu0 %vm9791_vm0, %v13923_v14 }
0x13c0   :  { %13026 = vmatpush3.bf16.msra.mxu0 %v16926_v38  ;;  %12983 = vmatprep.mubr.msk.bf16.mxu0 %vm9791_vm0, %v13924_v3  ;;  %v11074_v38 = vpop.permute.xlu0 %11073 }
0x13c1   :  { %13027 = vmatprep.subr.bf16.mxu0 %v16928_v62 }
0x13c4   :  { %13028 = vmatpush3.bf16.msra.mxu0 %v16928_v62  ;;  %v11084_v36 = vpop.permute.xlu0 %11083  ;;  %v11099_v62 = vpop.permute.xlu1 %11098 }
0x13c7   :  { %12984 = vmatmul.mubr.msk.bf16.gmra.mrb[136].mxu0 %vm9791_vm0, %v13925_v11 }
0x13c8   :  { %13029 = vmatprep.mubr.msk.bf16.mxu0 %vm7306_vm15, %v13926_v47  ;;  %v11094_v4 = vpop.permute.xlu0 %11093  ;;  %v11109_v9 = vpop.permute.xlu1 %11108 }
0x13cc   :  { %v11104_v16 = vpop.permute.xlu0 %11103  ;;  %v11224_v23 = vpop.permute.xlu1 %11223 }
0x13cf   :  { %13030 = vmatmul.mubr.msk.bf16.vlgmr.msra.gmra.mrb[132].mxu0 %vm7306_vm15, %v13927_v2 }
0x13d0   :  { %13033 = vmatprep.mubr.msk.bf16.mxu0 %vm7306_vm15, %v13928_v25  ;;  %v11219_v8 = vpop.permute.xlu0 %11218  ;;  %v11234_v52 = vpop.permute.xlu1 %11233 }
0x13d4   :  { %v11229_v7 = vpop.permute.xlu0 %11228  ;;  %v11244_v33 = vpop.permute.xlu1 %11243 }
0x13d7   :  { %13034 = vmatmul.mubr.msk.bf16.gmra.mrb[136].mxu0 %vm7306_vm15, %v13929_v5 }
0x13d8   :  { %v11239_v19 = vpop.permute.xlu0 %11238  ;;  %v11254_v34 = vpop.permute.xlu1 %11253 }
0x13dc   :  { %v11249_v56 = vpop.permute.xlu0 %11248 }
0x14a2   :  { %v13031_v50 = vpop.f32.mrb[132].mxu0 }
0x14a3   :  { %v11186_v37 = vadd.f32 %v13031_v50, %v11084_v36  ;;  %v11177_v48 = vpop.f32.mrb[133].mxu0 }
0x14a4   :  { %v11178_v24 = vadd.f32 %v11177_v48, %v11074_v38  ;;  %v13032_v12 = vpop.f32.mrb[134].mxu0 }
0x14a5   :  { %v13306_v22 = vadd.f32 %v11229_v7, %v11186_v37  ;;  %v11189_v30 = vadd.f32 %v13032_v12, %v11089_v20  ;;  %v11180_v15 = vpop.f32.mrb[135].mxu0 }
0x14a6   :  { %v13308_v13 = vadd.f32 %v11219_v8, %v11178_v24  ;;  %v11181_v54 = vadd.f32 %v11180_v15, %v11079_v39 }
0x14a7   :  { %v13310_v32 = vadd.f32 %v11234_v52, %v11189_v30  ;;  %v11274_v21 = vmax.f32 %v13306_v22, 0.0 }
0x14a8   :  { %v13312_v51 = vadd.f32 %v11224_v23, %v11181_v54  ;;  %v11272_v40 = vmax.f32 %v13308_v13, 0.0 }
0x14a9   :  { %v11275_v10 = vmax.f32 %v13310_v32, 0.0 }
0x14aa   :  { %v11273_v59 = vmax.f32 %v13312_v51, 0.0  ;;  %v13035_v60 = vpop.f32.mrb[136].mxu0 }
0x14ab   :  { %v11964_v28 = vpack.c.bf16 %v11275_v10, %v11274_v21  ;;  %v11202_v26 = vadd.f32 %v13035_v60, %v11104_v16  ;;  %v11193_v29 = vpop.f32.mrb[137].mxu0 }
0x14ac   :  { %v11959_v6 = vpack.c.bf16 %v11273_v59, %v11272_v40  ;;  %v11194_v61 = vadd.f32 %v11193_v29, %v11094_v4  ;;  %v13036_v49 = vpop.f32.mrb[138].mxu0 }
0x14ad   :  { %11977 = vst [vmem:[%s14834_s8 + $0x8] sm:$0xff] %v11964_v28   ;;  %v13314_v46 = vadd.f32 %v11249_v56, %v11202_v26  ;;  %v11205_v58 = vadd.f32 %v13036_v49, %v11109_v9  ;;  %v11196_v27 = vpop.f32.mrb[139].mxu0 }
0x14ae   :  { %11960 = vst [vmem:[%s14834_s8] sm:$0xff] %v11959_v6   ;;  %v13316_v31 = vadd.f32 %v11239_v19, %v11194_v61  ;;  %v11197_v45 = vadd.f32 %v11196_v27, %v11099_v62 }
0x14af   :  { %v13318_v18 = vadd.f32 %v11254_v34, %v11205_v58  ;;  %v11278_v43 = vmax.f32 %v13314_v46, 0.0 }
0x14b0   :  { %v13320_v41 = vadd.f32 %v11244_v33, %v11197_v45  ;;  %v11276_v17 = vmax.f32 %v13316_v31, 0.0 }
0x14b1   :  { %v11279_v57 = vmax.f32 %v13318_v18, 0.0 }
0x14b2   :  { %v11277_v42 = vmax.f32 %v13320_v41, 0.0 }
0x14b3   :  { %v11974_v1 = vpack.c.bf16 %v11279_v57, %v11278_v43 }
0x14b4   :  { %v11969_v0 = vpack.c.bf16 %v11277_v42, %v11276_v17 }
0x14b5   :  { %11979 = vst [vmem:[%s14834_s8 + $0x18] sm:$0xff] %v11974_v1  }
0x14b6   :  { %11978 = vst [vmem:[%s14834_s8 + $0x10] sm:$0xff] %v11969_v0  }
0x14b7   :  { %11332 = vsyncpa [#allocation3], 1 }
0x14b8   :  { %11333 = vsyncpa [#allocation5], 1 }
0x14b9   :  { %11334 = vsyncpa [#allocation8], 1 }
0x14ba   :  { %11335 = vsyncpa [#allocation11], 1 }
0x14bb   :  { %11336 = vsyncpa [#allocation14], 1 }
0x14bc   :  { %11337 = vsyncpa [#allocation17], 1 }
0x14bd   :  { %11338 = vsyncpa [#allocation20], 1 }
0x14be   :  { %11339 = vsyncpa [#allocation23], 1 }
0x14bf   :  { %11340 = vsyncpa [#allocation26], 1 }
0x14c0   :  { %11341 = vsyncpa [#allocation29], 1 }
0x14c1   :  { %11342 = vsyncpa [#allocation32], 1 }
0x14c2   :  { %11343 = vsyncpa [#allocation35], 1 }
0x14c3   :  { %11344 = vsyncpa [#allocation38], 1 }
0x14c4   :  { %11345 = vsyncpa [#allocation41], 1 }
0x14c5   :  { %11346 = vsyncpa [#allocation44], 1 }

</bundles_post_ra>
